<compile_context>
chip_gen: v5e
topology: v5e:2x2
jax: 0.10.0
libtpu: 0.0.40
codegen_flags: <defaults>
</compile_context>

<pallas_src>
import functools

import jax
import jax.numpy as jnp
from jax.experimental import pallas as pl
from jax.experimental.pallas import tpu as pltpu


_INV_SQRT2 = 0.7071067811865476


def _gelu_exact(x):
    # matches torch.nn.GELU() default (erf formulation); computed in f32.
    return 0.5 * x * (1.0 + jax.lax.erf(x * jnp.float32(_INV_SQRT2)))


# --------------------------------------------------------------------------------------
# one-time probe of pltpu.roll's rotation direction (used for the +-1 column shifts).
# --------------------------------------------------------------------------------------
_ROLL_MODE = None   # "np" | "rev" | "concat"


def _roll_probe_kernel(x_ref, o1_ref, o2_ref):
    n = x_ref.shape[0]
    o1_ref[...] = pltpu.roll(x_ref[...], 1, axis=0)
    o2_ref[...] = pltpu.roll(x_ref[...], n - 1, axis=0)


def _detect_roll_mode():
    n, m = 256, 128
    x = jnp.broadcast_to(jnp.arange(n, dtype=jnp.float32)[:, None], (n, m))
    try:
        o1, o2 = pl.pallas_call(
            _roll_probe_kernel,
            out_shape=(jax.ShapeDtypeStruct((n, m), jnp.float32),
                       jax.ShapeDtypeStruct((n, m), jnp.float32)),
        )(x)
        o1 = jax.device_get(o1)
        o2 = jax.device_get(o2)
        if o1[1, 0] == 0.0 and o2[0, 0] == 1.0:
            return "np"       # roll(x, s)[r] == x[r - s]  (numpy semantics)
        if o1[1, 0] == 2.0 and o2[0, 0] == float(n - 1):
            return "rev"      # roll(x, s)[r] == x[r + s]
    except Exception:
        pass
    return "concat"           # roll unavailable -> concatenate-based shift


def _roll_mode():
    global _ROLL_MODE
    if _ROLL_MODE is None:
        _ROLL_MODE = _detect_roll_mode()
    return _ROLL_MODE


def _shift_rows(a, delta, roll_mode):
    """s with s[r] == a[r + delta] for in-range rows (delta in {-1, +1}).

    Rows that would read out of range contain wrapped data; the caller masks them."""
    n = a.shape[0]
    if roll_mode == "np":
        return pltpu.roll(a, (-delta) % n, axis=0)
    if roll_mode == "rev":
        return pltpu.roll(a, delta % n, axis=0)
    # fallback: explicit zero-filled shift via concatenate (mask then redundant)
    z = jnp.zeros((1, a.shape[1]), a.dtype)
    if delta == -1:
        return jnp.concatenate([z, a[: n - 1, :]], axis=0)
    return jnp.concatenate([a[1:, :], z], axis=0)


# --------------------------- fused Mlp_ir kernel: one step = bt_tile images ---------------------------
def _mlp_ir_kernel(x_ref, w1_ref, b1_ref, k_ref, bconv_ref, w3_ref, b3_ref,
                   o_ref, hpad_ref, *, roll_mode):
    # x_ref:     (bt, H, W, Cin)        input tile (channels-last)
    # w1_ref:    (Cin, Hf)  bf16        b1_ref:   (1, Hf)  f32
    # k_ref:     (9, Hf)    f32         depthwise 3x3 taps, row-major (dh*3 + dw)
    # bconv_ref: (1, Hf)    f32
    # w3_ref:    (Hf, Cout) bf16        b3_ref:   (1, Cout) f32
    # o_ref:     (bt, H, W, Cout)
    # hpad_ref:  (bt, H+2, W, Hf) f32   scratch, zero halo along H only
    bt, H, W, C = x_ref.shape
    Hf = w1_ref.shape[1]
    Cout = w3_ref.shape[1]
    N = bt * H * W

    # ---- fc1 + GELU: bf16 operands on the MXU, f32 accumulation ----
    x2d = x_ref[...].reshape(N, C).astype(jnp.bfloat16)
    h = jnp.dot(x2d, w1_ref[...], preferred_element_type=jnp.float32)
    h = _gelu_exact(h + b1_ref[...])

    # ---- hidden -> H-haloed scratch; clear only the two halo rows each step ----
    zrow = jnp.zeros((bt, 1, W, Hf), jnp.float32)
    hpad_ref[:, 0:1, :, :] = zrow
    hpad_ref[:, H + 1:H + 2, :, :] = zrow
    hpad_ref[:, 1:1 + H, :, :] = h.reshape(bt, H, W, Hf)

    # ---- depthwise 3x3: sum the 3 H-taps per column offset, taps read straight
    #      from the scratch ref (free slices along the untiled H axis) ----
    k = k_ref[...]                                   # (9, Hf)
    a_l = a_c = a_r = resid = None
    for dh in range(3):
        slab = hpad_ref[:, dh:dh + H, :, :].reshape(N, Hf)
        if dh == 1:
            resid = slab                             # == h, reused for the residual
        tl = slab * k[3 * dh + 0:3 * dh + 1, :]
        tc = slab * k[3 * dh + 1:3 * dh + 2, :]
        tr = slab * k[3 * dh + 2:3 * dh + 3, :]
        if dh == 0:
            a_l, a_c, a_r = tl, tc, tr
        else:
            a_l, a_c, a_r = a_l + tl, a_c + tc, a_r + tr

    # +-1 column shifts: one roll per side on the flattened rows + border-column mask
    col = jax.lax.broadcasted_iota(jnp.int32, (N, 1), 0) % W
    conv = a_c
    conv = conv + jnp.where(col == 0, 0.0, _shift_rows(a_l, -1, roll_mode))
    conv = conv + jnp.where(col == W - 1, 0.0, _shift_rows(a_r, +1, roll_mode))

    y = resid + _gelu_exact(conv + bconv_ref[...])

    # ---- fc3 ----
    out = jnp.dot(y.astype(jnp.bfloat16), w3_ref[...],
                  preferred_element_type=jnp.float32)
    out = out + b3_ref[...]
    # TODO(synk): with tiny Cout (<128) this store is lane-masked; fold W into the lane
    # dim of the out_spec if production channel widths stay this small.
    o_ref[...] = out.reshape(bt, H, W, Cout).astype(o_ref.dtype)


# ------------------------------ generation-aware tiling ------------------------------
def _round_up(v, m):
    return -(-v // m) * m


def _tpu_budget():
    """(per-step VMEM budget, requested scoped-vmem limit, TensorCores sharing the grid)."""
    kind = ""
    try:
        kind = jax.devices()[0].device_kind.lower()
    except Exception:
        pass
    if "v7" in kind:
        return 40 << 20, 56 << 20, 2      # 64 MiB physical VMEM, 2 TCs share the grid
    if "v6" in kind or "v5" in kind:
        return 80 << 20, 100 << 20, 1     # 128 MiB physical VMEM, single TC
    return 24 << 20, 40 << 20, 1          # conservative default for unknown parts


def _vmem_estimate(t, h, w, cin, hf, cout):
    """Per-step footprint: double-buffered I/O blocks + (double-buffered) weights +
    hpad scratch + ~4x hidden-sized live f32 intermediates."""
    f32, bf16 = 4, 2
    subw = _round_up(w, 8)
    l_hf, l_ci, l_co = _round_up(hf, 128), _round_up(cin, 128), _round_up(cout, 128)
    n = t * h * w
    x_blk = 2 * t * h * subw * l_ci * f32
    o_blk = 2 * t * h * subw * l_co * f32
    wts = 2 * (_round_up(cin, 16) * l_hf * bf16 + 8 * l_hf * f32
               + 16 * l_hf * f32 + 8 * l_hf * f32
               + _round_up(hf, 16) * l_co * bf16 + 8 * l_co * f32)
    scratch = t * (h + 2) * subw * l_hf * f32
    live = 4 * _round_up(n, 8) * l_hf * f32
    return x_blk + o_blk + wts + scratch + live


def _choose_bt_tile(bt_total, h, w, cin, hf, cout, vmem_budget, cores):
    """Largest divisor of B*T that fits the VMEM budget.  Single-core parts may use a
    single grid step (biggest tile); on 2-core parts the grid must split evenly with
    >= 2 steps per core so DMA double-buffering still overlaps."""
    target_rows = 4096 if cores == 1 else 2048
    best = 1
    for t in range(1, bt_total + 1):
        if bt_total % t:
            continue
        steps = bt_total // t
        if t > 1:
            if t * h * w > target_rows:
                continue
            if _vmem_estimate(t, h, w, cin, hf, cout) > vmem_budget:
                continue
            if cores > 1 and (steps % cores or steps < 2 * cores):
                continue
        best = t
    return best


def mlp_ir_forward(x, params, *, bt_tile=None, vmem_limit_bytes=None):
    """x: (B, T, H, W, C_in) -> (B, T, H, W, C_out); single fused Pallas kernel."""
    B, T, H, W, C = x.shape
    Hf = params["w1"].shape[1]
    Cout = params["w3"].shape[1]
    BT = B * T

    vmem_budget, vmem_limit, cores = _tpu_budget()
    if bt_tile is None:
        bt_tile = _choose_bt_tile(BT, H, W, C, Hf, Cout, vmem_budget, cores)
    assert BT % bt_tile == 0
    if vmem_limit_bytes is None:
        vmem_limit_bytes = vmem_limit

    kernel = functools.partial(_mlp_ir_kernel, roll_mode=_roll_mode())

    x4 = x.reshape(BT, H, W, C)
    grid = (BT // bt_tile,)

    out = pl.pallas_call(
        kernel,
        out_shape=jax.ShapeDtypeStruct((BT, H, W, Cout), x.dtype),
        grid=grid,
        in_specs=[
            pl.BlockSpec((bt_tile, H, W, C), lambda i: (i, 0, 0, 0)),
            # weight/bias blocks are grid-invariant (index_map always (0, 0)).
            # TODO(synk): single-buffer them (pl.Buffered(1)) once universally supported;
            # at production Hf/Cout that reclaims MiBs of VMEM on v7x.
            pl.BlockSpec((C, Hf), lambda i: (0, 0)),
            pl.BlockSpec((1, Hf), lambda i: (0, 0)),
            pl.BlockSpec((9, Hf), lambda i: (0, 0)),
            pl.BlockSpec((1, Hf), lambda i: (0, 0)),
            pl.BlockSpec((Hf, Cout), lambda i: (0, 0)),
            pl.BlockSpec((1, Cout), lambda i: (0, 0)),
        ],
        out_specs=pl.BlockSpec((bt_tile, H, W, Cout), lambda i: (i, 0, 0, 0)),
        scratch_shapes=[pltpu.VMEM((bt_tile, H + 2, W, Hf), jnp.float32)],
        compiler_params=pltpu.CompilerParams(
            dimension_semantics=("parallel",),
            vmem_limit_bytes=vmem_limit_bytes,
        ),
    )(
        x4,
        params["w1"].astype(jnp.bfloat16), params["b1"].reshape(1, Hf),
        params["kconv"], params["bconv"].reshape(1, Hf),
        params["w3"].astype(jnp.bfloat16), params["b3"].reshape(1, Cout),
    )
    return out.reshape(B, T, H, W, Cout)


# ------------------------------------ pure-JAX reference ------------------------------------
def mlp_ir_reference(x, params):
    B, T, H, W, C = x.shape
    Hf = params["w1"].shape[1]
    Cout = params["w3"].shape[1]
    h = _gelu_exact(x.reshape(-1, C) @ params["w1"] + params["b1"])
    h = h.reshape(B * T, H, W, Hf)
    hp = jnp.pad(h, ((0, 0), (1, 1), (1, 1), (0, 0)))
    acc = jnp.zeros_like(h)
    for dh in range(3):
        for dw in range(3):
            acc = acc + hp[:, dh:dh + H, dw:dw + W, :] * params["kconv"][dh * 3 + dw]
    y = h + _gelu_exact(acc + params["bconv"])
    out = y.reshape(-1, Hf) @ params["w3"] + params["b3"]
    return out.reshape(B, T, H, W, Cout)


def init_params(key, in_features, hidden_features, out_features, dtype=jnp.float32):
    ks = jax.random.split(key, 6)
    scale = 0.02
    # fc1: torch Linear(in, hidden) weight (hidden, in) -> stored transposed (in, hidden)
    w1 = scale * jax.random.normal(ks[0], (in_features, hidden_features), dtype)
    b1 = scale * jax.random.normal(ks[1], (hidden_features,), dtype)
    # fc2: torch Conv2d(hidden, hidden, 3, groups=hidden) weight (hidden, 1, 3, 3)
    #      stored as (9, hidden) row-major taps (dh*3 + dw) for the channels-last kernel
    kconv = scale * jax.random.normal(ks[2], (9, hidden_features), dtype)
    bconv = scale * jax.random.normal(ks[3], (hidden_features,), dtype)
    # fc3: torch Linear(hidden, out) weight (out, hidden) -> stored transposed
    w3 = scale * jax.random.normal(ks[4], (hidden_features, out_features), dtype)
    b3 = scale * jax.random.normal(ks[5], (out_features,), dtype)
    return {"w1": w1, "b1": b1, "kconv": kconv, "bconv": bconv, "w3": w3, "b3": b3}


if __name__ == "__main__":
    B, T, H, W = 2, 2, 8, 8
    in_features, hidden_features, out_features = 16, 32, 16

    key = jax.random.PRNGKey(0)
    kx, kp = jax.random.split(key)
    x = jax.random.normal(kx, (B, T, H, W, in_features), jnp.float32)
    params = init_params(kp, in_features, hidden_features, out_features)

    _roll_mode()  # detect pltpu.roll direction once, outside jit

    out = jax.jit(mlp_ir_forward)(x, params)
    jax.block_until_ready(out)
    assert out.shape == (B, T, H, W, out_features)

    ref = mlp_ir_reference(x, params)
    max_err = float(jnp.max(jnp.abs(out - ref)))
    assert max_err < 2e-3, f"mismatch vs reference: {max_err}"
    print("KERNEL_OK")
</pallas_src>

<mosaic_0001>
module attributes {stable_mosaic.version = 11 : i64} {
  func.func @_roll_probe_kernel(%arg0: memref<256x128xf32, #tpu.memory_space<vmem>>, %arg1: memref<256x128xf32, #tpu.memory_space<vmem>>, %arg2: memref<256x128xf32, #tpu.memory_space<vmem>>) attributes {dimension_semantics = [], scalar_prefetch = 0 : i64, scratch_operands = 0 : i64, tpu.core_type = #tpu.core_type<tc>} {
    %c0 = arith.constant 0 : index
    %c0_0 = arith.constant 0 : index
    %0 = vector.load %arg0[%c0, %c0_0] : memref<256x128xf32, #tpu.memory_space<vmem>>, vector<256x128xf32>
    %c1_i32 = arith.constant 1 : i32
    %1 = tpu.dynamic_rotate %0 by %c1_i32 dim 0 : vector<256x128xf32>, i32 -> vector<256x128xf32>
    %c0_1 = arith.constant 0 : index
    %c0_2 = arith.constant 0 : index
    %2 = vector.load %arg1[%c0_1, %c0_2] : memref<256x128xf32, #tpu.memory_space<vmem>>, vector<256x128xf32>
    tpu.vector_store %arg1[%c0_1, %c0_2], %1 {strides = array<i32>} : memref<256x128xf32, #tpu.memory_space<vmem>>, vector<256x128xf32>,
    %c0_3 = arith.constant 0 : index
    %c0_4 = arith.constant 0 : index
    %3 = vector.load %arg0[%c0_3, %c0_4] : memref<256x128xf32, #tpu.memory_space<vmem>>, vector<256x128xf32>
    %c255_i32 = arith.constant 255 : i32
    %4 = tpu.dynamic_rotate %3 by %c255_i32 dim 0 : vector<256x128xf32>, i32 -> vector<256x128xf32>
    %c0_5 = arith.constant 0 : index
    %c0_6 = arith.constant 0 : index
    %5 = vector.load %arg2[%c0_5, %c0_6] : memref<256x128xf32, #tpu.memory_space<vmem>>, vector<256x128xf32>
    tpu.vector_store %arg2[%c0_5, %c0_6], %4 {strides = array<i32>} : memref<256x128xf32, #tpu.memory_space<vmem>>, vector<256x128xf32>,
    return
  }
}

module attributes {stable_mosaic.version = 11 : i64} {
  func.func @_mlp_ir_kernel(%arg0: i32, %arg1: memref<4x8x8x16xf32, #tpu.memory_space<vmem>>, %arg2: memref<16x32xbf16, #tpu.memory_space<vmem>>, %arg3: memref<1x32xf32, #tpu.memory_space<vmem>>, %arg4: memref<9x32xf32, #tpu.memory_space<vmem>>, %arg5: memref<1x32xf32, #tpu.memory_space<vmem>>, %arg6: memref<32x16xbf16, #tpu.memory_space<vmem>>, %arg7: memref<1x16xf32, #tpu.memory_space<vmem>>, %arg8: memref<4x8x8x16xf32, #tpu.memory_space<vmem>>, %arg9: memref<4x10x8x32xf32, #tpu.memory_space<vmem>>) attributes {dimension_semantics = [#tpu.dimension_semantics<parallel>], iteration_bounds = array<i64: 1>, scalar_prefetch = 0 : i64, scratch_operands = 1 : i64, tpu.core_type = #tpu.core_type<tc>, window_params = [{transform_indices = @transform_0, window_bounds = array<i64: 4, 8, 8, 16>}, {pipeline_mode = #tpu.pipeline_mode<synchronous>, transform_indices = @transform_1, window_bounds = array<i64: 16, 32>}, {pipeline_mode = #tpu.pipeline_mode<synchronous>, transform_indices = @transform_2, window_bounds = array<i64: 1, 32>}, {pipeline_mode = #tpu.pipeline_mode<synchronous>, transform_indices = @transform_3, window_bounds = array<i64: 9, 32>}, {pipeline_mode = #tpu.pipeline_mode<synchronous>, transform_indices = @transform_4, window_bounds = array<i64: 1, 32>}, {pipeline_mode = #tpu.pipeline_mode<synchronous>, transform_indices = @transform_5, window_bounds = array<i64: 32, 16>}, {pipeline_mode = #tpu.pipeline_mode<synchronous>, transform_indices = @transform_6, window_bounds = array<i64: 1, 16>}, {transform_indices = @transform_7, window_bounds = array<i64: 4, 8, 8, 16>}]} {
    %c0 = arith.constant 0 : index
    %c0_0 = arith.constant 0 : index
    %c0_1 = arith.constant 0 : index
    %c0_2 = arith.constant 0 : index
    %0 = vector.load %arg1[%c0, %c0_0, %c0_1, %c0_2] : memref<4x8x8x16xf32, #tpu.memory_space<vmem>>, vector<4x8x8x16xf32>
    %1 = vector.shape_cast %0 : vector<4x8x8x16xf32> to vector<256x16xf32>
    %2 = arith.truncf %1 : vector<256x16xf32> to vector<256x16xbf16>
    %c0_3 = arith.constant 0 : index
    %c0_4 = arith.constant 0 : index
    %3 = vector.load %arg2[%c0_3, %c0_4] : memref<16x32xbf16, #tpu.memory_space<vmem>>, vector<16x32xbf16>
    %cst = arith.constant dense<0.000000e+00> : vector<256x32xf32>
    %4 = tpu.matmul %2, %3, %cst {dimension_numbers = #tpu.dot_dimension_numbers<[1], [0], [0], [1], [0, 0, 1, 1], [], []>} : vector<256x16xbf16>, vector<16x32xbf16>, vector<256x32xf32> -> vector<256x32xf32>
    %c0_5 = arith.constant 0 : index
    %c0_6 = arith.constant 0 : index
    %5 = vector.load %arg3[%c0_5, %c0_6] : memref<1x32xf32, #tpu.memory_space<vmem>>, vector<1x32xf32>
    %6 = vector.broadcast %5 : vector<1x32xf32> to vector<256x32xf32>
    %7 = arith.addf %4, %6 : vector<256x32xf32>
    %cst_7 = arith.constant 5.000000e-01 : f32
    %8 = vector.broadcast %cst_7 : f32 to vector<256x32xf32>
    %9 = arith.mulf %8, %7 : vector<256x32xf32>
    %cst_8 = arith.constant 0.707106769 : f32
    %10 = vector.broadcast %cst_8 : f32 to vector<256x32xf32>
    %11 = arith.mulf %7, %10 : vector<256x32xf32>
    %12 = math.erf %11 : vector<256x32xf32>
    %cst_9 = arith.constant 1.000000e+00 : f32
    %13 = vector.broadcast %cst_9 : f32 to vector<256x32xf32>
    %14 = arith.addf %13, %12 : vector<256x32xf32>
    %15 = arith.mulf %9, %14 : vector<256x32xf32>
    %cst_10 = arith.constant 0.000000e+00 : f32
    %16 = vector.broadcast %cst_10 : f32 to vector<4x1x8x32xf32>
    %c0_11 = arith.constant 0 : index
    %c0_12 = arith.constant 0 : index
    %c0_13 = arith.constant 0 : index
    %c0_14 = arith.constant 0 : index
    %17 = vector.load %arg9[%c0_11, %c0_12, %c0_13, %c0_14] : memref<4x10x8x32xf32, #tpu.memory_space<vmem>>, vector<4x1x8x32xf32>
    tpu.vector_store %arg9[%c0_11, %c0_12, %c0_13, %c0_14], %16 {strides = array<i32>} : memref<4x10x8x32xf32, #tpu.memory_space<vmem>>, vector<4x1x8x32xf32>,
    %c0_15 = arith.constant 0 : index
    %c9 = arith.constant 9 : index
    %c0_16 = arith.constant 0 : index
    %c0_17 = arith.constant 0 : index
    %18 = vector.load %arg9[%c0_15, %c9, %c0_16, %c0_17] : memref<4x10x8x32xf32, #tpu.memory_space<vmem>>, vector<4x1x8x32xf32>
    tpu.vector_store %arg9[%c0_15, %c9, %c0_16, %c0_17], %16 {strides = array<i32>} : memref<4x10x8x32xf32, #tpu.memory_space<vmem>>, vector<4x1x8x32xf32>,
    %19 = vector.shape_cast %15 : vector<256x32xf32> to vector<4x8x8x32xf32>
    %c0_18 = arith.constant 0 : index
    %c1 = arith.constant 1 : index
    %c0_19 = arith.constant 0 : index
    %c0_20 = arith.constant 0 : index
    %20 = vector.load %arg9[%c0_18, %c1, %c0_19, %c0_20] : memref<4x10x8x32xf32, #tpu.memory_space<vmem>>, vector<4x8x8x32xf32>
    tpu.vector_store %arg9[%c0_18, %c1, %c0_19, %c0_20], %19 {strides = array<i32>} : memref<4x10x8x32xf32, #tpu.memory_space<vmem>>, vector<4x8x8x32xf32>,
    %c0_21 = arith.constant 0 : index
    %c0_22 = arith.constant 0 : index
    %21 = vector.load %arg4[%c0_21, %c0_22] : memref<9x32xf32, #tpu.memory_space<vmem>>, vector<9x32xf32>
    %c0_23 = arith.constant 0 : index
    %c0_24 = arith.constant 0 : index
    %c0_25 = arith.constant 0 : index
    %c0_26 = arith.constant 0 : index
    %22 = vector.load %arg9[%c0_23, %c0_24, %c0_25, %c0_26] : memref<4x10x8x32xf32, #tpu.memory_space<vmem>>, vector<4x8x8x32xf32>
    %23 = vector.shape_cast %22 : vector<4x8x8x32xf32> to vector<256x32xf32>
    %24 = vector.extract_strided_slice %21 {offsets = [0, 0], sizes = [1, 32], strides = [1, 1]} : vector<9x32xf32> to vector<1x32xf32>
    %25 = vector.broadcast %24 : vector<1x32xf32> to vector<256x32xf32>
    %26 = arith.mulf %23, %25 : vector<256x32xf32>
    %27 = vector.extract_strided_slice %21 {offsets = [1, 0], sizes = [1, 32], strides = [1, 1]} : vector<9x32xf32> to vector<1x32xf32>
    %28 = vector.broadcast %27 : vector<1x32xf32> to vector<256x32xf32>
    %29 = arith.mulf %23, %28 : vector<256x32xf32>
    %30 = vector.extract_strided_slice %21 {offsets = [2, 0], sizes = [1, 32], strides = [1, 1]} : vector<9x32xf32> to vector<1x32xf32>
    %31 = vector.broadcast %30 : vector<1x32xf32> to vector<256x32xf32>
    %32 = arith.mulf %23, %31 : vector<256x32xf32>
    %c0_27 = arith.constant 0 : index
    %c1_28 = arith.constant 1 : index
    %c0_29 = arith.constant 0 : index
    %c0_30 = arith.constant 0 : index
    %33 = vector.load %arg9[%c0_27, %c1_28, %c0_29, %c0_30] : memref<4x10x8x32xf32, #tpu.memory_space<vmem>>, vector<4x8x8x32xf32>
    %34 = vector.shape_cast %33 : vector<4x8x8x32xf32> to vector<256x32xf32>
    %35 = vector.extract_strided_slice %21 {offsets = [3, 0], sizes = [1, 32], strides = [1, 1]} : vector<9x32xf32> to vector<1x32xf32>
    %36 = vector.broadcast %35 : vector<1x32xf32> to vector<256x32xf32>
    %37 = arith.mulf %34, %36 : vector<256x32xf32>
    %38 = vector.extract_strided_slice %21 {offsets = [4, 0], sizes = [1, 32], strides = [1, 1]} : vector<9x32xf32> to vector<1x32xf32>
    %39 = vector.broadcast %38 : vector<1x32xf32> to vector<256x32xf32>
    %40 = arith.mulf %34, %39 : vector<256x32xf32>
    %41 = vector.extract_strided_slice %21 {offsets = [5, 0], sizes = [1, 32], strides = [1, 1]} : vector<9x32xf32> to vector<1x32xf32>
    %42 = vector.broadcast %41 : vector<1x32xf32> to vector<256x32xf32>
    %43 = arith.mulf %34, %42 : vector<256x32xf32>
    %44 = arith.addf %26, %37 : vector<256x32xf32>
    %45 = arith.addf %29, %40 : vector<256x32xf32>
    %46 = arith.addf %32, %43 : vector<256x32xf32>
    %c0_31 = arith.constant 0 : index
    %c2 = arith.constant 2 : index
    %c0_32 = arith.constant 0 : index
    %c0_33 = arith.constant 0 : index
    %47 = vector.load %arg9[%c0_31, %c2, %c0_32, %c0_33] : memref<4x10x8x32xf32, #tpu.memory_space<vmem>>, vector<4x8x8x32xf32>
    %48 = vector.shape_cast %47 : vector<4x8x8x32xf32> to vector<256x32xf32>
    %49 = vector.extract_strided_slice %21 {offsets = [6, 0], sizes = [1, 32], strides = [1, 1]} : vector<9x32xf32> to vector<1x32xf32>
    %50 = vector.broadcast %49 : vector<1x32xf32> to vector<256x32xf32>
    %51 = arith.mulf %48, %50 : vector<256x32xf32>
    %52 = vector.extract_strided_slice %21 {offsets = [7, 0], sizes = [1, 32], strides = [1, 1]} : vector<9x32xf32> to vector<1x32xf32>
    %53 = vector.broadcast %52 : vector<1x32xf32> to vector<256x32xf32>
    %54 = arith.mulf %48, %53 : vector<256x32xf32>
    %55 = vector.extract_strided_slice %21 {offsets = [8, 0], sizes = [1, 32], strides = [1, 1]} : vector<9x32xf32> to vector<1x32xf32>
    %56 = vector.broadcast %55 : vector<1x32xf32> to vector<256x32xf32>
    %57 = arith.mulf %48, %56 : vector<256x32xf32>
    %58 = arith.addf %44, %51 : vector<256x32xf32>
    %59 = arith.addf %45, %54 : vector<256x32xf32>
    %60 = arith.addf %46, %57 : vector<256x32xf32>
    %61 = tpu.iota {dimensions = array<i32: 0>} : vector<256x1xi32>
    %c8_i32 = arith.constant 8 : i32
    %c0_i32 = arith.constant 0 : i32
    %62 = arith.cmpi eq, %c8_i32, %c0_i32 : i32
    %c1_i32 = arith.constant 1 : i32
    %63 = arith.select %62, %c1_i32, %c8_i32 : i32
    %64 = vector.broadcast %63 : i32 to vector<256x1xi32>
    %65 = arith.remsi %61, %64 : vector<256x1xi32>
    %c0_i32_34 = arith.constant 0 : i32
    %66 = vector.broadcast %c0_i32_34 : i32 to vector<256x1xi32>
    %67 = arith.cmpi ne, %65, %66 : vector<256x1xi32>
    %c0_i32_35 = arith.constant 0 : i32
    %68 = vector.broadcast %c0_i32_35 : i32 to vector<256x1xi32>
    %69 = arith.cmpi slt, %65, %68 : vector<256x1xi32>
    %c0_i32_36 = arith.constant 0 : i32
    %70 = arith.cmpi slt, %63, %c0_i32_36 : i32
    %71 = vector.broadcast %70 : i1 to vector<256x1xi1>
    %72 = vector.broadcast %71 : vector<256x1xi1> to vector<256x1xi1>
    %73 = arith.xori %69, %72 : vector<256x1xi1>
    %74 = arith.andi %73, %67 : vector<256x1xi1>
    %75 = vector.broadcast %63 : i32 to vector<256x1xi32>
    %76 = arith.addi %65, %75 : vector<256x1xi32>
    %77 = arith.select %74, %76, %65 : vector<256x1xi1>, vector<256x1xi32>
    %c0_i32_37 = arith.constant 0 : i32
    %78 = vector.broadcast %c0_i32_37 : i32 to vector<256x1xi32>
    %79 = arith.cmpi eq, %77, %78 : vector<256x1xi32>
    %cst_38 = arith.constant 0.000000e+00 : f32
    %80 = vector.broadcast %cst_38 : f32 to vector<1x32xf32>
    %81 = vector.extract_strided_slice %58 {offsets = [0, 0], sizes = [255, 32], strides = [1, 1]} : vector<256x32xf32> to vector<255x32xf32>
    %82 = tpu.concatenate %80, %81 in 0 : vector<1x32xf32>, vector<255x32xf32> -> vector<256x32xf32>
    %cst_39 = arith.constant 0.000000e+00 : f32
    %83 = vector.shape_cast %79 : vector<256x1xi1> to vector<256x1xi1>
    %84 = vector.broadcast %83 : vector<256x1xi1> to vector<256x32xi1>
    %85 = vector.broadcast %cst_39 : f32 to vector<256x32xf32>
    %86 = arith.select %84, %85, %82 : vector<256x32xi1>, vector<256x32xf32>
    %87 = arith.addf %59, %86 : vector<256x32xf32>
    %c7_i32 = arith.constant 7 : i32
    %88 = vector.broadcast %c7_i32 : i32 to vector<256x1xi32>
    %89 = arith.cmpi eq, %77, %88 : vector<256x1xi32>
    %cst_40 = arith.constant 0.000000e+00 : f32
    %90 = vector.broadcast %cst_40 : f32 to vector<1x32xf32>
    %91 = vector.extract_strided_slice %60 {offsets = [1, 0], sizes = [255, 32], strides = [1, 1]} : vector<256x32xf32> to vector<255x32xf32>
    %92 = tpu.concatenate %91, %90 in 0 : vector<255x32xf32>, vector<1x32xf32> -> vector<256x32xf32>
    %cst_41 = arith.constant 0.000000e+00 : f32
    %93 = vector.shape_cast %89 : vector<256x1xi1> to vector<256x1xi1>
    %94 = vector.broadcast %93 : vector<256x1xi1> to vector<256x32xi1>
    %95 = vector.broadcast %cst_41 : f32 to vector<256x32xf32>
    %96 = arith.select %94, %95, %92 : vector<256x32xi1>, vector<256x32xf32>
    %97 = arith.addf %87, %96 : vector<256x32xf32>
    %c0_42 = arith.constant 0 : index
    %c0_43 = arith.constant 0 : index
    %98 = vector.load %arg5[%c0_42, %c0_43] : memref<1x32xf32, #tpu.memory_space<vmem>>, vector<1x32xf32>
    %99 = vector.broadcast %98 : vector<1x32xf32> to vector<256x32xf32>
    %100 = arith.addf %97, %99 : vector<256x32xf32>
    %cst_44 = arith.constant 5.000000e-01 : f32
    %101 = vector.broadcast %cst_44 : f32 to vector<256x32xf32>
    %102 = arith.mulf %101, %100 : vector<256x32xf32>
    %cst_45 = arith.constant 0.707106769 : f32
    %103 = vector.broadcast %cst_45 : f32 to vector<256x32xf32>
    %104 = arith.mulf %100, %103 : vector<256x32xf32>
    %105 = math.erf %104 : vector<256x32xf32>
    %cst_46 = arith.constant 1.000000e+00 : f32
    %106 = vector.broadcast %cst_46 : f32 to vector<256x32xf32>
    %107 = arith.addf %106, %105 : vector<256x32xf32>
    %108 = arith.mulf %102, %107 : vector<256x32xf32>
    %109 = arith.addf %34, %108 : vector<256x32xf32>
    %110 = arith.truncf %109 : vector<256x32xf32> to vector<256x32xbf16>
    %c0_47 = arith.constant 0 : index
    %c0_48 = arith.constant 0 : index
    %111 = vector.load %arg6[%c0_47, %c0_48] : memref<32x16xbf16, #tpu.memory_space<vmem>>, vector<32x16xbf16>
    %cst_49 = arith.constant dense<0.000000e+00> : vector<256x16xf32>
    %112 = tpu.matmul %110, %111, %cst_49 {dimension_numbers = #tpu.dot_dimension_numbers<[1], [0], [0], [1], [0, 0, 1, 1], [], []>} : vector<256x32xbf16>, vector<32x16xbf16>, vector<256x16xf32> -> vector<256x16xf32>
    %c0_50 = arith.constant 0 : index
    %c0_51 = arith.constant 0 : index
    %113 = vector.load %arg7[%c0_50, %c0_51] : memref<1x16xf32, #tpu.memory_space<vmem>>, vector<1x16xf32>
    %114 = vector.broadcast %113 : vector<1x16xf32> to vector<256x16xf32>
    %115 = arith.addf %112, %114 : vector<256x16xf32>
    %116 = vector.shape_cast %115 : vector<256x16xf32> to vector<4x8x8x16xf32>
    %c0_52 = arith.constant 0 : index
    %c0_53 = arith.constant 0 : index
    %c0_54 = arith.constant 0 : index
    %c0_55 = arith.constant 0 : index
    %117 = vector.load %arg8[%c0_52, %c0_53, %c0_54, %c0_55] : memref<4x8x8x16xf32, #tpu.memory_space<vmem>>, vector<4x8x8x16xf32>
    tpu.vector_store %arg8[%c0_52, %c0_53, %c0_54, %c0_55], %116 {strides = array<i32>} : memref<4x8x8x16xf32, #tpu.memory_space<vmem>>, vector<4x8x8x16xf32>,
    return
  }
  func.func @transform_0(%arg0: i32) -> (i32, i32, i32, i32) {
    %c0_i32 = arith.constant 0 : i32
    %c0_i32_0 = arith.constant 0 : i32
    %c0_i32_1 = arith.constant 0 : i32
    %c0_i32_2 = arith.constant 0 : i32
    return %arg0, %c0_i32, %c0_i32_0, %c0_i32_1 : i32, i32, i32, i32
  }
  func.func @transform_1(%arg0: i32) -> (i32, i32) {
    %c0_i32 = arith.constant 0 : i32
    %c0_i32_0 = arith.constant 0 : i32
    %c0_i32_1 = arith.constant 0 : i32
    return %c0_i32, %c0_i32_0 : i32, i32
  }
  func.func @transform_2(%arg0: i32) -> (i32, i32) {
    %c0_i32 = arith.constant 0 : i32
    %c0_i32_0 = arith.constant 0 : i32
    %c0_i32_1 = arith.constant 0 : i32
    return %c0_i32, %c0_i32_0 : i32, i32
  }
  func.func @transform_3(%arg0: i32) -> (i32, i32) {
    %c0_i32 = arith.constant 0 : i32
    %c0_i32_0 = arith.constant 0 : i32
    %c0_i32_1 = arith.constant 0 : i32
    return %c0_i32, %c0_i32_0 : i32, i32
  }
  func.func @transform_4(%arg0: i32) -> (i32, i32) {
    %c0_i32 = arith.constant 0 : i32
    %c0_i32_0 = arith.constant 0 : i32
    %c0_i32_1 = arith.constant 0 : i32
    return %c0_i32, %c0_i32_0 : i32, i32
  }
  func.func @transform_5(%arg0: i32) -> (i32, i32) {
    %c0_i32 = arith.constant 0 : i32
    %c0_i32_0 = arith.constant 0 : i32
    %c0_i32_1 = arith.constant 0 : i32
    return %c0_i32, %c0_i32_0 : i32, i32
  }
  func.func @transform_6(%arg0: i32) -> (i32, i32) {
    %c0_i32 = arith.constant 0 : i32
    %c0_i32_0 = arith.constant 0 : i32
    %c0_i32_1 = arith.constant 0 : i32
    return %c0_i32, %c0_i32_0 : i32, i32
  }
  func.func @transform_7(%arg0: i32) -> (i32, i32, i32, i32) {
    %c0_i32 = arith.constant 0 : i32
    %c0_i32_0 = arith.constant 0 : i32
    %c0_i32_1 = arith.constant 0 : i32
    %c0_i32_2 = arith.constant 0 : i32
    return %arg0, %c0_i32, %c0_i32_0, %c0_i32_1 : i32, i32, i32, i32
  }
}

</mosaic_0001>

<bundles_post_ra>
// kernel: tpu_custom_call.1
= control target key start
LH: loop header
LB: loop body
LE: loop exit
PB: predicated region body
PF: predicated region fallthrough
CT: control target
= control target key end

     0   :  { %8 = vsyncpa [#allocation3], 0  ;;  %s714_s0 = inlined_call_operand.hbm [shape: f32[256,128], index: 0, kind: input, shape index: {}]   ;;  %s715_s1 = inlined_call_operand.hbm [shape: f32[256,128], index: 1, kind: output, shape index: {0}]   ;;  %s716_s2 = inlined_call_operand.hbm [shape: f32[256,128], index: 2, kind: output, shape index: {1}]  }
   0x1   :  { %9 = vsyncpa [#allocation4], 0 }
   0x2   :  { %10 = vsyncpa [#allocation7], 0  ;;  %s15_s11 = sshll.u32 %s714_s0, 4  ;;  %s408_s12 = smov [#allocation2]   ;;  %s16_s11 = int_to_ptr.hbm [resolvable:$true] %s15_s11 }
   0x3   :  { %s17_s13 = sshll.u32 %s408_s12, 4  ;;  %s409_s14 = smov 128   ;;  %s18_s13 = int_to_ptr.vmem [resolvable:$true] %s17_s13 }
   0x4   :  { %s410_s15 = smov 8  }
   0x5   :  { %23 = dma.hbm_to_vmem [thread:$0]  %s16_s11, 4096, %s18_s13, [#allocation3], %s409_s14, %s409_s14, %s410_s15  }
   0x6   :  { %402 = dma.done.wait [#allocation3], 4096  }
   0x7   :  { %403 = vsyncadd [#allocation3], 4294963200  ;;  %v92_v0 = vlaneseq  ;;  %v436_v2 = vld [vmem:[#allocation2] sm:$0xff]  ;;  %v438_v3 = vld [vmem:[#allocation2 + $0xf8] sm:$0xff]  ;;  %s411_s0 = smov [#allocation5]   ;;  %s294_s19 = sshll.u32 %s715_s1, 4  ;;  %s295_s19 = int_to_ptr.hbm [resolvable:$true] %s294_s19 }
   0x8   :  { %v441_v4 = vld [vmem:[#allocation2 + $0x8] sm:$0xff]  ;;  %v60_v5 = vrot.slane %v436_v2, 7  ;;  %v91_v6 = vrot.slane %v438_v3, 7  ;;  %v446_v8 = vld [vmem:[#allocation2 + $0x10] sm:$0xff]  ;;  %v448_v9 = vld [vmem:[#allocation2 + $0x18] sm:$0xff]  ;;  %s292_s16 = sshll.u32 %s411_s0, 4  ;;  %s293_s16 = int_to_ptr.vmem [resolvable:$true] %s292_s16 }
   0x9   :  { %v434_v1 = vshrl.u32 %v92_v0, 7  ;;  %v61_v7 = vrot.slane %v441_v4, 7  ;;  %v450_v10 = vld [vmem:[#allocation2 + $0x20] sm:$0xff]  ;;  %v62_v11 = vrot.slane %v446_v8, 7  ;;  %v63_v12 = vrot.slane %v448_v9, 7  ;;  %v455_v14 = vld [vmem:[#allocation2 + $0x28] sm:$0xff] }
   0xa   :  { %v64_v13 = vrot.slane %v450_v10, 7  ;;  %v457_v15 = vld [vmem:[#allocation2 + $0x30] sm:$0xff]  ;;  %v459_v16 = vld [vmem:[#allocation2 + $0x38] sm:$0xff]  ;;  %v65_v19 = vrot.slane %v455_v14, 7  ;;  %v469_v21 = vld [vmem:[#allocation2 + $0x40] sm:$0xff]  ;;  %s412_s1 = smov [#allocation6]  }
   0xb   :  { %vm94_vm0 = vcmp.lt.s32.totalorder %v434_v1, 1  ;;  %v66_v20 = vrot.slane %v457_v15, 7  ;;  %v471_v22 = vld [vmem:[#allocation2 + $0x48] sm:$0xff]  ;;  %v67_v25 = vrot.slane %v459_v16, 7  ;;  %v478_v26 = vld [vmem:[#allocation2 + $0x50] sm:$0xff]  ;;  %v68_v28 = vrot.slane %v469_v21, 7 }
   0xc   :  { %v126_v17 = vsel %vm94_vm0, %v91_v6, %v60_v5  ;;  %v125_v18 = vsel %vm94_vm0, %v60_v5, %v61_v7  ;;  %v124_v23 = vsel %vm94_vm0, %v61_v7, %v62_v11  ;;  %v123_v24 = vsel %vm94_vm0, %v62_v11, %v63_v12  ;;  %v483_v29 = vld [vmem:[#allocation2 + $0x58] sm:$0xff]  ;;  %v488_v32 = vld [vmem:[#allocation2 + $0x60] sm:$0xff]  ;;  %v493_v35 = vld [vmem:[#allocation2 + $0x68] sm:$0xff]  ;;  %s305_s20 = sshll.u32 %s412_s1, 4  ;;  %s307_s23 = sshll.u32 %s716_s2, 4  ;;  %s306_s20 = int_to_ptr.vmem [resolvable:$true] %s305_s20  ;;  %s308_s23 = int_to_ptr.hbm [resolvable:$true] %s307_s23 }
   0xd   :  { %127 = vst [vmem:[#allocation5] sm:$0xff] %v126_v17  ;;  %v122_v27 = vsel %vm94_vm0, %v63_v12, %v64_v13  ;;  %v121_v30 = vsel %vm94_vm0, %v64_v13, %v65_v19  ;;  %v69_v31 = vrot.slane %v471_v22, 7  ;;  %v120_v33 = vsel %vm94_vm0, %v65_v19, %v66_v20  ;;  %v498_v38 = vld [vmem:[#allocation2 + $0x70] sm:$0xff]  ;;  %v503_v41 = vld [vmem:[#allocation2 + $0x78] sm:$0xff]  ;;  %v508_v44 = vld [vmem:[#allocation2 + $0x80] sm:$0xff] }
   0xe   :  { %128 = vst [vmem:[#allocation5 + $0x8] sm:$0xff] %v125_v18  ;;  %v70_v34 = vrot.slane %v478_v26, 7  ;;  %v119_v36 = vsel %vm94_vm0, %v66_v20, %v67_v25  ;;  %v71_v37 = vrot.slane %v483_v29, 7  ;;  %v118_v39 = vsel %vm94_vm0, %v67_v25, %v68_v28  ;;  %v513_v47 = vld [vmem:[#allocation2 + $0x88] sm:$0xff]  ;;  %v518_v50 = vld [vmem:[#allocation2 + $0x90] sm:$0xff]  ;;  %v523_v53 = vld [vmem:[#allocation2 + $0x98] sm:$0xff] }
   0xf   :  { %129 = vst [vmem:[#allocation5 + $0x10] sm:$0xff] %v124_v23  ;;  %v72_v40 = vrot.slane %v488_v32, 7  ;;  %v117_v42 = vsel %vm94_vm0, %v68_v28, %v69_v31  ;;  %v73_v43 = vrot.slane %v493_v35, 7  ;;  %v74_v46 = vrot.slane %v498_v38, 7  ;;  %v528_v56 = vld [vmem:[#allocation2 + $0xa0] sm:$0xff]  ;;  %v533_v59 = vld [vmem:[#allocation2 + $0xa8] sm:$0xff] }
  0x10   :  { %130 = vst [vmem:[#allocation5 + $0x18] sm:$0xff] %v123_v24  ;;  %v116_v45 = vsel %vm94_vm0, %v69_v31, %v70_v34  ;;  %v115_v48 = vsel %vm94_vm0, %v70_v34, %v71_v37  ;;  %v75_v49 = vrot.slane %v503_v41, 7  ;;  %v76_v52 = vrot.slane %v508_v44, 7  ;;  %v538_v62 = vld [vmem:[#allocation2 + $0xb0] sm:$0xff]  ;;  %v543_v5 = vld [vmem:[#allocation2 + $0xb8] sm:$0xff]  ;;  %v548_v12 = vld [vmem:[#allocation2 + $0xc0] sm:$0xff] }
  0x11   :  { %131 = vst [vmem:[#allocation5 + $0x20] sm:$0xff] %v122_v27  ;;  %v114_v51 = vsel %vm94_vm0, %v71_v37, %v72_v40  ;;  %v113_v54 = vsel %vm94_vm0, %v72_v40, %v73_v43  ;;  %v77_v55 = vrot.slane %v513_v47, 7  ;;  %v112_v57 = vsel %vm94_vm0, %v73_v43, %v74_v46  ;;  %v553_v18 = vld [vmem:[#allocation2 + $0xc8] sm:$0xff]  ;;  %v558_v23 = vld [vmem:[#allocation2 + $0xd0] sm:$0xff]  ;;  %v563_v27 = vld [vmem:[#allocation2 + $0xd8] sm:$0xff] }
  0x12   :  { %132 = vst [vmem:[#allocation5 + $0x28] sm:$0xff] %v121_v30  ;;  %v78_v58 = vrot.slane %v518_v50, 7  ;;  %v111_v60 = vsel %vm94_vm0, %v74_v46, %v75_v49  ;;  %v79_v61 = vrot.slane %v523_v53, 7  ;;  %v110_v63 = vsel %vm94_vm0, %v75_v49, %v76_v52  ;;  %v568_v31 = vld [vmem:[#allocation2 + $0xe0] sm:$0xff]  ;;  %v578_v40 = vld [vmem:[#allocation2 + $0xf0] sm:$0xff] }
  0x13   :  { %133 = vst [vmem:[#allocation5 + $0x30] sm:$0xff] %v120_v33  ;;  %v80_v0 = vrot.slane %v528_v56, 7  ;;  %v109_v7 = vsel %vm94_vm0, %v76_v52, %v77_v55  ;;  %v81_v11 = vrot.slane %v533_v59, 7  ;;  %v82_v17 = vrot.slane %v538_v62, 7 }
  0x14   :  { %134 = vst [vmem:[#allocation5 + $0x38] sm:$0xff] %v119_v36  ;;  %v108_v13 = vsel %vm94_vm0, %v77_v55, %v78_v58  ;;  %v107_v19 = vsel %vm94_vm0, %v78_v58, %v79_v61  ;;  %v83_v20 = vrot.slane %v543_v5, 7  ;;  %v84_v25 = vrot.slane %v548_v12, 7  ;;  %v573_v36 = vld [vmem:[#allocation2 + $0xe8] sm:$0xff] }
  0x15   :  { %135 = vst [vmem:[#allocation5 + $0x40] sm:$0xff] %v118_v39  ;;  %v106_v24 = vsel %vm94_vm0, %v79_v61, %v80_v0  ;;  %v105_v28 = vsel %vm94_vm0, %v80_v0, %v81_v11  ;;  %v85_v30 = vrot.slane %v553_v18, 7  ;;  %v104_v33 = vsel %vm94_vm0, %v81_v11, %v82_v17 }
  0x16   :  { %136 = vst [vmem:[#allocation5 + $0x48] sm:$0xff] %v117_v42  ;;  %v86_v34 = vrot.slane %v558_v23, 7  ;;  %v103_v37 = vsel %vm94_vm0, %v82_v17, %v83_v20  ;;  %v87_v39 = vrot.slane %v563_v27, 7  ;;  %v102_v42 = vsel %vm94_vm0, %v83_v20, %v84_v25 }
  0x17   :  { %137 = vst [vmem:[#allocation5 + $0x50] sm:$0xff] %v116_v45  ;;  %v88_v43 = vrot.slane %v568_v31, 7  ;;  %v101_v45 = vsel %vm94_vm0, %v84_v25, %v85_v30  ;;  %v89_v46 = vrot.slane %v573_v36, 7  ;;  %v90_v49 = vrot.slane %v578_v40, 7 }
  0x18   :  { %138 = vst [vmem:[#allocation5 + $0x58] sm:$0xff] %v115_v48  ;;  %v100_v48 = vsel %vm94_vm0, %v85_v30, %v86_v34  ;;  %v192_v55 = vrot.slane %v441_v4, 1  ;;  %vm223_vm1 = vcmp.lt.s32.totalorder %v434_v1, 7  ;;  %v193_v58 = vrot.slane %v446_v8, 1 }
  0x19   :  { %139 = vst [vmem:[#allocation5 + $0x60] sm:$0xff] %v114_v51  ;;  %v99_v51 = vsel %vm94_vm0, %v86_v34, %v87_v39  ;;  %v98_v52 = vsel %vm94_vm0, %v87_v39, %v88_v43  ;;  %v194_v4 = vrot.slane %v448_v9, 1  ;;  %v95_v61 = vsel %vm94_vm0, %v90_v49, %v91_v6 }
  0x1a   :  { %140 = vst [vmem:[#allocation5 + $0x68] sm:$0xff] %v113_v54  ;;  %v191_v54 = vrot.slane %v436_v2, 1  ;;  %v195_v8 = vrot.slane %v450_v10, 1  ;;  %v196_v0 = vrot.slane %v455_v14, 1  ;;  %v253_v9 = vsel %vm223_vm1, %v192_v55, %v193_v58 }
  0x1b   :  { %141 = vst [vmem:[#allocation5 + $0x70] sm:$0xff] %v112_v57  ;;  %v97_v57 = vsel %vm94_vm0, %v88_v43, %v89_v46  ;;  %v252_v6 = vsel %vm223_vm1, %v193_v58, %v194_v4  ;;  %v198_v10 = vrot.slane %v459_v16, 1  ;;  %v199_v14 = vrot.slane %v469_v21, 1 }
  0x1c   :  { %142 = vst [vmem:[#allocation5 + $0x78] sm:$0xff] %v111_v60  ;;  %v96_v60 = vsel %vm94_vm0, %v89_v46, %v90_v49  ;;  %v251_v11 = vsel %vm223_vm1, %v194_v4, %v195_v8  ;;  %v201_v17 = vrot.slane %v478_v26, 1  ;;  %v204_v25 = vrot.slane %v493_v35, 1 }
  0x1d   :  { %143 = vst [vmem:[#allocation5 + $0x80] sm:$0xff] %v110_v63  ;;  %v254_v63 = vsel %vm223_vm1, %v191_v54, %v192_v55  ;;  %v247_v20 = vsel %vm223_vm1, %v198_v10, %v199_v14  ;;  %v206_v30 = vrot.slane %v503_v41, 1  ;;  %v208_v34 = vrot.slane %v513_v47, 1 }
  0x1e   :  { %144 = vst [vmem:[#allocation5 + $0x88] sm:$0xff] %v109_v7  ;;  %v197_v7 = vrot.slane %v457_v15, 1  ;;  %v250_v15 = vsel %vm223_vm1, %v195_v8, %v196_v0  ;;  %v210_v39 = vrot.slane %v523_v53, 1  ;;  %v212_v43 = vrot.slane %v533_v59, 1 }
  0x1f   :  { %145 = vst [vmem:[#allocation5 + $0x90] sm:$0xff] %v108_v13  ;;  %v200_v13 = vrot.slane %v471_v22, 1  ;;  %v214_v46 = vrot.slane %v543_v5, 1  ;;  %v216_v49 = vrot.slane %v553_v18, 1  ;;  %v219_v55 = vrot.slane %v568_v31, 1 }
  0x20   :  { %146 = vst [vmem:[#allocation5 + $0x98] sm:$0xff] %v107_v19  ;;  %v249_v16 = vsel %vm223_vm1, %v196_v0, %v197_v7  ;;  %v248_v21 = vsel %vm223_vm1, %v197_v7, %v198_v10  ;;  %v202_v19 = vrot.slane %v483_v29, 1  ;;  %v221_v58 = vrot.slane %v578_v40, 1 }
  0x21   :  { %147 = vst [vmem:[#allocation5 + $0xa0] sm:$0xff] %v106_v24  ;;  %v203_v24 = vrot.slane %v488_v32, 1  ;;  %v246_v22 = vsel %vm223_vm1, %v199_v14, %v200_v13  ;;  %v245_v26 = vsel %vm223_vm1, %v200_v13, %v201_v17 }
  0x22   :  { %148 = vst [vmem:[#allocation5 + $0xa8] sm:$0xff] %v105_v28  ;;  %v205_v28 = vrot.slane %v498_v38, 1  ;;  %v244_v29 = vsel %vm223_vm1, %v201_v17, %v202_v19 }
  0x23   :  { %149 = vst [vmem:[#allocation5 + $0xb0] sm:$0xff] %v104_v33  ;;  %v243_v32 = vsel %vm223_vm1, %v202_v19, %v203_v24  ;;  %v207_v33 = vrot.slane %v508_v44, 1  ;;  %v242_v35 = vsel %vm223_vm1, %v203_v24, %v204_v25 }
  0x24   :  { %150 = vst [vmem:[#allocation5 + $0xb8] sm:$0xff] %v103_v37  ;;  %v241_v38 = vsel %vm223_vm1, %v204_v25, %v205_v28  ;;  %v209_v37 = vrot.slane %v518_v50, 1  ;;  %v240_v41 = vsel %vm223_vm1, %v205_v28, %v206_v30 }
  0x25   :  { %151 = vst [vmem:[#allocation5 + $0xc0] sm:$0xff] %v102_v42  ;;  %v239_v44 = vsel %vm223_vm1, %v206_v30, %v207_v33  ;;  %v211_v42 = vrot.slane %v528_v56, 1  ;;  %v238_v47 = vsel %vm223_vm1, %v207_v33, %v208_v34 }
  0x26   :  { %152 = vst [vmem:[#allocation5 + $0xc8] sm:$0xff] %v101_v45  ;;  %v237_v50 = vsel %vm223_vm1, %v208_v34, %v209_v37  ;;  %v213_v45 = vrot.slane %v538_v62, 1  ;;  %v236_v53 = vsel %vm223_vm1, %v209_v37, %v210_v39 }
  0x27   :  { %153 = vst [vmem:[#allocation5 + $0xd0] sm:$0xff] %v100_v48  ;;  %v235_v56 = vsel %vm223_vm1, %v210_v39, %v211_v42  ;;  %v215_v48 = vrot.slane %v548_v12, 1  ;;  %v234_v59 = vsel %vm223_vm1, %v211_v42, %v212_v43 }
  0x28   :  { %154 = vst [vmem:[#allocation5 + $0xd8] sm:$0xff] %v99_v51  ;;  %v233_v62 = vsel %vm223_vm1, %v212_v43, %v213_v45  ;;  %v217_v51 = vrot.slane %v558_v23, 1  ;;  %v232_v5 = vsel %vm223_vm1, %v213_v45, %v214_v46 }
  0x29   :  { %155 = vst [vmem:[#allocation5 + $0xe0] sm:$0xff] %v98_v52  ;;  %v218_v52 = vrot.slane %v563_v27, 1  ;;  %v231_v12 = vsel %vm223_vm1, %v214_v46, %v215_v48  ;;  %v230_v18 = vsel %vm223_vm1, %v215_v48, %v216_v49 }
  0x2a   :  { %156 = vst [vmem:[#allocation5 + $0xe8] sm:$0xff] %v97_v57  ;;  %v220_v57 = vrot.slane %v573_v36, 1  ;;  %v229_v23 = vsel %vm223_vm1, %v216_v49, %v217_v51 }
  0x2b   :  { %157 = vst [vmem:[#allocation5 + $0xf0] sm:$0xff] %v96_v60  ;;  %v228_v27 = vsel %vm223_vm1, %v217_v51, %v218_v52  ;;  %v222_v60 = vrot.slane %v438_v3, 1  ;;  %v227_v31 = vsel %vm223_vm1, %v218_v52, %v219_v55 }
  0x2c   :  { %158 = vst [vmem:[#allocation5 + $0xf8] sm:$0xff] %v95_v61  ;;  %v226_v36 = vsel %vm223_vm1, %v219_v55, %v220_v57  ;;  %v225_v4 = vsel %vm223_vm1, %v220_v57, %v221_v58 }
  0x2d   :  { %256 = vst [vmem:[#allocation6] sm:$0xff] %v254_v63  ;;  %300 = dma.vmem_to_hbm [thread:$0]  %s293_s16, 4096, %s295_s19, [#allocation4], %s409_s14, %s409_s14, %s410_s15   ;;  %v224_v3 = vsel %vm223_vm1, %v221_v58, %v222_v60  ;;  %v255_v40 = vsel %vm223_vm1, %v222_v60, %v191_v54 }
  0x2e   :  { %257 = vst [vmem:[#allocation6 + $0x8] sm:$0xff] %v253_v9 }
  0x2f   :  { %258 = vst [vmem:[#allocation6 + $0x10] sm:$0xff] %v252_v6 }
  0x30   :  { %259 = vst [vmem:[#allocation6 + $0x18] sm:$0xff] %v251_v11 }
  0x31   :  { %260 = vst [vmem:[#allocation6 + $0x20] sm:$0xff] %v250_v15 }
  0x32   :  { %261 = vst [vmem:[#allocation6 + $0x28] sm:$0xff] %v249_v16 }
  0x33   :  { %262 = vst [vmem:[#allocation6 + $0x30] sm:$0xff] %v248_v21 }
  0x34   :  { %263 = vst [vmem:[#allocation6 + $0x38] sm:$0xff] %v247_v20 }
  0x35   :  { %264 = vst [vmem:[#allocation6 + $0x40] sm:$0xff] %v246_v22 }
  0x36   :  { %265 = vst [vmem:[#allocation6 + $0x48] sm:$0xff] %v245_v26 }
  0x37   :  { %266 = vst [vmem:[#allocation6 + $0x50] sm:$0xff] %v244_v29 }
  0x38   :  { %267 = vst [vmem:[#allocation6 + $0x58] sm:$0xff] %v243_v32 }
  0x39   :  { %268 = vst [vmem:[#allocation6 + $0x60] sm:$0xff] %v242_v35 }
  0x3a   :  { %269 = vst [vmem:[#allocation6 + $0x68] sm:$0xff] %v241_v38 }
  0x3b   :  { %270 = vst [vmem:[#allocation6 + $0x70] sm:$0xff] %v240_v41 }
  0x3c   :  { %271 = vst [vmem:[#allocation6 + $0x78] sm:$0xff] %v239_v44 }
  0x3d   :  { %272 = vst [vmem:[#allocation6 + $0x80] sm:$0xff] %v238_v47 }
  0x3e   :  { %273 = vst [vmem:[#allocation6 + $0x88] sm:$0xff] %v237_v50 }
  0x3f   :  { %274 = vst [vmem:[#allocation6 + $0x90] sm:$0xff] %v236_v53 }
  0x40   :  { %275 = vst [vmem:[#allocation6 + $0x98] sm:$0xff] %v235_v56 }
  0x41   :  { %276 = vst [vmem:[#allocation6 + $0xa0] sm:$0xff] %v234_v59 }
  0x42   :  { %277 = vst [vmem:[#allocation6 + $0xa8] sm:$0xff] %v233_v62 }
  0x43   :  { %278 = vst [vmem:[#allocation6 + $0xb0] sm:$0xff] %v232_v5 }
  0x44   :  { %279 = vst [vmem:[#allocation6 + $0xb8] sm:$0xff] %v231_v12 }
  0x45   :  { %280 = vst [vmem:[#allocation6 + $0xc0] sm:$0xff] %v230_v18 }
  0x46   :  { %281 = vst [vmem:[#allocation6 + $0xc8] sm:$0xff] %v229_v23 }
  0x47   :  { %282 = vst [vmem:[#allocation6 + $0xd0] sm:$0xff] %v228_v27 }
  0x48   :  { %283 = vst [vmem:[#allocation6 + $0xd8] sm:$0xff] %v227_v31 }
  0x49   :  { %284 = vst [vmem:[#allocation6 + $0xe0] sm:$0xff] %v226_v36 }
  0x4a   :  { %285 = vst [vmem:[#allocation6 + $0xe8] sm:$0xff] %v225_v4 }
  0x4b   :  { %286 = vst [vmem:[#allocation6 + $0xf0] sm:$0xff] %v224_v3 }
  0x4c   :  { %287 = vst [vmem:[#allocation6 + $0xf8] sm:$0xff] %v255_v40 }
  0x4d   :  { %313 = dma.vmem_to_hbm [thread:$0]  %s306_s20, 4096, %s308_s23, [#allocation7], %s409_s14, %s409_s14, %s410_s15  }
  0x4e   :  { %404 = dma.done.wait [#allocation4], 4096  }
  0x4f   :  { %405 = vsyncadd [#allocation4], 4294963200 }
  0x50   :  { %406 = dma.done.wait [#allocation7], 4096  }
  0x51   :  { %407 = vsyncadd [#allocation7], 4294963200 }
  0x52   :  { %322 = vsyncpa [#allocation3], 1 }
  0x53   :  { %323 = vsyncpa [#allocation4], 1 }
  0x54   :  { %324 = vsyncpa [#allocation7], 1 }

// kernel: mlp_ir_forward.1
= control target key start
LH: loop header
LB: loop body
LE: loop exit
PB: predicated region body
PF: predicated region fallthrough
CT: control target
= control target key end

     0   :  { %12 = vsyncpa [#allocation4], 0  ;;  %s9511_s0 = inlined_call_operand.hbm [shape: f32[4,8,8,16], index: 0, kind: input, shape index: {}]   ;;  %s9512_s1 = inlined_call_operand.vmem [shape: bf16[16,32], index: 1, kind: input, shape index: {}]   ;;  %s9513_s2 = inlined_call_operand.vmem [shape: f32[1,32], index: 2, kind: input, shape index: {}]   ;;  %s9514_s3 = inlined_call_operand.vmem [shape: f32[9,32], index: 3, kind: input, shape index: {}]   ;;  %s9515_s4 = inlined_call_operand.vmem [shape: f32[1,32], index: 4, kind: input, shape index: {}]   ;;  %s9516_s5 = inlined_call_operand.vmem [shape: bf16[32,16], index: 5, kind: input, shape index: {}]   ;;  %s9517_s6 = inlined_call_operand.vmem [shape: f32[1,16], index: 6, kind: input, shape index: {}]   ;;  %s9518_s7 = inlined_call_operand.hbm [shape: f32[4,8,8,16], index: 7, kind: output, shape index: {}]  }
   0x1   :  { %13 = vsyncpa [#allocation5], 0  ;;  %s18_s26 = sshll.u32 %s9511_s0, 4  ;;  %s5298_s27 = smov [#allocation3]   ;;  %s19_s26 = int_to_ptr.hbm [resolvable:$true] %s18_s26 }
   0x2   :  { %s20_s28 = sshll.u32 %s5298_s27, 4  ;;  %s5299_s29 = smov 128   ;;  %s21_s28 = int_to_ptr.vmem [resolvable:$true] %s20_s28 }
   0x3   :  { %s5300_s30 = smov 8  }
   0x4   :  { %26 = dma.hbm_to_vmem [thread:$0]  %s19_s26, 4096, %s21_s28, [#allocation4], %s5299_s29, %s5299_s29, %s5300_s30  }
   0x5   :  { %5294 = dma.done.wait [#allocation4], 4096  }
   0x6   :  { %5295 = vsyncadd [#allocation4], 4294963200  ;;  %v5084_v0 = vld [vmem:[%s9512_s1] sm:$0xff]  ;;  %v45_v2 = vld [vmem:[#allocation3 + $0x8] sm:$0xff]  ;;  %vm104_vm0 = vcmask 130048   ;;  %vm1650_vm7 = vcmask 261120  }
   0x7   :  { %v44_v1 = vld [vmem:[#allocation3] sm:$0xff]  ;;  %v62_v4 = vld [vmem:[#allocation3 + $0x90] sm:$0xff]  ;;  %v63_v5 = vld [vmem:[#allocation3 + $0x98] sm:$0xff]  ;;  %160 = vmatpush.bf16.msra.mxu0 %v5084_v0  ;;  %5087 = vmatpush.bf16.msra.mxu3 %v5084_v0  ;;  %s4963_s18 = sshll.u32 %s9518_s7, 4  ;;  %s4964_s18 = int_to_ptr.hbm [resolvable:$true] %s4963_s18 }
   0x8   :  { %v76_v3 = vpack.c.bf16 %v45_v2, %v44_v1  ;;  %v85_v6 = vpack.c.bf16 %v63_v5, %v62_v4  ;;  %v46_v7 = vld [vmem:[#allocation3 + $0x10] sm:$0xff]  ;;  %v47_v8 = vld [vmem:[#allocation3 + $0x18] sm:$0xff]  ;;  %v64_v9 = vld [vmem:[#allocation3 + $0xa0] sm:$0xff] }
   0x9   :  { %v65_v10 = vld [vmem:[#allocation3 + $0xa8] sm:$0xff]  ;;  %v77_v11 = vpack.c.bf16 %v47_v8, %v46_v7  ;;  %v48_v13 = vld [vmem:[#allocation3 + $0x20] sm:$0xff]  ;;  %v66_v15 = vld [vmem:[#allocation3 + $0xb0] sm:$0xff] }
   0xa   :  { %4980 = vmatmul.msk.bf16.vlgmr.msra.gmra.mxu0 %vm104_vm0, %v76_v3  ;;  %4989 = vmatmul.msk.bf16.vlgmr.msra.gmra.mxu3 %vm104_vm0, %v85_v6  ;;  %v86_v12 = vpack.c.bf16 %v65_v10, %v64_v9  ;;  %v49_v14 = vld [vmem:[#allocation3 + $0x28] sm:$0xff]  ;;  %v67_v16 = vld [vmem:[#allocation3 + $0xb8] sm:$0xff]  ;;  %v50_v19 = vld [vmem:[#allocation3 + $0x30] sm:$0xff] }
   0xb   :  { %v78_v17 = vpack.c.bf16 %v49_v14, %v48_v13  ;;  %v87_v18 = vpack.c.bf16 %v67_v16, %v66_v15  ;;  %v51_v20 = vld [vmem:[#allocation3 + $0x38] sm:$0xff]  ;;  %v68_v21 = vld [vmem:[#allocation3 + $0xc0] sm:$0xff]  ;;  %v69_v22 = vld [vmem:[#allocation3 + $0xc8] sm:$0xff] }
   0xc   :  { %v79_v23 = vpack.c.bf16 %v51_v20, %v50_v19  ;;  %v88_v24 = vpack.c.bf16 %v69_v22, %v68_v21  ;;  %v52_v25 = vld [vmem:[#allocation3 + $0x40] sm:$0xff]  ;;  %v53_v26 = vld [vmem:[#allocation3 + $0x48] sm:$0xff]  ;;  %v70_v27 = vld [vmem:[#allocation3 + $0xd0] sm:$0xff] }
   0xd   :  { %v71_v28 = vld [vmem:[#allocation3 + $0xd8] sm:$0xff]  ;;  %v80_v29 = vpack.c.bf16 %v53_v26, %v52_v25  ;;  %v54_v31 = vld [vmem:[#allocation3 + $0x50] sm:$0xff]  ;;  %v72_v33 = vld [vmem:[#allocation3 + $0xe0] sm:$0xff] }
   0xe   :  { %v89_v30 = vpack.c.bf16 %v71_v28, %v70_v27  ;;  %v55_v32 = vld [vmem:[#allocation3 + $0x58] sm:$0xff]  ;;  %v73_v34 = vld [vmem:[#allocation3 + $0xe8] sm:$0xff]  ;;  %v56_v37 = vld [vmem:[#allocation3 + $0x60] sm:$0xff] }
   0xf   :  { %v81_v35 = vpack.c.bf16 %v55_v32, %v54_v31  ;;  %v90_v36 = vpack.c.bf16 %v73_v34, %v72_v33  ;;  %v57_v38 = vld [vmem:[#allocation3 + $0x68] sm:$0xff]  ;;  %v74_v39 = vld [vmem:[#allocation3 + $0xf0] sm:$0xff]  ;;  %v75_v40 = vld [vmem:[#allocation3 + $0xf8] sm:$0xff] }
  0x10   :  { %v82_v41 = vpack.c.bf16 %v57_v38, %v56_v37  ;;  %v91_v42 = vpack.c.bf16 %v75_v40, %v74_v39  ;;  %v58_v43 = vld [vmem:[#allocation3 + $0x70] sm:$0xff]  ;;  %v59_v44 = vld [vmem:[#allocation3 + $0x78] sm:$0xff]  ;;  %v60_v46 = vld [vmem:[#allocation3 + $0x80] sm:$0xff] }
  0x11   :  { %v83_v45 = vpack.c.bf16 %v59_v44, %v58_v43  ;;  %v61_v47 = vld [vmem:[#allocation3 + $0x88] sm:$0xff]  ;;  %v5370_v48 = vld [vmem:[%s9513_s2] ss:$0 sm:$0xff] }
  0x12   :  { %v84_v49 = vpack.c.bf16 %v61_v47, %v60_v46 }
  0x1a   :  { %4981 = vmatmul.msk.bf16.gmra.mxu0 %vm104_vm0, %v77_v11  ;;  %4990 = vmatmul.msk.bf16.gmra.mxu3 %vm104_vm0, %v86_v12 }
  0x2a   :  { %4982 = vmatmul.msk.bf16.gmra.mxu0 %vm104_vm0, %v78_v17  ;;  %4991 = vmatmul.msk.bf16.gmra.mxu3 %vm104_vm0, %v87_v18 }
  0x3a   :  { %4983 = vmatmul.msk.bf16.gmra.mxu0 %vm104_vm0, %v79_v23  ;;  %4992 = vmatmul.msk.bf16.gmra.mxu3 %vm104_vm0, %v88_v24 }
  0x4a   :  { %4984 = vmatmul.msk.bf16.gmra.mxu0 %vm104_vm0, %v80_v29  ;;  %4993 = vmatmul.msk.bf16.gmra.mxu3 %vm104_vm0, %v89_v30 }
  0x5a   :  { %4985 = vmatmul.msk.bf16.gmra.mxu0 %vm104_vm0, %v81_v35  ;;  %4994 = vmatmul.msk.bf16.gmra.mxu3 %vm104_vm0, %v90_v36 }
  0x6a   :  { %4986 = vmatmul.msk.bf16.gmra.mxu0 %vm104_vm0, %v82_v41  ;;  %4995 = vmatmul.msk.bf16.gmra.mxu3 %vm104_vm0, %v91_v42 }
  0x7a   :  { %4987 = vmatmul.msk.bf16.gmra.mxu0 %vm104_vm0, %v83_v45 }
  0x87   :  { %v162_v50 = vpop.f32.mrf.mxu0 }
  0x88   :  { %v5373_v51 = vadd.f32 %v5370_v48, %v162_v50 }
  0x8a   :  { %v5376_v52 = vmul.f32 0.70710677, %v5373_v51  ;;  %4988 = vmatmul.msk.bf16.gmra.mxu0 %vm104_vm0, %v84_v49 }
  0x8c   :  { %v306_v53 = vmul.f32 %v5376_v52, %v5376_v52 }
  0x8d   :  { %v207_v54 = vpop.f32.mrf.mxu3 }
  0x8e   :  { %v307_v55 = vmin.f32 %v306_v53, 16.0  ;;  %v5382_v56 = vadd.f32 %v5370_v48, %v207_v54 }
  0x8f   :  { %v164_v57 = vpop.f32.mrf.mxu0 }
  0x90   :  { %v308_v58 = vmul.f32 2.1237322e-06, %v307_v55  ;;  %v319_v59 = vmul.f32 3.8918573e-05, %v307_v55  ;;  %v5385_v60 = vmul.f32 0.70710677, %v5382_v56  ;;  %v165_v61 = vadd.f32 %v5370_v48, %v164_v57 }
  0x92   :  { %v309_v62 = vadd.f32 0.00028619796, %v308_v58  ;;  %v320_v63 = vadd.f32 0.001143296, %v319_v59  ;;  %v1026_v0 = vmul.f32 %v5385_v60, %v5385_v60  ;;  %v5390_v1 = vmul.f32 0.70710677, %v165_v61 }
  0x93   :  { %v5435_v59 = vmul.f32 0.5, %v5382_v56 }
  0x94   :  { %v310_v2 = vmul.f32 %v309_v62, %v307_v55  ;;  %v321_v3 = vmul.f32 %v320_v63, %v307_v55  ;;  %v5392_v4 = vmin.f32 %v1026_v0, 16.0  ;;  %v346_v5 = vmul.f32 %v5390_v1, %v5390_v1 }
  0x95   :  { %v209_v6 = vpop.f32.mrf.mxu3  ;;  %v5437_v62 = vmul.f32 0.5, %v165_v61 }
  0x96   :  { %v311_v7 = vadd.f32 0.0036580483, %v310_v2  ;;  %v322_v8 = vadd.f32 0.014752088, %v321_v3  ;;  %v1039_v9 = vmul.f32 3.8918573e-05, %v5392_v4  ;;  %v5398_v10 = vadd.f32 %v5370_v48, %v209_v6 }
  0x97   :  { %v5400_v11 = vmin.f32 %v346_v5, 16.0  ;;  %v167_v22 = vpop.f32.mrf.mxu0  ;;  %v1028_v29 = vmul.f32 2.1237322e-06, %v5392_v4 }
  0x98   :  { %v312_v12 = vmul.f32 %v311_v7, %v307_v55  ;;  %v323_v13 = vmul.f32 %v322_v8, %v307_v55  ;;  %v1040_v14 = vadd.f32 0.001143296, %v1039_v9  ;;  %v5403_v15 = vmul.f32 0.70710677, %v5398_v10 }
  0x99   :  { %v348_v16 = vmul.f32 2.1237322e-06, %v5400_v11  ;;  %v359_v17 = vmul.f32 3.8918573e-05, %v5400_v11  ;;  %v5416_v32 = vadd.f32 %v5370_v48, %v167_v22  ;;  %v1029_v37 = vadd.f32 0.00028619796, %v1028_v29 }
  0x9a   :  { %v313_v18 = vadd.f32 0.05243302, %v312_v12  ;;  %v324_v19 = vadd.f32 0.112945676, %v323_v13  ;;  %v1041_v20 = vmul.f32 %v1040_v14, %v5392_v4  ;;  %v1066_v21 = vmul.f32 %v5403_v15, %v5403_v15 }
  0x9b   :  { %v349_v23 = vadd.f32 0.00028619796, %v348_v16  ;;  %v360_v24 = vadd.f32 0.001143296, %v359_v17  ;;  %v1030_v44 = vmul.f32 %v1029_v37, %v5392_v4  ;;  %v5428_v53 = vmul.f32 0.70710677, %v5416_v32 }
  0x9c   :  { %v314_v25 = vmul.f32 %v313_v18, %v307_v55  ;;  %v325_v26 = vmul.f32 %v324_v19, %v307_v55  ;;  %v1042_v27 = vadd.f32 0.014752088, %v1041_v20  ;;  %v5410_v28 = vmin.f32 %v1066_v21, 16.0 }
  0x9d   :  { %v350_v30 = vmul.f32 %v349_v23, %v5400_v11  ;;  %v361_v31 = vmul.f32 %v360_v24, %v5400_v11  ;;  %v1031_v54 = vadd.f32 0.0036580483, %v1030_v44  ;;  %v212_v5 = vpop.f32.mrf.mxu3  ;;  %v386_v12 = vmul.f32 %v5428_v53, %v5428_v53 }
  0x9e   :  { %v315_v33 = vadd.f32 0.18741608, %v314_v25  ;;  %v326_v34 = vadd.f32 0.4994258, %v325_v26  ;;  %v1043_v35 = vmul.f32 %v1042_v27, %v5392_v4  ;;  %v1079_v36 = vmul.f32 3.8918573e-05, %v5410_v28 }
  0x9f   :  { %v351_v38 = vadd.f32 0.0036580483, %v350_v30  ;;  %v362_v39 = vadd.f32 0.014752088, %v361_v31  ;;  %v1032_v0 = vmul.f32 %v1031_v54, %v5392_v4  ;;  %v1068_v7 = vmul.f32 2.1237322e-06, %v5410_v28 }
  0xa0   :  { %v327_v40 = vmul.f32 %v326_v34, %v307_v55  ;;  %v1044_v41 = vadd.f32 0.112945676, %v1043_v35  ;;  %v1080_v42 = vadd.f32 0.001143296, %v1079_v36  ;;  %v316_v43 = vmul.f32 %v315_v33, %v307_v55 }
  0xa1   :  { %v352_v45 = vmul.f32 %v351_v38, %v5400_v11  ;;  %v363_v46 = vmul.f32 %v362_v39, %v5400_v11  ;;  %v5431_v55 = vmul.f32 0.5, %v5373_v51  ;;  %v5444_v8 = vadd.f32 %v5370_v48, %v212_v5 }
  0xa2   :  { %v5423_v47 = vadd.f32 1.0, %v327_v40  ;;  %v1045_v49 = vmul.f32 %v1044_v41, %v5392_v4  ;;  %v1081_v50 = vmul.f32 %v1080_v42, %v5410_v28  ;;  %v317_v63 = vadd.f32 1.1283791, %v316_v43 }
  0xa3   :  { %v353_v57 = vadd.f32 0.05243302, %v352_v45  ;;  %v364_v58 = vadd.f32 0.112945676, %v363_v46  ;;  %v1033_v9 = vadd.f32 0.05243302, %v1032_v0 }
  0xa4   :  { %5099 = vrcp.f32 %v5423_v47  ;;  %v1046_v2 = vadd.f32 0.4994258, %v1045_v49  ;;  %v1082_v51 = vadd.f32 0.014752088, %v1081_v50  ;;  %v338_v13 = vand.u32 2147483647, %v5423_v47 }
  0xa5   :  { %v354_v3 = vmul.f32 %v353_v57, %v5400_v11  ;;  %v365_v6 = vmul.f32 %v364_v58, %v5400_v11  ;;  %v1069_v16 = vadd.f32 0.00028619796, %v1068_v7  ;;  %v318_v18 = vmul.f32 %v317_v63, %v5376_v52 }
  0xa6   :  { %v1047_v56 = vmul.f32 %v1046_v2, %v5392_v4  ;;  %v1083_v17 = vmul.f32 %v1082_v51, %v5410_v28  ;;  %v1034_v19 = vmul.f32 %v1033_v9, %v5392_v4  ;;  %v340_v23 = vand.u32 2147483648, %v5423_v47 }
  0xa7   :  { %v355_v61 = vadd.f32 0.18741608, %v354_v3  ;;  %v366_v14 = vadd.f32 0.4994258, %v365_v6  ;;  %v1070_v25 = vmul.f32 %v1069_v16, %v5410_v28  ;;  %vm334_vm1 = vweird.f32 %v5423_v47 }
  0xa8   :  { %v1048_v20 = vadd.f32 1.0, %v1047_v56  ;;  %v1084_v26 = vadd.f32 0.112945676, %v1083_v17  ;;  %v1035_v29 = vadd.f32 0.18741608, %v1034_v19  ;;  %vm5459_vm2 = vcmp.eq.f32.partialorder %v338_v13, 8.507059e+37 }
  0xa9   :  { %v356_v21 = vmul.f32 %v355_v61, %v5400_v11  ;;  %v367_v24 = vmul.f32 %v366_v14, %v5400_v11  ;;  %v5463_v33 = vmin.f32 %v386_v12, 16.0  ;;  %v1071_v36 = vadd.f32 0.0036580483, %v1070_v25 }
  0xaa   :  { %v5100_v22 = vpop.eup %5099  ;;  %5101 = vrcp.f32 %v1048_v20  ;;  %v1058_v30 = vand.u32 2147483647, %v1048_v20  ;;  %v1060_v31 = vand.u32 2147483648, %v1048_v20  ;;  %v341_v37 = vor.u32 1.1754944e-38, %v340_v23 }
  0xab   :  { %v330_v27 = vmul.f32 %v5100_v22, %v5423_v47  ;;  %v357_v35 = vadd.f32 1.1283791, %v356_v21  ;;  %v5465_v11 = vadd.f32 1.0, %v367_v24  ;;  %v1036_v38 = vmul.f32 %v1035_v29, %v5392_v4 }
  0xac   :  { %v1085_v39 = vmul.f32 %v1084_v26, %v5410_v28  ;;  %v5470_v40 = vmul.f32 0.70710677, %v5444_v8  ;;  %vm335_vm3 = vweird.f32 %v5100_v22  ;;  %vm1054_vm4 = vweird.f32 %v1048_v20 }
  0xad   :  { %v331_v34 = vsub.f32 1.0, %v330_v27  ;;  %5103 = vrcp.f32 %v5465_v11  ;;  %vm5473_vm5 = vcmp.eq.f32.partialorder %v1058_v30, 8.507059e+37  ;;  %v1061_v43 = vor.u32 1.1754944e-38, %v1060_v31  ;;  %vm336_vm6 = vmor %vm334_vm1, %vm335_vm3  ;;  %v169_v31 = vpop.f32.mrf.mxu0 }
  0xae   :  { %v1072_v44 = vmul.f32 %v1071_v36, %v5410_v28  ;;  %v1086_v45 = vadd.f32 0.4994258, %v1085_v39  ;;  %v5479_v49 = vmul.f32 %v357_v35, %v5390_v1  ;;  %v388_v50 = vmul.f32 2.1237322e-06, %v5463_v33 }
  0xaf   :  { %v332_v41 = vmul.f32 %v5100_v22, %v331_v34  ;;  %v399_v54 = vmul.f32 3.8918573e-05, %v5463_v33  ;;  %v1037_v57 = vadd.f32 1.1283791, %v1036_v38  ;;  %v378_v63 = vand.u32 2147483647, %v5465_v11 }
  0xb0   :  { %v5102_v46 = vpop.eup %5101  ;;  %v380_v0 = vand.u32 2147483648, %v5465_v11  ;;  %v1073_v3 = vadd.f32 0.05243302, %v1072_v44  ;;  %v1087_v5 = vmul.f32 %v1086_v45, %v5410_v28  ;;  %v389_v1 = vadd.f32 0.00028619796, %v388_v50 }
  0xb1   :  { %v333_v4 = vadd.f32 %v5100_v22, %v332_v41  ;;  %v1050_v58 = vmul.f32 %v5102_v46, %v1048_v20  ;;  %vm1055_vm8 = vweird.f32 %v5102_v46  ;;  %vm374_vm9 = vweird.f32 %v5465_v11 }
  0xb2   :  { %v400_v47 = vadd.f32 0.001143296, %v399_v54  ;;  %v1074_v56 = vmul.f32 %v1073_v3, %v5410_v28  ;;  %v1088_v61 = vadd.f32 1.0, %v1087_v5  ;;  %v390_v12 = vmul.f32 %v389_v1, %v5463_v33  ;;  %vm5497_vm10 = vmor %vm1054_vm4, %vm1055_vm8 }
  0xb3   :  { %v337_v2 = vsel %vm336_vm6, %v5100_v22, %v333_v4  ;;  %v1051_v7 = vsub.f32 1.0, %v1050_v58  ;;  %v5104_v51 = vpop.eup %5103  ;;  %v1038_v13 = vmul.f32 %v1037_v57, %v5385_v60  ;;  %vm5501_vm11 = vcmp.eq.f32.partialorder %v378_v63, 8.507059e+37 }
  0xb4   :  { %v342_v6 = vsel %vm5459_vm2, %v341_v37, %v337_v2  ;;  %v370_v16 = vmul.f32 %v5104_v51, %v5465_v11  ;;  %v401_v17 = vmul.f32 %v400_v47, %v5463_v33  ;;  %v1075_v22 = vadd.f32 0.18741608, %v1074_v56 }
  0xb5   :  { %v343_v9 = vmul.f32 %v342_v6, %v318_v18  ;;  %v1052_v14 = vmul.f32 %v5102_v46, %v1051_v7  ;;  %5105 = vrcp.f32 %v1088_v61  ;;  %v381_v60 = vor.u32 1.1754944e-38, %v380_v0 }
  0xb6   :  { %v371_v24 = vsub.f32 1.0, %v370_v16  ;;  %v1106_v25 = vmul.f32 %v5470_v40, %v5470_v40  ;;  %v1076_v27 = vmul.f32 %v1075_v22, %v5410_v28  ;;  %v391_v20 = vadd.f32 0.0036580483, %v390_v12 }
  0xb7   :  { %v4996_v19 = vclamps-f32 %v343_v9, 1.0  ;;  %v1053_v23 = vadd.f32 %v5102_v46, %v1052_v14  ;;  %v402_v29 = vadd.f32 0.014752088, %v401_v17  ;;  %vm375_vm12 = vweird.f32 %v5104_v51 }
  0xb8   :  { %v372_v30 = vmul.f32 %v5104_v51, %v371_v24  ;;  %vm1094_vm13 = vweird.f32 %v1088_v61  ;;  %v1098_v36 = vand.u32 2147483647, %v1088_v61  ;;  %v392_v37 = vmul.f32 %v391_v20, %v5463_v33  ;;  %vm376_vm14 = vmor %vm374_vm9, %vm375_vm12 }
  0xb9   :  { %v1586_v26 = vadd.f32 1.0, %v4996_v19  ;;  %v1057_v52 = vsel %vm5497_vm10, %v5102_v46, %v1053_v23  ;;  %v403_v28 = vmul.f32 %v402_v29, %v5463_v33  ;;  %v5515_v41 = vmin.f32 %v1106_v25, 16.0 }
  0xba   :  { %v1062_v35 = vsel %vm5473_vm5, %v1061_v43, %v1057_v52  ;;  %v373_v39 = vadd.f32 %v5104_v51, %v372_v30  ;;  %v1077_v45 = vadd.f32 1.1283791, %v1076_v27  ;;  %v393_v46 = vadd.f32 0.05243302, %v392_v37  ;;  %v214_v43 = vpop.f32.mrf.mxu3 }
  0xbb   :  { %v1618_v34 = vmul.f32 %v1586_v26, %v5431_v55  ;;  %v1063_v38 = vmul.f32 %v1062_v35, %v1038_v13  ;;  %v5106_v44 = vpop.eup %5105  ;;  %v1100_v55 = vand.u32 2147483648, %v1088_v61  ;;  %v170_v42 = vadd.f32 %v5370_v48, %v169_v31 }
  0xbc   :  { %v377_v50 = vsel %vm376_vm14, %v5104_v51, %v373_v39  ;;  %v1090_v54 = vmul.f32 %v5106_v44, %v1088_v61  ;;  %v5522_v57 = vadd.f32 %v5370_v48, %v214_v43  ;;  %vm1095_vm15 = vweird.f32 %v5106_v44 }
  0xbd   :  { %1661 = vst.msk [vmem:[#allocation2 + $0x8] sm:$0xff] %vm1650_vm7, %v1618_v34  ;;  %v5014_v4 = vclamps-f32 %v1063_v38, 1.0  ;;  %v382_v58 = vsel %vm5501_vm11, %v381_v60, %v377_v50  ;;  %v404_v63 = vadd.f32 0.112945676, %v403_v28  ;;  %v1108_v11 = vmul.f32 2.1237322e-06, %v5515_v41  ;;  %vm5538_vm2 = vmor %vm1094_vm13, %vm1095_vm15 }
  0xbe   :  { %v383_v2 = vmul.f32 %v382_v58, %v5479_v49  ;;  %v1091_v3 = vsub.f32 1.0, %v1090_v54  ;;  %v1119_v5 = vmul.f32 3.8918573e-05, %v5515_v41  ;;  %vm5529_vm1 = vcmp.eq.f32.partialorder %v1098_v36, 8.507059e+37 }
  0xbf   :  { %v1604_v0 = vadd.f32 1.0, %v5014_v4  ;;  %v1101_v6 = vor.u32 1.1754944e-38, %v1100_v55  ;;  %v405_v7 = vmul.f32 %v404_v63, %v5463_v33  ;;  %v1109_v47 = vadd.f32 0.00028619796, %v1108_v11 }
  0xc0   :  { %v4997_v9 = vclamps-f32 %v383_v2, 1.0  ;;  %v1078_v56 = vmul.f32 %v1077_v45, %v5403_v15  ;;  %v1092_v12 = vmul.f32 %v5106_v44, %v1091_v3  ;;  %v394_v13 = vmul.f32 %v393_v46, %v5463_v33 }
  0xc1   :  { %v1636_v51 = vmul.f32 %v1604_v0, %v5435_v59  ;;  %v406_v14 = vadd.f32 0.4994258, %v405_v7  ;;  %v1110_v16 = vmul.f32 %v1109_v47, %v5515_v41  ;;  %v1120_v17 = vadd.f32 0.001143296, %v1119_v5 }
  0xc2   :  { %v1587_v19 = vadd.f32 1.0, %v4997_v9  ;;  %v1093_v59 = vadd.f32 %v5106_v44, %v1092_v12  ;;  %v5545_v21 = vmul.f32 0.70710677, %v170_v42  ;;  %v5548_v15 = vmul.f32 0.70710677, %v5522_v57 }
  0xc3   :  { %1679 = vst.msk [vmem:[#allocation2 + $0xb8] sm:$0xff] %vm1650_vm7, %v1636_v51  ;;  %v407_v61 = vmul.f32 %v406_v14, %v5463_v33  ;;  %v1111_v18 = vadd.f32 0.0036580483, %v1110_v16  ;;  %v1121_v22 = vmul.f32 %v1120_v17, %v5515_v41  ;;  %v395_v27 = vadd.f32 0.18741608, %v394_v13 }
  0xc4   :  { %v1619_v23 = vmul.f32 %v1587_v19, %v5437_v62  ;;  %v1097_v24 = vsel %vm5538_vm2, %v5106_v44, %v1093_v59  ;;  %v426_v60 = vmul.f32 %v5545_v21, %v5545_v21  ;;  %v1146_v25 = vmul.f32 %v5548_v15, %v5548_v15 }
  0xc5   :  { %v1102_v26 = vsel %vm5529_vm1, %v1101_v6, %v1097_v24  ;;  %v5561_v20 = vadd.f32 1.0, %v407_v61  ;;  %v1112_v29 = vmul.f32 %v1111_v18, %v5515_v41  ;;  %v1122_v52 = vadd.f32 0.014752088, %v1121_v22 }
  0xc6   :  { %1662 = vst.msk [vmem:[#allocation2 + $0x10] sm:$0xff] %vm1650_vm7, %v1619_v23  ;;  %v1103_v62 = vmul.f32 %v1102_v26, %v1078_v56  ;;  %v5565_v30 = vmin.f32 %v426_v60, 16.0  ;;  %v261_v31 = vmul.f32 0.5, %v5398_v10  ;;  %v5569_v34 = vmul.f32 0.5, %v5416_v32  ;;  %v172_v32 = vpop.f32.mrf.mxu0 }
  0xc7   :  { %5107 = vrcp.f32 %v5561_v20  ;;  %v5572_v35 = vmin.f32 %v1146_v25, 16.0  ;;  %v1113_v37 = vadd.f32 0.05243302, %v1112_v29  ;;  %v1123_v38 = vmul.f32 %v1122_v52, %v5515_v41 }
  0xc8   :  { %v5015_v36 = vclamps-f32 %v1103_v62, 1.0  ;;  %v428_v39 = vmul.f32 2.1237322e-06, %v5565_v30  ;;  %v396_v28 = vmul.f32 %v395_v27, %v5463_v33  ;;  %v5577_v44 = vmul.f32 0.5, %v170_v42 }
  0xc9   :  { %v439_v45 = vmul.f32 3.8918573e-05, %v5565_v30  ;;  %v1148_v10 = vmul.f32 2.1237322e-06, %v5572_v35  ;;  %v5582_v46 = vmul.f32 0.5, %v5444_v8  ;;  %v1114_v50 = vmul.f32 %v1113_v37, %v5515_v41 }
  0xca   :  { %v1605_v55 = vadd.f32 1.0, %v5015_v36  ;;  %v1124_v43 = vadd.f32 0.112945676, %v1123_v38  ;;  %v429_v4 = vadd.f32 0.00028619796, %v428_v39  ;;  %v5589_v0 = vadd.f32 %v5370_v48, %v172_v32 }
  0xcb   :  { %v440_v54 = vadd.f32 0.001143296, %v439_v45  ;;  %v1149_v58 = vadd.f32 0.00028619796, %v1148_v10  ;;  %v1159_v63 = vmul.f32 3.8918573e-05, %v5572_v35  ;;  %vm414_vm3 = vweird.f32 %v5561_v20 }
  0xcc   :  { %v1637_v33 = vmul.f32 %v1605_v55, %v261_v31  ;;  %v1125_v42 = vmul.f32 %v1124_v43, %v5515_v41  ;;  %v430_v11 = vmul.f32 %v429_v4, %v5565_v30  ;;  %v397_v3 = vadd.f32 1.1283791, %v396_v28 }
  0xcd   :  { %v5108_v2 = vpop.eup %5107  ;;  %v441_v8 = vmul.f32 %v440_v54, %v5565_v30  ;;  %v1150_v5 = vmul.f32 %v1149_v58, %v5572_v35  ;;  %v1160_v1 = vadd.f32 0.001143296, %v1159_v63  ;;  %v420_v7 = vand.u32 2147483648, %v5561_v20 }
  0xce   :  { %1680 = vst.msk [vmem:[#allocation2 + $0xc0] sm:$0xff] %vm1650_vm7, %v1637_v33  ;;  %v410_v6 = vmul.f32 %v5108_v2, %v5561_v20  ;;  %v1126_v47 = vadd.f32 0.4994258, %v1125_v42  ;;  %v431_v51 = vadd.f32 0.0036580483, %v430_v11  ;;  %vm415_vm4 = vweird.f32 %v5108_v2 }
  0xcf   :  { %v442_v9 = vadd.f32 0.014752088, %v441_v8  ;;  %v1151_v56 = vadd.f32 0.0036580483, %v1150_v5  ;;  %v1161_v12 = vmul.f32 %v1160_v1, %v5572_v35  ;;  %v1115_v13 = vadd.f32 0.18741608, %v1114_v50  ;;  %vm416_vm5 = vmor %vm414_vm3, %vm415_vm4 }
  0xd0   :  { %v411_v49 = vsub.f32 1.0, %v410_v6  ;;  %v1127_v14 = vmul.f32 %v1126_v47, %v5515_v41  ;;  %v5600_v16 = vmul.f32 0.70710677, %v5589_v0  ;;  %v432_v17 = vmul.f32 %v431_v51, %v5565_v30  ;;  %v174_v6 = vpop.f32.mrf.mxu0 }
  0xd1   :  { %v443_v19 = vmul.f32 %v442_v9, %v5565_v30  ;;  %v1152_v59 = vmul.f32 %v1151_v56, %v5572_v35  ;;  %v1162_v61 = vadd.f32 0.014752088, %v1161_v12  ;;  %v418_v22 = vand.u32 2147483647, %v5561_v20 }
  0xd2   :  { %v412_v18 = vmul.f32 %v5108_v2, %v411_v49  ;;  %v1128_v23 = vadd.f32 1.0, %v1127_v14  ;;  %v433_v24 = vadd.f32 0.05243302, %v432_v17  ;;  %v421_v29 = vor.u32 1.1754944e-38, %v420_v7 }
  0xd3   :  { %v444_v60 = vadd.f32 0.112945676, %v443_v19  ;;  %v1153_v25 = vadd.f32 0.05243302, %v1152_v59  ;;  %v1163_v26 = vmul.f32 %v1162_v61, %v5572_v35  ;;  %v466_v62 = vmul.f32 %v5600_v16, %v5600_v16 }
  0xd4   :  { %v413_v27 = vadd.f32 %v5108_v2, %v412_v18  ;;  %5109 = vrcp.f32 %v1128_v23  ;;  %v1116_v52 = vmul.f32 %v1115_v13, %v5515_v41  ;;  %v434_v31 = vmul.f32 %v433_v24, %v5565_v30 }
  0xd5   :  { %v445_v36 = vmul.f32 %v444_v60, %v5565_v30  ;;  %v1154_v37 = vmul.f32 %v1153_v25, %v5572_v35  ;;  %v398_v38 = vmul.f32 %v397_v3, %v5428_v53  ;;  %vm419_vm6 = vcmp.eq.f32.partialorder %v418_v22, 8.507059e+37  ;;  %v217_v53 = vpop.f32.mrf.mxu3 }
  0xd6   :  { %v417_v39 = vsel %vm416_vm5, %v5108_v2, %v413_v27  ;;  %v1164_v28 = vadd.f32 0.112945676, %v1163_v26  ;;  %v1138_v10 = vand.u32 2147483647, %v1128_v23  ;;  %v435_v32 = vadd.f32 0.18741608, %v434_v31 }
  0xd7   :  { %v422_v45 = vsel %vm419_vm6, %v421_v29, %v417_v39  ;;  %v446_v55 = vadd.f32 0.4994258, %v445_v36  ;;  %v1155_v20 = vadd.f32 0.18741608, %v1154_v37  ;;  %v5617_v41 = vmin.f32 %v466_v62, 16.0 }
  0xd8   :  { %v423_v43 = vmul.f32 %v422_v45, %v398_v38  ;;  %v1165_v4 = vmul.f32 %v1164_v28, %v5572_v35  ;;  %v1117_v50 = vadd.f32 1.1283791, %v1116_v52  ;;  %vm1134_vm8 = vweird.f32 %v1128_v23 }
  0xd9   :  { %v436_v54 = vmul.f32 %v435_v32, %v5565_v30  ;;  %v447_v58 = vmul.f32 %v446_v55, %v5565_v30  ;;  %v1156_v42 = vmul.f32 %v1155_v20, %v5572_v35  ;;  %v468_v2 = vmul.f32 2.1237322e-06, %v5617_v41 }
  0xda   :  { %v5110_v63 = vpop.eup %5109  ;;  %v4998_v33 = vclamps-f32 %v423_v43, 1.0  ;;  %v1166_v11 = vadd.f32 0.4994258, %v1165_v4  ;;  %vm5623_vm9 = vcmp.eq.f32.partialorder %v1138_v10, 8.507059e+37  ;;  %v1140_v5 = vand.u32 2147483648, %v1128_v23 }
  0xdb   :  { %v1130_v3 = vmul.f32 %v5110_v63, %v1128_v23  ;;  %v5627_v1 = vadd.f32 1.0, %v447_v58  ;;  %v469_v47 = vadd.f32 0.00028619796, %v468_v2  ;;  %v5631_v51 = vadd.f32 %v5370_v48, %v217_v53 }
  0xdc   :  { %v1588_v7 = vadd.f32 1.0, %v4998_v33  ;;  %v1167_v30 = vmul.f32 %v1166_v11, %v5572_v35  ;;  %vm1135_vm10 = vweird.f32 %v5110_v63  ;;  %v437_v56 = vadd.f32 1.1283791, %v436_v54 }
  0xdd   :  { %v1131_v9 = vsub.f32 1.0, %v1130_v3  ;;  %5111 = vrcp.f32 %v5627_v1  ;;  %v460_v49 = vand.u32 2147483648, %v5627_v1  ;;  %v1157_v13 = vadd.f32 1.1283791, %v1156_v42  ;;  %vm5646_vm11 = vmor %vm1134_vm8, %vm1135_vm10 }
  0xde   :  { %v1620_v12 = vmul.f32 %v1588_v7, %v5569_v34  ;;  %v5637_v14 = vadd.f32 %v5370_v48, %v174_v6  ;;  %v5639_v19 = vadd.f32 1.0, %v1167_v30  ;;  %v470_v35 = vmul.f32 %v469_v47, %v5617_v41 }
  0xdf   :  { %v1132_v17 = vmul.f32 %v5110_v63, %v1131_v9  ;;  %v479_v59 = vmul.f32 3.8918573e-05, %v5617_v41  ;;  %v1118_v61 = vmul.f32 %v1117_v50, %v5470_v40  ;;  %v1141_v18 = vor.u32 1.1754944e-38, %v1140_v5 }
  0xe0   :  { %1663 = vst.msk [vmem:[#allocation2 + $0x18] sm:$0xff] %vm1650_vm7, %v1620_v12  ;;  %v458_v22 = vand.u32 2147483647, %v5627_v1  ;;  %v5652_v24 = vmul.f32 0.70710677, %v5631_v51  ;;  %v438_v25 = vmul.f32 %v437_v56, %v5545_v21  ;;  %v5656_v26 = vmul.f32 0.5, %v5522_v57  ;;  %v219_v21 = vpop.f32.mrf.mxu3 }
  0xe1   :  { %v1133_v60 = vadd.f32 %v5110_v63, %v1132_v17  ;;  %5113 = vrcp.f32 %v5639_v19  ;;  %vm454_vm12 = vweird.f32 %v5627_v1  ;;  %v471_v40 = vadd.f32 0.0036580483, %v470_v35 }
  0xe2   :  { %v480_v23 = vadd.f32 0.001143296, %v479_v59  ;;  %v1186_v27 = vmul.f32 %v5652_v24, %v5652_v24  ;;  %v461_v52 = vor.u32 1.1754944e-38, %v460_v49  ;;  %v5665_v31 = vmul.f32 %v1157_v13, %v5548_v15 }
  0xe3   :  { %v5112_v29 = vpop.eup %5111  ;;  %v1137_v62 = vsel %vm5646_vm11, %v5110_v63, %v1133_v60  ;;  %v5668_v57 = vmul.f32 0.70710677, %v5637_v14  ;;  %vm5673_vm13 = vcmp.eq.f32.partialorder %v458_v22, 8.507059e+37  ;;  %vm1174_vm14 = vweird.f32 %v5639_v19 }
  0xe4   :  { %v1142_v36 = vsel %vm5623_vm9, %v1141_v18, %v1137_v62  ;;  %v450_v37 = vmul.f32 %v5112_v29, %v5627_v1  ;;  %v1180_v39 = vand.u32 2147483648, %v5639_v19  ;;  %v472_v15 = vmul.f32 %v471_v40, %v5617_v41 }
  0xe5   :  { %v1143_v28 = vmul.f32 %v1142_v36, %v1118_v61  ;;  %v481_v45 = vmul.f32 %v480_v23, %v5617_v41  ;;  %v5681_v10 = vmin.f32 %v1186_v27, 16.0  ;;  %v1178_v55 = vand.u32 2147483647, %v5639_v19 }
  0xe6   :  { %v451_v32 = vsub.f32 1.0, %v450_v37  ;;  %v506_v43 = vmul.f32 %v5668_v57, %v5668_v57  ;;  %v5687_v20 = vadd.f32 %v5370_v48, %v219_v21  ;;  %vm455_vm15 = vweird.f32 %v5112_v29 }
  0xe7   :  { %v5114_v4 = vpop.eup %5113  ;;  %v5016_v50 = vclamps-f32 %v1143_v28, 1.0  ;;  %v473_v54 = vadd.f32 0.05243302, %v472_v15  ;;  %v482_v58 = vadd.f32 0.014752088, %v481_v45  ;;  %v1181_v33 = vor.u32 1.1754944e-38, %v1180_v39  ;;  %vm456_vm2 = vmor %vm454_vm12, %vm455_vm15 }
  0xe8   :  { %v452_v53 = vmul.f32 %v5112_v29, %v451_v32  ;;  %v1170_v63 = vmul.f32 %v5114_v4, %v5639_v19  ;;  %v1188_v42 = vmul.f32 2.1237322e-06, %v5681_v10  ;;  %vm1175_vm1 = vweird.f32 %v5114_v4 }
  0xe9   :  { %v1606_v11 = vadd.f32 1.0, %v5016_v50  ;;  %v483_v2 = vmul.f32 %v482_v58, %v5617_v41  ;;  %v1199_v3 = vmul.f32 3.8918573e-05, %v5681_v10  ;;  %v5693_v7 = vmin.f32 %v506_v43, 16.0  ;;  %vm5708_vm3 = vmor %vm1174_vm14, %vm1175_vm1  ;;  %v177_v58 = vpop.f32.mrf.mxu0 }
  0xea   :  { %v453_v8 = vadd.f32 %v5112_v29, %v452_v53  ;;  %v1171_v5 = vsub.f32 1.0, %v1170_v63  ;;  %v1189_v6 = vadd.f32 0.00028619796, %v1188_v42  ;;  %v474_v47 = vmul.f32 %v473_v54, %v5617_v41 }
  0xeb   :  { %v1638_v30 = vmul.f32 %v1606_v11, %v5582_v46  ;;  %v484_v9 = vadd.f32 0.112945676, %v483_v2  ;;  %v1200_v56 = vadd.f32 0.001143296, %v1199_v3  ;;  %v508_v17 = vmul.f32 2.1237322e-06, %v5693_v7 }
  0xec   :  { %v457_v12 = vsel %vm456_vm2, %v5112_v29, %v453_v8  ;;  %v1172_v49 = vmul.f32 %v5114_v4, %v1171_v5  ;;  %v1190_v13 = vmul.f32 %v1189_v6, %v5681_v10  ;;  %v5715_v61 = vmul.f32 0.70710677, %v5687_v20 }
  0xed   :  { %1681 = vst.msk [vmem:[#allocation2 + $0xc8] sm:$0xff] %vm1650_vm7, %v1638_v30  ;;  %v462_v35 = vsel %vm5673_vm13, %v461_v52, %v457_v12  ;;  %v485_v1 = vmul.f32 %v484_v9, %v5617_v41  ;;  %v1201_v59 = vmul.f32 %v1200_v56, %v5681_v10  ;;  %vm1179_vm4 = vcmp.eq.f32.partialorder %v1178_v55, 8.507059e+37 }
  0xee   :  { %v463_v34 = vmul.f32 %v462_v35, %v438_v25  ;;  %v1173_v18 = vadd.f32 %v5114_v4, %v1172_v49  ;;  %v1191_v22 = vadd.f32 0.0036580483, %v1190_v13  ;;  %v475_v60 = vadd.f32 0.18741608, %v474_v47 }
  0xef   :  { %v486_v40 = vadd.f32 0.4994258, %v485_v1  ;;  %v1202_v23 = vadd.f32 0.014752088, %v1201_v59  ;;  %v509_v62 = vadd.f32 0.00028619796, %v508_v17  ;;  %v1226_v25 = vmul.f32 %v5715_v61, %v5715_v61 }
  0xf0   :  { %v4999_v27 = vclamps-f32 %v463_v34, 1.0  ;;  %v1177_v19 = vsel %vm5708_vm3, %v5114_v4, %v1173_v18  ;;  %v1192_v29 = vmul.f32 %v1191_v22, %v5681_v10  ;;  %v476_v15 = vmul.f32 %v475_v60, %v5617_v41 }
  0xf1   :  { %v1182_v52 = vsel %vm1179_vm4, %v1181_v33, %v1177_v19  ;;  %v487_v21 = vmul.f32 %v486_v40, %v5617_v41  ;;  %v1203_v36 = vmul.f32 %v1202_v23, %v5681_v10  ;;  %v510_v28 = vmul.f32 %v509_v62, %v5693_v7 }
  0xf2   :  { %v1589_v37 = vadd.f32 1.0, %v4999_v27  ;;  %v1183_v38 = vmul.f32 %v1182_v52, %v5665_v31  ;;  %v1193_v39 = vadd.f32 0.05243302, %v1192_v29  ;;  %v519_v55 = vmul.f32 3.8918573e-05, %v5693_v7 }
  0xf3   :  { %v5727_v45 = vadd.f32 1.0, %v487_v21  ;;  %v1204_v32 = vadd.f32 0.112945676, %v1203_v36  ;;  %v511_v54 = vadd.f32 0.0036580483, %v510_v28  ;;  %v5733_v31 = vmin.f32 %v1226_v25, 16.0  ;;  %v222_v25 = vpop.f32.mrf.mxu3 }
  0xf4   :  { %v1621_v43 = vmul.f32 %v1589_v37, %v5577_v44  ;;  %v5017_v4 = vclamps-f32 %v1183_v38, 1.0  ;;  %v1194_v50 = vmul.f32 %v1193_v39, %v5681_v10  ;;  %v5739_v42 = vmul.f32 0.5, %v5589_v0 }
  0xf5   :  { %5115 = vrcp.f32 %v5727_v45  ;;  %v1205_v63 = vmul.f32 %v1204_v32, %v5681_v10  ;;  %v512_v33 = vmul.f32 %v511_v54, %v5693_v7  ;;  %v520_v44 = vadd.f32 0.001143296, %v519_v55 }
  0xf6   :  { %1664 = vst.msk [vmem:[#allocation2 + $0x20] sm:$0xff] %vm1650_vm7, %v1621_v43  ;;  %v1607_v53 = vadd.f32 1.0, %v5017_v4  ;;  %v1195_v41 = vadd.f32 0.18741608, %v1194_v50  ;;  %v1228_v11 = vmul.f32 2.1237322e-06, %v5733_v31  ;;  %v5743_v2 = vadd.f32 %v5370_v48, %v177_v58 }
  0xf7   :  { %v477_v8 = vadd.f32 1.1283791, %v476_v15  ;;  %v1206_v5 = vadd.f32 0.4994258, %v1205_v63  ;;  %v513_v6 = vadd.f32 0.05243302, %v512_v33  ;;  %v521_v47 = vmul.f32 %v520_v44, %v5693_v7 }
  0xf8   :  { %v1639_v3 = vmul.f32 %v1607_v53, %v5656_v26  ;;  %v5747_v30 = vmul.f32 0.5, %v5631_v51  ;;  %v1229_v9 = vadd.f32 0.00028619796, %v1228_v11  ;;  %v1239_v0 = vmul.f32 3.8918573e-05, %v5733_v31 }
  0xf9   :  { %v498_v56 = vand.u32 2147483647, %v5727_v45  ;;  %v500_v12 = vand.u32 2147483648, %v5727_v45  ;;  %v1196_v49 = vmul.f32 %v1195_v41, %v5681_v10  ;;  %v1207_v26 = vmul.f32 %v1206_v5, %v5681_v10 }
  0xfa   :  { %1682 = vst.msk [vmem:[#allocation2 + $0xd0] sm:$0xff] %vm1650_vm7, %v1639_v3  ;;  %v514_v17 = vmul.f32 %v513_v6, %v5693_v7  ;;  %v522_v51 = vadd.f32 0.014752088, %v521_v47  ;;  %v1230_v35 = vmul.f32 %v1229_v9, %v5733_v31  ;;  %v1240_v46 = vadd.f32 0.001143296, %v1239_v0 }
  0xfb   :  { %v5116_v13 = vpop.eup %5115  ;;  %v478_v1 = vmul.f32 %v477_v8, %v5600_v16  ;;  %v1208_v34 = vadd.f32 1.0, %v1207_v26  ;;  %v5761_v18 = vmul.f32 0.70710677, %v5743_v2  ;;  %vm494_vm5 = vweird.f32 %v5727_v45 }
  0xfc   :  { %v490_v59 = vmul.f32 %v5116_v13, %v5727_v45  ;;  %v523_v22 = vmul.f32 %v522_v51, %v5693_v7  ;;  %v1231_v10 = vadd.f32 0.0036580483, %v1230_v35  ;;  %v1241_v60 = vmul.f32 %v1240_v46, %v5733_v31 }
  0xfd   :  { %vm5766_vm6 = vcmp.eq.f32.partialorder %v498_v56, 8.507059e+37  ;;  %v501_v27 = vor.u32 1.1754944e-38, %v500_v12  ;;  %5117 = vrcp.f32 %v1208_v34  ;;  %v1197_v16 = vadd.f32 1.1283791, %v1196_v49 }
  0xfe   :  { %v491_v40 = vsub.f32 1.0, %v490_v59  ;;  %v515_v19 = vadd.f32 0.18741608, %v514_v17  ;;  %v524_v29 = vadd.f32 0.112945676, %v523_v22  ;;  %v1232_v62 = vmul.f32 %v1231_v10, %v5733_v31 }
  0xff   :  { %vm495_vm8 = vweird.f32 %v5116_v13  ;;  %v1242_v21 = vadd.f32 0.014752088, %v1241_v60  ;;  %v546_v36 = vmul.f32 %v5761_v18, %v5761_v18  ;;  %vm1214_vm9 = vweird.f32 %v1208_v34 }
 0x100   :  { %v492_v52 = vmul.f32 %v5116_v13, %v491_v40  ;;  %v525_v37 = vmul.f32 %v524_v29, %v5693_v7  ;;  %v1233_v38 = vadd.f32 0.05243302, %v1232_v62  ;;  %v5775_v39 = vadd.f32 %v5370_v48, %v222_v25  ;;  %vm496_vm10 = vmor %vm494_vm5, %vm495_vm8 }
 0x101   :  { %v1218_v15 = vand.u32 2147483647, %v1208_v34  ;;  %v1243_v32 = vmul.f32 %v1242_v21, %v5733_v31  ;;  %v5778_v55 = vmin.f32 %v546_v36, 16.0  ;;  %v1220_v43 = vand.u32 2147483648, %v1208_v34 }
 0x102   :  { %v493_v28 = vadd.f32 %v5116_v13, %v492_v52  ;;  %v516_v4 = vmul.f32 %v515_v19, %v5693_v7  ;;  %v526_v50 = vadd.f32 0.4994258, %v525_v37  ;;  %v1234_v54 = vmul.f32 %v1233_v38, %v5733_v31 }
 0x103   :  { %v5118_v58 = vpop.eup %5117  ;;  %v1244_v41 = vadd.f32 0.112945676, %v1243_v32  ;;  %v548_v48 = vmul.f32 2.1237322e-06, %v5778_v55  ;;  %v559_v63 = vmul.f32 3.8918573e-05, %v5778_v55  ;;  %v1198_v12 = vmul.f32 %v1197_v16, %v5652_v24  ;;  %v179_v32 = vpop.f32.mrf.mxu0 }
 0x104   :  { %v497_v53 = vsel %vm496_vm10, %v5116_v13, %v493_v28  ;;  %v1210_v44 = vmul.f32 %v5118_v58, %v1208_v34  ;;  %v527_v45 = vmul.f32 %v526_v50, %v5693_v7  ;;  %v5790_v11 = vmul.f32 0.70710677, %v5775_v39 }
 0x105   :  { %v502_v33 = vsel %vm5766_vm6, %v501_v27, %v497_v53  ;;  %vm1215_vm11 = vweird.f32 %v5118_v58  ;;  %v1245_v8 = vmul.f32 %v1244_v41, %v5733_v31  ;;  %v549_v5 = vadd.f32 0.00028619796, %v548_v48  ;;  %v224_v48 = vpop.f32.mrf.mxu3 }
 0x106   :  { %v503_v3 = vmul.f32 %v502_v33, %v478_v1  ;;  %v1211_v6 = vsub.f32 1.0, %v1210_v44  ;;  %v5793_v47 = vadd.f32 1.0, %v527_v45  ;;  %v1235_v9 = vadd.f32 0.18741608, %v1234_v54  ;;  %vm5804_vm13 = vmor %vm1214_vm9, %vm1215_vm11  ;;  %v5844_v44 = vld [vmem:[%s9513_s2] ss:$0 sm:$0xff] }
 0x107   :  { %v560_v0 = vadd.f32 0.001143296, %v559_v63  ;;  %v1246_v49 = vadd.f32 0.4994258, %v1245_v8  ;;  %v550_v26 = vmul.f32 %v549_v5, %v5778_v55  ;;  %vm5797_vm12 = vcmp.eq.f32.partialorder %v1218_v15, 8.507059e+37 }
 0x108   :  { %v5000_v56 = vclamps-f32 %v503_v3, 1.0  ;;  %v1212_v7 = vmul.f32 %v5118_v58, %v1211_v6  ;;  %v517_v17 = vadd.f32 1.1283791, %v516_v4  ;;  %5119 = vrcp.f32 %v5793_v47 }
 0x109   :  { %v1221_v46 = vor.u32 1.1754944e-38, %v1220_v43  ;;  %v1247_v24 = vmul.f32 %v1246_v49, %v5733_v31  ;;  %v1266_v1 = vmul.f32 %v5790_v11, %v5790_v11  ;;  %v1236_v22 = vmul.f32 %v1235_v9, %v5733_v31 }
 0x10a   :  { %v1590_v51 = vadd.f32 1.0, %v5000_v56  ;;  %v1213_v59 = vadd.f32 %v5118_v58, %v1212_v7  ;;  %v551_v10 = vadd.f32 0.0036580483, %v550_v26  ;;  %v561_v60 = vmul.f32 %v560_v0, %v5778_v55 }
 0x10b   :  { %v538_v34 = vand.u32 2147483647, %v5793_v47  ;;  %v540_v23 = vand.u32 2147483648, %v5793_v47  ;;  %v5816_v27 = vadd.f32 1.0, %v1247_v24  ;;  %v518_v19 = vmul.f32 %v517_v17, %v5668_v57 }
 0x10c   :  { %v1622_v40 = vmul.f32 %v1590_v51, %v5739_v42  ;;  %v1217_v16 = vsel %vm5804_vm13, %v5118_v58, %v1213_v59  ;;  %v552_v29 = vmul.f32 %v551_v10, %v5778_v55  ;;  %v562_v62 = vadd.f32 0.014752088, %v561_v60 }
 0x10d   :  { %v1222_v31 = vsel %vm5797_vm12, %v1221_v46, %v1217_v16  ;;  %vm534_vm14 = vweird.f32 %v5793_v47  ;;  %5121 = vrcp.f32 %v5816_v27  ;;  %v5827_v42 = vmin.f32 %v1266_v1, 16.0 }
 0x10e   :  { %1665 = vst.msk [vmem:[#allocation2 + $0x28] sm:$0xff] %vm1650_vm7, %v1622_v40  ;;  %v5120_v52 = vpop.eup %5119  ;;  %v1223_v21 = vmul.f32 %v1222_v31, %v1198_v12  ;;  %v1237_v36 = vadd.f32 1.1283791, %v1236_v22  ;;  %v553_v25 = vadd.f32 0.05243302, %v552_v29  ;;  %v563_v57 = vmul.f32 %v562_v62, %v5778_v55 }
 0x10f   :  { %v530_v37 = vmul.f32 %v5120_v52, %v5793_v47  ;;  %vm5831_vm15 = vcmp.eq.f32.partialorder %v538_v34, 8.507059e+37  ;;  %v541_v28 = vor.u32 1.1754944e-38, %v540_v23  ;;  %v1268_v15 = vmul.f32 2.1237322e-06, %v5827_v42 }
 0x110   :  { %v5018_v43 = vclamps-f32 %v1223_v21, 1.0  ;;  %vm1254_vm1 = vweird.f32 %v5816_v27  ;;  %v554_v4 = vmul.f32 %v553_v25, %v5778_v55  ;;  %v564_v50 = vadd.f32 0.112945676, %v563_v57 }
 0x111   :  { %v531_v54 = vsub.f32 1.0, %v530_v37  ;;  %v1260_v58 = vand.u32 2147483648, %v5816_v27  ;;  %v1269_v53 = vadd.f32 0.00028619796, %v1268_v15  ;;  %v1279_v41 = vmul.f32 3.8918573e-05, %v5827_v42 }
 0x112   :  { %v1608_v63 = vadd.f32 1.0, %v5018_v43  ;;  %vm535_vm2 = vweird.f32 %v5120_v52  ;;  %v565_v33 = vmul.f32 %v564_v50, %v5778_v55  ;;  %v180_v45 = vadd.f32 %v5844_v44, %v179_v32 }
 0x113   :  { %v5122_v3 = vpop.eup %5121  ;;  %v532_v8 = vmul.f32 %v5120_v52, %v531_v54  ;;  %v555_v5 = vadd.f32 0.18741608, %v554_v4  ;;  %v1270_v6 = vmul.f32 %v1269_v53, %v5827_v42  ;;  %v1280_v9 = vadd.f32 0.001143296, %v1279_v41  ;;  %vm536_vm3 = vmor %vm534_vm14, %vm535_vm2 }
 0x114   :  { %v1640_v0 = vmul.f32 %v1608_v63, %v5747_v30  ;;  %v1250_v56 = vmul.f32 %v5122_v3, %v5816_v27  ;;  %v1258_v12 = vand.u32 2147483647, %v5816_v27  ;;  %v5852_v49 = vadd.f32 %v5844_v44, %v224_v48 }
 0x115   :  { %v533_v26 = vadd.f32 %v5120_v52, %v532_v8  ;;  %v1261_v7 = vor.u32 1.1754944e-38, %v1260_v58  ;;  %v566_v13 = vadd.f32 0.4994258, %v565_v33  ;;  %v1271_v17 = vadd.f32 0.0036580483, %v1270_v6 }
 0x116   :  { %1683 = vst.msk [vmem:[#allocation2 + $0xd8] sm:$0xff] %vm1650_vm7, %v1640_v0  ;;  %v1251_v51 = vsub.f32 1.0, %v1250_v56  ;;  %vm1255_vm4 = vweird.f32 %v5122_v3  ;;  %v1281_v30 = vmul.f32 %v1280_v9, %v5827_v42  ;;  %v5859_v35 = vmul.f32 0.70710677, %v180_v45 }
 0x117   :  { %v537_v46 = vsel %vm536_vm3, %v5120_v52, %v533_v26  ;;  %v556_v24 = vmul.f32 %v555_v5, %v5778_v55  ;;  %v567_v1 = vmul.f32 %v566_v13, %v5778_v55  ;;  %v1272_v59 = vmul.f32 %v1271_v17, %v5827_v42  ;;  %vm5871_vm5 = vmor %vm1254_vm1, %vm1255_vm4  ;;  %v227_v17 = vpop.f32.mrf.mxu3 }
 0x118   :  { %v542_v22 = vsel %vm5831_vm15, %v541_v28, %v537_v46  ;;  %v1252_v10 = vmul.f32 %v5122_v3, %v1251_v51  ;;  %v1282_v60 = vadd.f32 0.014752088, %v1281_v30  ;;  %v5867_v47 = vmul.f32 0.70710677, %v5852_v49 }
 0x119   :  { %v543_v40 = vmul.f32 %v542_v22, %v518_v19  ;;  %v5875_v23 = vadd.f32 1.0, %v567_v1  ;;  %v1273_v55 = vadd.f32 0.05243302, %v1272_v59  ;;  %v586_v16 = vmul.f32 %v5859_v35, %v5859_v35 }
 0x11a   :  { %v1238_v29 = vmul.f32 %v1237_v36, %v5715_v61  ;;  %v1253_v62 = vadd.f32 %v5122_v3, %v1252_v10  ;;  %vm1259_vm6 = vcmp.eq.f32.partialorder %v1258_v12, 8.507059e+37  ;;  %v1283_v31 = vmul.f32 %v1282_v60, %v5827_v42  ;;  %v182_v36 = vpop.f32.mrf.mxu0 }
 0x11b   :  { %v247_v19 = vmul.f32 0.5, %v5637_v14  ;;  %v5001_v52 = vclamps-f32 %v543_v40, 1.0  ;;  %v5883_v27 = vmul.f32 0.5, %v5743_v2  ;;  %5123 = vrcp.f32 %v5875_v23 }
 0x11c   :  { %v1257_v21 = vsel %vm5871_vm5, %v5122_v3, %v1253_v62  ;;  %v1274_v25 = vmul.f32 %v1273_v55, %v5827_v42  ;;  %v1284_v57 = vadd.f32 0.112945676, %v1283_v31  ;;  %v1306_v61 = vmul.f32 %v5867_v47, %v5867_v47 }
 0x11d   :  { %v1591_v37 = vadd.f32 1.0, %v5001_v52  ;;  %v1262_v38 = vsel %vm1259_vm6, %v1261_v7, %v1257_v21  ;;  %v557_v28 = vadd.f32 1.1283791, %v556_v24  ;;  %v5891_v14 = vmin.f32 %v586_v16, 16.0 }
 0x11e   :  { %v265_v2 = vmul.f32 0.5, %v5687_v20  ;;  %v1263_v15 = vmul.f32 %v1262_v38, %v1238_v29  ;;  %v1285_v32 = vmul.f32 %v1284_v57, %v5827_v42  ;;  %v5895_v43 = vmul.f32 0.5, %v180_v45 }
 0x11f   :  { %v1623_v4 = vmul.f32 %v1591_v37, %v247_v19  ;;  %v5898_v50 = vmul.f32 0.5, %v5775_v39  ;;  %v588_v54 = vmul.f32 2.1237322e-06, %v5891_v14  ;;  %v599_v58 = vmul.f32 3.8918573e-05, %v5891_v14 }
 0x120   :  { %v5019_v53 = vclamps-f32 %v1263_v15, 1.0  ;;  %v1275_v41 = vadd.f32 0.18741608, %v1274_v25  ;;  %v1286_v48 = vadd.f32 0.4994258, %v1285_v32  ;;  %v5902_v63 = vmin.f32 %v1306_v61, 16.0 }
 0x121   :  { %v5124_v33 = vpop.eup %5123  ;;  %1666 = vst.msk [vmem:[#allocation2 + $0x30] sm:$0xff] %vm1650_vm7, %v1623_v4  ;;  %v558_v20 = vmul.f32 %v557_v28, %v5761_v18  ;;  %v589_v45 = vadd.f32 0.00028619796, %v588_v54  ;;  %v600_v3 = vadd.f32 0.001143296, %v599_v58  ;;  %v5907_v8 = vadd.f32 %v5844_v44, %v182_v36 }
 0x122   :  { %v1609_v39 = vadd.f32 1.0, %v5019_v53  ;;  %v570_v5 = vmul.f32 %v5124_v33, %v5875_v23  ;;  %v578_v6 = vand.u32 2147483647, %v5875_v23  ;;  %v580_v9 = vand.u32 2147483648, %v5875_v23  ;;  %v184_v10 = vpop.f32.mrf.mxu0 }
 0x123   :  { %v1287_v0 = vmul.f32 %v1286_v48, %v5827_v42  ;;  %v590_v56 = vmul.f32 %v589_v45, %v5891_v14  ;;  %v601_v12 = vmul.f32 %v600_v3, %v5891_v14  ;;  %v1308_v18 = vmul.f32 2.1237322e-06, %v5902_v63 }
 0x124   :  { %v1641_v26 = vmul.f32 %v1609_v39, %v265_v2  ;;  %v571_v7 = vsub.f32 1.0, %v570_v5  ;;  %vm574_vm8 = vweird.f32 %v5875_v23  ;;  %v1319_v13 = vmul.f32 3.8918573e-05, %v5902_v63 }
 0x125   :  { %v1276_v51 = vmul.f32 %v1275_v41, %v5827_v42  ;;  %v5919_v30 = vadd.f32 1.0, %v1287_v0  ;;  %v591_v46 = vadd.f32 0.0036580483, %v590_v56  ;;  %v602_v24 = vadd.f32 0.014752088, %v601_v12 }
 0x126   :  { %1684 = vst.msk [vmem:[#allocation2 + $0xe0] sm:$0xff] %vm1650_vm7, %v1641_v26  ;;  %v572_v1 = vmul.f32 %v5124_v33, %v571_v7  ;;  %vm575_vm9 = vweird.f32 %v5124_v33  ;;  %v1309_v59 = vadd.f32 0.00028619796, %v1308_v18  ;;  %v1320_v22 = vadd.f32 0.001143296, %v1319_v13 }
 0x127   :  { %vm5922_vm10 = vcmp.eq.f32.partialorder %v578_v6, 8.507059e+37  ;;  %v581_v40 = vor.u32 1.1754944e-38, %v580_v9  ;;  %5125 = vrcp.f32 %v5919_v30  ;;  %v5928_v42 = vadd.f32 %v5844_v44, %v227_v17  ;;  %vm576_vm11 = vmor %vm574_vm8, %vm575_vm9 }
 0x128   :  { %v573_v34 = vadd.f32 %v5124_v33, %v572_v1  ;;  %v592_v55 = vmul.f32 %v591_v46, %v5891_v14  ;;  %v603_v16 = vmul.f32 %v602_v24, %v5891_v14  ;;  %v1310_v29 = vmul.f32 %v1309_v59, %v5902_v63 }
 0x129   :  { %v1277_v62 = vadd.f32 1.1283791, %v1276_v51  ;;  %v1321_v31 = vmul.f32 %v1320_v22, %v5902_v63  ;;  %v5937_v19 = vmul.f32 0.70710677, %v5907_v8  ;;  %v5940_v52 = vadd.f32 %v5844_v44, %v184_v10 }
 0x12a   :  { %v577_v21 = vsel %vm576_vm11, %v5124_v33, %v573_v34  ;;  %v593_v25 = vadd.f32 0.05243302, %v592_v55  ;;  %v604_v57 = vadd.f32 0.112945676, %v603_v16  ;;  %v1311_v61 = vadd.f32 0.0036580483, %v1310_v29 }
 0x12b   :  { %v582_v36 = vsel %vm5922_vm10, %v581_v40, %v577_v21  ;;  %v1322_v37 = vadd.f32 0.014752088, %v1321_v31  ;;  %v626_v23 = vmul.f32 %v5937_v19, %v5937_v19  ;;  %v5947_v38 = vmul.f32 0.70710677, %v5928_v42 }
 0x12c   :  { %v583_v28 = vmul.f32 %v582_v36, %v558_v20  ;;  %v594_v2 = vmul.f32 %v593_v25, %v5891_v14  ;;  %v605_v15 = vmul.f32 %v604_v57, %v5891_v14  ;;  %v1312_v32 = vmul.f32 %v1311_v61, %v5902_v63 }
 0x12d   :  { %v5126_v4 = vpop.eup %5125  ;;  %v1278_v54 = vmul.f32 %v1277_v62, %v5790_v11  ;;  %vm1294_vm12 = vweird.f32 %v5919_v30  ;;  %v1323_v58 = vmul.f32 %v1322_v37, %v5902_v63  ;;  %v5955_v53 = vmin.f32 %v626_v23, 16.0 }
 0x12e   :  { %v5002_v41 = vclamps-f32 %v583_v28, 1.0  ;;  %v1290_v48 = vmul.f32 %v5126_v4, %v5919_v30  ;;  %v1298_v33 = vand.u32 2147483647, %v5919_v30  ;;  %v1300_v20 = vand.u32 2147483648, %v5919_v30 }
 0x12f   :  { %v595_v45 = vadd.f32 0.18741608, %v594_v2  ;;  %v606_v3 = vadd.f32 0.4994258, %v605_v15  ;;  %v1313_v39 = vadd.f32 0.05243302, %v1312_v32  ;;  %v1346_v5 = vmul.f32 %v5947_v38, %v5947_v38  ;;  %v229_v15 = vpop.f32.mrf.mxu3 }
 0x130   :  { %v1592_v11 = vadd.f32 1.0, %v5002_v41  ;;  %v1291_v6 = vsub.f32 1.0, %v1290_v48  ;;  %vm1295_vm13 = vweird.f32 %v5126_v4  ;;  %v1324_v9 = vadd.f32 0.112945676, %v1323_v58 }
 0x131   :  { %v607_v0 = vmul.f32 %v606_v3, %v5891_v14  ;;  %v1314_v56 = vmul.f32 %v1313_v39, %v5902_v63  ;;  %v628_v12 = vmul.f32 2.1237322e-06, %v5955_v53  ;;  %v639_v18 = vmul.f32 3.8918573e-05, %v5955_v53  ;;  %vm5970_vm14 = vmor %vm1294_vm12, %vm1295_vm13 }
 0x132   :  { %v1624_v26 = vmul.f32 %v1592_v11, %v5883_v27  ;;  %v1292_v7 = vmul.f32 %v5126_v4, %v1291_v6  ;;  %v1301_v13 = vor.u32 1.1754944e-38, %v1300_v20  ;;  %v1325_v17 = vmul.f32 %v1324_v9, %v5902_v63 }
 0x133   :  { %v596_v46 = vmul.f32 %v595_v45, %v5891_v14  ;;  %v5975_v24 = vadd.f32 1.0, %v607_v0  ;;  %v1315_v1 = vadd.f32 0.18741608, %v1314_v56  ;;  %v629_v59 = vadd.f32 0.00028619796, %v628_v12 }
 0x134   :  { %1667 = vst.msk [vmem:[#allocation2 + $0x38] sm:$0xff] %vm1650_vm7, %v1624_v26  ;;  %v1293_v22 = vadd.f32 %v5126_v4, %v1292_v7  ;;  %vm1299_vm15 = vcmp.eq.f32.partialorder %v1298_v33, 8.507059e+37  ;;  %v1326_v27 = vadd.f32 0.4994258, %v1325_v17  ;;  %v640_v10 = vadd.f32 0.001143296, %v639_v18 }
 0x135   :  { %5127 = vrcp.f32 %v5975_v24  ;;  %v5980_v30 = vmul.f32 0.5, %v5907_v8  ;;  %v5982_v60 = vmin.f32 %v1346_v5, 16.0  ;;  %v5985_v40 = vmul.f32 0.70710677, %v5940_v52 }
 0x136   :  { %v1297_v14 = vsel %vm5970_vm14, %v5126_v4, %v1293_v22  ;;  %v1316_v34 = vmul.f32 %v1315_v1, %v5902_v63  ;;  %v1327_v55 = vmul.f32 %v1326_v27, %v5902_v63  ;;  %v630_v16 = vmul.f32 %v629_v59, %v5955_v53 }
 0x137   :  { %v1302_v29 = vsel %vm1299_vm15, %v1301_v13, %v1297_v14  ;;  %v597_v62 = vadd.f32 1.1283791, %v596_v46  ;;  %v618_v31 = vand.u32 2147483647, %v5975_v24  ;;  %v641_v8 = vmul.f32 %v640_v10, %v5955_v53 }
 0x138   :  { %v1303_v21 = vmul.f32 %v1302_v29, %v1278_v54  ;;  %v620_v25 = vand.u32 2147483648, %v5975_v24  ;;  %v5995_v57 = vadd.f32 1.0, %v1327_v55  ;;  %v631_v61 = vadd.f32 0.0036580483, %v630_v16 }
 0x139   :  { %v1317_v36 = vadd.f32 1.1283791, %v1316_v34  ;;  %v642_v37 = vadd.f32 0.014752088, %v641_v8  ;;  %v1348_v23 = vmul.f32 2.1237322e-06, %v5982_v60  ;;  %v666_v2 = vmul.f32 %v5985_v40, %v5985_v40 }
 0x13a   :  { %v5020_v28 = vclamps-f32 %v1303_v21, 1.0  ;;  %5129 = vrcp.f32 %v5995_v57  ;;  %v1359_v63 = vmul.f32 3.8918573e-05, %v5982_v60  ;;  %v598_v4 = vmul.f32 %v597_v62, %v5859_v35 }
 0x13b   :  { %v5128_v32 = vpop.eup %5127  ;;  %vm614_vm1 = vweird.f32 %v5975_v24  ;;  %v632_v54 = vmul.f32 %v631_v61, %v5955_v53  ;;  %v643_v58 = vmul.f32 %v642_v37, %v5955_v53  ;;  %vm6007_vm2 = vcmp.eq.f32.partialorder %v618_v31, 8.507059e+37 }
 0x13c   :  { %v1610_v41 = vadd.f32 1.0, %v5020_v28  ;;  %v610_v48 = vmul.f32 %v5128_v32, %v5975_v24  ;;  %v621_v20 = vor.u32 1.1754944e-38, %v620_v25  ;;  %v1349_v45 = vadd.f32 0.00028619796, %v1348_v23 }
 0x13d   :  { %v1318_v3 = vmul.f32 %v1317_v36, %v5867_v47  ;;  %v633_v39 = vadd.f32 0.05243302, %v632_v54  ;;  %v644_v5 = vadd.f32 0.112945676, %v643_v58  ;;  %v6013_v35 = vadd.f32 %v5844_v44, %v229_v15 }
 0x13e   :  { %v1642_v11 = vmul.f32 %v1610_v41, %v5898_v50  ;;  %v611_v6 = vsub.f32 1.0, %v610_v48  ;;  %v1350_v9 = vmul.f32 %v1349_v45, %v5982_v60  ;;  %v1360_v0 = vadd.f32 0.001143296, %v1359_v63 }
 0x13f   :  { %vm1334_vm3 = vweird.f32 %v5995_v57  ;;  %v634_v56 = vmul.f32 %v633_v39, %v5955_v53  ;;  %v645_v12 = vmul.f32 %v644_v5, %v5955_v53  ;;  %v6020_v18 = vmin.f32 %v666_v2, 16.0 }
 0x140   :  { %v5130_v47 = vpop.eup %5129  ;;  %1685 = vst.msk [vmem:[#allocation2 + $0xf8] sm:$0xff] %vm1650_vm7, %v1642_v11  ;;  %v612_v26 = vmul.f32 %v5128_v32, %v611_v6  ;;  %vm615_vm4 = vweird.f32 %v5128_v32  ;;  %v1351_v7 = vadd.f32 0.0036580483, %v1350_v9  ;;  %v1361_v50 = vmul.f32 %v1360_v0, %v5982_v60 }
 0x141   :  { %v1330_v13 = vmul.f32 %v5130_v47, %v5995_v57  ;;  %v1338_v17 = vand.u32 2147483647, %v5995_v57  ;;  %v1340_v51 = vand.u32 2147483648, %v5995_v57  ;;  %v646_v46 = vadd.f32 0.4994258, %v645_v12  ;;  %vm616_vm5 = vmor %vm614_vm1, %vm615_vm4 }
 0x142   :  { %v613_v1 = vadd.f32 %v5128_v32, %v612_v26  ;;  %v1352_v59 = vmul.f32 %v1351_v7, %v5982_v60  ;;  %v1362_v22 = vadd.f32 0.014752088, %v1361_v50  ;;  %v668_v27 = vmul.f32 2.1237322e-06, %v6020_v18  ;;  %v187_v50 = vpop.f32.mrf.mxu0 }
 0x143   :  { %v1331_v10 = vsub.f32 1.0, %v1330_v13  ;;  %vm1335_vm6 = vweird.f32 %v5130_v47  ;;  %v635_v14 = vadd.f32 0.18741608, %v634_v56  ;;  %v647_v34 = vmul.f32 %v646_v46, %v5955_v53 }
 0x144   :  { %v617_v55 = vsel %vm616_vm5, %v5128_v32, %v613_v1  ;;  %v1353_v16 = vadd.f32 0.05243302, %v1352_v59  ;;  %v1363_v29 = vmul.f32 %v1362_v22, %v5982_v60  ;;  %v669_v62 = vadd.f32 0.00028619796, %v668_v27  ;;  %vm6040_vm8 = vmor %vm1334_vm3, %vm1335_vm6 }
 0x145   :  { %v622_v31 = vsel %vm6007_vm2, %v621_v20, %v617_v55  ;;  %v1332_v8 = vmul.f32 %v5130_v47, %v1331_v10  ;;  %v6035_v21 = vadd.f32 1.0, %v647_v34  ;;  %v679_v25 = vmul.f32 3.8918573e-05, %v6020_v18 }
 0x146   :  { %v623_v24 = vmul.f32 %v622_v31, %v598_v4  ;;  %v1341_v36 = vor.u32 1.1754944e-38, %v1340_v51  ;;  %v1364_v37 = vadd.f32 0.112945676, %v1363_v29  ;;  %v670_v23 = vmul.f32 %v669_v62, %v6020_v18 }
 0x147   :  { %v1333_v28 = vadd.f32 %v5130_v47, %v1332_v8  ;;  %vm1339_vm9 = vcmp.eq.f32.partialorder %v1338_v17, 8.507059e+37  ;;  %5131 = vrcp.f32 %v6035_v21  ;;  %v1354_v63 = vmul.f32 %v1353_v16, %v5982_v60  ;;  %v232_v8 = vpop.f32.mrf.mxu3 }
 0x148   :  { %v5003_v2 = vclamps-f32 %v623_v24, 1.0  ;;  %v636_v15 = vmul.f32 %v635_v14, %v5955_v53  ;;  %v6049_v32 = vmul.f32 0.5, %v5940_v52  ;;  %v6052_v57 = vmul.f32 0.70710677, %v6013_v35 }
 0x149   :  { %v1337_v4 = vsel %vm6040_vm8, %v5130_v47, %v1333_v28  ;;  %v1365_v54 = vmul.f32 %v1364_v37, %v5982_v60  ;;  %v671_v58 = vadd.f32 0.0036580483, %v670_v23  ;;  %v680_v41 = vadd.f32 0.001143296, %v679_v25 }
 0x14a   :  { %v1593_v48 = vadd.f32 1.0, %v5003_v2  ;;  %v267_v33 = vmul.f32 0.5, %v5852_v49  ;;  %v1342_v20 = vsel %vm1339_vm9, %v1341_v36, %v1337_v4  ;;  %v6059_v45 = vmul.f32 0.5, %v5928_v42 }
 0x14b   :  { %v1343_v53 = vmul.f32 %v1342_v20, %v1318_v3  ;;  %v1355_v52 = vadd.f32 0.18741608, %v1354_v63  ;;  %v1366_v39 = vadd.f32 0.4994258, %v1365_v54  ;;  %v672_v5 = vmul.f32 %v671_v58, %v6020_v18 }
 0x14c   :  { %v1625_v11 = vmul.f32 %v1593_v48, %v5895_v43  ;;  %v637_v6 = vadd.f32 1.1283791, %v636_v15  ;;  %v681_v9 = vmul.f32 %v680_v41, %v6020_v18  ;;  %v1386_v0 = vmul.f32 %v6052_v57, %v6052_v57 }
 0x14d   :  { %v5132_v56 = vpop.eup %5131  ;;  %v5021_v12 = vclamps-f32 %v1343_v53, 1.0  ;;  %v658_v49 = vand.u32 2147483647, %v6035_v21  ;;  %v1367_v42 = vmul.f32 %v1366_v39, %v5982_v60  ;;  %v673_v47 = vadd.f32 0.05243302, %v672_v5 }
 0x14e   :  { %1668 = vst.msk [vmem:[#allocation2 + $0x40] sm:$0xff] %vm1650_vm7, %v1625_v11  ;;  %v650_v3 = vmul.f32 %v5132_v56, %v6035_v21  ;;  %v660_v26 = vand.u32 2147483648, %v6035_v21  ;;  %v682_v43 = vadd.f32 0.014752088, %v681_v9  ;;  %v6071_v7 = vmin.f32 %v1386_v0, 16.0 }
 0x14f   :  { %v1611_v13 = vadd.f32 1.0, %v5021_v12  ;;  %v1356_v17 = vmul.f32 %v1355_v52, %v5982_v60  ;;  %v1368_v51 = vadd.f32 1.0, %v1367_v42  ;;  %v674_v46 = vmul.f32 %v673_v47, %v6020_v18 }
 0x150   :  { %v651_v1 = vsub.f32 1.0, %v650_v3  ;;  %v683_v59 = vmul.f32 %v682_v43, %v6020_v18  ;;  %v1388_v22 = vmul.f32 2.1237322e-06, %v6071_v7  ;;  %v1399_v27 = vmul.f32 3.8918573e-05, %v6071_v7 }
 0x151   :  { %v1643_v10 = vmul.f32 %v1611_v13, %v267_v33  ;;  %v638_v14 = vmul.f32 %v637_v6, %v5937_v19  ;;  %5133 = vrcp.f32 %v1368_v51  ;;  %v188_v34 = vadd.f32 %v5844_v44, %v187_v50 }
 0x152   :  { %v652_v55 = vmul.f32 %v5132_v56, %v651_v1  ;;  %vm655_vm10 = vweird.f32 %v5132_v56  ;;  %vm6080_vm11 = vcmp.eq.f32.partialorder %v658_v49, 8.507059e+37  ;;  %v684_v16 = vadd.f32 0.112945676, %v683_v59 }
 0x153   :  { %1686 = vst.msk [vmem:[#allocation2 + $0x100] sm:$0xff] %vm1650_vm7, %v1643_v10  ;;  %vm654_vm12 = vweird.f32 %v6035_v21  ;;  %v661_v29 = vor.u32 1.1754944e-38, %v660_v26  ;;  %v1389_v62 = vadd.f32 0.00028619796, %v1388_v22  ;;  %v1400_v31 = vadd.f32 0.001143296, %v1399_v27 }
 0x154   :  { %v653_v25 = vadd.f32 %v5132_v56, %v652_v55  ;;  %v1357_v19 = vadd.f32 1.1283791, %v1356_v17  ;;  %v675_v24 = vadd.f32 0.18741608, %v674_v46  ;;  %v685_v61 = vmul.f32 %v684_v16, %v6020_v18  ;;  %vm656_vm13 = vmor %vm654_vm12, %vm655_vm10 }
 0x155   :  { %vm1374_vm14 = vweird.f32 %v1368_v51  ;;  %v1390_v36 = vmul.f32 %v1389_v62, %v6071_v7  ;;  %v1401_v37 = vmul.f32 %v1400_v31, %v6071_v7  ;;  %v6089_v23 = vmul.f32 0.70710677, %v188_v34  ;;  %v234_v31 = vpop.f32.mrf.mxu3 }
 0x156   :  { %v657_v28 = vsel %vm656_vm13, %v5132_v56, %v653_v25  ;;  %v1378_v63 = vand.u32 2147483647, %v1368_v51  ;;  %v686_v21 = vadd.f32 0.4994258, %v685_v61  ;;  %v6092_v2 = vadd.f32 %v5844_v44, %v232_v8 }
 0x157   :  { %v5134_v15 = vpop.eup %5133  ;;  %v662_v4 = vsel %vm6080_vm11, %v661_v29, %v657_v28  ;;  %v1391_v54 = vadd.f32 0.0036580483, %v1390_v36  ;;  %v1402_v58 = vadd.f32 0.014752088, %v1401_v37  ;;  %v706_v41 = vmul.f32 %v6089_v23, %v6089_v23 }
 0x158   :  { %v663_v48 = vmul.f32 %v662_v4, %v638_v14  ;;  %v1370_v33 = vmul.f32 %v5134_v15, %v1368_v51  ;;  %v1380_v20 = vand.u32 2147483648, %v1368_v51  ;;  %v676_v53 = vmul.f32 %v675_v24, %v6020_v18  ;;  %v189_v51 = vpop.f32.mrf.mxu0 }
 0x159   :  { %v687_v52 = vmul.f32 %v686_v21, %v6020_v18  ;;  %v1392_v39 = vmul.f32 %v1391_v54, %v6071_v7  ;;  %v1403_v5 = vmul.f32 %v1402_v58, %v6071_v7  ;;  %v6102_v11 = vmin.f32 %v706_v41, 16.0 }
 0x15a   :  { %v5004_v6 = vclamps-f32 %v663_v48, 1.0  ;;  %v1371_v9 = vsub.f32 1.0, %v1370_v33  ;;  %vm1375_vm15 = vweird.f32 %v5134_v15  ;;  %v6105_v0 = vmul.f32 0.70710677, %v6092_v2 }
 0x15b   :  { %v1358_v56 = vmul.f32 %v1357_v19, %v5947_v38  ;;  %v6108_v12 = vadd.f32 1.0, %v687_v52  ;;  %v1393_v49 = vadd.f32 0.05243302, %v1392_v39  ;;  %v1404_v42 = vadd.f32 0.112945676, %v1403_v5  ;;  %vm6113_vm1 = vmor %vm1374_vm14, %vm1375_vm15 }
 0x15c   :  { %v1594_v47 = vadd.f32 1.0, %v5004_v6  ;;  %v1372_v18 = vmul.f32 %v5134_v15, %v1371_v9  ;;  %v708_v3 = vmul.f32 2.1237322e-06, %v6102_v11  ;;  %v719_v26 = vmul.f32 3.8918573e-05, %v6102_v11 }
 0x15d   :  { %vm6117_vm2 = vcmp.eq.f32.partialorder %v1378_v63, 8.507059e+37  ;;  %v1381_v38 = vor.u32 1.1754944e-38, %v1380_v20  ;;  %v677_v13 = vadd.f32 1.1283791, %v676_v53  ;;  %5135 = vrcp.f32 %v6108_v12 }
 0x15e   :  { %v1626_v17 = vmul.f32 %v1594_v47, %v5980_v30  ;;  %v1373_v46 = vadd.f32 %v5134_v15, %v1372_v18  ;;  %v1394_v1 = vmul.f32 %v1393_v49, %v6071_v7  ;;  %v1405_v59 = vmul.f32 %v1404_v42, %v6071_v7 }
 0x15f   :  { %v6126_v22 = vmul.f32 0.5, %v6013_v35  ;;  %v6128_v27 = vmul.f32 0.5, %v188_v34  ;;  %v709_v10 = vadd.f32 0.00028619796, %v708_v3  ;;  %v720_v14 = vadd.f32 0.001143296, %v719_v26 }
 0x160   :  { %1669 = vst.msk [vmem:[#allocation2 + $0x58] sm:$0xff] %vm1650_vm7, %v1626_v17  ;;  %v1377_v55 = vsel %vm6113_vm1, %v5134_v15, %v1373_v46  ;;  %v1395_v60 = vadd.f32 0.18741608, %v1394_v1  ;;  %v1406_v30 = vadd.f32 0.4994258, %v1405_v59  ;;  %v1426_v16 = vmul.f32 %v6105_v0, %v6105_v0 }
 0x161   :  { %v1382_v29 = vsel %vm6117_vm2, %v1381_v38, %v1377_v55  ;;  %v710_v35 = vmul.f32 %v709_v10, %v6102_v11  ;;  %v721_v34 = vmul.f32 %v720_v14, %v6102_v11  ;;  %v6140_v62 = vadd.f32 %v5844_v44, %v189_v51 }
 0x162   :  { %v1383_v8 = vmul.f32 %v1382_v29, %v1358_v56  ;;  %v698_v25 = vand.u32 2147483647, %v6108_v12  ;;  %v1407_v19 = vmul.f32 %v1406_v30, %v6071_v7  ;;  %v6144_v24 = vmin.f32 %v1426_v16, 16.0  ;;  %v192_v29 = vpop.f32.mrf.mxu0 }
 0x163   :  { %v5136_v61 = vpop.eup %5135  ;;  %v678_v36 = vmul.f32 %v677_v13, %v5985_v40  ;;  %v700_v37 = vand.u32 2147483648, %v6108_v12  ;;  %v711_v28 = vadd.f32 0.0036580483, %v710_v35  ;;  %v722_v63 = vadd.f32 0.014752088, %v721_v34 }
 0x164   :  { %v5022_v21 = vclamps-f32 %v1383_v8, 1.0  ;;  %v690_v15 = vmul.f32 %v5136_v61, %v6108_v12  ;;  %v1396_v4 = vmul.f32 %v1395_v60, %v6071_v7  ;;  %v6151_v54 = vadd.f32 %v5844_v44, %v234_v31 }
 0x165   :  { %v6153_v58 = vadd.f32 1.0, %v1407_v19  ;;  %v712_v41 = vmul.f32 %v711_v28, %v6102_v11  ;;  %v723_v48 = vmul.f32 %v722_v63, %v6102_v11  ;;  %v1428_v40 = vmul.f32 2.1237322e-06, %v6144_v24 }
 0x166   :  { %v1612_v33 = vadd.f32 1.0, %v5022_v21  ;;  %v691_v20 = vsub.f32 1.0, %v690_v15  ;;  %v1439_v53 = vmul.f32 3.8918573e-05, %v6144_v24  ;;  %v6160_v52 = vmul.f32 0.70710677, %v6140_v62 }
 0x167   :  { %vm695_vm3 = vweird.f32 %v5136_v61  ;;  %vm6162_vm4 = vcmp.eq.f32.partialorder %v698_v25, 8.507059e+37  ;;  %v701_v39 = vor.u32 1.1754944e-38, %v700_v37  ;;  %5137 = vrcp.f32 %v6153_v58 }
 0x168   :  { %v1644_v5 = vmul.f32 %v1612_v33, %v6059_v45  ;;  %v692_v6 = vmul.f32 %v5136_v61, %v691_v20  ;;  %v713_v9 = vadd.f32 0.05243302, %v712_v41  ;;  %v724_v56 = vadd.f32 0.112945676, %v723_v48  ;;  %v237_v48 = vpop.f32.mrf.mxu3 }
 0x169   :  { %vm694_vm5 = vweird.f32 %v6108_v12  ;;  %v1397_v49 = vadd.f32 1.1283791, %v1396_v4  ;;  %v1429_v42 = vadd.f32 0.00028619796, %v1428_v40  ;;  %v1440_v47 = vadd.f32 0.001143296, %v1439_v53 }
 0x16a   :  { %1687 = vst.msk [vmem:[#allocation2 + $0x108] sm:$0xff] %vm1650_vm7, %v1644_v5  ;;  %v693_v18 = vadd.f32 %v5136_v61, %v692_v6  ;;  %v714_v3 = vmul.f32 %v713_v9, %v6102_v11  ;;  %v725_v26 = vmul.f32 %v724_v56, %v6102_v11  ;;  %v746_v43 = vmul.f32 %v6160_v52, %v6160_v52  ;;  %vm696_vm6 = vmor %vm694_vm5, %vm695_vm3 }
 0x16b   :  { %vm1414_vm8 = vweird.f32 %v6153_v58  ;;  %v1418_v45 = vand.u32 2147483647, %v6153_v58  ;;  %v1430_v12 = vmul.f32 %v1429_v42, %v6144_v24  ;;  %v1441_v50 = vmul.f32 %v1440_v47, %v6144_v24 }
 0x16c   :  { %v697_v38 = vsel %vm696_vm6, %v5136_v61, %v693_v18  ;;  %v1420_v13 = vand.u32 2147483648, %v6153_v58  ;;  %v715_v17 = vadd.f32 0.18741608, %v714_v3  ;;  %v726_v46 = vadd.f32 0.4994258, %v725_v26 }
 0x16d   :  { %v5138_v1 = vpop.eup %5137  ;;  %v702_v59 = vsel %vm6162_vm4, %v701_v39, %v697_v38  ;;  %v1431_v51 = vadd.f32 0.0036580483, %v1430_v12  ;;  %v1442_v10 = vadd.f32 0.014752088, %v1441_v50  ;;  %v6182_v14 = vmin.f32 %v746_v43, 16.0 }
 0x16e   :  { %v703_v55 = vmul.f32 %v702_v59, %v678_v36  ;;  %v1410_v60 = vmul.f32 %v5138_v1, %v6153_v58  ;;  %v716_v30 = vmul.f32 %v715_v17, %v6102_v11  ;;  %v6187_v16 = vmul.f32 0.70710677, %v6151_v54 }
 0x16f   :  { %v727_v35 = vmul.f32 %v726_v46, %v6102_v11  ;;  %v1432_v34 = vmul.f32 %v1431_v51, %v6144_v24  ;;  %v1443_v31 = vmul.f32 %v1442_v10, %v6144_v24  ;;  %v748_v8 = vmul.f32 2.1237322e-06, %v6182_v14 }
 0x170   :  { %v5005_v25 = vclamps-f32 %v703_v55, 1.0  ;;  %v1411_v19 = vsub.f32 1.0, %v1410_v60  ;;  %vm1415_vm9 = vweird.f32 %v5138_v1  ;;  %v759_v61 = vmul.f32 3.8918573e-05, %v6182_v14 }
 0x171   :  { %v6194_v36 = vadd.f32 1.0, %v727_v35  ;;  %v1433_v37 = vadd.f32 0.05243302, %v1432_v34  ;;  %v1444_v28 = vadd.f32 0.112945676, %v1443_v31  ;;  %v193_v63 = vadd.f32 %v5844_v44, %v192_v29  ;;  %vm6202_vm10 = vmor %vm1414_vm8, %vm1415_vm9 }
 0x172   :  { %v1595_v21 = vadd.f32 1.0, %v5005_v25  ;;  %v1412_v15 = vmul.f32 %v5138_v1, %v1411_v19  ;;  %v749_v11 = vadd.f32 0.00028619796, %v748_v8  ;;  %v1466_v4 = vmul.f32 %v6187_v16, %v6187_v16 }
 0x173   :  { %v1398_v41 = vmul.f32 %v1397_v49, %v6052_v57  ;;  %v1421_v40 = vor.u32 1.1754944e-38, %v1420_v13  ;;  %v717_v33 = vadd.f32 1.1283791, %v716_v30  ;;  %5139 = vrcp.f32 %v6194_v36 }
 0x174   :  { %v1627_v20 = vmul.f32 %v1595_v21, %v6049_v32  ;;  %v1413_v53 = vadd.f32 %v5138_v1, %v1412_v15  ;;  %vm1419_vm11 = vcmp.eq.f32.partialorder %v1418_v45, 8.507059e+37  ;;  %v1445_v7 = vmul.f32 %v1444_v28, %v6144_v24 }
 0x175   :  { %v1434_v39 = vmul.f32 %v1433_v37, %v6144_v24  ;;  %v6211_v57 = vmul.f32 0.5, %v6140_v62  ;;  %v750_v58 = vmul.f32 %v749_v11, %v6182_v14  ;;  %v760_v5 = vadd.f32 0.001143296, %v759_v61 }
 0x176   :  { %1670 = vst.msk [vmem:[#allocation2 + $0x60] sm:$0xff] %vm1650_vm7, %v1627_v20  ;;  %v1417_v6 = vsel %vm6202_vm10, %v5138_v1, %v1413_v53  ;;  %v1446_v9 = vadd.f32 0.4994258, %v1445_v7  ;;  %v6217_v56 = vmin.f32 %v1466_v4, 16.0  ;;  %v6219_v32 = vmul.f32 0.5, %v193_v63 }
 0x177   :  { %v1422_v49 = vsel %vm1419_vm11, %v1421_v40, %v1417_v6  ;;  %v718_v42 = vmul.f32 %v717_v33, %v6089_v23  ;;  %v751_v47 = vadd.f32 0.0036580483, %v750_v58  ;;  %v761_v62 = vmul.f32 %v760_v5, %v6182_v14 }
 0x178   :  { %v1423_v18 = vmul.f32 %v1422_v49, %v1398_v41  ;;  %v1447_v3 = vmul.f32 %v1446_v9, %v6144_v24  ;;  %v1468_v26 = vmul.f32 2.1237322e-06, %v6217_v56  ;;  %v6225_v43 = vmul.f32 0.70710677, %v193_v63 }
 0x179   :  { %v5140_v45 = vpop.eup %5139  ;;  %v1435_v12 = vadd.f32 0.18741608, %v1434_v39  ;;  %v752_v50 = vmul.f32 %v751_v47, %v6182_v14  ;;  %v762_v38 = vadd.f32 0.014752088, %v761_v62  ;;  %v1479_v13 = vmul.f32 3.8918573e-05, %v6217_v56 }
 0x17a   :  { %v5023_v17 = vclamps-f32 %v1423_v18, 1.0  ;;  %v730_v23 = vmul.f32 %v5140_v45, %v6194_v36  ;;  %v738_v46 = vand.u32 2147483647, %v6194_v36  ;;  %v740_v1 = vand.u32 2147483648, %v6194_v36 }
 0x17b   :  { %v6232_v59 = vadd.f32 1.0, %v1447_v3  ;;  %v753_v51 = vadd.f32 0.05243302, %v752_v50  ;;  %v763_v10 = vmul.f32 %v762_v38, %v6182_v14  ;;  %v1469_v55 = vadd.f32 0.00028619796, %v1468_v26 }
 0x17c   :  { %v1613_v60 = vadd.f32 1.0, %v5023_v17  ;;  %v731_v30 = vsub.f32 1.0, %v730_v23  ;;  %v1480_v29 = vadd.f32 0.001143296, %v1479_v13  ;;  %v786_v35 = vmul.f32 %v6225_v43, %v6225_v43 }
 0x17d   :  { %vm734_vm12 = vweird.f32 %v6194_v36  ;;  %vm735_vm13 = vweird.f32 %v5140_v45  ;;  %v1436_v34 = vmul.f32 %v1435_v12, %v6144_v24  ;;  %5141 = vrcp.f32 %v6232_v59 }
 0x17e   :  { %v1645_v31 = vmul.f32 %v1613_v60, %v6126_v22  ;;  %v732_v8 = vmul.f32 %v5140_v45, %v731_v30  ;;  %v754_v25 = vmul.f32 %v753_v51, %v6182_v14  ;;  %v764_v19 = vadd.f32 0.112945676, %v763_v10  ;;  %vm736_vm15 = vmor %vm734_vm12, %vm735_vm13 }
 0x17f   :  { %vm6242_vm14 = vcmp.eq.f32.partialorder %v738_v46, 8.507059e+37  ;;  %v741_v37 = vor.u32 1.1754944e-38, %v740_v1  ;;  %v1470_v28 = vmul.f32 %v1469_v55, %v6217_v56  ;;  %v1481_v63 = vmul.f32 %v1480_v29, %v6217_v56  ;;  %v194_v1 = vpop.f32.mrf.mxu0 }
 0x180   :  { %1688 = vst.msk [vmem:[#allocation2 + $0x110] sm:$0xff] %vm1650_vm7, %v1645_v31  ;;  %v733_v24 = vadd.f32 %v5140_v45, %v732_v8  ;;  %v755_v21 = vadd.f32 0.18741608, %v754_v25  ;;  %v765_v15 = vmul.f32 %v764_v19, %v6182_v14  ;;  %v6250_v22 = vmin.f32 %v786_v35, 16.0  ;;  %v6295_v8 = vld [vmem:[%s9513_s2] ss:$0 sm:$0xff] }
 0x181   :  { %v1437_v11 = vadd.f32 1.1283791, %v1436_v34  ;;  %vm1454_vm1 = vweird.f32 %v6232_v59  ;;  %v1471_v4 = vadd.f32 0.0036580483, %v1470_v28  ;;  %v1482_v41 = vadd.f32 0.014752088, %v1481_v63 }
 0x182   :  { %v737_v40 = vsel %vm736_vm15, %v5140_v45, %v733_v24  ;;  %v1458_v33 = vand.u32 2147483647, %v6232_v59  ;;  %v1460_v20 = vand.u32 2147483648, %v6232_v59  ;;  %v766_v53 = vadd.f32 0.4994258, %v765_v15 }
 0x183   :  { %v5142_v7 = vpop.eup %5141  ;;  %v742_v39 = vsel %vm6242_vm14, %v741_v37, %v737_v40  ;;  %v1472_v58 = vmul.f32 %v1471_v4, %v6217_v56  ;;  %v1483_v36 = vmul.f32 %v1482_v41, %v6217_v56  ;;  %v788_v5 = vmul.f32 2.1237322e-06, %v6250_v22 }
 0x184   :  { %v743_v6 = vmul.f32 %v742_v39, %v718_v42  ;;  %v1450_v9 = vmul.f32 %v5142_v7, %v6232_v59  ;;  %v756_v49 = vmul.f32 %v755_v21, %v6182_v14  ;;  %v6266_v47 = vadd.f32 %v5844_v44, %v237_v48  ;;  %v239_v48 = vpop.f32.mrf.mxu3 }
 0x185   :  { %v767_v62 = vmul.f32 %v766_v53, %v6182_v14  ;;  %v1473_v18 = vadd.f32 0.05243302, %v1472_v58  ;;  %v1484_v3 = vadd.f32 0.112945676, %v1483_v36  ;;  %v789_v26 = vadd.f32 0.00028619796, %v788_v5 }
 0x186   :  { %v5006_v45 = vclamps-f32 %v743_v6, 1.0  ;;  %v1451_v12 = vsub.f32 1.0, %v1450_v9  ;;  %vm1455_vm2 = vweird.f32 %v5142_v7  ;;  %v799_v50 = vmul.f32 3.8918573e-05, %v6250_v22 }
 0x187   :  { %v6270_v38 = vadd.f32 1.0, %v767_v62  ;;  %v1474_v42 = vmul.f32 %v1473_v18, %v6217_v56  ;;  %v1485_v13 = vmul.f32 %v1484_v3, %v6217_v56  ;;  %v790_v17 = vmul.f32 %v789_v26, %v6250_v22  ;;  %vm6281_vm3 = vmor %vm1454_vm1, %vm1455_vm2 }
 0x188   :  { %v1596_v44 = vadd.f32 1.0, %v5006_v45  ;;  %v1452_v23 = vmul.f32 %v5142_v7, %v1451_v12  ;;  %v800_v46 = vadd.f32 0.001143296, %v799_v50  ;;  %v6276_v14 = vmul.f32 0.70710677, %v6266_v47 }
 0x189   :  { %v1438_v51 = vmul.f32 %v1437_v11, %v6105_v0  ;;  %vm6285_vm4 = vcmp.eq.f32.partialorder %v1458_v33, 8.507059e+37  ;;  %v1461_v60 = vor.u32 1.1754944e-38, %v1460_v20  ;;  %5143 = vrcp.f32 %v6270_v38 }
 0x18a   :  { %v1628_v30 = vmul.f32 %v1596_v44, %v6128_v27  ;;  %v1453_v29 = vadd.f32 %v5142_v7, %v1452_v23  ;;  %v757_v35 = vadd.f32 1.1283791, %v756_v49  ;;  %v1486_v34 = vadd.f32 0.4994258, %v1485_v13 }
 0x18b   :  { %v1475_v31 = vadd.f32 0.18741608, %v1474_v42  ;;  %v791_v0 = vadd.f32 0.0036580483, %v790_v17  ;;  %v801_v59 = vmul.f32 %v800_v46, %v6250_v22  ;;  %v6298_v25 = vadd.f32 %v6295_v8, %v194_v1 }
 0x18c   :  { %1671 = vst.msk [vmem:[#allocation2 + $0x68] sm:$0xff] %vm1650_vm7, %v1628_v30  ;;  %v1457_v27 = vsel %vm6281_vm3, %v5142_v7, %v1453_v29  ;;  %v778_v19 = vand.u32 2147483647, %v6270_v38  ;;  %v1487_v61 = vmul.f32 %v1486_v34, %v6217_v56  ;;  %v1506_v37 = vmul.f32 %v6276_v14, %v6276_v14 }
 0x18d   :  { %v1462_v28 = vsel %vm6285_vm4, %v1461_v60, %v1457_v27  ;;  %v780_v63 = vand.u32 2147483648, %v6270_v38  ;;  %v792_v24 = vmul.f32 %v791_v0, %v6250_v22  ;;  %v802_v21 = vadd.f32 0.014752088, %v801_v59 }
 0x18e   :  { %v270_v15 = vmul.f32 0.5, %v6092_v2  ;;  %v1463_v11 = vmul.f32 %v1462_v28, %v1438_v51  ;;  %v758_v4 = vmul.f32 %v757_v35, %v6160_v52  ;;  %v6313_v41 = vadd.f32 1.0, %v1487_v61  ;;  %v197_v2 = vpop.f32.mrf.mxu0 }
 0x18f   :  { %v5144_v40 = vpop.eup %5143  ;;  %v1476_v33 = vmul.f32 %v1475_v31, %v6217_v56  ;;  %v793_v20 = vadd.f32 0.05243302, %v792_v24  ;;  %v803_v53 = vmul.f32 %v802_v21, %v6250_v22  ;;  %v6317_v7 = vmin.f32 %v1506_v37, 16.0 }
 0x190   :  { %v5024_v39 = vclamps-f32 %v1463_v11, 1.0  ;;  %v770_v58 = vmul.f32 %v5144_v40, %v6270_v38  ;;  %vm774_vm5 = vweird.f32 %v6270_v38  ;;  %vm6321_vm6 = vcmp.eq.f32.partialorder %v778_v19, 8.507059e+37 }
 0x191   :  { %v781_v52 = vor.u32 1.1754944e-38, %v780_v63  ;;  %5145 = vrcp.f32 %v6313_v41  ;;  %v6327_v36 = vmul.f32 0.70710677, %v6298_v25  ;;  %v6330_v56 = vadd.f32 %v6295_v8, %v239_v48 }
 0x192   :  { %v1614_v5 = vadd.f32 1.0, %v5024_v39  ;;  %v771_v6 = vsub.f32 1.0, %v770_v58  ;;  %v794_v9 = vmul.f32 %v793_v20, %v6250_v22  ;;  %v804_v49 = vadd.f32 0.112945676, %v803_v53 }
 0x193   :  { %vm775_vm8 = vweird.f32 %v5144_v40  ;;  %v1477_v62 = vadd.f32 1.1283791, %v1476_v33  ;;  %v1508_v18 = vmul.f32 2.1237322e-06, %v6317_v7  ;;  %v1519_v3 = vmul.f32 3.8918573e-05, %v6317_v7 }
 0x194   :  { %v1646_v26 = vmul.f32 %v1614_v5, %v270_v15  ;;  %v772_v45 = vmul.f32 %v5144_v40, %v771_v6  ;;  %v795_v12 = vadd.f32 0.18741608, %v794_v9  ;;  %v805_v50 = vmul.f32 %v804_v49, %v6250_v22  ;;  %vm776_vm10 = vmor %vm774_vm5, %vm775_vm8 }
 0x195   :  { %v1509_v42 = vadd.f32 0.00028619796, %v1508_v18  ;;  %v1520_v13 = vadd.f32 0.001143296, %v1519_v3  ;;  %v826_v17 = vmul.f32 %v6327_v36, %v6327_v36  ;;  %v6339_v44 = vmul.f32 0.70710677, %v6330_v56 }
 0x196   :  { %1689 = vst.msk [vmem:[#allocation2 + $0x118] sm:$0xff] %vm1650_vm7, %v1646_v26  ;;  %v773_v23 = vadd.f32 %v5144_v40, %v772_v45  ;;  %vm1494_vm9 = vweird.f32 %v6313_v41  ;;  %v1498_v46 = vand.u32 2147483647, %v6313_v41  ;;  %v806_v1 = vadd.f32 0.4994258, %v805_v50 }
 0x197   :  { %v5146_v51 = vpop.eup %5145  ;;  %v1500_v10 = vand.u32 2147483648, %v6313_v41  ;;  %v1510_v55 = vmul.f32 %v1509_v42, %v6317_v7  ;;  %v1521_v60 = vmul.f32 %v1520_v13, %v6317_v7  ;;  %v6350_v30 = vmin.f32 %v826_v17, 16.0 }
 0x198   :  { %v777_v29 = vsel %vm776_vm10, %v5144_v40, %v773_v23  ;;  %v1490_v35 = vmul.f32 %v5146_v51, %v6313_v41  ;;  %v796_v34 = vmul.f32 %v795_v12, %v6250_v22  ;;  %v1546_v31 = vmul.f32 %v6339_v44, %v6339_v44 }
 0x199   :  { %v782_v38 = vsel %vm6321_vm6, %v781_v52, %v777_v29  ;;  %v807_v0 = vmul.f32 %v806_v1, %v6250_v22  ;;  %v1511_v59 = vadd.f32 0.0036580483, %v1510_v55  ;;  %v1522_v27 = vadd.f32 0.014752088, %v1521_v60 }
 0x19a   :  { %v783_v19 = vmul.f32 %v782_v38, %v758_v4  ;;  %v1491_v61 = vsub.f32 1.0, %v1490_v35  ;;  %vm1495_vm11 = vweird.f32 %v5146_v51  ;;  %v828_v37 = vmul.f32 2.1237322e-06, %v6350_v30 }
 0x19b   :  { %v6360_v28 = vadd.f32 1.0, %v807_v0  ;;  %v1512_v63 = vmul.f32 %v1511_v59, %v6317_v7  ;;  %v1523_v24 = vmul.f32 %v1522_v27, %v6317_v7  ;;  %v839_v21 = vmul.f32 3.8918573e-05, %v6350_v30  ;;  %vm6368_vm12 = vmor %vm1494_vm9, %vm1495_vm11 }
 0x19c   :  { %v5007_v15 = vclamps-f32 %v783_v19, 1.0  ;;  %v1478_v11 = vmul.f32 %v1477_v62, %v6187_v16  ;;  %v1492_v48 = vmul.f32 %v5146_v51, %v1491_v61  ;;  %v829_v22 = vadd.f32 0.00028619796, %v828_v37 }
 0x19d   :  { %vm6372_vm13 = vcmp.eq.f32.partialorder %v1498_v46, 8.507059e+37  ;;  %v1501_v33 = vor.u32 1.1754944e-38, %v1500_v10  ;;  %v797_v20 = vadd.f32 1.1283791, %v796_v34  ;;  %5147 = vrcp.f32 %v6360_v28 }
 0x19e   :  { %v1597_v53 = vadd.f32 1.0, %v5007_v15  ;;  %v1493_v39 = vadd.f32 %v5146_v51, %v1492_v48  ;;  %v1513_v58 = vadd.f32 0.05243302, %v1512_v63  ;;  %v1524_v16 = vadd.f32 0.112945676, %v1523_v24 }
 0x19f   :  { %v818_v52 = vand.u32 2147483647, %v6360_v28  ;;  %v830_v41 = vmul.f32 %v829_v22, %v6350_v30  ;;  %v840_v5 = vadd.f32 0.001143296, %v839_v21  ;;  %v6379_v6 = vmin.f32 %v1546_v31, 16.0 }
 0x1a0   :  { %v1629_v9 = vmul.f32 %v1597_v53, %v6211_v57  ;;  %v1497_v49 = vsel %vm6368_vm12, %v5146_v51, %v1493_v39  ;;  %v1514_v62 = vmul.f32 %v1513_v58, %v6317_v7  ;;  %v1525_v18 = vmul.f32 %v1524_v16, %v6317_v7 }
 0x1a1   :  { %v1502_v3 = vsel %vm6372_vm13, %v1501_v33, %v1497_v49  ;;  %v831_v26 = vadd.f32 0.0036580483, %v830_v41  ;;  %v841_v45 = vmul.f32 %v840_v5, %v6350_v30  ;;  %v1548_v12 = vmul.f32 2.1237322e-06, %v6379_v6 }
 0x1a2   :  { %1672 = vst.msk [vmem:[#allocation2 + $0x70] sm:$0xff] %vm1650_vm7, %v1629_v9  ;;  %v271_v50 = vmul.f32 0.5, %v6151_v54  ;;  %v1503_v57 = vmul.f32 %v1502_v3, %v1478_v11  ;;  %v1515_v42 = vadd.f32 0.18741608, %v1514_v62  ;;  %v1526_v13 = vadd.f32 0.4994258, %v1525_v18 }
 0x1a3   :  { %v5148_v17 = vpop.eup %5147  ;;  %v832_v23 = vmul.f32 %v831_v26, %v6350_v30  ;;  %v842_v46 = vadd.f32 0.014752088, %v841_v45  ;;  %v1549_v1 = vadd.f32 0.00028619796, %v1548_v12  ;;  %v1559_v51 = vmul.f32 3.8918573e-05, %v6379_v6 }
 0x1a4   :  { %v5025_v10 = vclamps-f32 %v1503_v57, 1.0  ;;  %v810_v55 = vmul.f32 %v5148_v17, %v6360_v28  ;;  %v820_v60 = vand.u32 2147483648, %v6360_v28  ;;  %v1516_v29 = vmul.f32 %v1515_v42, %v6317_v7 }
 0x1a5   :  { %v1527_v35 = vmul.f32 %v1526_v13, %v6317_v7  ;;  %v833_v54 = vadd.f32 0.05243302, %v832_v23  ;;  %v843_v34 = vmul.f32 %v842_v46, %v6350_v30  ;;  %v1550_v31 = vmul.f32 %v1549_v1, %v6379_v6  ;;  %v199_v7 = vpop.f32.mrf.mxu0 }
 0x1a6   :  { %v1615_v38 = vadd.f32 1.0, %v5025_v10  ;;  %v811_v0 = vsub.f32 1.0, %v810_v55  ;;  %vm815_vm14 = vweird.f32 %v5148_v17  ;;  %v1560_v59 = vadd.f32 0.001143296, %v1559_v51 }
 0x1a7   :  { %v1528_v27 = vadd.f32 1.0, %v1527_v35  ;;  %v834_v19 = vmul.f32 %v833_v54, %v6350_v30  ;;  %v844_v61 = vadd.f32 0.112945676, %v843_v34  ;;  %v1551_v37 = vadd.f32 0.0036580483, %v1550_v31 }
 0x1a8   :  { %v1647_v63 = vmul.f32 %v1615_v38, %v271_v50  ;;  %v812_v24 = vmul.f32 %v5148_v17, %v811_v0  ;;  %v1517_v21 = vadd.f32 1.1283791, %v1516_v29  ;;  %v1561_v15 = vmul.f32 %v1560_v59, %v6379_v6 }
 0x1a9   :  { %v798_v11 = vmul.f32 %v797_v20, %v6225_v43  ;;  %5149 = vrcp.f32 %v1528_v27  ;;  %v6404_v48 = vmul.f32 0.5, %v6298_v25  ;;  %v6407_v22 = vadd.f32 %v6295_v8, %v197_v2 }
 0x1aa   :  { %1690 = vst.msk [vmem:[#allocation2 + $0x120] sm:$0xff] %vm1650_vm7, %v1647_v63  ;;  %v813_v4 = vadd.f32 %v5148_v17, %v812_v24  ;;  %vm814_vm15 = vweird.f32 %v6360_v28  ;;  %v845_v40 = vmul.f32 %v844_v61, %v6350_v30  ;;  %v1552_v33 = vmul.f32 %v1551_v37, %v6379_v6 }
 0x1ab   :  { %vm816_vm1 = vmor %vm814_vm15, %vm815_vm14  ;;  %vm819_vm2 = vcmp.eq.f32.partialorder %v818_v52, 8.507059e+37  ;;  %v821_v43 = vor.u32 1.1754944e-38, %v820_v60  ;;  %v835_v20 = vadd.f32 0.18741608, %v834_v19  ;;  %v1562_v53 = vadd.f32 0.014752088, %v1561_v15 }
 0x1ac   :  { %v817_v25 = vsel %vm816_vm1, %v5148_v17, %v813_v4  ;;  %v6415_v39 = vmul.f32 %v1517_v21, %v6276_v14  ;;  %v1538_v58 = vand.u32 2147483647, %v1528_v27  ;;  %v846_v16 = vadd.f32 0.4994258, %v845_v40 }
 0x1ad   :  { %v822_v2 = vsel %vm819_vm2, %v821_v43, %v817_v25  ;;  %v1553_v41 = vadd.f32 0.05243302, %v1552_v33  ;;  %v1563_v28 = vmul.f32 %v1562_v53, %v6379_v6  ;;  %v6419_v5 = vmul.f32 0.70710677, %v6407_v22  ;;  %v202_v51 = vpop.f32.mrf.mxu0 }
 0x1ae   :  { %v823_v9 = vmul.f32 %v822_v2, %v798_v11  ;;  %v1540_v49 = vand.u32 2147483648, %v1528_v27  ;;  %v847_v52 = vmul.f32 %v846_v16, %v6350_v30  ;;  %v6423_v62 = vadd.f32 %v6295_v8, %v199_v7  ;;  %v5086_v7 = vld [vmem:[%s9516_s5 + $0x8] sm:$0xff] }
 0x1af   :  { %v5150_v18 = vpop.eup %5149  ;;  %v836_v14 = vmul.f32 %v835_v20, %v6350_v30  ;;  %v1554_v3 = vmul.f32 %v1553_v41, %v6379_v6  ;;  %v1564_v26 = vadd.f32 0.112945676, %v1563_v28  ;;  %v866_v45 = vmul.f32 %v6419_v5, %v6419_v5  ;;  %4842 = vmatpush.bf16.msra.mxu1 %v5086_v7  ;;  %5088 = vmatpush.bf16.msra.mxu2 %v5086_v7 }
 0x1b0   :  { %v5008_v12 = vclamps-f32 %v823_v9, 1.0  ;;  %v1530_v50 = vmul.f32 %v5150_v18, %v1528_v27  ;;  %vm1534_vm3 = vweird.f32 %v1528_v27  ;;  %vm6429_vm4 = vcmp.eq.f32.partialorder %v1538_v58, 8.507059e+37 }
 0x1b1   :  { %v6433_v42 = vadd.f32 1.0, %v847_v52  ;;  %v1555_v13 = vadd.f32 0.18741608, %v1554_v3  ;;  %v1565_v17 = vmul.f32 %v1564_v26, %v6379_v6  ;;  %v6436_v23 = vmin.f32 %v866_v45, 16.0 }
 0x1b2   :  { %v1598_v30 = vadd.f32 1.0, %v5008_v12  ;;  %v1531_v46 = vsub.f32 1.0, %v1530_v50  ;;  %vm1535_vm5 = vweird.f32 %v5150_v18  ;;  %v6439_v1 = vmul.f32 0.70710677, %v6423_v62 }
 0x1b3   :  { %v1541_v10 = vor.u32 1.1754944e-38, %v1540_v49  ;;  %v837_v55 = vadd.f32 1.1283791, %v836_v14  ;;  %5151 = vrcp.f32 %v6433_v42  ;;  %v858_v60 = vand.u32 2147483647, %v6433_v42  ;;  %vm6446_vm6 = vmor %vm1534_vm3, %vm1535_vm5 }
 0x1b4   :  { %v1630_v29 = vmul.f32 %v1598_v30, %v6219_v32  ;;  %v1532_v35 = vmul.f32 %v5150_v18, %v1531_v46  ;;  %v1556_v54 = vmul.f32 %v1555_v13, %v6379_v6  ;;  %v1566_v34 = vadd.f32 0.4994258, %v1565_v17 }
 0x1b5   :  { %v860_v38 = vand.u32 2147483648, %v6433_v42  ;;  %v868_v0 = vmul.f32 2.1237322e-06, %v6436_v23  ;;  %v879_v59 = vmul.f32 3.8918573e-05, %v6436_v23  ;;  %v6454_v19 = vadd.f32 %v6295_v8, %v202_v51 }
 0x1b6   :  { %1673 = vst.msk [vmem:[#allocation2 + $0x78] sm:$0xff] %vm1650_vm7, %v1630_v29  ;;  %v1533_v32 = vadd.f32 %v5150_v18, %v1532_v35  ;;  %v1557_v61 = vadd.f32 1.1283791, %v1556_v54  ;;  %v1567_v37 = vmul.f32 %v1566_v34, %v6379_v6  ;;  %v906_v27 = vmul.f32 %v6439_v1, %v6439_v1 }
 0x1b7   :  { %v272_v63 = vmul.f32 0.5, %v6266_v47  ;;  %v838_v24 = vmul.f32 %v837_v55, %v6327_v36  ;;  %v869_v21 = vadd.f32 0.00028619796, %v868_v0  ;;  %v880_v15 = vadd.f32 0.001143296, %v879_v59 }
 0x1b8   :  { %v1537_v11 = vsel %vm6446_vm6, %v5150_v18, %v1533_v32  ;;  %vm854_vm8 = vweird.f32 %v6433_v42  ;;  %v6468_v4 = vadd.f32 1.0, %v1567_v37  ;;  %v6470_v6 = vmin.f32 %v906_v27, 16.0 }
 0x1b9   :  { %v5152_v40 = vpop.eup %5151  ;;  %v1542_v47 = vsel %vm6429_vm4, %v1541_v10, %v1537_v11  ;;  %v861_v36 = vor.u32 1.1754944e-38, %v860_v38  ;;  %v870_v33 = vmul.f32 %v869_v21, %v6436_v23  ;;  %v881_v43 = vmul.f32 %v880_v15, %v6436_v23 }
 0x1ba   :  { %v1543_v20 = vmul.f32 %v1542_v47, %v6415_v39  ;;  %v850_v53 = vmul.f32 %v5152_v40, %v6433_v42  ;;  %vm6478_vm9 = vcmp.eq.f32.partialorder %v858_v60, 8.507059e+37  ;;  %5153 = vrcp.f32 %v6468_v4  ;;  %v5085_v39 = vld [vmem:[%s9516_s5] sm:$0xff] }
 0x1bb   :  { %v6484_v58 = vmul.f32 0.70710677, %v6454_v19  ;;  %vm855_vm10 = vweird.f32 %v5152_v40  ;;  %v6487_v16 = vmul.f32 %v1557_v61, %v6339_v44  ;;  %v1578_v2 = vand.u32 2147483647, %v6468_v4  ;;  %4843 = vmatpush.bf16.msra.mxu1 %v5085_v39  ;;  %5089 = vmatpush.bf16.msra.mxu2 %v5085_v39 }
 0x1bc   :  { %v871_v41 = vadd.f32 0.0036580483, %v870_v33  ;;  %v5026_v28 = vclamps-f32 %v1543_v20, 1.0  ;;  %v851_v9 = vsub.f32 1.0, %v850_v53  ;;  %v882_v49 = vadd.f32 0.014752088, %v881_v43  ;;  %vm856_vm13 = vmor %vm854_vm8, %vm855_vm10  ;;  %v204_v43 = vpop.f32.mrf.mxu0 }
 0x1bd   :  { %v908_v52 = vmul.f32 2.1237322e-06, %v6470_v6  ;;  %vm1574_vm11 = vweird.f32 %v6468_v4  ;;  %v1580_v18 = vand.u32 2147483648, %v6468_v4  ;;  %v919_v44 = vmul.f32 3.8918573e-05, %v6470_v6 }
 0x1be   :  { %v872_v14 = vmul.f32 %v871_v41, %v6436_v23  ;;  %v1616_v3 = vadd.f32 1.0, %v5026_v28  ;;  %v852_v26 = vmul.f32 %v5152_v40, %v851_v9  ;;  %v883_v45 = vmul.f32 %v882_v49, %v6436_v23 }
 0x1bf   :  { %v909_v12 = vadd.f32 0.00028619796, %v908_v52  ;;  %vm6499_vm12 = vcmp.eq.f32.partialorder %v1578_v2, 8.507059e+37  ;;  %v920_v13 = vadd.f32 0.001143296, %v919_v44  ;;  %v946_v17 = vmul.f32 %v6484_v58, %v6484_v58 }
 0x1c0   :  { %v873_v57 = vadd.f32 0.05243302, %v872_v14  ;;  %v5154_v30 = vpop.eup %5153  ;;  %v1648_v46 = vmul.f32 %v1616_v3, %v272_v63  ;;  %v853_v51 = vadd.f32 %v5152_v40, %v852_v26  ;;  %v884_v10 = vadd.f32 0.112945676, %v883_v45 }
 0x1c1   :  { %v910_v55 = vmul.f32 %v909_v12, %v6470_v6  ;;  %v1570_v60 = vmul.f32 %v5154_v30, %v6468_v4  ;;  %vm1575_vm14 = vweird.f32 %v5154_v30  ;;  %v921_v35 = vmul.f32 %v920_v13, %v6470_v6 }
 0x1c2   :  { %v874_v29 = vmul.f32 %v873_v57, %v6436_v23  ;;  %1691 = vst.msk [vmem:[#allocation2 + $0x128] sm:$0xff] %vm1650_vm7, %v1648_v46  ;;  %v857_v54 = vsel %vm856_vm13, %v5152_v40, %v853_v51  ;;  %v885_v34 = vmul.f32 %v884_v10, %v6436_v23  ;;  %v6514_v38 = vmin.f32 %v946_v17, 16.0  ;;  %vm6525_vm15 = vmor %vm1574_vm11, %vm1575_vm14 }
 0x1c3   :  { %v911_v31 = vadd.f32 0.0036580483, %v910_v55  ;;  %v862_v0 = vsel %vm6478_vm9, %v861_v36, %v857_v54  ;;  %v1571_v42 = vsub.f32 1.0, %v1570_v60  ;;  %v922_v32 = vadd.f32 0.014752088, %v921_v35  ;;  %v6575_v55 = vld [vmem:[%s9514_s3] sm:$0xff] }
 0x1c4   :  { %v875_v59 = vadd.f32 0.18741608, %v874_v29  ;;  %v863_v61 = vmul.f32 %v862_v0, %v838_v24  ;;  %v886_v37 = vadd.f32 0.4994258, %v885_v34  ;;  %v948_v63 = vmul.f32 2.1237322e-06, %v6514_v38 }
 0x1c5   :  { %v912_v27 = vmul.f32 %v911_v31, %v6470_v6  ;;  %v1572_v21 = vmul.f32 %v5154_v30, %v1571_v42  ;;  %v1581_v15 = vor.u32 1.1754944e-38, %v1580_v18  ;;  %v923_v7 = vmul.f32 %v922_v32, %v6470_v6 }
 0x1c6   :  { %v959_v11 = vmul.f32 3.8918573e-05, %v6514_v38  ;;  %v5009_v40 = vclamps-f32 %v863_v61, 1.0  ;;  %v887_v24 = vmul.f32 %v886_v37, %v6436_v23  ;;  %v949_v33 = vadd.f32 0.00028619796, %v948_v63 }
 0x1c7   :  { %v913_v36 = vadd.f32 0.05243302, %v912_v27  ;;  %v1573_v20 = vadd.f32 %v5154_v30, %v1572_v21  ;;  %v876_v53 = vmul.f32 %v875_v59, %v6436_v23  ;;  %v924_v25 = vadd.f32 0.112945676, %v923_v7 }
 0x1c8   :  { %v960_v2 = vadd.f32 0.001143296, %v959_v11  ;;  %v1599_v41 = vadd.f32 1.0, %v5009_v40  ;;  %v6531_v39 = vadd.f32 1.0, %v887_v24  ;;  %v950_v4 = vmul.f32 %v949_v33, %v6514_v38  ;;  %v6611_v33 = vld [vmem:[#allocation2 + $0x8] sm:$0xff] }
 0x1c9   :  { %v914_v28 = vmul.f32 %v913_v36, %v6470_v6  ;;  %v1577_v9 = vsel %vm6525_vm15, %v5154_v30, %v1573_v20  ;;  %v6538_v49 = vmul.f32 0.5, %v6407_v22  ;;  %v925_v52 = vmul.f32 %v924_v25, %v6470_v6 }
 0x1ca   :  { %v205_v18 = vadd.f32 %v6295_v8, %v204_v43  ;;  %v1631_v23 = vmul.f32 %v1599_v41, %v6404_v48  ;;  %v1582_v14 = vsel %vm6499_vm12, %v1581_v15, %v1577_v9  ;;  %5155 = vrcp.f32 %v6531_v39 }
 0x1cb   :  { %v961_v44 = vmul.f32 %v960_v2, %v6514_v38  ;;  %v273_v3 = vmul.f32 0.5, %v6330_v56  ;;  %v1583_v26 = vmul.f32 %v1582_v14, %v6487_v16  ;;  %v877_v45 = vadd.f32 1.1283791, %v876_v53  ;;  %v6561_v56 = vld [vmem:[%s9514_s3 + $0x8] ss:$0 sm:$0xff] }
 0x1cc   :  { %v915_v22 = vadd.f32 0.18741608, %v914_v28  ;;  %1674 = vst.msk [vmem:[#allocation2 + $0x80] sm:$0xff] %vm1650_vm7, %v1631_v23  ;;  %v926_v12 = vadd.f32 0.4994258, %v925_v52  ;;  %v6551_v48 = vmul.f32 0.5, %v6423_v62  ;;  %vm894_vm1 = vweird.f32 %v6531_v39 }
 0x1cd   :  { %v951_v57 = vadd.f32 0.0036580483, %v950_v4  ;;  %v5027_v8 = vclamps-f32 %v1583_v26, 1.0  ;;  %v6555_v13 = vmul.f32 0.5, %v6454_v19  ;;  %v5301_v17 = vmov 0.0  }
 0x1ce   :  { %v916_v50 = vmul.f32 %v915_v22, %v6470_v6  ;;  %1651 = vst.msk [vmem:[#allocation2] sm:$0xff] %vm1650_vm7, %v5301_v17  ;;  %v927_v16 = vmul.f32 %v926_v12, %v6470_v6  ;;  %v962_v46 = vadd.f32 0.014752088, %v961_v44  ;;  %v6565_v62 = vmul.f32 0.70710677, %v205_v18  ;;  %v6577_v6 = vld [vmem:[#allocation2 + $0x10] sm:$0xff] }
 0x1cf   :  { %v952_v30 = vmul.f32 %v951_v57, %v6514_v38  ;;  %1652 = vst.msk [vmem:[#allocation2 + $0x50] sm:$0xff] %vm1650_vm7, %v5301_v17  ;;  %v1617_v51 = vadd.f32 1.0, %v5027_v8  ;;  %v878_v19 = vmul.f32 %v877_v45, %v6419_v5  ;;  %v6570_v10 = vmul.f32 0.5, %v205_v18 }
 0x1d0   :  { %1653 = vst.msk [vmem:[#allocation2 + $0xa0] sm:$0xff] %vm1650_vm7, %v5301_v17  ;;  %v5156_v60 = vpop.eup %5155  ;;  %v6580_v29 = vadd.f32 1.0, %v927_v16  ;;  %v963_v54 = vmul.f32 %v962_v46, %v6514_v38  ;;  %v986_v5 = vmul.f32 %v6565_v62, %v6565_v62  ;;  %v898_v0 = vand.u32 2147483647, %v6531_v39 }
 0x1d1   :  { %v953_v35 = vadd.f32 0.05243302, %v952_v30  ;;  %1654 = vst.msk [vmem:[#allocation2 + $0xf0] sm:$0xff] %vm1650_vm7, %v5301_v17  ;;  %v1649_v34 = vmul.f32 %v1617_v51, %v273_v3  ;;  %v890_v31 = vmul.f32 %v5156_v60, %v6531_v39  ;;  %v900_v42 = vand.u32 2147483648, %v6531_v39 }
 0x1d2   :  { %1656 = vst.msk [vmem:[#allocation2 + $0x48] sm:$0xff] %vm1650_vm7, %v5301_v17  ;;  %v917_v59 = vadd.f32 1.1283791, %v916_v50  ;;  %5157 = vrcp.f32 %v6580_v29  ;;  %v6592_v32 = vperm.slane %v6575_v55, 0  ;;  %v6596_v61 = vmul.f32 %v6561_v56, %v6577_v6 }
 0x1d3   :  { %1657 = vst.msk [vmem:[#allocation2 + $0x98] sm:$0xff] %vm1650_vm7, %v5301_v17  ;;  %v891_v37 = vsub.f32 1.0, %v890_v31  ;;  %v954_v27 = vmul.f32 %v953_v35, %v6514_v38  ;;  %v964_v63 = vadd.f32 0.112945676, %v963_v54  ;;  %v6601_v21 = vmin.f32 %v986_v5, 16.0 }
 0x1d4   :  { %1692 = vst.msk [vmem:[#allocation2 + $0x130] sm:$0xff] %vm1650_vm7, %v1649_v34  ;;  %vm895_vm2 = vweird.f32 %v5156_v60  ;;  %v938_v15 = vand.u32 2147483647, %v6580_v29  ;;  %v940_v7 = vand.u32 2147483648, %v6580_v29  ;;  %v6606_v11 = vperm.slane %v6575_v55, 1 }
 0x1d5   :  { %1658 = vst.msk [vmem:[#allocation2 + $0xe8] sm:$0xff] %vm1650_vm7, %v5301_v17  ;;  %v892_v40 = vmul.f32 %v5156_v60, %v891_v37  ;;  %v955_v47 = vadd.f32 0.18741608, %v954_v27  ;;  %v965_v24 = vmul.f32 %v964_v63, %v6514_v38  ;;  %v988_v36 = vmul.f32 2.1237322e-06, %v6601_v21  ;;  %vm896_vm5 = vmor %vm894_vm1, %vm895_vm2  ;;  %v1695_v18 = vld [vmem:[#allocation2] sm:$0xff] }
 0x1d6   :  { %1659 = vst.msk [vmem:[#allocation2 + $0x138] sm:$0xff] %vm1650_vm7, %v5301_v17  ;;  %vm6614_vm3 = vcmp.eq.f32.partialorder %v898_v0, 8.507059e+37  ;;  %v901_v20 = vor.u32 1.1754944e-38, %v900_v42  ;;  %v918_v53 = vmul.f32 %v917_v59, %v6439_v1  ;;  %v999_v25 = vmul.f32 3.8918573e-05, %v6601_v21 }
 0x1d7   :  { %v893_v2 = vadd.f32 %v5156_v60, %v892_v40  ;;  %vm934_vm4 = vweird.f32 %v6580_v29  ;;  %v966_v41 = vadd.f32 0.4994258, %v965_v24  ;;  %v989_v28 = vadd.f32 0.00028619796, %v988_v36 }
 0x1d8   :  { %v5158_v4 = vpop.eup %5157  ;;  %v941_v9 = vor.u32 1.1754944e-38, %v940_v7  ;;  %v1000_v52 = vadd.f32 0.001143296, %v999_v25  ;;  %v1729_v23 = vmul.f32 %v6592_v32, %v6611_v33  ;;  %v6628_v1 = vmul.f32 %v6606_v11, %v6611_v33 }
 0x1d9   :  { %v897_v14 = vsel %vm896_vm5, %v5156_v60, %v893_v2  ;;  %v930_v44 = vmul.f32 %v5158_v4, %v6580_v29  ;;  %vm6631_vm6 = vcmp.eq.f32.partialorder %v938_v15, 8.507059e+37  ;;  %v956_v39 = vmul.f32 %v955_v47, %v6514_v38 }
 0x1da   :  { %v6637_v26 = vperm.slane %v6575_v55, 2  ;;  %v902_v45 = vsel %vm6614_vm3, %v901_v20, %v897_v14  ;;  %v967_v22 = vmul.f32 %v966_v41, %v6514_v38  ;;  %v990_v12 = vmul.f32 %v989_v28, %v6601_v21 }
 0x1db   :  { %v1001_v57 = vmul.f32 %v1000_v52, %v6601_v21  ;;  %v903_v8 = vmul.f32 %v902_v45, %v878_v19  ;;  %v931_v50 = vsub.f32 1.0, %v930_v44  ;;  %v1728_v17 = vmul.f32 %v6592_v32, %v1695_v18 }
 0x1dc   :  { %v1761_v16 = vmul.f32 %v6606_v11, %v1695_v18  ;;  %v6646_v30 = vadd.f32 1.0, %v967_v22  ;;  %v991_v46 = vadd.f32 0.0036580483, %v990_v12  ;;  %v6649_v60 = vperm.slane %v6575_v55, 3 }
 0x1dd   :  { %v1002_v51 = vadd.f32 0.014752088, %v1001_v57  ;;  %v5010_v35 = vclamps-f32 %v903_v8, 1.0  ;;  %v932_v54 = vmul.f32 %v5158_v4, %v931_v50  ;;  %vm935_vm8 = vweird.f32 %v5158_v4 }
 0x1de   :  { %v1794_v38 = vmul.f32 %v6637_v26, %v1695_v18  ;;  %v957_v5 = vadd.f32 1.1283791, %v956_v39  ;;  %5159 = vrcp.f32 %v6646_v30  ;;  %v1795_v19 = vmul.f32 %v6637_v26, %v6611_v33  ;;  %vm936_vm9 = vmor %vm934_vm4, %vm935_vm8 }
 0x1df   :  { %v6656_v34 = vperm.slane %v6575_v55, 4  ;;  %v1600_v31 = vadd.f32 1.0, %v5010_v35  ;;  %v933_v0 = vadd.f32 %v5158_v4, %v932_v54  ;;  %v992_v42 = vmul.f32 %v991_v46, %v6601_v21 }
 0x1e0   :  { %v1003_v59 = vmul.f32 %v1002_v51, %v6601_v21  ;;  %v978_v37 = vand.u32 2147483647, %v6646_v30  ;;  %v980_v27 = vand.u32 2147483648, %v6646_v30  ;;  %v1859_v63 = vmul.f32 %v6649_v60, %v6611_v33  ;;  %v6703_v51 = vld [vmem:[#allocation2 + $0x20] sm:$0xff] }
 0x1e1   :  { %v1860_v15 = vmul.f32 %v6649_v60, %v6577_v6  ;;  %v1632_v7 = vmul.f32 %v1600_v31, %v6538_v49  ;;  %v937_v40 = vsel %vm936_vm9, %v5158_v4, %v933_v0  ;;  %v993_v47 = vadd.f32 0.05243302, %v992_v42 }
 0x1e2   :  { %v1004_v24 = vadd.f32 0.112945676, %v1003_v59  ;;  %v942_v36 = vsel %vm6631_vm6, %v941_v9, %v937_v40  ;;  %v1796_v29 = vmul.f32 %v6637_v26, %v6577_v6  ;;  %v1892_v43 = vmul.f32 %v6656_v34, %v6611_v33 }
 0x1e3   :  { %v6676_v20 = vperm.slane %v6575_v55, 5  ;;  %1675 = vst.msk [vmem:[#allocation2 + $0x88] sm:$0xff] %vm1650_vm7, %v1632_v7  ;;  %v943_v25 = vmul.f32 %v942_v36, %v918_v53  ;;  %v958_v49 = vmul.f32 %v957_v5, %v6484_v58  ;;  %v994_v2 = vmul.f32 %v993_v47, %v6601_v21  ;;  %v6690_v53 = vld [vmem:[#allocation2 + $0x18] sm:$0xff] }
 0x1e4   :  { %v1005_v41 = vmul.f32 %v1004_v24, %v6601_v21  ;;  %v5160_v28 = vpop.eup %5159  ;;  %vm974_vm10 = vweird.f32 %v6646_v30  ;;  %v981_v4 = vor.u32 1.1754944e-38, %v980_v27  ;;  %v1893_v9 = vmul.f32 %v6656_v34, %v6577_v6 }
 0x1e5   :  { %v1957_v52 = vadd.f32 %v1859_v63, %v1728_v17  ;;  %v5011_v18 = vclamps-f32 %v943_v25, 1.0  ;;  %v970_v14 = vmul.f32 %v5160_v28, %v6646_v30  ;;  %vm6686_vm11 = vcmp.eq.f32.partialorder %v978_v37, 8.507059e+37 }
 0x1e6   :  { %v995_v58 = vadd.f32 0.18741608, %v994_v2  ;;  %v1958_v3 = vadd.f32 %v1860_v15, %v1729_v23  ;;  %v1006_v39 = vadd.f32 0.4994258, %v1005_v41  ;;  %v1925_v45 = vmul.f32 %v6676_v20, %v6611_v33 }
 0x1e7   :  { %v1926_v22 = vmul.f32 %v6676_v20, %v6577_v6  ;;  %v1989_v12 = vadd.f32 %v1892_v43, %v1761_v16  ;;  %v1601_v57 = vadd.f32 1.0, %v5011_v18  ;;  %v971_v8 = vsub.f32 1.0, %v970_v14 }
 0x1e8   :  { %v996_v50 = vmul.f32 %v995_v58, %v6601_v21  ;;  %v6698_v17 = vperm.slane %v6575_v55, 6  ;;  %vm975_vm12 = vweird.f32 %v5160_v28  ;;  %v1007_v46 = vmul.f32 %v1006_v39, %v6601_v21 }
 0x1e9   :  { %v1927_v23 = vmul.f32 %v6676_v20, %v6690_v53  ;;  %v6706_v35 = vperm.slane %v6575_v55, 7  ;;  %v1633_v16 = vmul.f32 %v1601_v57, %v6551_v48  ;;  %v972_v54 = vmul.f32 %v5160_v28, %v971_v8  ;;  %vm976_vm13 = vmor %vm974_vm10, %vm975_vm12 }
 0x1ea   :  { %v997_v5 = vadd.f32 1.1283791, %v996_v50  ;;  %v2087_v31 = vmul.f32 %v6698_v17, %v6577_v6  ;;  %v6711_v0 = vadd.f32 1.0, %v1007_v46  ;;  %v1990_v42 = vadd.f32 %v1893_v9, %v6628_v1 }
 0x1eb   :  { %v2088_v21 = vmul.f32 %v6698_v17, %v6690_v53  ;;  %v2154_v59 = vmul.f32 %v6561_v56, %v6690_v53  ;;  %1676 = vst.msk [vmem:[#allocation2 + $0x90] sm:$0xff] %vm1650_vm7, %v1633_v16  ;;  %v973_v55 = vadd.f32 %v5160_v28, %v972_v54  ;;  %v2021_v37 = vadd.f32 %v1925_v45, %v1794_v38 }
 0x1ec   :  { %v2022_v48 = vadd.f32 %v1926_v22, %v1795_v19  ;;  %v2155_v27 = vmul.f32 %v6561_v56, %v6703_v51  ;;  %5161 = vrcp.f32 %v6711_v0  ;;  %v2023_v1 = vadd.f32 %v1927_v23, %v1796_v29 }
 0x1ed   :  { %v2120_v63 = vmul.f32 %v6706_v35, %v6577_v6  ;;  %v2185_v15 = vadd.f32 %v2087_v31, %v1957_v52  ;;  %v977_v7 = vsel %vm976_vm13, %v5160_v28, %v973_v55  ;;  %v6728_v40 = vmul.f32 %v997_v5, %v6565_v62 }
 0x1ee   :  { %v2121_v38 = vmul.f32 %v6706_v35, %v6690_v53  ;;  %v6732_v19 = vadd.f32 %v2088_v21, %v1958_v3  ;;  %v982_v30 = vsel %vm6686_vm11, %v981_v4, %v977_v7  ;;  %v1020_v47 = vand.u32 2147483648, %v6711_v0 }
 0x1ef   :  { %v2249_v24 = vadd.f32 %v6596_v61, %v2021_v37  ;;  %v2250_v36 = vadd.f32 %v2154_v59, %v2022_v48  ;;  %v983_v29 = vmul.f32 %v982_v30, %v958_v49  ;;  %v1018_v43 = vand.u32 2147483647, %v6711_v0 }
 0x1f0   :  { %v6739_v25 = vadd.f32 %v2155_v27, %v2023_v1  ;;  %v2281_v62 = vlaneseq  ;;  %vm2762_vm14 = vcmask 1040384   ;;  %v2763_v2 = vrot.slane %v2185_v15, 7  ;;  %v6782_v27 = vld [vmem:[%s9515_s4] ss:$0 sm:$0xff] }
 0x1f1   :  { %v2764_v41 = vrot.slane %v6732_v19, 7  ;;  %vm3051_vm15 = vcmask 1046528   ;;  %v5012_v28 = vclamps-f32 %v983_v29, 1.0  ;;  %vm1014_vm1 = vweird.f32 %v6711_v0 }
 0x1f2   :  { %v6743_v4 = vshrl.u32 %v2281_v62, 7  ;;  %v3053_v9 = vrot.slane %v2250_v36, 1  ;;  %v3055_v61 = vrot.slane %v6739_v25, 1  ;;  %v5162_v52 = vpop.eup %5161  ;;  %v1021_v49 = vor.u32 1.1754944e-38, %v1020_v47  ;;  %v6793_v47 = vld [vmem:[#allocation2 + $0x28] sm:$0xff] }
 0x1f3   :  { %v2217_v18 = vadd.f32 %v2120_v63, %v1989_v12  ;;  %v2218_v14 = vadd.f32 %v2121_v38, %v1990_v42  ;;  %v3052_v44 = vrot.slane %v2249_v24, 1  ;;  %v1602_v58 = vadd.f32 1.0, %v5012_v28 }
 0x1f4   :  { %v1010_v3 = vmul.f32 %v5162_v52, %v6711_v0  ;;  %vm6747_vm2 = vcmp.eq.f32.partialorder %v1018_v43, 8.507059e+37  ;;  %v2283_v45 = vadd.s32 8, %v6743_v4  ;;  %v2765_v22 = vsel %vm2762_vm14, %v2763_v2, %v2764_v41 }
 0x1f5   :  { %v2318_v57 = vand.u32 7, %v6743_v4  ;;  %v2858_v8 = vsel %vm2762_vm14, 0.0, %v2763_v2  ;;  %v3054_v12 = vsel %vm3051_vm15, %v3052_v44, %v3053_v9  ;;  %v1730_v50 = vmul.f32 %v6592_v32, %v6577_v6 }
 0x1f6   :  { %v1634_v46 = vmul.f32 %v1602_v58, %v6555_v13  ;;  %v1011_v23 = vsub.f32 1.0, %v1010_v3  ;;  %v2325_v16 = vand.u32 7, %v2283_v45  ;;  %v3056_v54 = vsel %vm3051_vm15, %v3053_v9, %v3055_v61  ;;  %v6821_v45 = vld [vmem:[#allocation2 + $0x30] sm:$0xff] }
 0x1f7   :  { %vm1015_vm3 = vweird.f32 %v5162_v52  ;;  %vm2698_vm4 = vcmp.eq.s32.totalorder %v2318_v57, 0  ;;  %vm6764_vm5 = vcmp.eq.s32.totalorder %v2318_v57, 7  ;;  %v1731_v31 = vmul.f32 %v6690_v53, %v6592_v32 }
 0x1f8   :  { %1677 = vst.msk [vmem:[#allocation2 + $0xa8] sm:$0xff] %vm1650_vm7, %v1634_v46  ;;  %v1012_v42 = vmul.f32 %v5162_v52, %v1011_v23  ;;  %vm2699_vm6 = vcmp.eq.s32.totalorder %v2325_v16, 0  ;;  %v2923_v13 = vsel %vm2698_vm4, 0.0, %v2858_v8  ;;  %vm6771_vm8 = vcmp.eq.s32.totalorder %v2325_v16, 7  ;;  %vm1016_vm9 = vmor %vm1014_vm1, %vm1015_vm3 }
 0x1f9   :  { %v2924_v59 = vsel %vm2699_vm6, 0.0, %v2765_v22  ;;  %v2955_v55 = vadd.f32 %v2923_v13, %v2217_v18  ;;  %v3212_v37 = vsel %vm6764_vm5, 0.0, %v3054_v12  ;;  %v3213_v48 = vsel %vm6771_vm8, 0.0, %v3056_v54 }
 0x1fa   :  { %v1013_v1 = vadd.f32 %v5162_v52, %v1012_v42  ;;  %v2956_v63 = vadd.f32 %v2924_v59, %v2218_v14  ;;  %v1763_v15 = vmul.f32 %v6606_v11, %v6577_v6  ;;  %v1861_v7 = vmul.f32 %v6649_v60, %v6690_v53 }
 0x1fb   :  { %v3244_v38 = vadd.f32 %v3212_v37, %v2955_v55  ;;  %v1764_v30 = vmul.f32 %v6690_v53, %v6606_v11  ;;  %v1862_v24 = vmul.f32 %v6703_v51, %v6649_v60  ;;  %v1894_v36 = vmul.f32 %v6656_v34, %v6690_v53 }
 0x1fc   :  { %v1017_v29 = vsel %vm1016_vm9, %v5162_v52, %v1013_v1  ;;  %v3245_v43 = vadd.f32 %v3213_v48, %v2956_v63  ;;  %v1797_v62 = vmul.f32 %v6690_v53, %v6637_v26  ;;  %v1895_v0 = vmul.f32 %v6703_v51, %v6656_v34 }
 0x1fd   :  { %v1022_v2 = vsel %vm6747_vm2, %v1021_v49, %v1017_v29  ;;  %v6806_v28 = vadd.f32 %v6782_v27, %v3244_v38  ;;  %v1798_v9 = vmul.f32 %v6703_v51, %v6637_v26  ;;  %v1928_v18 = vmul.f32 %v6703_v51, %v6676_v20 }
 0x1fe   :  { %v1023_v52 = vmul.f32 %v1022_v2, %v6728_v40  ;;  %v6814_v14 = vadd.f32 %v6782_v27, %v3245_v43  ;;  %v1929_v44 = vmul.f32 %v6676_v20, %v6793_v47  ;;  %v1959_v58 = vadd.f32 %v1861_v7, %v1730_v50 }
 0x1ff   :  { %v6819_v49 = vmul.f32 0.70710677, %v6806_v28  ;;  %v1960_v3 = vadd.f32 %v1862_v24, %v1731_v31  ;;  %v1991_v39 = vadd.f32 %v1894_v36, %v1763_v15  ;;  %v2089_v22 = vmul.f32 %v6698_v17, %v6703_v51 }
 0x200   :  { %v5013_v57 = vclamps-f32 %v1023_v52, 1.0  ;;  %v6826_v40 = vmul.f32 0.70710677, %v6814_v14  ;;  %v1992_v8 = vadd.f32 %v1895_v0, %v1764_v30  ;;  %v2090_v12 = vmul.f32 %v6698_v17, %v6793_v47 }
 0x201   :  { %v3376_v50 = vmul.f32 %v6819_v49, %v6819_v49  ;;  %v2024_v46 = vadd.f32 %v1928_v18, %v1797_v62  ;;  %v2122_v23 = vmul.f32 %v6706_v35, %v6703_v51  ;;  %v2156_v16 = vmul.f32 %v6561_v56, %v6793_v47 }
 0x202   :  { %v1603_v54 = vadd.f32 1.0, %v5013_v57  ;;  %v3416_v5 = vmul.f32 %v6826_v40, %v6826_v40  ;;  %v2157_v31 = vmul.f32 %v6561_v56, %v6821_v45  ;;  %v2187_v42 = vadd.f32 %v2089_v22, %v1959_v58 }
 0x203   :  { %v6840_v13 = vmin.f32 %v3376_v50, 16.0  ;;  %v2025_v21 = vadd.f32 %v1929_v44, %v1798_v9  ;;  %v2123_v59 = vmul.f32 %v6706_v35, %v6793_v47  ;;  %v6844_v55 = vadd.f32 %v2090_v12, %v1960_v3 }
 0x204   :  { %v1635_v37 = vmul.f32 %v1603_v54, %v6570_v10  ;;  %v6847_v48 = vmin.f32 %v3416_v5, 16.0  ;;  %v2219_v1 = vadd.f32 %v2122_v23, %v1991_v39  ;;  %v2252_v63 = vadd.f32 %v2156_v16, %v2024_v46 }
 0x205   :  { %v3378_v15 = vmul.f32 2.1237322e-06, %v6840_v13  ;;  %v3389_v7 = vmul.f32 3.8918573e-05, %v6840_v13  ;;  %v2284_v38 = vadd.s32 16, %v6743_v4  ;;  %v2285_v30 = vadd.s32 24, %v6743_v4 }
 0x206   :  { %1678 = vst.msk [vmem:[#allocation2 + $0xb0] sm:$0xff] %vm1650_vm7, %v1635_v37  ;;  %v3418_v24 = vmul.f32 2.1237322e-06, %v6847_v48  ;;  %v3429_v36 = vmul.f32 3.8918573e-05, %v6847_v48  ;;  %v6856_v29 = vadd.f32 %v2157_v31, %v2025_v21  ;;  %v2766_v10 = vrot.slane %v2187_v42, 7 }
 0x207   :  { %v3379_v43 = vadd.f32 0.00028619796, %v3378_v15  ;;  %v3390_v62 = vadd.f32 0.001143296, %v3389_v7  ;;  %v2332_v0 = vand.u32 7, %v2284_v38  ;;  %v2339_v2 = vand.u32 7, %v2285_v30 }
 0x208   :  { %v3419_v9 = vadd.f32 0.00028619796, %v3418_v24  ;;  %v3430_v18 = vadd.f32 0.001143296, %v3429_v36  ;;  %v2767_v52 = vsel %vm2762_vm14, %v2764_v41, %v2766_v10  ;;  %v9520_v44 = vrot.slane %v6844_v55, 7 }
 0x209   :  { %v3380_v58 = vmul.f32 %v3379_v43, %v6840_v13  ;;  %v3391_v3 = vmul.f32 %v3390_v62, %v6840_v13  ;;  %vm2700_vm10 = vcmp.eq.s32.totalorder %v2332_v0, 0  ;;  %vm6864_vm11 = vcmp.eq.s32.totalorder %v2339_v2, 0 }
 0x20a   :  { %v3420_v22 = vmul.f32 %v3419_v9, %v6847_v48  ;;  %v3431_v57 = vmul.f32 %v3430_v18, %v6847_v48  ;;  %v2769_v19 = vsel %vm2762_vm14, %v2766_v10, %v9520_v44  ;;  %v2925_v41 = vsel %vm2700_vm10, 0.0, %v2767_v52 }
 0x20b   :  { %v3381_v12 = vadd.f32 0.0036580483, %v3380_v58  ;;  %v3392_v50 = vadd.f32 0.014752088, %v3391_v3  ;;  %v2220_v46 = vadd.f32 %v2123_v59, %v1992_v8  ;;  %v2926_v54 = vsel %vm6864_vm11, 0.0, %v2769_v19 }
 0x20c   :  { %v3421_v23 = vadd.f32 0.0036580483, %v3420_v22  ;;  %v3432_v16 = vadd.f32 0.014752088, %v3431_v57  ;;  %v2957_v5 = vadd.f32 %v2925_v41, %v2219_v1  ;;  %vm6877_vm12 = vcmp.eq.s32.totalorder %v2332_v0, 7 }
 0x20d   :  { %v3382_v31 = vmul.f32 %v3381_v12, %v6840_v13  ;;  %v3393_v42 = vmul.f32 %v3392_v50, %v6840_v13  ;;  %v3057_v37 = vrot.slane %v2252_v63, 1  ;;  %vm6883_vm13 = vcmp.eq.s32.totalorder %v2339_v2, 7 }
 0x20e   :  { %v3422_v15 = vmul.f32 %v3421_v23, %v6847_v48  ;;  %v3433_v7 = vmul.f32 %v3432_v16, %v6847_v48  ;;  %v9519_v59 = vrot.slane %v6856_v29, 1  ;;  %v2958_v30 = vadd.f32 %v2926_v54, %v2220_v46 }
 0x20f   :  { %v3383_v1 = vadd.f32 0.05243302, %v3382_v31  ;;  %v3394_v38 = vadd.f32 0.112945676, %v3393_v42  ;;  %v3058_v24 = vsel %vm3051_vm15, %v3055_v61, %v3057_v37  ;;  %v6913_v16 = vmul.f32 0.5, %v6806_v28 }
 0x210   :  { %v3423_v36 = vadd.f32 0.05243302, %v3422_v15  ;;  %v3434_v10 = vadd.f32 0.112945676, %v3433_v7  ;;  %v3060_v63 = vsel %vm3051_vm15, %v3057_v37, %v9519_v59  ;;  %v3214_v43 = vsel %vm6877_vm12, 0.0, %v3058_v24 }
 0x211   :  { %v3384_v62 = vmul.f32 %v3383_v1, %v6840_v13  ;;  %v3395_v0 = vmul.f32 %v3394_v38, %v6840_v13  ;;  %v3215_v2 = vsel %vm6883_vm13, 0.0, %v3060_v63  ;;  %v3246_v9 = vadd.f32 %v3214_v43, %v2957_v5 }
 0x212   :  { %v3424_v25 = vmul.f32 %v3423_v36, %v6847_v48  ;;  %v3435_v61 = vmul.f32 %v3434_v10, %v6847_v48  ;;  %v3247_v18 = vadd.f32 %v3215_v2, %v2958_v30  ;;  %v6920_v31 = vmul.f32 0.5, %v6814_v14 }
 0x213   :  { %v3385_v52 = vadd.f32 0.18741608, %v3384_v62  ;;  %v3396_v58 = vadd.f32 0.4994258, %v3395_v0  ;;  %v3282_v3 = vadd.f32 %v6782_v27, %v3246_v9  ;;  %v6933_v28 = vmul.f32 %v6793_v47, %v6592_v32 }
 0x214   :  { %v3425_v39 = vadd.f32 0.18741608, %v3424_v25  ;;  %v3436_v22 = vadd.f32 0.4994258, %v3435_v61  ;;  %v3283_v57 = vadd.f32 %v6782_v27, %v3247_v18  ;;  %v6937_v14 = vmul.f32 %v6703_v51, %v6606_v11 }
 0x215   :  { %v3386_v19 = vmul.f32 %v3385_v52, %v6840_v13  ;;  %v3397_v41 = vmul.f32 %v3396_v58, %v6840_v13  ;;  %v6906_v12 = vmul.f32 0.70710677, %v3282_v3  ;;  %v6942_v15 = vmul.f32 %v6793_v47, %v6606_v11 }
 0x216   :  { %v3426_v50 = vmul.f32 %v3425_v39, %v6847_v48  ;;  %v3437_v46 = vmul.f32 %v3436_v22, %v6847_v48  ;;  %v6910_v23 = vmul.f32 0.70710677, %v3283_v57  ;;  %v6928_v48 = vmul.f32 %v6703_v51, %v6592_v32 }
 0x217   :  { %v6915_v54 = vadd.f32 1.0, %v3397_v41  ;;  %v3456_v5 = vmul.f32 %v6906_v12, %v6906_v12  ;;  %v3387_v21 = vadd.f32 1.1283791, %v3386_v19  ;;  %v6946_v7 = vmul.f32 %v6793_v47, %v6637_v26 }
 0x218   :  { %v6922_v13 = vadd.f32 1.0, %v3437_v46  ;;  %v3496_v42 = vmul.f32 %v6910_v23, %v6910_v23  ;;  %v3427_v37 = vadd.f32 1.1283791, %v3426_v50  ;;  %v6948_v8 = vmul.f32 0.5, %v3282_v3 }
 0x219   :  { %5163 = vrcp.f32 %v6915_v54  ;;  %v6950_v1 = vmul.f32 0.5, %v3283_v57  ;;  %v6952_v38 = vmin.f32 %v3456_v5, 16.0  ;;  %v6956_v30 = vmul.f32 %v6821_v45, %v6637_v26 }
 0x21a   :  { %5165 = vrcp.f32 %v6922_v13  ;;  %v3408_v24 = vand.u32 2147483647, %v6915_v54  ;;  %v6959_v36 = vmin.f32 %v3496_v42, 16.0  ;;  %v6963_v10 = vmul.f32 %v6649_v60, %v6793_v47 }
 0x21b   :  { %v6967_v63 = vmul.f32 %v6821_v45, %v6649_v60  ;;  %v3388_v43 = vmul.f32 %v3387_v21, %v6819_v49  ;;  %v3410_v62 = vand.u32 2147483648, %v6915_v54  ;;  %v3458_v0 = vmul.f32 2.1237322e-06, %v6952_v38 }
 0x21c   :  { %v3469_v2 = vmul.f32 3.8918573e-05, %v6952_v38  ;;  %vm3404_vm1 = vweird.f32 %v6915_v54  ;;  %v3428_v9 = vmul.f32 %v3427_v37, %v6826_v40  ;;  %v3498_v25 = vmul.f32 2.1237322e-06, %v6959_v36 }
 0x21d   :  { %v3509_v61 = vmul.f32 3.8918573e-05, %v6959_v36  ;;  %vm3444_vm2 = vweird.f32 %v6922_v13  ;;  %v3448_v52 = vand.u32 2147483647, %v6922_v13  ;;  %v3459_v49 = vadd.f32 0.00028619796, %v3458_v0 }
 0x21e   :  { %v3470_v58 = vadd.f32 0.001143296, %v3469_v2  ;;  %vm6980_vm3 = vcmp.eq.f32.partialorder %v3408_v24, 8.507059e+37  ;;  %v3450_v40 = vand.u32 2147483648, %v6922_v13  ;;  %v3499_v57 = vadd.f32 0.00028619796, %v3498_v25 }
 0x21f   :  { %v5164_v18 = vpop.eup %5163  ;;  %v3510_v19 = vadd.f32 0.001143296, %v3509_v61  ;;  %v3411_v41 = vor.u32 1.1754944e-38, %v3410_v62  ;;  %v3460_v46 = vmul.f32 %v3459_v49, %v6952_v38  ;;  %v1896_v24 = vmul.f32 %v6656_v34, %v6793_v47 }
 0x220   :  { %v5166_v3 = vpop.eup %5165  ;;  %v3400_v39 = vmul.f32 %v5164_v18, %v6915_v54  ;;  %v3471_v5 = vmul.f32 %v3470_v58, %v6952_v38  ;;  %v3500_v21 = vmul.f32 %v3499_v57, %v6959_v36  ;;  %v1897_v62 = vmul.f32 %v6821_v45, %v6656_v34 }
 0x221   :  { %v3440_v50 = vmul.f32 %v5166_v3, %v6922_v13  ;;  %v3511_v37 = vmul.f32 %v3510_v19, %v6959_v36  ;;  %v3461_v2 = vadd.f32 0.0036580483, %v3460_v46  ;;  %vm3405_vm4 = vweird.f32 %v5164_v18 }
 0x222   :  { %v3401_v42 = vsub.f32 1.0, %v3400_v39  ;;  %v3472_v59 = vadd.f32 0.014752088, %v3471_v5  ;;  %v3501_v61 = vadd.f32 0.0036580483, %v3500_v21  ;;  %vm3445_vm5 = vweird.f32 %v5166_v3  ;;  %vm3406_vm8 = vmor %vm3404_vm1, %vm3405_vm4 }
 0x223   :  { %v3441_v0 = vsub.f32 1.0, %v3440_v50  ;;  %v3512_v49 = vadd.f32 0.014752088, %v3511_v37  ;;  %v3462_v58 = vmul.f32 %v3461_v2, %v6952_v38  ;;  %vm6996_vm6 = vcmp.eq.f32.partialorder %v3448_v52, 8.507059e+37  ;;  %vm3446_vm9 = vmor %vm3444_vm2, %vm3445_vm5  ;;  %v7006_v2 = vld [vmem:[#allocation2 + $0x38] sm:$0xff] }
 0x224   :  { %v3402_v25 = vmul.f32 %v5164_v18, %v3401_v42  ;;  %v3473_v39 = vmul.f32 %v3472_v59, %v6952_v38  ;;  %v3502_v50 = vmul.f32 %v3501_v61, %v6959_v36  ;;  %v3451_v42 = vor.u32 1.1754944e-38, %v3450_v40 }
 0x225   :  { %v3442_v44 = vmul.f32 %v5166_v3, %v3441_v0  ;;  %v3513_v46 = vmul.f32 %v3512_v49, %v6959_v36  ;;  %v3463_v21 = vadd.f32 0.05243302, %v3462_v58  ;;  %v1931_v22 = vmul.f32 %v6676_v20, %v7006_v2 }
 0x226   :  { %v3403_v57 = vadd.f32 %v5164_v18, %v3402_v25  ;;  %v3474_v37 = vadd.f32 0.112945676, %v3473_v39  ;;  %v3503_v59 = vadd.f32 0.05243302, %v3502_v50  ;;  %v1930_v25 = vmul.f32 %v6821_v45, %v6676_v20 }
 0x227   :  { %v3443_v5 = vadd.f32 %v5166_v3, %v3442_v44  ;;  %v3514_v52 = vadd.f32 0.112945676, %v3513_v46  ;;  %v3464_v44 = vmul.f32 %v3463_v21, %v6952_v38  ;;  %v1962_v21 = vadd.f32 %v6967_v63, %v6933_v28 }
 0x228   :  { %v3407_v0 = vsel %vm3406_vm8, %v5164_v18, %v3403_v57  ;;  %v3475_v40 = vmul.f32 %v3474_v37, %v6952_v38  ;;  %v3504_v18 = vmul.f32 %v3503_v59, %v6959_v36  ;;  %v7028_v59 = vld [vmem:[#allocation2 + $0x40] sm:$0xff] }
 0x229   :  { %v3412_v61 = vsel %vm6980_vm3, %v3411_v41, %v3407_v0  ;;  %v3447_v54 = vsel %vm3446_vm9, %v5166_v3, %v3443_v5  ;;  %v3515_v58 = vmul.f32 %v3514_v52, %v6959_v36  ;;  %v3465_v57 = vadd.f32 0.18741608, %v3464_v44 }
 0x22a   :  { %v3413_v49 = vmul.f32 %v3412_v61, %v3388_v43  ;;  %v3452_v13 = vsel %vm6996_vm6, %v3451_v42, %v3447_v54  ;;  %v3476_v50 = vadd.f32 0.4994258, %v3475_v40  ;;  %v3505_v3 = vadd.f32 0.18741608, %v3504_v18 }
 0x22b   :  { %v3453_v39 = vmul.f32 %v3452_v13, %v3428_v9  ;;  %v3516_v46 = vadd.f32 0.4994258, %v3515_v58  ;;  %v1961_v5 = vadd.f32 %v6963_v10, %v6928_v48  ;;  %v3466_v19 = vmul.f32 %v3465_v57, %v6952_v38 }
 0x22c   :  { %v5028_v41 = vclamps-f32 %v3413_v49, 1.0  ;;  %v3477_v42 = vmul.f32 %v3476_v50, %v6952_v38  ;;  %v1993_v0 = vadd.f32 %v1896_v24, %v6937_v14  ;;  %v2091_v52 = vmul.f32 %v6698_v17, %v6821_v45 }
 0x22d   :  { %v5029_v43 = vclamps-f32 %v3453_v39, 1.0  ;;  %v3517_v37 = vmul.f32 %v3516_v46, %v6959_v36  ;;  %v2092_v10 = vmul.f32 %v6698_v17, %v7006_v2  ;;  %v2124_v38 = vmul.f32 %v6706_v35, %v6821_v45 }
 0x22e   :  { %v4656_v9 = vadd.f32 1.0, %v5028_v41  ;;  %v7032_v48 = vadd.f32 1.0, %v3477_v42  ;;  %v3467_v63 = vadd.f32 1.1283791, %v3466_v19  ;;  %v3506_v54 = vmul.f32 %v3505_v3, %v6959_v36 }
 0x22f   :  { %v4657_v61 = vadd.f32 1.0, %v5029_v43  ;;  %v7040_v14 = vadd.f32 1.0, %v3517_v37  ;;  %v2158_v44 = vmul.f32 %v6561_v56, %v7006_v2  ;;  %v2159_v40 = vmul.f32 %v6561_v56, %v7028_v59 }
 0x230   :  { %v4688_v28 = vmul.f32 %v4656_v9, %v6913_v16  ;;  %5167 = vrcp.f32 %v7032_v48  ;;  %v1994_v49 = vadd.f32 %v1897_v62, %v6942_v15  ;;  %v2026_v13 = vadd.f32 %v1930_v25, %v6946_v7 }
 0x231   :  { %v4689_v24 = vmul.f32 %v4657_v61, %v6920_v31  ;;  %v2027_v16 = vadd.f32 %v1931_v22, %v6956_v30  ;;  %v2189_v18 = vadd.f32 %v2091_v52, %v1961_v5  ;;  %5169 = vrcp.f32 %v7040_v14 }
 0x232   :  { %v4720_v36 = vadd.f32 %v4688_v28, %v6611_v33  ;;  %v7054_v31 = vadd.f32 %v2092_v10, %v1962_v21  ;;  %v3468_v39 = vmul.f32 %v3467_v63, %v6906_v12  ;;  %v3507_v57 = vadd.f32 1.1283791, %v3506_v54 }
 0x233   :  { %v4721_v58 = vadd.f32 %v4689_v24, %v6577_v6  ;;  %v2125_v56 = vmul.f32 %v6706_v35, %v7006_v2  ;;  %v2221_v15 = vadd.f32 %v2124_v38, %v1993_v0  ;;  %v3488_v7 = vand.u32 2147483647, %v7032_v48 }
 0x234   :  { %v2254_v30 = vadd.f32 %v2158_v44, %v2026_v13  ;;  %v7060_v25 = vadd.f32 %v2159_v40, %v2027_v16  ;;  %vm3484_vm10 = vweird.f32 %v7032_v48  ;;  %v3490_v6 = vand.u32 2147483648, %v7032_v48 }
 0x235   :  { %v4752_v62 = vpack.c.bf16 %v4721_v58, %v4720_v36  ;;  %v2286_v33 = vadd.s32 32, %v6743_v4  ;;  %v2287_v50 = vadd.s32 40, %v6743_v4  ;;  %v2770_v12 = vrot.slane %v2189_v18, 7 }
 0x236   :  { %v5168_v22 = vpop.eup %5167  ;;  %v3528_v41 = vand.u32 2147483647, %v7040_v14  ;;  %v2772_v3 = vrot.slane %v7054_v31, 7  ;;  %v3061_v46 = vrot.slane %v2254_v30, 1  ;;  %v3063_v5 = vrot.slane %v7060_v25, 1 }
 0x237   :  { %5068 = vmatmul.msk.bf16.vlgmr.msra.gmra.mxu1 %vm1650_vm7, %v4752_v62  ;;  %v3480_v43 = vmul.f32 %v5168_v22, %v7032_v48  ;;  %v2222_v19 = vadd.f32 %v2125_v56, %v1994_v49  ;;  %v2346_v42 = vand.u32 7, %v2286_v33  ;;  %v2353_v21 = vand.u32 7, %v2287_v50  ;;  %v5170_v9 = vpop.eup %5169 }
 0x238   :  { %vm3485_vm11 = vweird.f32 %v5168_v22  ;;  %v9623_v37 = vrot.slane %v6844_v55, 7  ;;  %v2773_v52 = vsel %vm2762_vm14, %v2770_v12, %v2772_v3  ;;  %v9624_v61 = vrot.slane %v6856_v29, 1 }
 0x239   :  { %v3481_v38 = vsub.f32 1.0, %v3480_v43  ;;  %v3520_v28 = vmul.f32 %v5170_v9, %v7040_v14  ;;  %vm2702_vm12 = vcmp.eq.s32.totalorder %v2346_v42, 0  ;;  %v3064_v63 = vsel %vm3051_vm15, %v3061_v46, %v3063_v5  ;;  %vm3486_vm4 = vmor %vm3484_vm10, %vm3485_vm11 }
 0x23a   :  { %v2771_v0 = vsel %vm2762_vm14, %v9623_v37, %v2770_v12  ;;  %v3062_v10 = vsel %vm3051_vm15, %v9624_v61, %v3061_v46  ;;  %vm2703_vm13 = vcmp.eq.s32.totalorder %v2353_v21, 0  ;;  %vm2991_vm1 = vcmp.eq.s32.totalorder %v2346_v42, 7 }
 0x23b   :  { %v2927_v55 = vsel %vm2702_vm12, 0.0, %v2771_v0  ;;  %vm7084_vm2 = vcmp.eq.s32.totalorder %v2353_v21, 7  ;;  %v3482_v24 = vmul.f32 %v5168_v22, %v3481_v38  ;;  %v3521_v44 = vsub.f32 1.0, %v3520_v28 }
 0x23c   :  { %v2928_v29 = vsel %vm2703_vm13, 0.0, %v2773_v52  ;;  %v2959_v40 = vadd.f32 %v2927_v55, %v2221_v15  ;;  %v3530_v49 = vand.u32 2147483648, %v7040_v14  ;;  %v3216_v16 = vsel %vm2991_vm1, 0.0, %v3062_v10 }
 0x23d   :  { %v2960_v13 = vadd.f32 %v2928_v29, %v2222_v19  ;;  %v3217_v18 = vsel %vm7084_vm2, 0.0, %v3064_v63  ;;  %v3483_v36 = vadd.f32 %v5168_v22, %v3482_v24  ;;  %v3522_v58 = vmul.f32 %v5170_v9, %v3521_v44 }
 0x23e   :  { %vm3525_vm3 = vweird.f32 %v5170_v9  ;;  %v3248_v56 = vadd.f32 %v3216_v16, %v2959_v40  ;;  %v3491_v62 = vor.u32 1.1754944e-38, %v3490_v6  ;;  %v3508_v30 = vmul.f32 %v3507_v57, %v6910_v23  ;;  %v7148_v40 = vld [vmem:[#allocation2 + $0x48] sm:$0xff] }
 0x23f   :  { %vm3524_vm5 = vweird.f32 %v7040_v14  ;;  %v3249_v15 = vadd.f32 %v3217_v18, %v2960_v13  ;;  %v3487_v33 = vsel %vm3486_vm4, %v5168_v22, %v3483_v36  ;;  %vm3489_vm6 = vcmp.eq.f32.partialorder %v3488_v7, 8.507059e+37  ;;  %v7105_v14 = vld [vmem:[#allocation2 + $0x50] sm:$0xff]  ;;  %v7153_v36 = vld [vmem:[#allocation2 + $0x58] sm:$0xff] }
 0x240   :  { %v3523_v50 = vadd.f32 %v5170_v9, %v3522_v58  ;;  %v7097_v12 = vadd.f32 %v6782_v27, %v3248_v56  ;;  %v3492_v46 = vsel %vm3489_vm6, %v3491_v62, %v3487_v33  ;;  %vm3526_vm8 = vmor %vm3524_vm5, %vm3525_vm3  ;;  %vm3529_vm9 = vcmp.eq.f32.partialorder %v3528_v41, 8.507059e+37  ;;  %9627 = vst [vmem:[#allocation9_spill] sm:$0xff] %v7153_v36 }
 0x241   :  { %v3531_v43 = vor.u32 1.1754944e-38, %v3530_v49  ;;  %v7100_v19 = vadd.f32 %v6782_v27, %v3249_v15  ;;  %v3493_v48 = vmul.f32 %v3492_v46, %v3468_v39  ;;  %v1734_v57 = vmul.f32 %v6821_v45, %v6592_v32 }
 0x242   :  { %v3527_v6 = vsel %vm3526_vm8, %v5170_v9, %v3523_v50  ;;  %v7103_v23 = vmul.f32 0.70710677, %v7097_v12  ;;  %v1735_v41 = vmul.f32 %v7006_v2, %v6592_v32  ;;  %v7116_v42 = vmul.f32 %v6821_v45, %v6606_v11 }
 0x243   :  { %v3532_v7 = vsel %vm3529_vm9, %v3531_v43, %v3527_v6  ;;  %v7110_v22 = vmul.f32 0.70710677, %v7100_v19  ;;  %v5030_v39 = vclamps-f32 %v3493_v48, 1.0  ;;  %v7122_v37 = vmul.f32 %v7006_v2, %v6606_v11 }
 0x244   :  { %v3533_v21 = vmul.f32 %v3532_v7, %v3508_v30  ;;  %v3536_v9 = vmul.f32 %v7103_v23, %v7103_v23  ;;  %v1801_v52 = vmul.f32 %v7006_v2, %v6637_v26  ;;  %v1802_v61 = vmul.f32 %v6637_v26, %v7105_v14 }
 0x245   :  { %v3576_v0 = vmul.f32 %v7110_v22, %v7110_v22  ;;  %v1866_v10 = vmul.f32 %v7028_v59, %v6649_v60  ;;  %v4658_v28 = vadd.f32 1.0, %v5030_v39  ;;  %v1865_v55 = vmul.f32 %v6649_v60, %v7006_v2 }
 0x246   :  { %v5031_v38 = vclamps-f32 %v3533_v21, 1.0  ;;  %v7132_v63 = vmin.f32 %v3536_v9, 16.0  ;;  %v7140_v24 = vmul.f32 %v6656_v34, %v7006_v2  ;;  %v7144_v44 = vmul.f32 %v7028_v59, %v6656_v34 }
 0x247   :  { %v7136_v54 = vmin.f32 %v3576_v0, 16.0  ;;  %v1932_v29 = vmul.f32 %v7028_v59, %v6676_v20  ;;  %v4690_v13 = vmul.f32 %v4658_v28, %v6948_v8  ;;  %v1964_v62 = vadd.f32 %v1866_v10, %v1735_v41  ;;  %v7170_v10 = vld [vmem:[#allocation2 + $0x60] sm:$0xff] }
 0x248   :  { %v4659_v49 = vadd.f32 1.0, %v5031_v38  ;;  %v3538_v16 = vmul.f32 2.1237322e-06, %v7132_v63  ;;  %v3549_v18 = vmul.f32 3.8918573e-05, %v7132_v63  ;;  %v2093_v30 = vmul.f32 %v6698_v17, %v7028_v59 }
 0x249   :  { %v3578_v58 = vmul.f32 2.1237322e-06, %v7136_v54  ;;  %v3589_v56 = vmul.f32 3.8918573e-05, %v7136_v54  ;;  %v2094_v8 = vmul.f32 %v6698_v17, %v7148_v40  ;;  %v1933_v48 = vmul.f32 %v6676_v20, %v7153_v36 }
 0x24a   :  { %v4691_v15 = vmul.f32 %v4659_v49, %v6950_v1  ;;  %v3539_v33 = vadd.f32 0.00028619796, %v3538_v16  ;;  %v3550_v50 = vadd.f32 0.001143296, %v3549_v18  ;;  %v1963_v6 = vadd.f32 %v1865_v55, %v1734_v57 }
 0x24b   :  { %v3579_v46 = vadd.f32 0.00028619796, %v3578_v58  ;;  %v3590_v43 = vadd.f32 0.001143296, %v3589_v56  ;;  %v4722_v7 = vadd.f32 %v4690_v13, %v6690_v53  ;;  %v2028_v0 = vadd.f32 %v1932_v29, %v1801_v52  ;;  %v7182_v29 = vld [vmem:[%s9514_s3 + $0x8] ss:$0 sm:$0xff] }
 0x24c   :  { %v4723_v41 = vadd.f32 %v4691_v15, %v6703_v51  ;;  %v3540_v39 = vmul.f32 %v3539_v33, %v7132_v63  ;;  %v3551_v21 = vmul.f32 %v3550_v50, %v7132_v63  ;;  %v2191_v38 = vadd.f32 %v2093_v30, %v1963_v6 }
 0x24d   :  { %v3580_v1 = vmul.f32 %v3579_v46, %v7136_v54  ;;  %v3591_v9 = vmul.f32 %v3590_v43, %v7136_v54  ;;  %v7172_v57 = vadd.f32 %v2094_v8, %v1964_v62  ;;  %v2029_v51 = vadd.f32 %v1933_v48, %v1802_v61 }
 0x24e   :  { %v4753_v28 = vpack.c.bf16 %v4723_v41, %v4722_v7  ;;  %v3541_v49 = vadd.f32 0.0036580483, %v3540_v39  ;;  %v3552_v16 = vadd.f32 0.014752088, %v3551_v21  ;;  %v2126_v13 = vmul.f32 %v6706_v35, %v7028_v59 }
 0x24f   :  { %v3581_v53 = vadd.f32 0.0036580483, %v3580_v1  ;;  %v3592_v55 = vadd.f32 0.014752088, %v3591_v9  ;;  %v2160_v58 = vmul.f32 %v7182_v29, %v7148_v40  ;;  %v2161_v61 = vmul.f32 %v7182_v29, %v7170_v10 }
 0x250   :  { %5069 = vmatmul.msk.bf16.gmra.mxu1 %vm1650_vm7, %v4753_v28  ;;  %v3542_v18 = vmul.f32 %v3541_v49, %v7132_v63  ;;  %v3553_v52 = vmul.f32 %v3552_v16, %v7132_v63  ;;  %v2288_v30 = vadd.s32 48, %v6743_v4  ;;  %v2289_v15 = vadd.s32 56, %v6743_v4 }
 0x251   :  { %v3582_v56 = vmul.f32 %v3581_v53, %v7136_v54  ;;  %v3593_v62 = vmul.f32 %v3592_v55, %v7136_v54  ;;  %v2774_v8 = vrot.slane %v2191_v38, 7  ;;  %v9522_v46 = vrot.slane %v7172_v57, 7 }
 0x252   :  { %v3543_v33 = vadd.f32 0.05243302, %v3542_v18  ;;  %v3554_v50 = vadd.f32 0.112945676, %v3553_v52  ;;  %v2360_v6 = vand.u32 7, %v2288_v30  ;;  %v2367_v7 = vand.u32 7, %v2289_v15 }
 0x253   :  { %v3583_v43 = vadd.f32 0.05243302, %v3582_v56  ;;  %v3594_v48 = vadd.f32 0.112945676, %v3593_v62  ;;  %v2256_v21 = vadd.f32 %v2160_v58, %v2028_v0  ;;  %v7195_v1 = vadd.f32 %v2161_v61, %v2029_v51 }
 0x254   :  { %v3544_v41 = vmul.f32 %v3543_v33, %v7132_v63  ;;  %v3555_v39 = vmul.f32 %v3554_v50, %v7132_v63  ;;  %vm7199_vm10 = vcmp.eq.s32.totalorder %v2360_v6, 0  ;;  %v2775_v38 = vsel %vm2762_vm14, %v2772_v3, %v2774_v8 }
 0x255   :  { %v3584_v9 = vmul.f32 %v3583_v43, %v7136_v54  ;;  %v3595_v28 = vmul.f32 %v3594_v48, %v7136_v54  ;;  %v1995_v55 = vadd.f32 %v7140_v24, %v7116_v42  ;;  %v1996_v0 = vadd.f32 %v7144_v44, %v7122_v37 }
 0x256   :  { %v3545_v16 = vadd.f32 0.18741608, %v3544_v41  ;;  %v3556_v53 = vadd.f32 0.4994258, %v3555_v39  ;;  %vm7210_vm11 = vcmp.eq.s32.totalorder %v2367_v7, 0  ;;  %v2777_v31 = vsel %vm2762_vm14, %v2774_v8, %v9522_v46 }
 0x257   :  { %v3585_v51 = vadd.f32 0.18741608, %v3584_v9  ;;  %v3596_v18 = vadd.f32 0.4994258, %v3595_v28  ;;  %v2127_v58 = vmul.f32 %v6706_v35, %v7148_v40  ;;  %v2223_v61 = vadd.f32 %v2126_v13, %v1995_v55 }
 0x258   :  { %v3557_v3 = vmul.f32 %v3556_v53, %v7132_v63  ;;  %v2929_v42 = vsel %vm7199_vm10, 0.0, %v2775_v38  ;;  %v3546_v37 = vmul.f32 %v3545_v16, %v7132_v63  ;;  %v3065_v44 = vrot.slane %v2256_v21, 1 }
 0x259   :  { %v3597_v24 = vmul.f32 %v3596_v18, %v7136_v54  ;;  %v9521_v56 = vrot.slane %v7195_v1, 1  ;;  %v3586_v30 = vmul.f32 %v3585_v51, %v7136_v54  ;;  %v2930_v15 = vsel %vm7210_vm11, 0.0, %v2777_v31 }
 0x25a   :  { %v7225_v62 = vadd.f32 1.0, %v3557_v3  ;;  %v2961_v40 = vadd.f32 %v2929_v42, %v2223_v61  ;;  %vm2993_vm12 = vcmp.eq.s32.totalorder %v2360_v6, 7  ;;  %v3066_v63 = vsel %vm3051_vm15, %v3063_v5, %v3065_v44 }
 0x25b   :  { %v7230_v33 = vadd.f32 1.0, %v3597_v24  ;;  %v2224_v13 = vadd.f32 %v2127_v58, %v1996_v0  ;;  %vm2994_vm13 = vcmp.eq.s32.totalorder %v2367_v7, 7  ;;  %v3068_v50 = vsel %vm3051_vm15, %v3065_v44, %v9521_v56 }
 0x25c   :  { %5171 = vrcp.f32 %v7225_v62  ;;  %v3547_v54 = vadd.f32 1.1283791, %v3546_v37  ;;  %v7241_v8 = vmul.f32 0.5, %v7097_v12  ;;  %v3587_v43 = vadd.f32 1.1283791, %v3586_v30 }
 0x25d   :  { %5173 = vrcp.f32 %v7230_v33  ;;  %v2962_v48 = vadd.f32 %v2930_v15, %v2224_v13  ;;  %v3218_v6 = vsel %vm2993_vm12, 0.0, %v3066_v63  ;;  %v3568_v25 = vand.u32 2147483647, %v7225_v62 }
 0x25e   :  { %v3570_v5 = vand.u32 2147483648, %v7225_v62  ;;  %v3219_v41 = vsel %vm2994_vm13, 0.0, %v3068_v50  ;;  %v3250_v39 = vadd.f32 %v3218_v6, %v2961_v40  ;;  %v7246_v7 = vmul.f32 0.5, %v7100_v19 }
 0x25f   :  { %v3608_v21 = vand.u32 2147483647, %v7230_v33  ;;  %v3610_v9 = vand.u32 2147483648, %v7230_v33  ;;  %v3251_v28 = vadd.f32 %v3219_v41, %v2962_v48  ;;  %v3548_v12 = vmul.f32 %v3547_v54, %v7103_v23 }
 0x260   :  { %v7252_v49 = vadd.f32 %v6782_v27, %v3250_v39  ;;  %v1736_v38 = vmul.f32 %v6592_v32, %v7105_v14  ;;  %v1737_v16 = vmul.f32 %v7153_v36, %v6592_v32  ;;  %vm3564_vm1 = vweird.f32 %v7225_v62 }
 0x261   :  { %v3588_v19 = vmul.f32 %v3587_v43, %v7110_v22  ;;  %vm3604_vm2 = vweird.f32 %v7230_v33  ;;  %v7262_v55 = vadd.f32 %v6782_v27, %v3251_v28  ;;  %vm7265_vm3 = vcmp.eq.f32.partialorder %v3568_v25, 8.507059e+37  ;;  %v7306_v43 = vld [vmem:[#allocation2 + $0x68] sm:$0xff] }
 0x262   :  { %v5172_v53 = vpop.eup %5171  ;;  %v3571_v18 = vor.u32 1.1754944e-38, %v3570_v5  ;;  %v7270_v52 = vmul.f32 0.70710677, %v7252_v49  ;;  %v7274_v31 = vmul.f32 %v6606_v11, %v7105_v14  ;;  %vm7277_vm4 = vcmp.eq.f32.partialorder %v3608_v21, 8.507059e+37 }
 0x263   :  { %v5174_v23 = vpop.eup %5173  ;;  %v3560_v0 = vmul.f32 %v5172_v53, %v7225_v62  ;;  %v3611_v3 = vor.u32 1.1754944e-38, %v3610_v9  ;;  %v7282_v58 = vmul.f32 0.70710677, %v7262_v55  ;;  %v7288_v37 = vmul.f32 %v7153_v36, %v6606_v11 }
 0x264   :  { %v3600_v22 = vmul.f32 %v5174_v23, %v7230_v33  ;;  %v3616_v42 = vmul.f32 %v7270_v52, %v7270_v52  ;;  %v1803_v14 = vmul.f32 %v7153_v36, %v6637_v26  ;;  %v7296_v30 = vmul.f32 %v7170_v10, %v6637_v26 }
 0x265   :  { %v3561_v61 = vsub.f32 1.0, %v3560_v0  ;;  %v3656_v44 = vmul.f32 %v7282_v58, %v7282_v58  ;;  %v1867_v15 = vmul.f32 %v6649_v60, %v7153_v36  ;;  %vm3565_vm5 = vweird.f32 %v5172_v53 }
 0x266   :  { %v3601_v24 = vsub.f32 1.0, %v3600_v22  ;;  %v7300_v63 = vmin.f32 %v3616_v42, 16.0  ;;  %v1868_v13 = vmul.f32 %v7170_v10, %v6649_v60  ;;  %vm3605_vm6 = vweird.f32 %v5174_v23  ;;  %vm3566_vm8 = vmor %vm3564_vm1, %vm3565_vm5 }
 0x267   :  { %v3562_v40 = vmul.f32 %v5172_v53, %v3561_v61  ;;  %v7304_v54 = vmin.f32 %v3656_v44, 16.0  ;;  %v1900_v48 = vmul.f32 %v6656_v34, %v7153_v36  ;;  %v7314_v41 = vmul.f32 %v7170_v10, %v6656_v34  ;;  %vm3606_vm9 = vmor %vm3604_vm2, %vm3605_vm6 }
 0x268   :  { %v3602_v50 = vmul.f32 %v5174_v23, %v3601_v24  ;;  %v3618_v25 = vmul.f32 2.1237322e-06, %v7300_v63  ;;  %v3629_v5 = vmul.f32 3.8918573e-05, %v7300_v63  ;;  %v1934_v28 = vmul.f32 %v7170_v10, %v6676_v20 }
 0x269   :  { %v3563_v6 = vadd.f32 %v5172_v53, %v3562_v40  ;;  %v3658_v21 = vmul.f32 2.1237322e-06, %v7304_v54  ;;  %v3669_v9 = vmul.f32 3.8918573e-05, %v7304_v54  ;;  %v7326_v42 = vmul.f32 %v6676_v20, %v7306_v43 }
 0x26a   :  { %v3603_v39 = vadd.f32 %v5174_v23, %v3602_v50  ;;  %v3619_v22 = vadd.f32 0.00028619796, %v3618_v25  ;;  %v3630_v61 = vadd.f32 0.001143296, %v3629_v5  ;;  %v1965_v46 = vadd.f32 %v1867_v15, %v1736_v38 }
 0x26b   :  { %v3567_v0 = vsel %vm3566_vm8, %v5172_v53, %v3563_v6  ;;  %v3659_v44 = vadd.f32 0.00028619796, %v3658_v21  ;;  %v3670_v40 = vadd.f32 0.001143296, %v3669_v9  ;;  %v2095_v27 = vmul.f32 %v6698_v17, %v7170_v10 }
 0x26c   :  { %v3572_v62 = vsel %vm7265_vm3, %v3571_v18, %v3567_v0  ;;  %v3607_v24 = vsel %vm3606_vm9, %v5174_v23, %v3603_v39  ;;  %v3620_v53 = vmul.f32 %v3619_v22, %v7300_v63  ;;  %v3631_v33 = vmul.f32 %v3630_v61, %v7300_v63 }
 0x26d   :  { %v3573_v50 = vmul.f32 %v3572_v62, %v3548_v12  ;;  %v3612_v56 = vsel %vm7277_vm4, %v3611_v3, %v3607_v24  ;;  %v3660_v25 = vmul.f32 %v3659_v44, %v7304_v54  ;;  %v3671_v5 = vmul.f32 %v3670_v40, %v7304_v54 }
 0x26e   :  { %v3613_v6 = vmul.f32 %v3612_v56, %v3588_v19  ;;  %v3621_v51 = vadd.f32 0.0036580483, %v3620_v53  ;;  %v3632_v18 = vadd.f32 0.014752088, %v3631_v33  ;;  %v1966_v23 = vadd.f32 %v1868_v13, %v1737_v16  ;;  %v7351_v33 = vld [vmem:[#allocation2 + $0x70] sm:$0xff] }
 0x26f   :  { %v5032_v36 = vclamps-f32 %v3573_v50, 1.0  ;;  %v3661_v21 = vadd.f32 0.0036580483, %v3660_v25  ;;  %v3672_v12 = vadd.f32 0.014752088, %v3671_v5  ;;  %v2096_v19 = vmul.f32 %v6698_v17, %v7306_v43 }
 0x270   :  { %v5033_v39 = vclamps-f32 %v3613_v6, 1.0  ;;  %v3622_v9 = vmul.f32 %v3621_v51, %v7300_v63  ;;  %v3633_v56 = vmul.f32 %v3632_v18, %v7300_v63  ;;  %v1997_v16 = vadd.f32 %v1900_v48, %v7274_v31 }
 0x271   :  { %v4660_v3 = vadd.f32 1.0, %v5032_v36  ;;  %v3662_v38 = vmul.f32 %v3661_v21, %v7304_v54  ;;  %v3673_v15 = vmul.f32 %v3672_v12, %v7304_v54  ;;  %v2030_v62 = vadd.f32 %v1934_v28, %v1803_v14 }
 0x272   :  { %v4661_v0 = vadd.f32 1.0, %v5033_v39  ;;  %v3623_v22 = vadd.f32 0.05243302, %v3622_v9  ;;  %v3634_v61 = vadd.f32 0.112945676, %v3633_v56  ;;  %v2162_v40 = vmul.f32 %v7182_v29, %v7306_v43 }
 0x273   :  { %v4692_v13 = vmul.f32 %v4660_v3, %v7241_v8  ;;  %v3663_v24 = vadd.f32 0.05243302, %v3662_v38  ;;  %v3674_v44 = vadd.f32 0.112945676, %v3673_v15  ;;  %v2193_v6 = vadd.f32 %v2095_v27, %v1965_v46 }
 0x274   :  { %v4693_v36 = vmul.f32 %v4661_v0, %v7246_v7  ;;  %v3624_v50 = vmul.f32 %v3623_v22, %v7300_v63  ;;  %v3635_v53 = vmul.f32 %v3634_v61, %v7300_v63  ;;  %v7353_v31 = vadd.f32 %v2096_v19, %v1966_v23 }
 0x275   :  { %v4724_v8 = vadd.f32 %v4692_v13, %v6793_v47  ;;  %v3664_v7 = vmul.f32 %v3663_v24, %v7304_v54  ;;  %v3675_v48 = vmul.f32 %v3674_v44, %v7304_v54  ;;  %v2290_v5 = vadd.s32 64, %v6743_v4 }
 0x276   :  { %v4725_v14 = vadd.f32 %v4693_v36, %v6821_v45  ;;  %v3625_v28 = vadd.f32 0.18741608, %v3624_v50  ;;  %v3636_v25 = vadd.f32 0.4994258, %v3635_v53  ;;  %v2291_v51 = vadd.s32 72, %v6743_v4 }
 0x277   :  { %v3665_v39 = vadd.f32 0.18741608, %v3664_v7  ;;  %v3676_v21 = vadd.f32 0.4994258, %v3675_v48  ;;  %v2163_v46 = vmul.f32 %v7182_v29, %v7351_v33  ;;  %v2374_v23 = vand.u32 7, %v2290_v5 }
 0x278   :  { %v4754_v18 = vpack.c.bf16 %v4725_v14, %v4724_v8  ;;  %v3626_v47 = vmul.f32 %v3625_v28, %v7300_v63  ;;  %v3637_v45 = vmul.f32 %v3636_v25, %v7300_v63  ;;  %v2778_v12 = vrot.slane %v2193_v6, 7 }
 0x279   :  { %v3666_v27 = vmul.f32 %v3665_v39, %v7304_v54  ;;  %v3677_v3 = vmul.f32 %v3676_v21, %v7304_v54  ;;  %v2381_v9 = vand.u32 7, %v2291_v51  ;;  %v2780_v56 = vrot.slane %v7353_v31, 7 }
 0x27a   :  { %5070 = vmatmul.msk.bf16.gmra.mxu1 %vm1650_vm7, %v4754_v18  ;;  %v7369_v19 = vadd.f32 1.0, %v3637_v45  ;;  %v1998_v0 = vadd.f32 %v7314_v41, %v7288_v37  ;;  %v2031_v38 = vadd.f32 %v7326_v42, %v7296_v30  ;;  %v2128_v63 = vmul.f32 %v6706_v35, %v7170_v10 }
 0x27b   :  { %v3627_v15 = vadd.f32 1.1283791, %v3626_v47  ;;  %v7377_v13 = vadd.f32 1.0, %v3677_v3  ;;  %v2129_v54 = vmul.f32 %v6706_v35, %v7306_v43  ;;  %v2258_v22 = vadd.f32 %v2162_v40, %v2030_v62 }
 0x27c   :  { %5175 = vrcp.f32 %v7369_v19  ;;  %v7382_v61 = vadd.f32 %v2163_v46, %v2031_v38  ;;  %vm7384_vm10 = vcmp.eq.s32.totalorder %v2374_v23, 0  ;;  %v9638_v37 = vrot.slane %v7172_v57, 7 }
 0x27d   :  { %v3667_v41 = vadd.f32 1.1283791, %v3666_v27  ;;  %5177 = vrcp.f32 %v7377_v13  ;;  %vm7392_vm11 = vcmp.eq.s32.totalorder %v2381_v9, 0  ;;  %v2781_v62 = vsel %vm2762_vm14, %v2778_v12, %v2780_v56 }
 0x27e   :  { %v2779_v30 = vsel %vm2762_vm14, %v9638_v37, %v2778_v12  ;;  %v7400_v24 = vmul.f32 0.5, %v7252_v49  ;;  %v7403_v44 = vmul.f32 0.5, %v7262_v55  ;;  %v2225_v57 = vadd.f32 %v2128_v63, %v1997_v16 }
 0x27f   :  { %v7406_v40 = vmul.f32 %v3627_v15, %v7270_v52  ;;  %v3648_v50 = vand.u32 2147483647, %v7369_v19  ;;  %v2226_v53 = vadd.f32 %v2129_v54, %v1998_v0  ;;  %v2931_v6 = vsel %vm7384_vm10, 0.0, %v2779_v30  ;;  %v7451_v15 = vld [vmem:[%s9515_s4] ss:$0 sm:$0xff] }
 0x280   :  { %v3650_v8 = vand.u32 2147483648, %v7369_v19  ;;  %v2932_v14 = vsel %vm7392_vm11, 0.0, %v2781_v62  ;;  %vm7414_vm12 = vcmp.eq.s32.totalorder %v2374_v23, 7  ;;  %v3069_v55 = vrot.slane %v2258_v22, 1 }
 0x281   :  { %vm3644_vm13 = vweird.f32 %v7369_v19  ;;  %v3668_v52 = vmul.f32 %v3667_v41, %v7282_v58  ;;  %v3688_v16 = vand.u32 2147483647, %v7377_v13  ;;  %vm7421_vm1 = vcmp.eq.s32.totalorder %v2381_v9, 7 }
 0x282   :  { %v3071_v48 = vrot.slane %v7382_v61, 1  ;;  %v5176_v28 = vpop.eup %5175  ;;  %vm3684_vm2 = vweird.f32 %v7377_v13  ;;  %v3690_v25 = vand.u32 2147483648, %v7377_v13  ;;  %v2963_v5 = vadd.f32 %v2931_v6, %v2225_v57 }
 0x283   :  { %v9645_v51 = vrot.slane %v7195_v1, 1  ;;  %v5178_v39 = vpop.eup %5177  ;;  %v3640_v58 = vmul.f32 %v5176_v28, %v7369_v19  ;;  %v2964_v21 = vadd.f32 %v2932_v14, %v2226_v53  ;;  %vm7437_vm3 = vcmp.eq.f32.partialorder %v3648_v50, 8.507059e+37  ;;  %v7493_v19 = vld [vmem:[#allocation2 + $0x78] sm:$0xff] }
 0x284   :  { %v3072_v46 = vsel %vm3051_vm15, %v3069_v55, %v3071_v48  ;;  %v3680_v23 = vmul.f32 %v5178_v39, %v7377_v13  ;;  %v3651_v3 = vor.u32 1.1754944e-38, %v3650_v8  ;;  %vm7444_vm4 = vcmp.eq.f32.partialorder %v3688_v16, 8.507059e+37 }
 0x285   :  { %v3070_v18 = vsel %vm3051_vm15, %v9645_v51, %v3069_v55  ;;  %v3221_v1 = vsel %vm7421_vm1, 0.0, %v3072_v46  ;;  %v3641_v27 = vsub.f32 1.0, %v3640_v58  ;;  %v3691_v63 = vor.u32 1.1754944e-38, %v3690_v25 }
 0x286   :  { %v3220_v47 = vsel %vm7414_vm12, 0.0, %v3070_v18  ;;  %v3253_v0 = vadd.f32 %v3221_v1, %v2964_v21  ;;  %v3681_v38 = vsub.f32 1.0, %v3680_v23  ;;  %v1738_v22 = vmul.f32 %v7170_v10, %v6592_v32 }
 0x287   :  { %v3252_v12 = vadd.f32 %v3220_v47, %v2963_v5  ;;  %v3642_v36 = vmul.f32 %v5176_v28, %v3641_v27  ;;  %vm3645_vm5 = vweird.f32 %v5176_v28  ;;  %v1739_v30 = vmul.f32 %v7306_v43, %v6592_v32 }
 0x288   :  { %v7459_v37 = vadd.f32 %v7451_v15, %v3253_v0  ;;  %v3682_v41 = vmul.f32 %v5178_v39, %v3681_v38  ;;  %vm3685_vm6 = vweird.f32 %v5178_v39  ;;  %v7468_v62 = vmul.f32 %v7170_v10, %v6606_v11  ;;  %vm3646_vm8 = vmor %vm3644_vm13, %vm3645_vm5 }
 0x289   :  { %v7454_v54 = vadd.f32 %v7451_v15, %v3252_v12  ;;  %v3643_v57 = vadd.f32 %v5176_v28, %v3642_v36  ;;  %v7475_v53 = vmul.f32 %v7306_v43, %v6606_v11  ;;  %v1805_v6 = vmul.f32 %v7306_v43, %v6637_v26  ;;  %vm3686_vm9 = vmor %vm3684_vm2, %vm3685_vm6 }
 0x28a   :  { %v7471_v50 = vmul.f32 0.70710677, %v7459_v37  ;;  %v3683_v8 = vadd.f32 %v5178_v39, %v3682_v41  ;;  %v7485_v49 = vmul.f32 %v7351_v33, %v6637_v26  ;;  %v1869_v55 = vmul.f32 %v6649_v60, %v7306_v43 }
 0x28b   :  { %v7464_v42 = vmul.f32 0.70710677, %v7454_v54  ;;  %v3647_v16 = vsel %vm3646_vm8, %v5176_v28, %v3643_v57  ;;  %v1870_v25 = vmul.f32 %v7351_v33, %v6649_v60  ;;  %v7499_v5 = vmul.f32 %v6656_v34, %v7306_v43 }
 0x28c   :  { %v3736_v7 = vmul.f32 %v7471_v50, %v7471_v50  ;;  %v3652_v51 = vsel %vm7437_vm3, %v3651_v3, %v3647_v16  ;;  %v3687_v18 = vsel %vm3686_vm9, %v5178_v39, %v3683_v8  ;;  %v7507_v13 = vmul.f32 %v7351_v33, %v6656_v34 }
 0x28d   :  { %v3696_v14 = vmul.f32 %v7464_v42, %v7464_v42  ;;  %v3653_v58 = vmul.f32 %v3652_v51, %v7406_v40  ;;  %v3692_v21 = vsel %vm7444_vm4, %v3691_v63, %v3687_v18  ;;  %v1936_v47 = vmul.f32 %v7351_v33, %v6676_v20 }
 0x28e   :  { %v7512_v46 = vmin.f32 %v3736_v7, 16.0  ;;  %v3693_v23 = vmul.f32 %v3692_v21, %v3668_v52  ;;  %v1937_v1 = vmul.f32 %v6676_v20, %v7493_v19  ;;  %v1967_v3 = vadd.f32 %v1869_v55, %v1738_v22 }
 0x28f   :  { %v7503_v28 = vmin.f32 %v3696_v14, 16.0  ;;  %v5034_v12 = vclamps-f32 %v3653_v58, 1.0  ;;  %v2097_v63 = vmul.f32 %v6698_v17, %v7351_v33  ;;  %v2098_v57 = vmul.f32 %v6698_v17, %v7493_v19 }
 0x290   :  { %v3738_v27 = vmul.f32 2.1237322e-06, %v7512_v46  ;;  %v3749_v40 = vmul.f32 3.8918573e-05, %v7512_v46  ;;  %v5035_v9 = vclamps-f32 %v3693_v23, 1.0  ;;  %v1968_v7 = vadd.f32 %v1870_v25, %v1739_v30 }
 0x291   :  { %v3698_v45 = vmul.f32 2.1237322e-06, %v7503_v28  ;;  %v3709_v39 = vmul.f32 3.8918573e-05, %v7503_v28  ;;  %v4662_v52 = vadd.f32 1.0, %v5034_v12  ;;  %v2032_v18 = vadd.f32 %v1936_v47, %v1805_v6 }
 0x292   :  { %v3739_v36 = vadd.f32 0.00028619796, %v3738_v27  ;;  %v3750_v41 = vadd.f32 0.001143296, %v3749_v40  ;;  %v4663_v8 = vadd.f32 1.0, %v5035_v9  ;;  %v2195_v40 = vadd.f32 %v2097_v63, %v1967_v3 }
 0x293   :  { %v3699_v0 = vadd.f32 0.00028619796, %v3698_v45  ;;  %v3710_v38 = vadd.f32 0.001143296, %v3709_v39  ;;  %v4694_v22 = vmul.f32 %v4662_v52, %v7400_v24  ;;  %v7532_v45 = vld [vmem:[#allocation2 + $0x80] sm:$0xff]  ;;  %v2164_v39 = vmul.f32 %v7182_v29, %v7493_v19 }
 0x294   :  { %v3740_v55 = vmul.f32 %v3739_v36, %v7512_v46  ;;  %v3751_v51 = vmul.f32 %v3750_v41, %v7512_v46  ;;  %v4695_v58 = vmul.f32 %v4663_v8, %v7403_v44  ;;  %v7536_v30 = vadd.f32 %v2098_v57, %v1968_v7 }
 0x295   :  { %v3700_v14 = vmul.f32 %v3699_v0, %v7503_v28  ;;  %v3711_v16 = vmul.f32 %v3710_v38, %v7503_v28  ;;  %v4726_v24 = vadd.f32 %v4694_v22, %v7006_v2  ;;  %v2165_v0 = vmul.f32 %v7182_v29, %v7532_v45 }
 0x296   :  { %v3741_v12 = vadd.f32 0.0036580483, %v3740_v55  ;;  %v3752_v27 = vadd.f32 0.014752088, %v3751_v51  ;;  %v4727_v25 = vadd.f32 %v4695_v58, %v7028_v59  ;;  %v2292_v38 = vadd.s32 80, %v6743_v4 }
 0x297   :  { %v3701_v21 = vadd.f32 0.0036580483, %v3700_v14  ;;  %v3712_v23 = vadd.f32 0.014752088, %v3711_v16  ;;  %v2293_v2 = vadd.s32 88, %v6743_v4  ;;  %v2782_v57 = vrot.slane %v2195_v40, 7 }
 0x298   :  { %v3742_v47 = vmul.f32 %v3741_v12, %v7512_v46  ;;  %v3753_v9 = vmul.f32 %v3752_v27, %v7512_v46  ;;  %v4755_v3 = vpack.c.bf16 %v4727_v25, %v4726_v24  ;;  %v2388_v41 = vand.u32 7, %v2292_v38 }
 0x299   :  { %v3702_v6 = vmul.f32 %v3701_v21, %v7503_v28  ;;  %v3713_v44 = vmul.f32 %v3712_v23, %v7503_v28  ;;  %v2395_v16 = vand.u32 7, %v2293_v2  ;;  %v9525_v7 = vrot.slane %v7536_v30, 7 }
 0x29a   :  { %v3743_v36 = vadd.f32 0.05243302, %v3742_v47  ;;  %v3754_v59 = vadd.f32 0.112945676, %v3753_v9  ;;  %5071 = vmatmul.msk.bf16.gmra.mxu1 %vm1650_vm7, %v4755_v3  ;;  %v2033_v51 = vadd.f32 %v1937_v1, %v7485_v49  ;;  %v2130_v58 = vmul.f32 %v6706_v35, %v7351_v33 }
 0x29b   :  { %v3703_v63 = vadd.f32 0.05243302, %v3702_v6  ;;  %v3714_v52 = vadd.f32 0.112945676, %v3713_v44  ;;  %v2131_v12 = vmul.f32 %v6706_v35, %v7493_v19  ;;  %v2260_v27 = vadd.f32 %v2164_v39, %v2032_v18 }
 0x29c   :  { %v3744_v22 = vmul.f32 %v3743_v36, %v7512_v46  ;;  %v3755_v55 = vmul.f32 %v3754_v59, %v7512_v46  ;;  %v7559_v25 = vadd.f32 %v2165_v0, %v2033_v51  ;;  %vm7561_vm10 = vcmp.eq.s32.totalorder %v2388_v41, 0 }
 0x29d   :  { %v3704_v8 = vmul.f32 %v3703_v63, %v7503_v28  ;;  %v3715_v14 = vmul.f32 %v3714_v52, %v7503_v28  ;;  %vm7566_vm11 = vcmp.eq.s32.totalorder %v2395_v16, 0  ;;  %v2783_v1 = vsel %vm2762_vm14, %v2780_v56, %v2782_v57 }
 0x29e   :  { %v3745_v40 = vadd.f32 0.18741608, %v3744_v22  ;;  %v3756_v24 = vadd.f32 0.4994258, %v3755_v55  ;;  %v2785_v18 = vsel %vm2762_vm14, %v2782_v57, %v9525_v7  ;;  %v7577_v39 = vmul.f32 0.5, %v7454_v54 }
 0x29f   :  { %v3705_v21 = vadd.f32 0.18741608, %v3704_v8  ;;  %v3716_v23 = vadd.f32 0.4994258, %v3715_v14  ;;  %v1999_v0 = vadd.f32 %v7499_v5, %v7468_v62  ;;  %v2000_v56 = vadd.f32 %v7507_v13, %v7475_v53 }
 0x2a0   :  { %v3757_v9 = vmul.f32 %v3756_v24, %v7512_v46  ;;  %v3746_v31 = vmul.f32 %v3745_v40, %v7512_v46  ;;  %v3073_v3 = vrot.slane %v2260_v27, 1  ;;  %v2933_v54 = vsel %vm7561_vm10, 0.0, %v2783_v1 }
 0x2a1   :  { %v3717_v44 = vmul.f32 %v3716_v23, %v7503_v28  ;;  %v3706_v47 = vmul.f32 %v3705_v21, %v7503_v28  ;;  %v2934_v28 = vsel %vm7566_vm11, 0.0, %v2785_v18  ;;  %v9524_v52 = vrot.slane %v7559_v25, 1 }
 0x2a2   :  { %v7588_v63 = vadd.f32 1.0, %v3757_v9  ;;  %v2227_v62 = vadd.f32 %v2130_v58, %v1999_v0  ;;  %v2228_v5 = vadd.f32 %v2131_v12, %v2000_v56  ;;  %vm7596_vm12 = vcmp.eq.s32.totalorder %v2388_v41, 7 }
 0x2a3   :  { %v7583_v38 = vadd.f32 1.0, %v3717_v44  ;;  %v7601_v53 = vmul.f32 0.5, %v7459_v37  ;;  %v3707_v13 = vadd.f32 1.1283791, %v3706_v47  ;;  %vm2998_vm13 = vcmp.eq.s32.totalorder %v2395_v16, 7 }
 0x2a4   :  { %v3747_v2 = vadd.f32 1.1283791, %v3746_v31  ;;  %v2965_v36 = vadd.f32 %v2933_v54, %v2227_v62  ;;  %v2966_v59 = vadd.f32 %v2934_v28, %v2228_v5  ;;  %v3074_v57 = vsel %vm3051_vm15, %v3071_v48, %v3073_v3 }
 0x2a5   :  { %5179 = vrcp.f32 %v7583_v38  ;;  %v3728_v8 = vand.u32 2147483647, %v7583_v38  ;;  %v3730_v41 = vand.u32 2147483648, %v7583_v38  ;;  %v3076_v37 = vsel %vm3051_vm15, %v3073_v3, %v9524_v52 }
 0x2a6   :  { %5181 = vrcp.f32 %v7588_v63  ;;  %v3222_v14 = vsel %vm7596_vm12, 0.0, %v3074_v57  ;;  %v3768_v16 = vand.u32 2147483647, %v7588_v63  ;;  %v3770_v22 = vand.u32 2147483648, %v7588_v63 }
 0x2a7   :  { %v3223_v55 = vsel %vm2998_vm13, 0.0, %v3076_v37  ;;  %v3254_v51 = vadd.f32 %v3222_v14, %v2965_v36  ;;  %v3708_v61 = vmul.f32 %v3707_v13, %v7464_v42  ;;  %v7619_v58 = vmul.f32 %v7351_v33, %v6592_v32 }
 0x2a8   :  { %v3255_v48 = vadd.f32 %v3223_v55, %v2966_v59  ;;  %v7623_v21 = vmul.f32 %v7493_v19, %v6592_v32  ;;  %vm3724_vm1 = vweird.f32 %v7583_v38  ;;  %v3748_v12 = vmul.f32 %v3747_v2, %v7471_v50 }
 0x2a9   :  { %vm3764_vm2 = vweird.f32 %v7588_v63  ;;  %v3290_v27 = vadd.f32 %v7451_v15, %v3254_v51  ;;  %vm7630_vm3 = vcmp.eq.f32.partialorder %v3728_v8, 8.507059e+37  ;;  %v3731_v6 = vor.u32 1.1754944e-38, %v3730_v41 }
 0x2aa   :  { %v3291_v44 = vadd.f32 %v7451_v15, %v3255_v48  ;;  %v7637_v49 = vmul.f32 %v7351_v33, %v6606_v11  ;;  %vm7640_vm4 = vcmp.eq.f32.partialorder %v3768_v16, 8.507059e+37  ;;  %v3771_v18 = vor.u32 1.1754944e-38, %v3770_v22 }
 0x2ab   :  { %v5180_v23 = vpop.eup %5179  ;;  %v7644_v47 = vmul.f32 0.70710677, %v3290_v27  ;;  %v7650_v31 = vmul.f32 %v7493_v19, %v6606_v11  ;;  %v1807_v56 = vmul.f32 %v7493_v19, %v6637_v26  ;;  %v7658_v28 = vmul.f32 %v7532_v45, %v6637_v26 }
 0x2ac   :  { %v5182_v40 = vpop.eup %5181  ;;  %v3720_v42 = vmul.f32 %v5180_v23, %v7583_v38  ;;  %v7646_v0 = vmul.f32 0.70710677, %v3291_v44  ;;  %v1871_v62 = vmul.f32 %v6649_v60, %v7493_v19  ;;  %vm3725_vm5 = vweird.f32 %v5180_v23 }
 0x2ad   :  { %v3760_v50 = vmul.f32 %v5182_v40, %v7588_v63  ;;  %v3776_v54 = vmul.f32 %v7644_v47, %v7644_v47  ;;  %v1872_v13 = vmul.f32 %v7532_v45, %v6649_v60  ;;  %vm3765_vm6 = vweird.f32 %v5182_v40  ;;  %vm3726_vm8 = vmor %vm3724_vm1, %vm3725_vm5 }
 0x2ae   :  { %v3721_v9 = vsub.f32 1.0, %v3720_v42  ;;  %v3816_v46 = vmul.f32 %v7646_v0, %v7646_v0  ;;  %v7670_v59 = vmul.f32 %v6656_v34, %v7493_v19  ;;  %v7672_v8 = vmul.f32 0.5, %v3290_v27  ;;  %vm3766_vm9 = vmor %vm3764_vm2, %vm3765_vm6  ;;  %v7690_v42 = vld [vmem:[#allocation2 + $0x88] sm:$0xff] }
 0x2af   :  { %v3761_v3 = vsub.f32 1.0, %v3760_v50  ;;  %v7666_v36 = vmin.f32 %v3776_v54, 16.0  ;;  %v7678_v37 = vmul.f32 %v7532_v45, %v6656_v34  ;;  %v7682_v16 = vmul.f32 0.5, %v3291_v44 }
 0x2b0   :  { %v3722_v5 = vmul.f32 %v5180_v23, %v3721_v9  ;;  %v7674_v41 = vmin.f32 %v3816_v46, 16.0  ;;  %v1938_v38 = vmul.f32 %v7532_v45, %v6676_v20  ;;  %v1939_v52 = vmul.f32 %v6676_v20, %v7690_v42 }
 0x2b1   :  { %v3762_v2 = vmul.f32 %v5182_v40, %v3761_v3  ;;  %v3778_v22 = vmul.f32 2.1237322e-06, %v7666_v36  ;;  %v3789_v55 = vmul.f32 3.8918573e-05, %v7666_v36 }
 0x2b2   :  { %v3723_v57 = vadd.f32 %v5180_v23, %v3722_v5  ;;  %v3818_v48 = vmul.f32 2.1237322e-06, %v7674_v41  ;;  %v3829_v27 = vmul.f32 3.8918573e-05, %v7674_v41 }
 0x2b3   :  { %v3763_v14 = vadd.f32 %v5182_v40, %v3762_v2  ;;  %v3779_v9 = vadd.f32 0.00028619796, %v3778_v22  ;;  %v3790_v3 = vadd.f32 0.001143296, %v3789_v55 }
 0x2b4   :  { %v3727_v51 = vsel %vm3726_vm8, %v5180_v23, %v3723_v57  ;;  %v3819_v23 = vadd.f32 0.00028619796, %v3818_v48  ;;  %v3830_v5 = vadd.f32 0.001143296, %v3829_v27 }
 0x2b5   :  { %v3732_v44 = vsel %vm7630_vm3, %v3731_v6, %v3727_v51  ;;  %v3767_v50 = vsel %vm3766_vm9, %v5182_v40, %v3763_v14  ;;  %v3780_v2 = vmul.f32 %v3779_v9, %v7666_v36  ;;  %v3791_v57 = vmul.f32 %v3790_v3, %v7666_v36 }
 0x2b6   :  { %v3733_v54 = vmul.f32 %v3732_v44, %v3708_v61  ;;  %v3772_v63 = vsel %vm7640_vm4, %v3771_v18, %v3767_v50  ;;  %v3820_v24 = vmul.f32 %v3819_v23, %v7674_v41  ;;  %v3831_v40 = vmul.f32 %v3830_v5, %v7674_v41 }
 0x2b7   :  { %v3773_v46 = vmul.f32 %v3772_v63, %v3748_v12  ;;  %v1969_v61 = vadd.f32 %v1871_v62, %v7619_v58  ;;  %v3781_v1 = vadd.f32 0.0036580483, %v3780_v2  ;;  %v3792_v18 = vadd.f32 0.014752088, %v3791_v57 }
 0x2b8   :  { %v5036_v7 = vclamps-f32 %v3733_v54, 1.0  ;;  %v2099_v12 = vmul.f32 %v6698_v17, %v7532_v45  ;;  %v3821_v22 = vadd.f32 0.0036580483, %v3820_v24  ;;  %v3832_v55 = vadd.f32 0.014752088, %v3831_v40  ;;  %v7726_v40 = vld [vmem:[#allocation2 + $0x90] sm:$0xff] }
 0x2b9   :  { %v5037_v6 = vclamps-f32 %v3773_v46, 1.0  ;;  %v2100_v51 = vmul.f32 %v6698_v17, %v7690_v42  ;;  %v3782_v27 = vmul.f32 %v3781_v1, %v7666_v36  ;;  %v3793_v44 = vmul.f32 %v3792_v18, %v7666_v36 }
 0x2ba   :  { %v4664_v14 = vadd.f32 1.0, %v5036_v7  ;;  %v1970_v50 = vadd.f32 %v1872_v13, %v7623_v21  ;;  %v3822_v62 = vmul.f32 %v3821_v22, %v7674_v41  ;;  %v3833_v9 = vmul.f32 %v3832_v55, %v7674_v41  ;;  %v9660_v21 = vld [vmem:[#allocation9_spill] sm:$0xff] }
 0x2bb   :  { %v4665_v48 = vadd.f32 1.0, %v5037_v6  ;;  %v2034_v3 = vadd.f32 %v1938_v38, %v1807_v56  ;;  %v3783_v54 = vadd.f32 0.05243302, %v3782_v27  ;;  %v3794_v63 = vadd.f32 0.112945676, %v3793_v44 }
 0x2bc   :  { %v4696_v58 = vmul.f32 %v4664_v14, %v7577_v39  ;;  %v2197_v23 = vadd.f32 %v2099_v12, %v1969_v61  ;;  %v3823_v5 = vadd.f32 0.05243302, %v3822_v62  ;;  %v3834_v46 = vadd.f32 0.112945676, %v3833_v9 }
 0x2bd   :  { %v4697_v7 = vmul.f32 %v4665_v48, %v7601_v53  ;;  %v2166_v2 = vmul.f32 %v7182_v29, %v7690_v42  ;;  %v7718_v57 = vadd.f32 %v2100_v51, %v1970_v50  ;;  %v3784_v24 = vmul.f32 %v3783_v54, %v7666_v36 }
 0x2be   :  { %v4728_v13 = vadd.f32 %v4696_v58, %v9660_v21  ;;  %v3795_v56 = vmul.f32 %v3794_v63, %v7666_v36  ;;  %v3824_v53 = vmul.f32 %v3823_v5, %v7674_v41  ;;  %v3835_v38 = vmul.f32 %v3834_v46, %v7674_v41 }
 0x2bf   :  { %v4729_v39 = vadd.f32 %v4697_v7, %v7170_v10  ;;  %v2294_v61 = vadd.s32 96, %v6743_v4  ;;  %v2295_v6 = vadd.s32 104, %v6743_v4  ;;  %v3785_v18 = vadd.f32 0.18741608, %v3784_v24 }
 0x2c0   :  { %v3796_v12 = vadd.f32 0.4994258, %v3795_v56  ;;  %v2786_v14 = vrot.slane %v2197_v23, 7  ;;  %v3825_v22 = vadd.f32 0.18741608, %v3824_v53  ;;  %v2035_v27 = vadd.f32 %v1939_v52, %v7658_v28 }
 0x2c1   :  { %v4756_v1 = vpack.c.bf16 %v4729_v39, %v4728_v13  ;;  %v3836_v10 = vadd.f32 0.4994258, %v3835_v38  ;;  %v2402_v55 = vand.u32 7, %v2294_v61  ;;  %v2409_v51 = vand.u32 7, %v2295_v6 }
 0x2c2   :  { %v3797_v48 = vmul.f32 %v3796_v12, %v7666_v36  ;;  %v2167_v44 = vmul.f32 %v7182_v29, %v7726_v40  ;;  %v2788_v50 = vrot.slane %v7718_v57, 7  ;;  %v3786_v58 = vmul.f32 %v3785_v18, %v7666_v36 }
 0x2c3   :  { %5072 = vmatmul.msk.bf16.gmra.mxu1 %vm1650_vm7, %v4756_v1  ;;  %v3826_v62 = vmul.f32 %v3825_v22, %v7674_v41  ;;  %v3837_v9 = vmul.f32 %v3836_v10, %v7674_v41  ;;  %v2132_v7 = vmul.f32 %v6706_v35, %v7532_v45  ;;  %v2133_v63 = vmul.f32 %v6706_v35, %v7690_v42 }
 0x2c4   :  { %v7741_v54 = vadd.f32 1.0, %v3797_v48  ;;  %vm7745_vm10 = vcmp.eq.s32.totalorder %v2402_v55, 0  ;;  %v9663_v29 = vrot.slane %v7536_v30, 7  ;;  %v2262_v23 = vadd.f32 %v2166_v2, %v2034_v3 }
 0x2c5   :  { %v7752_v36 = vadd.f32 1.0, %v3837_v9  ;;  %vm7754_vm11 = vcmp.eq.s32.totalorder %v2409_v51, 0  ;;  %v2789_v5 = vsel %vm2762_vm14, %v2786_v14, %v2788_v50  ;;  %v2001_v46 = vadd.f32 %v7670_v59, %v7637_v49 }
 0x2c6   :  { %v2787_v28 = vsel %vm2762_vm14, %v9663_v29, %v2786_v14  ;;  %5183 = vrcp.f32 %v7741_v54  ;;  %v2002_v30 = vadd.f32 %v7678_v37, %v7650_v31  ;;  %v7766_v21 = vadd.f32 %v2167_v44, %v2035_v27 }
 0x2c7   :  { %v3787_v13 = vadd.f32 1.1283791, %v3786_v58  ;;  %v3827_v3 = vadd.f32 1.1283791, %v3826_v62  ;;  %5185 = vrcp.f32 %v7752_v36  ;;  %v2935_v2 = vsel %vm7745_vm10, 0.0, %v2787_v28 }
 0x2c8   :  { %v3810_v39 = vand.u32 2147483648, %v7741_v54  ;;  %v2229_v24 = vadd.f32 %v2132_v7, %v2001_v46  ;;  %v2230_v56 = vadd.f32 %v2133_v63, %v2002_v30  ;;  %v2936_v53 = vsel %vm7754_vm11, 0.0, %v2789_v5 }
 0x2c9   :  { %v3808_v49 = vand.u32 2147483647, %v7741_v54  ;;  %v3850_v31 = vand.u32 2147483648, %v7752_v36  ;;  %vm7776_vm12 = vcmp.eq.s32.totalorder %v2402_v55, 7  ;;  %v3077_v37 = vrot.slane %v2262_v23, 1 }
 0x2ca   :  { %v3848_v38 = vand.u32 2147483647, %v7752_v36  ;;  %v2967_v61 = vadd.f32 %v2935_v2, %v2229_v24  ;;  %vm7781_vm13 = vcmp.eq.s32.totalorder %v2409_v51, 7  ;;  %v3079_v1 = vrot.slane %v7766_v21, 1  ;;  %v7831_v24 = vld [vmem:[#allocation2 + $0xa8] sm:$0xff] }
 0x2cb   :  { %v3788_v18 = vmul.f32 %v3787_v13, %v7644_v47  ;;  %vm3804_vm1 = vweird.f32 %v7741_v54  ;;  %v3828_v12 = vmul.f32 %v3827_v3, %v7646_v0  ;;  %v9670_v14 = vrot.slane %v7559_v25, 1  ;;  %v7824_v13 = vld [vmem:[#allocation2 + $0xa0] sm:$0xff] }
 0x2cc   :  { %v5184_v10 = vpop.eup %5183  ;;  %v3811_v55 = vor.u32 1.1754944e-38, %v3810_v39  ;;  %vm3844_vm2 = vweird.f32 %v7752_v36  ;;  %v2968_v51 = vadd.f32 %v2936_v53, %v2230_v56  ;;  %v3080_v48 = vsel %vm3051_vm15, %v3077_v37, %v3079_v1 }
 0x2cd   :  { %v3078_v22 = vsel %vm3051_vm15, %v9670_v14, %v3077_v37  ;;  %v5186_v27 = vpop.eup %5185  ;;  %v3800_v44 = vmul.f32 %v5184_v10, %v7741_v54  ;;  %vm7799_vm3 = vcmp.eq.f32.partialorder %v3808_v49, 8.507059e+37  ;;  %v3851_v25 = vor.u32 1.1754944e-38, %v3850_v31 }
 0x2ce   :  { %v3224_v47 = vsel %vm7776_vm12, 0.0, %v3078_v22  ;;  %v3225_v58 = vsel %vm7781_vm13, 0.0, %v3080_v48  ;;  %v3840_v9 = vmul.f32 %v5186_v27, %v7752_v36  ;;  %vm7806_vm4 = vcmp.eq.f32.partialorder %v3848_v38, 8.507059e+37 }
 0x2cf   :  { %v3256_v62 = vadd.f32 %v3224_v47, %v2967_v61  ;;  %v3257_v63 = vadd.f32 %v3225_v58, %v2968_v51  ;;  %v1742_v52 = vmul.f32 %v7532_v45, %v6592_v32  ;;  %v1743_v29 = vmul.f32 %v7690_v42, %v6592_v32 }
 0x2d0   :  { %v3801_v28 = vsub.f32 1.0, %v3800_v44  ;;  %v1775_v41 = vmul.f32 %v7532_v45, %v6606_v11  ;;  %v1776_v5 = vmul.f32 %v7690_v42, %v6606_v11  ;;  %vm3805_vm5 = vweird.f32 %v5184_v10 }
 0x2d1   :  { %v7815_v23 = vadd.f32 %v7451_v15, %v3256_v62  ;;  %v3841_v46 = vsub.f32 1.0, %v3840_v9  ;;  %v7822_v30 = vadd.f32 %v7451_v15, %v3257_v63  ;;  %v1809_v3 = vmul.f32 %v7690_v42, %v6637_v26  ;;  %vm3806_vm8 = vmor %vm3804_vm1, %vm3805_vm5 }
 0x2d2   :  { %v3802_v2 = vmul.f32 %v5184_v10, %v3801_v28  ;;  %v1873_v56 = vmul.f32 %v6649_v60, %v7690_v42  ;;  %v1874_v53 = vmul.f32 %v7726_v40, %v6649_v60  ;;  %vm3845_vm6 = vweird.f32 %v5186_v27 }
 0x2d3   :  { %v7829_v39 = vmul.f32 0.70710677, %v7815_v23  ;;  %v3842_v49 = vmul.f32 %v5186_v27, %v3841_v46  ;;  %v7838_v31 = vmul.f32 0.70710677, %v7822_v30  ;;  %v1906_v59 = vmul.f32 %v6656_v34, %v7690_v42  ;;  %vm3846_vm9 = vmor %vm3844_vm2, %vm3845_vm6 }
 0x2d4   :  { %v3803_v37 = vadd.f32 %v5184_v10, %v3802_v2  ;;  %v1810_v61 = vmul.f32 %v6637_v26, %v7824_v13  ;;  %v1907_v6 = vmul.f32 %v7726_v40, %v6656_v34  ;;  %v1940_v51 = vmul.f32 %v7726_v40, %v6676_v20 }
 0x2d5   :  { %v3856_v38 = vmul.f32 %v7829_v39, %v7829_v39  ;;  %v3843_v14 = vadd.f32 %v5186_v27, %v3842_v49  ;;  %v3896_v22 = vmul.f32 %v7838_v31, %v7838_v31  ;;  %v1941_v48 = vmul.f32 %v6676_v20, %v7831_v24 }
 0x2d6   :  { %v3807_v47 = vsel %vm3806_vm8, %v5184_v10, %v3803_v37  ;;  %v1971_v58 = vadd.f32 %v1873_v56, %v1742_v52  ;;  %v1972_v62 = vadd.f32 %v1874_v53, %v1743_v29  ;;  %v7865_v28 = vadd.f32 %v1906_v59, %v1775_v41 }
 0x2d7   :  { %v7859_v44 = vmin.f32 %v3856_v38, 16.0  ;;  %v3812_v54 = vsel %vm7799_vm3, %v3811_v55, %v3807_v47  ;;  %v3847_v9 = vsel %vm3846_vm9, %v5186_v27, %v3843_v14  ;;  %v7863_v63 = vmin.f32 %v3896_v22, 16.0  ;;  %v2069_v55 = vld [vmem:[#allocation2 + $0x98] sm:$0xff] }
 0x2d8   :  { %v3813_v46 = vmul.f32 %v3812_v54, %v3788_v18  ;;  %v3852_v2 = vsel %vm7806_vm4, %v3851_v25, %v3847_v9  ;;  %v7873_v0 = vadd.f32 %v1907_v6, %v1776_v5  ;;  %v2036_v53 = vadd.f32 %v1940_v51, %v1809_v3 }
 0x2d9   :  { %v3858_v10 = vmul.f32 2.1237322e-06, %v7859_v44  ;;  %v3869_v36 = vmul.f32 3.8918573e-05, %v7859_v44  ;;  %v3853_v49 = vmul.f32 %v3852_v2, %v3828_v12  ;;  %v3898_v52 = vmul.f32 2.1237322e-06, %v7863_v63 }
 0x2da   :  { %v3909_v29 = vmul.f32 3.8918573e-05, %v7863_v63  ;;  %v5038_v27 = vclamps-f32 %v3813_v46, 1.0  ;;  %v2101_v25 = vmul.f32 %v6698_v17, %v7726_v40  ;;  %v2102_v14 = vmul.f32 %v6698_v17, %v2069_v55 }
 0x2db   :  { %v3859_v56 = vadd.f32 0.00028619796, %v3858_v10  ;;  %v3870_v41 = vadd.f32 0.001143296, %v3869_v36  ;;  %v5039_v18 = vclamps-f32 %v3853_v49, 1.0  ;;  %v2037_v47 = vadd.f32 %v1941_v48, %v1810_v61  ;;  %v7886_v36 = vld [vmem:[#allocation2 + $0xb0] sm:$0xff] }
 0x2dc   :  { %v3899_v59 = vadd.f32 0.00028619796, %v3898_v52  ;;  %v3910_v7 = vadd.f32 0.001143296, %v3909_v29  ;;  %v4666_v37 = vadd.f32 1.0, %v5038_v27  ;;  %v2134_v9 = vmul.f32 %v6706_v35, %v7726_v40 }
 0x2dd   :  { %v3860_v12 = vmul.f32 %v3859_v56, %v7859_v44  ;;  %v3871_v38 = vmul.f32 %v3870_v41, %v7859_v44  ;;  %v4667_v5 = vadd.f32 1.0, %v5039_v18  ;;  %v7891_v49 = vld [vmem:[%s9514_s3 + $0x8] ss:$0 sm:$0xff]  ;;  %v2199_v52 = vadd.f32 %v2101_v25, %v1971_v58 }
 0x2de   :  { %v3900_v6 = vmul.f32 %v3899_v59, %v7863_v63  ;;  %v3911_v22 = vmul.f32 %v3910_v7, %v7863_v63  ;;  %v4698_v3 = vmul.f32 %v4666_v37, %v7672_v8  ;;  %v2168_v61 = vmul.f32 %v7891_v49, %v2069_v55 }
 0x2df   :  { %v3861_v51 = vadd.f32 0.0036580483, %v3860_v12  ;;  %v3872_v54 = vadd.f32 0.014752088, %v3871_v38  ;;  %v4699_v46 = vmul.f32 %v4667_v5, %v7682_v16  ;;  %v7896_v29 = vadd.f32 %v2102_v14, %v1972_v62 }
 0x2e0   :  { %v3901_v2 = vadd.f32 0.0036580483, %v3900_v6  ;;  %v3912_v10 = vadd.f32 0.014752088, %v3911_v22  ;;  %v4730_v16 = vadd.f32 %v4698_v3, %v7306_v43  ;;  %v2169_v7 = vmul.f32 %v7891_v49, %v7886_v36 }
 0x2e1   :  { %v3862_v8 = vmul.f32 %v3861_v51, %v7859_v44  ;;  %v3873_v48 = vmul.f32 %v3872_v54, %v7859_v44  ;;  %v4731_v27 = vadd.f32 %v4699_v46, %v7351_v33  ;;  %v2296_v37 = vadd.s32 112, %v6743_v4 }
 0x2e2   :  { %v3902_v56 = vmul.f32 %v3901_v2, %v7863_v63  ;;  %v3913_v41 = vmul.f32 %v3912_v10, %v7863_v63  ;;  %v2297_v62 = vadd.s32 120, %v6743_v4  ;;  %v2790_v14 = vrot.slane %v2199_v52, 7 }
 0x2e3   :  { %v3863_v18 = vadd.f32 0.05243302, %v3862_v8  ;;  %v3874_v59 = vadd.f32 0.112945676, %v3873_v48  ;;  %v4757_v12 = vpack.c.bf16 %v4731_v27, %v4730_v16  ;;  %v2416_v25 = vand.u32 7, %v2296_v37 }
 0x2e4   :  { %v3903_v38 = vadd.f32 0.05243302, %v3902_v56  ;;  %v3914_v58 = vadd.f32 0.112945676, %v3913_v41  ;;  %v2423_v22 = vand.u32 7, %v2297_v62  ;;  %v2792_v3 = vrot.slane %v7896_v29, 7 }
 0x2e5   :  { %v3864_v43 = vmul.f32 %v3863_v18, %v7859_v44  ;;  %v3875_v33 = vmul.f32 %v3874_v59, %v7859_v44  ;;  %5073 = vmatmul.msk.bf16.gmra.mxu1 %vm1650_vm7, %v4757_v12  ;;  %vm7912_vm10 = vcmp.eq.s32.totalorder %v2416_v25, 0  ;;  %v2791_v2 = vsel %vm2762_vm14, %v2788_v50, %v2790_v14 }
 0x2e6   :  { %v3904_v5 = vmul.f32 %v3903_v38, %v7863_v63  ;;  %v3915_v6 = vmul.f32 %v3914_v58, %v7863_v63  ;;  %v2264_v48 = vadd.f32 %v2168_v61, %v2036_v53  ;;  %v7919_v52 = vadd.f32 %v2169_v7, %v2037_v47 }
 0x2e7   :  { %v3865_v51 = vadd.f32 0.18741608, %v3864_v43  ;;  %v3876_v54 = vadd.f32 0.4994258, %v3875_v33  ;;  %v2135_v27 = vmul.f32 %v6706_v35, %v2069_v55  ;;  %vm7923_vm11 = vcmp.eq.s32.totalorder %v2423_v22, 0 }
 0x2e8   :  { %v3905_v10 = vadd.f32 0.18741608, %v3904_v5  ;;  %v3916_v8 = vadd.f32 0.4994258, %v3915_v6  ;;  %v2793_v41 = vsel %vm2762_vm14, %v2790_v14, %v2792_v3  ;;  %v2937_v53 = vsel %vm7912_vm10, 0.0, %v2791_v2 }
 0x2e9   :  { %v3877_v16 = vmul.f32 %v3876_v54, %v7859_v44  ;;  %v3866_v57 = vmul.f32 %v3865_v51, %v7859_v44  ;;  %v2231_v55 = vadd.f32 %v2134_v9, %v7865_v28  ;;  %v2938_v59 = vsel %vm7923_vm11, 0.0, %v2793_v41 }
 0x2ea   :  { %v3917_v50 = vmul.f32 %v3916_v8, %v7863_v63  ;;  %v3906_v61 = vmul.f32 %v3905_v10, %v7863_v63  ;;  %v3081_v7 = vrot.slane %v2264_v48, 1  ;;  %v3083_v37 = vrot.slane %v7919_v52, 1 }
 0x2eb   :  { %v7934_v47 = vadd.f32 1.0, %v3877_v16  ;;  %v2232_v44 = vadd.f32 %v2135_v27, %v7873_v0  ;;  %v2969_v12 = vadd.f32 %v2937_v53, %v2231_v55  ;;  %vm3001_vm12 = vcmp.eq.s32.totalorder %v2416_v25, 7 }
 0x2ec   :  { %v7938_v18 = vadd.f32 1.0, %v3917_v50  ;;  %v3867_v38 = vadd.f32 1.1283791, %v3866_v57  ;;  %vm3002_vm13 = vcmp.eq.s32.totalorder %v2423_v22, 7  ;;  %v3907_v63 = vadd.f32 1.1283791, %v3906_v61 }
 0x2ed   :  { %5187 = vrcp.f32 %v7934_v47  ;;  %v2970_v28 = vadd.f32 %v2938_v59, %v2232_v44  ;;  %v3082_v9 = vsel %vm3051_vm15, %v3079_v1, %v3081_v7  ;;  %v3888_v58 = vand.u32 2147483647, %v7934_v47 }
 0x2ee   :  { %5189 = vrcp.f32 %v7938_v18  ;;  %v3890_v62 = vand.u32 2147483648, %v7934_v47  ;;  %v3084_v0 = vsel %vm3051_vm15, %v3081_v7, %v3083_v37  ;;  %v3226_v43 = vsel %vm3001_vm12, 0.0, %v3082_v9 }
 0x2ef   :  { %v7955_v33 = vmul.f32 0.5, %v7815_v23  ;;  %v3928_v25 = vand.u32 2147483647, %v7938_v18  ;;  %v3227_v14 = vsel %vm3002_vm13, 0.0, %v3084_v0  ;;  %v3258_v5 = vadd.f32 %v3226_v43, %v2969_v12 }
 0x2f0   :  { %v7959_v21 = vmul.f32 0.5, %v7822_v30  ;;  %v3868_v1 = vmul.f32 %v3867_v38, %v7829_v39  ;;  %v3930_v6 = vand.u32 2147483648, %v7938_v18  ;;  %v3259_v22 = vadd.f32 %v3227_v14, %v2970_v28 }
 0x2f1   :  { %vm3884_vm1 = vweird.f32 %v7934_v47  ;;  %v3908_v54 = vmul.f32 %v3907_v63, %v7838_v31  ;;  %vm3924_vm2 = vweird.f32 %v7938_v18  ;;  %v3294_v23 = vadd.f32 %v7451_v15, %v3258_v5 }
 0x2f2   :  { %vm7968_vm3 = vcmp.eq.f32.partialorder %v3888_v58, 8.507059e+37  ;;  %v3891_v39 = vor.u32 1.1754944e-38, %v3890_v62  ;;  %v3295_v10 = vadd.f32 %v7451_v15, %v3259_v22  ;;  %vm7974_vm4 = vcmp.eq.f32.partialorder %v3928_v25, 8.507059e+37 }
 0x2f3   :  { %v5188_v51 = vpop.eup %5187  ;;  %v7978_v31 = vmul.f32 0.70710677, %v3294_v23  ;;  %v7982_v16 = vmul.f32 %v6592_v32, %v7824_v13  ;;  %v3931_v56 = vor.u32 1.1754944e-38, %v3930_v6  ;;  %v7988_v57 = vmul.f32 %v7831_v24, %v6592_v32 }
 0x2f4   :  { %v5190_v46 = vpop.eup %5189  ;;  %v3880_v2 = vmul.f32 %v5188_v51, %v7934_v47  ;;  %v7984_v41 = vmul.f32 0.70710677, %v3295_v10  ;;  %v7994_v53 = vmul.f32 %v6606_v11, %v7824_v13  ;;  %v7998_v61 = vmul.f32 %v7831_v24, %v6606_v11 }
 0x2f5   :  { %v3920_v8 = vmul.f32 %v5190_v46, %v7938_v18  ;;  %v3936_v50 = vmul.f32 %v7978_v31, %v7978_v31  ;;  %vm3885_vm5 = vweird.f32 %v5188_v51  ;;  %v8004_v7 = vmul.f32 %v7831_v24, %v6637_v26  ;;  %v8038_v18 = vld [vmem:[#allocation2 + $0xb8] sm:$0xff] }
 0x2f6   :  { %v3881_v27 = vsub.f32 1.0, %v3880_v2  ;;  %v3976_v59 = vmul.f32 %v7984_v41, %v7984_v41  ;;  %vm3925_vm6 = vweird.f32 %v5190_v46  ;;  %v8010_v13 = vmul.f32 %v7886_v36, %v6637_v26  ;;  %vm3886_vm8 = vmor %vm3884_vm1, %vm3885_vm5 }
 0x2f7   :  { %v3921_v15 = vsub.f32 1.0, %v3920_v8  ;;  %v8006_v12 = vmin.f32 %v3936_v50, 16.0  ;;  %v8016_v28 = vmul.f32 %v6649_v60, %v7831_v24  ;;  %v8020_v9 = vmul.f32 %v7886_v36, %v6649_v60  ;;  %vm3926_vm9 = vmor %vm3924_vm2, %vm3925_vm6 }
 0x2f8   :  { %v3882_v55 = vmul.f32 %v5188_v51, %v3881_v27  ;;  %v8012_v63 = vmin.f32 %v3976_v59, 16.0  ;;  %v8024_v62 = vmul.f32 0.5, %v3294_v23  ;;  %v8030_v14 = vmul.f32 0.5, %v3295_v10 }
 0x2f9   :  { %v3922_v44 = vmul.f32 %v5190_v46, %v3921_v15  ;;  %v3938_v0 = vmul.f32 2.1237322e-06, %v8006_v12  ;;  %v3949_v43 = vmul.f32 3.8918573e-05, %v8006_v12  ;;  %v1908_v30 = vmul.f32 %v6656_v34, %v7831_v24 }
 0x2fa   :  { %v3883_v38 = vadd.f32 %v5188_v51, %v3882_v55  ;;  %v3978_v5 = vmul.f32 2.1237322e-06, %v8012_v63  ;;  %v3989_v6 = vmul.f32 3.8918573e-05, %v8012_v63 }
 0x2fb   :  { %v3923_v58 = vadd.f32 %v5190_v46, %v3922_v44  ;;  %v3939_v23 = vadd.f32 0.00028619796, %v3938_v0  ;;  %v3950_v2 = vadd.f32 0.001143296, %v3949_v43 }
 0x2fc   :  { %v3887_v25 = vsel %vm3886_vm8, %v5188_v51, %v3883_v38  ;;  %v3979_v51 = vadd.f32 0.00028619796, %v3978_v5  ;;  %v3990_v15 = vadd.f32 0.001143296, %v3989_v6  ;;  %v1747_v38 = vmul.f32 %v8038_v18, %v6592_v32 }
 0x2fd   :  { %v3892_v47 = vsel %vm7968_vm3, %v3891_v39, %v3887_v25  ;;  %v3927_v22 = vsel %vm3926_vm9, %v5190_v46, %v3923_v58  ;;  %v3940_v50 = vmul.f32 %v3939_v23, %v8006_v12  ;;  %v3951_v55 = vmul.f32 %v3950_v2, %v8006_v12  ;;  %v8044_v39 = vld [vmem:[#allocation2 + $0xc0] sm:$0xff] }
 0x2fe   :  { %v3893_v8 = vmul.f32 %v3892_v47, %v3868_v1  ;;  %v3932_v27 = vsel %vm7974_vm4, %v3931_v56, %v3927_v22  ;;  %v3980_v1 = vmul.f32 %v3979_v51, %v8012_v63  ;;  %v3991_v48 = vmul.f32 %v3990_v15, %v8012_v63  ;;  %v8060_v22 = vld [vmem:[#allocation2 + $0xc8] sm:$0xff] }
 0x2ff   :  { %v3933_v10 = vmul.f32 %v3932_v27, %v3908_v54  ;;  %v8050_v56 = vmul.f32 %v7886_v36, %v6656_v34  ;;  %v3941_v54 = vadd.f32 0.0036580483, %v3940_v50  ;;  %v3952_v44 = vadd.f32 0.014752088, %v3951_v55 }
 0x300   :  { %v5040_v46 = vclamps-f32 %v3893_v8, 1.0  ;;  %v3981_v0 = vadd.f32 0.0036580483, %v3980_v1  ;;  %v3992_v24 = vadd.f32 0.014752088, %v3991_v48  ;;  %v1878_v43 = vmul.f32 %v8044_v39, %v6649_v60 }
 0x301   :  { %v5041_v59 = vclamps-f32 %v3933_v10, 1.0  ;;  %v3942_v5 = vmul.f32 %v3941_v54, %v8006_v12  ;;  %v3953_v6 = vmul.f32 %v3952_v44, %v8006_v12  ;;  %v1814_v47 = vmul.f32 %v8044_v39, %v6637_v26 }
 0x302   :  { %v4668_v58 = vadd.f32 1.0, %v5040_v46  ;;  %v3982_v2 = vmul.f32 %v3981_v0, %v8012_v63  ;;  %v3993_v8 = vmul.f32 %v3992_v24, %v8012_v63  ;;  %v1945_v27 = vmul.f32 %v6676_v20, %v8060_v22 }
 0x303   :  { %v4669_v25 = vadd.f32 1.0, %v5041_v59  ;;  %v3943_v15 = vadd.f32 0.05243302, %v3942_v5  ;;  %v3954_v10 = vadd.f32 0.112945676, %v3953_v6  ;;  %v1942_v50 = vmul.f32 %v7886_v36, %v6676_v20 }
 0x304   :  { %v4700_v23 = vmul.f32 %v4668_v58, %v7955_v33  ;;  %v3983_v55 = vadd.f32 0.05243302, %v3982_v2  ;;  %v3994_v46 = vadd.f32 0.112945676, %v3993_v8  ;;  %v1976_v1 = vadd.f32 %v1878_v43, %v1747_v38 }
 0x305   :  { %v4701_v51 = vmul.f32 %v4669_v25, %v7959_v21  ;;  %v2106_v33 = vmul.f32 %v6698_v17, %v8060_v22  ;;  %v3944_v54 = vmul.f32 %v3943_v15, %v8006_v12  ;;  %v3955_v44 = vmul.f32 %v3954_v10, %v8006_v12  ;;  %v8076_v21 = vld [vmem:[#allocation2 + $0xd0] sm:$0xff] }
 0x306   :  { %v4732_v48 = vadd.f32 %v4700_v23, %v7493_v19  ;;  %v3984_v58 = vmul.f32 %v3983_v55, %v8012_v63  ;;  %v3995_v0 = vmul.f32 %v3994_v46, %v8012_v63  ;;  %v2041_v24 = vadd.f32 %v1945_v27, %v1814_v47 }
 0x307   :  { %v4733_v59 = vadd.f32 %v4701_v51, %v7532_v45  ;;  %v2173_v38 = vmul.f32 %v7891_v49, %v8076_v21  ;;  %v3945_v25 = vadd.f32 0.18741608, %v3944_v54  ;;  %v3956_v5 = vadd.f32 0.4994258, %v3955_v44 }
 0x308   :  { %v1943_v19 = vmul.f32 %v6676_v20, %v8038_v18  ;;  %v3985_v45 = vadd.f32 0.18741608, %v3984_v58  ;;  %v3996_v6 = vadd.f32 0.4994258, %v3995_v0  ;;  %v2104_v23 = vmul.f32 %v6698_v17, %v8038_v18 }
 0x309   :  { %v4758_v43 = vpack.c.bf16 %v4733_v59, %v4732_v48  ;;  %v8086_v2 = vadd.f32 %v2106_v33, %v1976_v1  ;;  %v3946_v47 = vmul.f32 %v3945_v25, %v8006_v12  ;;  %v3957_v8 = vmul.f32 %v3956_v5, %v8006_v12 }
 0x30a   :  { %v2137_v27 = vmul.f32 %v6706_v35, %v8038_v18  ;;  %v2170_v51 = vmul.f32 %v7891_v49, %v8038_v18  ;;  %v3986_v15 = vmul.f32 %v3985_v45, %v8012_v63  ;;  %v3997_v10 = vmul.f32 %v3996_v6, %v8012_v63 }
 0x30b   :  { %5074 = vmatmul.msk.bf16.gmra.mxu1 %vm1650_vm7, %v4758_v43  ;;  %v2171_v55 = vmul.f32 %v7891_v49, %v8044_v39  ;;  %v8099_v46 = vadd.f32 %v2173_v38, %v2041_v24  ;;  %v8101_v1 = vadd.f32 1.0, %v3957_v8  ;;  %v1973_v12 = vadd.f32 %v8016_v28, %v7982_v16 }
 0x30c   :  { %v2005_v33 = vadd.f32 %v1908_v30, %v7994_v53  ;;  %v2103_v48 = vmul.f32 %v6698_v17, %v7886_v36  ;;  %v3947_v59 = vadd.f32 1.1283791, %v3946_v47  ;;  %v8108_v54 = vadd.f32 1.0, %v3997_v10 }
 0x30d   :  { %v1974_v63 = vadd.f32 %v8020_v9, %v7988_v57  ;;  %5191 = vrcp.f32 %v8101_v1  ;;  %v3987_v58 = vadd.f32 1.1283791, %v3986_v15  ;;  %v2038_v0 = vadd.f32 %v1942_v50, %v8004_v7 }
 0x30e   :  { %v2039_v16 = vadd.f32 %v1943_v19, %v8010_v13  ;;  %5193 = vrcp.f32 %v8108_v54  ;;  %v9527_v53 = vrot.slane %v8099_v46, 1  ;;  %v8120_v28 = vmul.f32 %v8044_v39, %v6592_v32 }
 0x30f   :  { %v8124_v57 = vmul.f32 %v8060_v22, %v6592_v32  ;;  %v2006_v9 = vadd.f32 %v8050_v56, %v7998_v61  ;;  %v2136_v7 = vmul.f32 %v6706_v35, %v7886_v36  ;;  %v2201_v30 = vadd.f32 %v2103_v48, %v1973_v12 }
 0x310   :  { %v8132_v13 = vmul.f32 %v8044_v39, %v6606_v11  ;;  %v8135_v50 = vmul.f32 %v3947_v59, %v7978_v31  ;;  %v3968_v24 = vand.u32 2147483647, %v8101_v1  ;;  %v3970_v38 = vand.u32 2147483648, %v8101_v1 }
 0x311   :  { %v8139_v43 = vadd.f32 %v2104_v23, %v1974_v63  ;;  %v8142_v25 = vmul.f32 %v3987_v58, %v7984_v41  ;;  %v4008_v61 = vand.u32 2147483647, %v8108_v54  ;;  %v2266_v56 = vadd.f32 %v2170_v51, %v2038_v0 }
 0x312   :  { %v8145_v5 = vadd.f32 %v2171_v55, %v2039_v16  ;;  %vm3964_vm10 = vweird.f32 %v8101_v1  ;;  %v2298_v19 = vadd.s32 128, %v6743_v4  ;;  %v2299_v31 = vadd.s32 136, %v6743_v4 }
 0x313   :  { %v2794_v45 = vrot.slane %v2201_v30, 7  ;;  %v9526_v6 = vrot.slane %v8139_v43, 7  ;;  %v5192_v47 = vpop.eup %5191  ;;  %vm4004_vm11 = vweird.f32 %v8108_v54  ;;  %v4010_v41 = vand.u32 2147483648, %v8108_v54 }
 0x314   :  { %v2233_v23 = vadd.f32 %v2136_v7, %v2005_v33  ;;  %v2234_v8 = vadd.f32 %v2137_v27, %v2006_v9  ;;  %v3085_v15 = vrot.slane %v2266_v56, 1  ;;  %v5194_v51 = vpop.eup %5193  ;;  %v3960_v10 = vmul.f32 %v5192_v47, %v8101_v1 }
 0x315   :  { %v2430_v55 = vand.u32 7, %v2298_v19  ;;  %v2437_v12 = vand.u32 7, %v2299_v31  ;;  %v9528_v48 = vrot.slane %v8145_v5, 1  ;;  %vm3965_vm12 = vweird.f32 %v5192_v47 }
 0x316   :  { %v4000_v59 = vmul.f32 %v5194_v51, %v8108_v54  ;;  %v2795_v63 = vsel %vm2762_vm14, %v2792_v3, %v2794_v45  ;;  %v2797_v33 = vsel %vm2762_vm14, %v2794_v45, %v9526_v6  ;;  %v3961_v27 = vsub.f32 1.0, %v3960_v10  ;;  %vm3966_vm6 = vmor %vm3964_vm10, %vm3965_vm12 }
 0x317   :  { %vm2714_vm13 = vcmp.eq.s32.totalorder %v2430_v55, 0  ;;  %vm2715_vm1 = vcmp.eq.s32.totalorder %v2437_v12, 0  ;;  %vm8162_vm2 = vcmp.eq.s32.totalorder %v2430_v55, 7  ;;  %vm8166_vm3 = vcmp.eq.s32.totalorder %v2437_v12, 7 }
 0x318   :  { %v4001_v0 = vsub.f32 1.0, %v4000_v59  ;;  %v2939_v16 = vsel %vm2714_vm13, 0.0, %v2795_v63  ;;  %v2940_v9 = vsel %vm2715_vm1, 0.0, %v2797_v33  ;;  %v3962_v29 = vmul.f32 %v5192_v47, %v3961_v27 }
 0x319   :  { %v2971_v3 = vadd.f32 %v2939_v16, %v2233_v23  ;;  %v2972_v30 = vadd.f32 %v2940_v9, %v2234_v8  ;;  %v3086_v56 = vsel %vm3051_vm15, %v3083_v37, %v3085_v15  ;;  %vm4005_vm4 = vweird.f32 %v5194_v51 }
 0x31a   :  { %v4002_v19 = vmul.f32 %v5194_v51, %v4001_v0  ;;  %v3088_v31 = vsel %vm3051_vm15, %v3085_v15, %v9528_v48  ;;  %v3228_v45 = vsel %vm8162_vm2, 0.0, %v3086_v56  ;;  %v3963_v10 = vadd.f32 %v5192_v47, %v3962_v29  ;;  %vm4006_vm9 = vmor %vm4004_vm11, %vm4005_vm4 }
 0x31b   :  { %vm3969_vm5 = vcmp.eq.f32.partialorder %v3968_v24, 8.507059e+37  ;;  %v3229_v55 = vsel %vm8166_vm3, 0.0, %v3088_v31  ;;  %v3260_v23 = vadd.f32 %v3228_v45, %v2971_v3  ;;  %v3971_v52 = vor.u32 1.1754944e-38, %v3970_v38  ;;  %v8188_v24 = vld [vmem:[%s9515_s4] ss:$0 sm:$0xff] }
 0x31c   :  { %v4003_v37 = vadd.f32 %v5194_v51, %v4002_v19  ;;  %vm4009_vm8 = vcmp.eq.f32.partialorder %v4008_v61, 8.507059e+37  ;;  %v3261_v8 = vadd.f32 %v3229_v55, %v2972_v30  ;;  %v3967_v12 = vsel %vm3966_vm6, %v5192_v47, %v3963_v10 }
 0x31d   :  { %v4011_v15 = vor.u32 1.1754944e-38, %v4010_v41  ;;  %v8191_v59 = vadd.f32 %v8188_v24, %v3260_v23  ;;  %v1813_v1 = vmul.f32 %v8038_v18, %v6637_v26  ;;  %v3972_v38 = vsel %vm3969_vm5, %v3971_v52, %v3967_v12 }
 0x31e   :  { %v4007_v63 = vsel %vm4006_vm9, %v5194_v51, %v4003_v37  ;;  %v8196_v61 = vadd.f32 %v8188_v24, %v3261_v8  ;;  %v1944_v54 = vmul.f32 %v8044_v39, %v6676_v20  ;;  %v3973_v47 = vmul.f32 %v3972_v38, %v8135_v50 }
 0x31f   :  { %v4012_v41 = vsel %vm4009_vm8, %v4011_v15, %v4007_v63  ;;  %v8202_v33 = vmul.f32 0.70710677, %v8191_v59  ;;  %v8206_v27 = vmul.f32 %v8060_v22, %v6606_v11  ;;  %v1780_v0 = vmul.f32 %v8038_v18, %v6606_v11 }
 0x320   :  { %v4013_v58 = vmul.f32 %v4012_v41, %v8142_v25  ;;  %v8210_v51 = vmul.f32 0.70710677, %v8196_v61  ;;  %v1911_v16 = vmul.f32 %v8044_v39, %v6656_v34  ;;  %v5042_v50 = vclamps-f32 %v3973_v47, 1.0 }
 0x321   :  { %v4016_v9 = vmul.f32 %v8202_v33, %v8202_v33  ;;  %v8220_v7 = vmul.f32 %v7886_v36, %v6592_v32  ;;  %v8224_v25 = vmul.f32 %v8060_v22, %v6637_v26  ;;  %v2040_v30 = vadd.f32 %v1944_v54, %v1813_v1 }
 0x322   :  { %v5043_v29 = vclamps-f32 %v4013_v58, 1.0  ;;  %v4056_v3 = vmul.f32 %v8210_v51, %v8210_v51  ;;  %v2172_v56 = vmul.f32 %v7891_v49, %v8060_v22  ;;  %v4670_v19 = vadd.f32 1.0, %v5042_v50 }
 0x323   :  { %v8230_v31 = vmin.f32 %v4016_v9, 16.0  ;;  %v8234_v45 = vmul.f32 %v6649_v60, %v8038_v18  ;;  %v8238_v10 = vmul.f32 %v6656_v34, %v8038_v18  ;;  %v8242_v52 = vadd.f32 %v1911_v16, %v1780_v0 }
 0x324   :  { %v4671_v55 = vadd.f32 1.0, %v5043_v29  ;;  %v8240_v23 = vmin.f32 %v4056_v3, 16.0  ;;  %v8246_v37 = vmul.f32 %v6698_v17, %v8044_v39  ;;  %v4702_v8 = vmul.f32 %v4670_v19, %v8024_v62 }
 0x325   :  { %v4018_v12 = vmul.f32 2.1237322e-06, %v8230_v31  ;;  %v4029_v15 = vmul.f32 3.8918573e-05, %v8230_v31  ;;  %v8252_v1 = vadd.s32 152, %v6743_v4  ;;  %v8257_v54 = vadd.f32 %v2172_v56, %v2040_v30 }
 0x326   :  { %v4703_v18 = vmul.f32 %v4671_v55, %v8030_v14  ;;  %v4058_v38 = vmul.f32 2.1237322e-06, %v8240_v23  ;;  %v4069_v63 = vmul.f32 3.8918573e-05, %v8240_v23  ;;  %v8261_v62 = vmul.f32 %v6706_v35, %v8044_v39 }
 0x327   :  { %v4019_v47 = vadd.f32 0.00028619796, %v4018_v12  ;;  %v4030_v41 = vadd.f32 0.001143296, %v4029_v15  ;;  %v2139_v58 = vmul.f32 %v6706_v35, %v8060_v22  ;;  %v4734_v0 = vadd.f32 %v4702_v8, %v7690_v42 }
 0x328   :  { %v4735_v16 = vadd.f32 %v4703_v18, %v7726_v40  ;;  %v4059_v14 = vadd.f32 0.00028619796, %v4058_v38  ;;  %v4070_v50 = vadd.f32 0.001143296, %v4069_v63  ;;  %v2451_v3 = vand.u32 7, %v8252_v1 }
 0x329   :  { %v4020_v9 = vmul.f32 %v4019_v47, %v8230_v31  ;;  %v4031_v29 = vmul.f32 %v4030_v41, %v8230_v31  ;;  %v1816_v30 = vmul.f32 %v8076_v21, %v6637_v26  ;;  %v3089_v42 = vrot.slane %v8257_v54, 1 }
 0x32a   :  { %v4759_v39 = vpack.c.bf16 %v4735_v16, %v4734_v0  ;;  %v4060_v56 = vmul.f32 %v4059_v14, %v8240_v23  ;;  %v4071_v19 = vmul.f32 %v4070_v50, %v8240_v23  ;;  %v1879_v8 = vmul.f32 %v6649_v60, %v8060_v22  ;;  %v8292_v16 = vld [vmem:[#allocation2 + $0xd8] sm:$0xff] }
 0x32b   :  { %v4021_v55 = vadd.f32 0.0036580483, %v4020_v9  ;;  %v4032_v40 = vadd.f32 0.014752088, %v4031_v29  ;;  %v1880_v12 = vmul.f32 %v8076_v21, %v6649_v60  ;;  %v1912_v38 = vmul.f32 %v6656_v34, %v8060_v22 }
 0x32c   :  { %5075 = vmatmul.msk.bf16.gmra.mxu1 %vm1650_vm7, %v4759_v39  ;;  %v4061_v15 = vadd.f32 0.0036580483, %v4060_v56  ;;  %v4072_v18 = vadd.f32 0.014752088, %v4071_v19  ;;  %v1913_v63 = vmul.f32 %v8076_v21, %v6656_v34  ;;  %vm8288_vm10 = vcmp.eq.s32.totalorder %v2451_v3, 7 }
 0x32d   :  { %v4022_v47 = vmul.f32 %v4021_v55, %v8230_v31  ;;  %v4033_v41 = vmul.f32 %v4032_v40, %v8230_v31  ;;  %v1946_v14 = vmul.f32 %v8076_v21, %v6676_v20  ;;  %v8303_v9 = vsel %vm3051_vm15, %v3089_v42, %v9527_v53 }
 0x32e   :  { %v4062_v22 = vmul.f32 %v4061_v15, %v8240_v23  ;;  %v4073_v50 = vmul.f32 %v4072_v18, %v8240_v23  ;;  %v1947_v29 = vmul.f32 %v6676_v20, %v8292_v16  ;;  %v1977_v19 = vadd.f32 %v1879_v8, %v8120_v28 }
 0x32f   :  { %v4023_v39 = vadd.f32 0.05243302, %v4022_v47  ;;  %v4034_v56 = vadd.f32 0.112945676, %v4033_v41  ;;  %v1978_v55 = vadd.f32 %v1880_v12, %v8124_v57  ;;  %v2009_v18 = vadd.f32 %v1912_v38, %v8132_v13  ;;  %v8318_v57 = vld [vmem:[#allocation2 + $0xe0] sm:$0xff] }
 0x330   :  { %v4063_v40 = vadd.f32 0.05243302, %v4062_v22  ;;  %v4074_v15 = vadd.f32 0.112945676, %v4073_v50  ;;  %v2010_v44 = vadd.f32 %v1913_v63, %v8206_v27  ;;  %v2042_v48 = vadd.f32 %v1946_v14, %v8224_v25 }
 0x331   :  { %v4024_v6 = vmul.f32 %v4023_v39, %v8230_v31  ;;  %v4035_v53 = vmul.f32 %v4034_v56, %v8230_v31  ;;  %v2107_v47 = vmul.f32 %v6698_v17, %v8076_v21  ;;  %v2108_v13 = vmul.f32 %v6698_v17, %v8292_v16 }
 0x332   :  { %v4064_v41 = vmul.f32 %v4063_v40, %v8240_v23  ;;  %v4075_v28 = vmul.f32 %v4074_v15, %v8240_v23  ;;  %v2140_v27 = vmul.f32 %v6706_v35, %v8076_v21  ;;  %v2141_v25 = vmul.f32 %v6706_v35, %v8292_v16 }
 0x333   :  { %v4025_v8 = vadd.f32 0.18741608, %v4024_v6  ;;  %v4036_v12 = vadd.f32 0.4994258, %v4035_v53  ;;  %v2174_v38 = vmul.f32 %v7891_v49, %v8292_v16  ;;  %v8329_v22 = vadd.f32 %v2139_v58, %v8242_v52 }
 0x334   :  { %v4065_v63 = vadd.f32 0.18741608, %v4064_v41  ;;  %v4076_v14 = vadd.f32 0.4994258, %v4075_v28  ;;  %v3231_v50 = vsel %vm8288_vm10, 0.0, %v8303_v9  ;;  %v2043_v53 = vadd.f32 %v1947_v29, %v1816_v30 }
 0x335   :  { %v4026_v39 = vmul.f32 %v4025_v8, %v8230_v31  ;;  %v4037_v6 = vmul.f32 %v4036_v12, %v8230_v31  ;;  %v2175_v56 = vmul.f32 %v7891_v49, %v8318_v57  ;;  %v8340_v41 = vadd.f32 %v2107_v47, %v1977_v19  ;;  %v8349_v28 = vld [vmem:[%s9517_s6] ss:$0 sm:$0xff] }
 0x336   :  { %v4066_v40 = vmul.f32 %v4065_v63, %v8240_v23  ;;  %v4077_v15 = vmul.f32 %v4076_v14, %v8240_v23  ;;  %v8342_v52 = vadd.f32 %v2108_v13, %v1978_v55  ;;  %v8351_v31 = vadd.f32 %v2140_v27, %v2009_v18  ;;  %v4845_v23 = vpop.f32.mrf.mxu1 }
 0x337   :  { %v8344_v58 = vadd.f32 1.0, %v4037_v6  ;;  %v8353_v30 = vadd.f32 %v2141_v25, %v2010_v44  ;;  %v8355_v49 = vadd.f32 %v2174_v38, %v2042_v48  ;;  %v1779_v19 = vmul.f32 %v7886_v36, %v6606_v11 }
 0x338   :  { %v8357_v29 = vadd.f32 1.0, %v4077_v15  ;;  %v1975_v55 = vadd.f32 %v8234_v45, %v8220_v7  ;;  %v2300_v47 = vadd.s32 144, %v6743_v4  ;;  %v4027_v13 = vadd.f32 1.1283791, %v4026_v39 }
 0x339   :  { %5195 = vrcp.f32 %v8344_v58  ;;  %v4067_v18 = vadd.f32 1.1283791, %v4066_v40  ;;  %v2302_v44 = vadd.s32 160, %v6743_v4  ;;  %v4050_v48 = vand.u32 2147483648, %v8344_v58 }
 0x33a   :  { %5197 = vrcp.f32 %v8357_v29  ;;  %v8368_v27 = vadd.f32 %v2175_v56, %v2043_v53  ;;  %v8371_v8 = vadd.s32 168, %v6743_v4  ;;  %v4090_v12 = vand.u32 2147483648, %v8357_v29 }
 0x33b   :  { %v4846_v7 = vadd.f32 %v8349_v28, %v4845_v23  ;;  %vm8377_vm11 = vcmp.eq.s32.totalorder %v2451_v3, 0  ;;  %v2802_v25 = vrot.slane %v8340_v41, 7  ;;  %v4048_v38 = vand.u32 2147483647, %v8344_v58 }
 0x33c   :  { %v2007_v63 = vadd.f32 %v8238_v10, %v1779_v19  ;;  %v2203_v14 = vadd.f32 %v8246_v37, %v1975_v55  ;;  %v2444_v39 = vand.u32 7, %v2300_v47  ;;  %v4028_v6 = vmul.f32 %v4027_v13, %v8202_v33 }
 0x33d   :  { %v8387_v53 = vmul.f32 %v4067_v18, %v8210_v51  ;;  %v4088_v1 = vand.u32 2147483647, %v8357_v29  ;;  %4925 = vst.msk [vmem:[#allocation6] sm:$0xff] %vm104_vm0, %v4846_v7  ;;  %v2458_v3 = vand.u32 7, %v2302_v44  ;;  %vm4044_vm12 = vweird.f32 %v8344_v58 }
 0x33e   :  { %v4051_v56 = vor.u32 1.1754944e-38, %v4050_v48  ;;  %v4091_v40 = vor.u32 1.1754944e-38, %v4090_v12  ;;  %vm8392_vm13 = vcmp.eq.s32.totalorder %v2444_v39, 0  ;;  %v2798_v10 = vrot.slane %v2203_v14, 7 }
 0x33f   :  { %v5196_v37 = vpop.eup %5195  ;;  %vm4084_vm1 = vweird.f32 %v8357_v29  ;;  %v2235_v33 = vadd.f32 %v8261_v62, %v2007_v63  ;;  %vm8398_vm2 = vcmp.eq.s32.totalorder %v2444_v39, 7  ;;  %v9695_v41 = vrot.slane %v8145_v5, 1 }
 0x340   :  { %v2465_v19 = vand.u32 7, %v8371_v8  ;;  %v5198_v55 = vpop.eup %5197  ;;  %v4040_v47 = vmul.f32 %v5196_v37, %v8344_v58  ;;  %vm8409_vm3 = vcmp.eq.f32.partialorder %v4048_v38, 8.507059e+37  ;;  %v9698_v62 = vrot.slane %v8139_v43, 7 }
 0x341   :  { %v3090_v23 = vsel %vm3051_vm15, %v9695_v41, %v3089_v42  ;;  %v9699_v44 = vrot.slane %v8086_v2, 7  ;;  %vm8419_vm4 = vcmp.eq.s32.totalorder %v2458_v3, 0  ;;  %v4080_v42 = vmul.f32 %v5198_v55, %v8357_v29 }
 0x342   :  { %v2799_v18 = vsel %vm2762_vm14, %v9698_v62, %v2798_v10  ;;  %v4041_v7 = vsub.f32 1.0, %v4040_v47  ;;  %v3230_v14 = vsel %vm8398_vm2, 0.0, %v3090_v23  ;;  %vm4045_vm5 = vweird.f32 %v5196_v37 }
 0x343   :  { %v2801_v54 = vsel %vm2762_vm14, %v2798_v10, %v9699_v44  ;;  %v2941_v48 = vsel %vm8392_vm13, 0.0, %v2799_v18  ;;  %v9702_v43 = vmov %v9699_v44  ;;  %v4081_v39 = vsub.f32 1.0, %v4080_v42 }
 0x344   :  { %v2942_v8 = vsel %vm8377_vm11, 0.0, %v2801_v54  ;;  %v2803_v12 = vsel %vm2762_vm14, %v9702_v43, %v2802_v25  ;;  %v2973_v38 = vadd.f32 %v2941_v48, %v2235_v33  ;;  %vm8434_vm6 = vcmp.eq.s32.totalorder %v2465_v19, 0  ;;  %vm4046_vm11 = vmor %vm4044_vm12, %vm4045_vm5 }
 0x345   :  { %v2974_v63 = vadd.f32 %v2942_v8, %v8329_v22  ;;  %v2804_v45 = vrot.slane %v8342_v52, 7  ;;  %v4042_v15 = vmul.f32 %v5196_v37, %v4041_v7  ;;  %vm4085_vm8 = vweird.f32 %v5198_v55 }
 0x346   :  { %v3262_v2 = vadd.f32 %v3230_v14, %v2973_v38  ;;  %v2943_v41 = vsel %vm8419_vm4, 0.0, %v2803_v12  ;;  %v4082_v33 = vmul.f32 %v5198_v55, %v4081_v39  ;;  %vm8444_vm9 = vcmp.eq.s32.totalorder %v2458_v3, 7  ;;  %vm4086_vm10 = vmor %vm4084_vm1, %vm4085_vm8 }
 0x347   :  { %v2805_v22 = vsel %vm2762_vm14, %v2802_v25, %v2804_v45  ;;  %v3093_v23 = vrot.slane %v8355_v49, 1  ;;  %v4043_v47 = vadd.f32 %v5196_v37, %v4042_v15  ;;  %v3263_v62 = vadd.f32 %v3231_v50, %v2974_v63 }
 0x348   :  { %v3298_v18 = vadd.f32 %v8188_v24, %v3262_v2  ;;  %v2944_v44 = vsel %vm8434_vm6, 0.0, %v2805_v22  ;;  %v4083_v25 = vadd.f32 %v5198_v55, %v4082_v33  ;;  %v2975_v3 = vadd.f32 %v2943_v41, %v8351_v31 }
 0x349   :  { %v9707_v49 = vrot.slane %v8099_v46, 1  ;;  %v3095_v0 = vrot.slane %v8368_v27, 1  ;;  %v4047_v9 = vsel %vm4046_vm11, %v5196_v37, %v4043_v47  ;;  %v2976_v5 = vadd.f32 %v2944_v44, %v8353_v30 }
 0x34a   :  { %v8467_v50 = vmul.f32 0.70710677, %v3298_v18  ;;  %vm3008_vm13 = vcmp.eq.s32.totalorder %v2465_v19, 7  ;;  %v4052_v58 = vsel %vm8409_vm3, %v4051_v56, %v4047_v9  ;;  %v4087_v31 = vsel %vm4086_vm10, %v5198_v55, %v4083_v25  ;;  %v5233_v25 = vld [vmem:[#allocation2 + $0xa8] sm:$0xff] }
 0x34b   :  { %v3094_v54 = vsel %vm3051_vm15, %v9707_v49, %v3093_v23  ;;  %vm4089_vm12 = vcmp.eq.f32.partialorder %v4088_v1, 8.507059e+37  ;;  %v3096_v46 = vsel %vm3051_vm15, %v3093_v23, %v3095_v0  ;;  %v4053_v42 = vmul.f32 %v4052_v58, %v4028_v6 }
 0x34c   :  { %v4092_v37 = vsel %vm4089_vm12, %v4091_v40, %v4087_v31  ;;  %v4096_v29 = vmul.f32 %v8467_v50, %v8467_v50  ;;  %v3232_v48 = vsel %vm8444_vm9, 0.0, %v3094_v54  ;;  %v3299_v19 = vadd.f32 %v8188_v24, %v3263_v62 }
 0x34d   :  { %v4093_v30 = vmul.f32 %v4092_v37, %v8387_v53  ;;  %v3233_v13 = vsel %vm3008_vm13, 0.0, %v3096_v46  ;;  %v3264_v56 = vadd.f32 %v3232_v48, %v2975_v3  ;;  %v5044_v55 = vclamps-f32 %v4053_v42, 1.0  ;;  %v8536_v48 = vld [vmem:[#allocation2 + $0xf0] sm:$0xff] }
 0x34e   :  { %v8481_v1 = vmin.f32 %v4096_v29, 16.0  ;;  %v3265_v8 = vadd.f32 %v3233_v13, %v2976_v5  ;;  %v3328_v43 = vmul.f32 0.5, %v8191_v59  ;;  %v3329_v6 = vmul.f32 0.5, %v8196_v61 }
 0x34f   :  { %v5045_v40 = vclamps-f32 %v4093_v30, 1.0  ;;  %v8486_v12 = vadd.f32 %v8188_v24, %v3264_v56  ;;  %v4672_v7 = vadd.f32 1.0, %v5044_v55  ;;  %v8493_v39 = vmul.f32 0.5, %v3298_v18 }
 0x350   :  { %v4098_v38 = vmul.f32 2.1237322e-06, %v8481_v1  ;;  %v4109_v53 = vmul.f32 3.8918573e-05, %v8481_v1  ;;  %v8491_v63 = vadd.f32 %v8188_v24, %v3265_v8  ;;  %v8495_v10 = vmul.f32 0.5, %v3299_v19 }
 0x351   :  { %v4673_v14 = vadd.f32 1.0, %v5045_v40  ;;  %v8498_v59 = vmul.f32 0.70710677, %v8486_v12  ;;  %v4704_v61 = vmul.f32 %v4672_v7, %v3328_v43  ;;  %v8503_v22 = vmul.f32 0.70710677, %v3299_v19 }
 0x352   :  { %v4099_v15 = vadd.f32 0.00028619796, %v4098_v38  ;;  %v4110_v2 = vadd.f32 0.001143296, %v4109_v53  ;;  %v8501_v41 = vmul.f32 0.70710677, %v8491_v63  ;;  %v8509_v23 = vmul.f32 %v8076_v21, %v6592_v32 }
 0x353   :  { %v4705_v33 = vmul.f32 %v4673_v14, %v3329_v6  ;;  %v4176_v51 = vmul.f32 %v8498_v59, %v8498_v59  ;;  %v8517_v44 = vmul.f32 %v8292_v16, %v6592_v32  ;;  %v4736_v3 = vadd.f32 %v5233_v25, %v4704_v61 }
 0x354   :  { %v4100_v47 = vmul.f32 %v4099_v15, %v8481_v1  ;;  %v4111_v62 = vmul.f32 %v4110_v2, %v8481_v1  ;;  %v4216_v18 = vmul.f32 %v8501_v41, %v8501_v41  ;;  %v8524_v9 = vmul.f32 %v8076_v21, %v6606_v11 }
 0x355   :  { %v4737_v49 = vadd.f32 %v4705_v33, %v7886_v36  ;;  %v8520_v54 = vmin.f32 %v4176_v51, 16.0  ;;  %v8530_v46 = vmul.f32 %v8292_v16, %v6606_v11  ;;  %v4136_v37 = vmul.f32 %v8503_v22, %v8503_v22 }
 0x356   :  { %v4101_v5 = vadd.f32 0.0036580483, %v4100_v47  ;;  %v4112_v58 = vadd.f32 0.014752088, %v4111_v62  ;;  %v8526_v31 = vmin.f32 %v4216_v18, 16.0  ;;  %v8547_v43 = vmul.f32 %v8292_v16, %v6637_v26 }
 0x357   :  { %v4760_v42 = vpack.c.bf16 %v4737_v49, %v4736_v3  ;;  %v4178_v36 = vmul.f32 2.1237322e-06, %v8520_v54  ;;  %v4189_v29 = vmul.f32 3.8918573e-05, %v8520_v54  ;;  %v8543_v56 = vmin.f32 %v4136_v37, 16.0 }
 0x358   :  { %v4102_v21 = vmul.f32 %v4101_v5, %v8481_v1  ;;  %v4113_v30 = vmul.f32 %v4112_v58, %v8481_v1  ;;  %v4218_v19 = vmul.f32 2.1237322e-06, %v8526_v31  ;;  %v4229_v13 = vmul.f32 3.8918573e-05, %v8526_v31 }
 0x359   :  { %5076 = vmatmul.msk.bf16.vlgmr.msra.gmra.mxu2 %vm1650_vm7, %v4760_v42  ;;  %v4179_v55 = vadd.f32 0.00028619796, %v4178_v36  ;;  %v4190_v8 = vadd.f32 0.001143296, %v4189_v29  ;;  %v8551_v38 = vmul.f32 %v6637_v26, %v8536_v48  ;;  %v4138_v53 = vmul.f32 2.1237322e-06, %v8543_v56 }
 0x35a   :  { %v4103_v6 = vadd.f32 0.05243302, %v4102_v21  ;;  %v4114_v40 = vadd.f32 0.112945676, %v4113_v30  ;;  %v4219_v7 = vadd.f32 0.00028619796, %v4218_v19  ;;  %v1881_v3 = vmul.f32 %v6649_v60, %v8292_v16 }
 0x35b   :  { %v4149_v14 = vmul.f32 3.8918573e-05, %v8543_v56  ;;  %v4180_v61 = vmul.f32 %v4179_v55, %v8520_v54  ;;  %v4191_v15 = vmul.f32 %v4190_v8, %v8520_v54  ;;  %v4230_v47 = vadd.f32 0.001143296, %v4229_v13  ;;  %v8569_v13 = vld [vmem:[#allocation2 + $0xf8] sm:$0xff] }
 0x35c   :  { %v4104_v2 = vmul.f32 %v4103_v6, %v8481_v1  ;;  %v4115_v33 = vmul.f32 %v4114_v40, %v8481_v1  ;;  %v4220_v51 = vmul.f32 %v4219_v7, %v8526_v31  ;;  %v4139_v62 = vadd.f32 0.00028619796, %v4138_v53 }
 0x35d   :  { %v4150_v18 = vadd.f32 0.001143296, %v4149_v14  ;;  %v4181_v25 = vadd.f32 0.0036580483, %v4180_v61  ;;  %v4192_v58 = vadd.f32 0.014752088, %v4191_v15  ;;  %v1882_v42 = vmul.f32 %v8318_v57, %v6649_v60 }
 0x35e   :  { %v4105_v49 = vadd.f32 0.18741608, %v4104_v2  ;;  %v4116_v5 = vadd.f32 0.4994258, %v4115_v33  ;;  %v4140_v37 = vmul.f32 %v4139_v62, %v8543_v56  ;;  %v4221_v21 = vadd.f32 0.0036580483, %v4220_v51 }
 0x35f   :  { %v4151_v36 = vmul.f32 %v4150_v18, %v8543_v56  ;;  %v4182_v29 = vmul.f32 %v4181_v25, %v8520_v54  ;;  %v4193_v19 = vmul.f32 %v4192_v58, %v8520_v54  ;;  %v1914_v55 = vmul.f32 %v6656_v34, %v8292_v16 }
 0x360   :  { %v4117_v30 = vmul.f32 %v4116_v5, %v8481_v1  ;;  %v1915_v8 = vmul.f32 %v8318_v57, %v6656_v34  ;;  %v4141_v6 = vadd.f32 0.0036580483, %v4140_v37  ;;  %v4222_v53 = vmul.f32 %v4221_v21, %v8526_v31 }
 0x361   :  { %v4152_v40 = vadd.f32 0.014752088, %v4151_v36  ;;  %v4183_v7 = vadd.f32 0.05243302, %v4182_v29  ;;  %v4106_v14 = vmul.f32 %v4105_v49, %v8481_v1  ;;  %v4194_v15 = vadd.f32 0.112945676, %v4193_v19 }
 0x362   :  { %v8577_v61 = vadd.f32 1.0, %v4117_v30  ;;  %v4231_v2 = vmul.f32 %v4230_v47, %v8526_v31  ;;  %v4142_v33 = vmul.f32 %v4141_v6, %v8543_v56  ;;  %v4223_v62 = vadd.f32 0.05243302, %v4222_v53 }
 0x363   :  { %v4153_v51 = vmul.f32 %v4152_v40, %v8543_v56  ;;  %v4184_v16 = vmul.f32 %v4183_v7, %v8520_v54  ;;  %v1948_v18 = vmul.f32 %v8318_v57, %v6676_v20  ;;  %v1949_v1 = vmul.f32 %v6676_v20, %v8569_v13 }
 0x364   :  { %5199 = vrcp.f32 %v8577_v61  ;;  %v8589_v25 = vadd.f32 %v1881_v3, %v8509_v23  ;;  %v4143_v49 = vadd.f32 0.05243302, %v4142_v33  ;;  %v8592_v5 = vmul.f32 0.5, %v8486_v12 }
 0x365   :  { %v4154_v47 = vadd.f32 0.112945676, %v4153_v51  ;;  %v8595_v58 = vadd.f32 %v1882_v42, %v8517_v44  ;;  %v4107_v37 = vadd.f32 1.1283791, %v4106_v14  ;;  %v4185_v36 = vadd.f32 0.18741608, %v4184_v16 }
 0x366   :  { %v4195_v29 = vmul.f32 %v4194_v15, %v8520_v54  ;;  %v4224_v21 = vmul.f32 %v4223_v62, %v8526_v31  ;;  %v4128_v30 = vand.u32 2147483647, %v8577_v61  ;;  %v4144_v19 = vmul.f32 %v4143_v49, %v8543_v56 }
 0x367   :  { %v4155_v23 = vmul.f32 %v4154_v47, %v8543_v56  ;;  %v4232_v3 = vadd.f32 0.014752088, %v4231_v2  ;;  %v4130_v6 = vand.u32 2147483648, %v8577_v61  ;;  %v4186_v12 = vmul.f32 %v4185_v36, %v8520_v54  ;;  %v4847_v47 = vpop.f32.mrf.mxu1 }
 0x368   :  { %v4196_v40 = vadd.f32 0.4994258, %v4195_v29  ;;  %v4225_v44 = vadd.f32 0.18741608, %v4224_v21  ;;  %v4145_v42 = vadd.f32 0.18741608, %v4144_v19  ;;  %v8606_v14 = vadd.f32 %v1914_v55, %v8524_v9 }
 0x369   :  { %v4156_v7 = vadd.f32 0.4994258, %v4155_v23  ;;  %v4233_v53 = vmul.f32 %v4232_v3, %v8526_v31  ;;  %v4108_v33 = vmul.f32 %v4107_v37, %v8467_v50  ;;  %vm4124_vm1 = vweird.f32 %v8577_v61 }
 0x36a   :  { %v5200_v15 = vpop.eup %5199  ;;  %v8611_v2 = vmul.f32 0.5, %v8491_v63  ;;  %v4197_v51 = vmul.f32 %v4196_v40, %v8520_v54  ;;  %vm8615_vm2 = vcmp.eq.f32.partialorder %v4128_v30, 8.507059e+37  ;;  %v4146_v49 = vmul.f32 %v4145_v42, %v8543_v56 }
 0x36b   :  { %v4120_v16 = vmul.f32 %v5200_v15, %v8577_v61  ;;  %v4157_v9 = vmul.f32 %v4156_v7, %v8543_v56  ;;  %v4226_v55 = vmul.f32 %v4225_v44, %v8526_v31  ;;  %v4131_v50 = vor.u32 1.1754944e-38, %v4130_v6  ;;  %v2077_v7 = vld [vmem:[#allocation2 + $0xe8] sm:$0xff]  ;;  %v8660_v61 = vld [vmem:[#allocation2 + $0x100] sm:$0xff] }
 0x36c   :  { %v4187_v37 = vadd.f32 1.1283791, %v4186_v12  ;;  %v8622_v36 = vadd.f32 1.0, %v4197_v51  ;;  %v8625_v63 = vadd.f32 %v1915_v8, %v8530_v46  ;;  %v4848_v21 = vadd.f32 %v8349_v28, %v4847_v47 }
 0x36d   :  { %v4121_v54 = vsub.f32 1.0, %v4120_v16  ;;  %v8627_v29 = vadd.f32 1.0, %v4157_v9  ;;  %v4234_v30 = vadd.f32 0.112945676, %v4233_v53  ;;  %vm4125_vm3 = vweird.f32 %v5200_v15 }
 0x36e   :  { %v4147_v19 = vadd.f32 1.1283791, %v4146_v49  ;;  %5201 = vrcp.f32 %v8622_v36  ;;  %v4210_v56 = vand.u32 2147483648, %v8622_v36  ;;  %4926 = vst.msk [vmem:[#allocation6 + $0x8] sm:$0xff] %vm104_vm0, %v4848_v21  ;;  %v4208_v46 = vand.u32 2147483647, %v8622_v36  ;;  %vm4126_vm5 = vmor %vm4124_vm1, %vm4125_vm3 }
 0x36f   :  { %v4122_v23 = vmul.f32 %v5200_v15, %v4121_v54  ;;  %5203 = vrcp.f32 %v8627_v29  ;;  %v4227_v8 = vadd.f32 1.1283791, %v4226_v55  ;;  %v4170_v3 = vand.u32 2147483648, %v8627_v29  ;;  %v4850_v47 = vpop.f32.mrf.mxu1 }
 0x370   :  { %v8637_v6 = vmul.f32 %v4187_v37, %v8498_v59  ;;  %v2044_v12 = vadd.f32 %v1948_v18, %v8547_v43  ;;  %v2045_v40 = vadd.f32 %v1949_v1, %v8551_v38  ;;  %vm4204_vm4 = vweird.f32 %v8622_v36 }
 0x371   :  { %v4123_v44 = vadd.f32 %v5200_v15, %v4122_v23  ;;  %v4235_v42 = vmul.f32 %v4234_v30, %v8526_v31  ;;  %v2109_v53 = vmul.f32 %v6698_v17, %v8318_v57  ;;  %v8649_v59 = vmul.f32 %v4147_v19, %v8503_v22 }
 0x372   :  { %v4168_v43 = vand.u32 2147483647, %v8627_v29  ;;  %v4211_v18 = vor.u32 1.1754944e-38, %v4210_v56  ;;  %v2110_v38 = vmul.f32 %v6698_v17, %v2077_v7  ;;  %v4171_v51 = vor.u32 1.1754944e-38, %v4170_v3 }
 0x373   :  { %v4127_v1 = vsel %vm4126_vm5, %v5200_v15, %v4123_v44  ;;  %vm8653_vm6 = vcmp.eq.f32.partialorder %v4208_v46, 8.507059e+37  ;;  %v8658_v49 = vmul.f32 %v4227_v8, %v8501_v41  ;;  %v4236_v9 = vadd.f32 0.4994258, %v4235_v42  ;;  %v8671_v41 = vld [vmem:[%s9514_s3 + $0x8] ss:$0 sm:$0xff] }
 0x374   :  { %v5202_v55 = vpop.eup %5201  ;;  %v4132_v22 = vsel %vm8615_vm2, %v4131_v50, %v4127_v1  ;;  %vm4164_vm8 = vweird.f32 %v8627_v29  ;;  %v2142_v15 = vmul.f32 %v6706_v35, %v8318_v57  ;;  %v2143_v37 = vmul.f32 %v6706_v35, %v2077_v7 }
 0x375   :  { %v2176_v54 = vmul.f32 %v8671_v41, %v2077_v7  ;;  %v5204_v21 = vpop.eup %5203  ;;  %v4133_v30 = vmul.f32 %v4132_v22, %v4108_v33  ;;  %v4851_v62 = vadd.f32 %v8349_v28, %v4850_v47  ;;  %v4200_v50 = vmul.f32 %v5202_v55, %v8622_v36 }
 0x376   :  { %v2207_v19 = vadd.f32 %v2109_v53, %v8589_v25  ;;  %v4160_v56 = vmul.f32 %v5204_v21, %v8627_v29  ;;  %vm8678_vm9 = vcmp.eq.f32.partialorder %v4168_v43, 8.507059e+37  ;;  %v4237_v23 = vmul.f32 %v4236_v9, %v8526_v31 }
 0x377   :  { %v2177_v46 = vmul.f32 %v8671_v41, %v8660_v61  ;;  %v8686_v8 = vadd.f32 %v2110_v38, %v8595_v58  ;;  %v5046_v33 = vclamps-f32 %v4133_v30, 1.0  ;;  %vm4165_vm11 = vweird.f32 %v5204_v21  ;;  %4927 = vst.msk [vmem:[#allocation6 + $0x10] sm:$0xff] %vm104_vm0, %v4851_v62 }
 0x378   :  { %v4201_v3 = vsub.f32 1.0, %v4200_v50  ;;  %vm4205_vm10 = vweird.f32 %v5202_v55  ;;  %v4161_v25 = vsub.f32 1.0, %v4160_v56  ;;  %v8689_v44 = vadd.f32 1.0, %v4237_v23  ;;  %v4852_v50 = vpop.f32.mrf.mxu1  ;;  %vm4166_vm1 = vmor %vm4164_vm8, %vm4165_vm11 }
 0x379   :  { %v2239_v42 = vadd.f32 %v2142_v15, %v8606_v14  ;;  %v2304_v7 = vadd.s32 176, %v6743_v4  ;;  %v4674_v31 = vadd.f32 1.0, %v5046_v33  ;;  %v2305_v43 = vadd.s32 184, %v6743_v4  ;;  %vm8696_vm13 = vmor %vm4204_vm4, %vm4205_vm10 }
 0x37a   :  { %v4202_v53 = vmul.f32 %v5202_v55, %v4201_v3  ;;  %v2806_v1 = vrot.slane %v2207_v19, 7  ;;  %v4162_v58 = vmul.f32 %v5204_v21, %v4161_v25  ;;  %5205 = vrcp.f32 %v8689_v44 }
 0x37b   :  { %v2240_v9 = vadd.f32 %v2143_v37, %v8625_v63  ;;  %v2272_v22 = vadd.f32 %v2176_v54, %v2044_v12  ;;  %vm4244_vm12 = vweird.f32 %v8689_v44  ;;  %v8703_v47 = vadd.f32 %v2177_v46, %v2045_v40 }
 0x37c   :  { %v4203_v14 = vadd.f32 %v5202_v55, %v4202_v53  ;;  %v2472_v15 = vand.u32 7, %v2304_v7  ;;  %v4163_v30 = vadd.f32 %v5204_v21, %v4162_v58  ;;  %v4248_v62 = vand.u32 2147483647, %v8689_v44  ;;  %v5235_v58 = vld [vmem:[#allocation2 + $0xb8] sm:$0xff] }
 0x37d   :  { %v2479_v36 = vand.u32 7, %v2305_v43  ;;  %v2807_v19 = vsel %vm2762_vm14, %v2804_v45, %v2806_v1  ;;  %v4706_v63 = vmul.f32 %v4674_v31, %v8493_v39  ;;  %v4250_v40 = vand.u32 2147483648, %v8689_v44 }
 0x37e   :  { %v4207_v12 = vsel %vm8696_vm13, %v5202_v55, %v4203_v14  ;;  %v4853_v37 = vadd.f32 %v8349_v28, %v4852_v50  ;;  %v4167_v54 = vsel %vm4166_vm1, %v5204_v21, %v4163_v30  ;;  %vm2720_vm2 = vcmp.eq.s32.totalorder %v2472_v15, 0 }
 0x37f   :  { %v4212_v56 = vsel %vm8653_vm6, %v4211_v18, %v4207_v12  ;;  %vm8719_vm3 = vcmp.eq.s32.totalorder %v2479_v36, 0  ;;  %v4172_v45 = vsel %vm8678_vm9, %v4171_v51, %v4167_v54  ;;  %v2808_v29 = vrot.slane %v8686_v8, 7 }
 0x380   :  { %v4213_v39 = vmul.f32 %v4212_v56, %v8637_v6  ;;  %4928 = vst.msk [vmem:[#allocation6 + $0x18] sm:$0xff] %vm104_vm0, %v4853_v37  ;;  %v2945_v55 = vsel %vm2720_vm2, 0.0, %v2807_v19  ;;  %v5206_v23 = vpop.eup %5205  ;;  %v4173_v21 = vmul.f32 %v4172_v45, %v8649_v59  ;;  %vm8729_vm4 = vcmp.eq.f32.partialorder %v4248_v62, 8.507059e+37  ;;  %v4855_v14 = vpop.f32.mrf.mxu1 }
 0x381   :  { %v2977_v16 = vadd.f32 %v2945_v55, %v2239_v42  ;;  %vm8733_vm5 = vcmp.eq.s32.totalorder %v2472_v15, 7  ;;  %v4240_v6 = vmul.f32 %v5206_v23, %v8689_v44  ;;  %v2809_v57 = vsel %vm2762_vm14, %v2806_v1, %v2808_v29  ;;  %v5236_v44 = vld [vmem:[#allocation2 + $0xc0] sm:$0xff] }
 0x382   :  { %v5048_v51 = vclamps-f32 %v4213_v39, 1.0  ;;  %vm8741_vm6 = vcmp.eq.s32.totalorder %v2479_v36, 7  ;;  %v5047_v59 = vclamps-f32 %v4173_v21, 1.0  ;;  %v2946_v3 = vsel %vm8719_vm3, 0.0, %v2809_v57 }
 0x383   :  { %v3097_v25 = vrot.slane %v2272_v22, 1  ;;  %v3099_v42 = vrot.slane %v8703_v47, 1  ;;  %v4241_v7 = vsub.f32 1.0, %v4240_v6  ;;  %vm4245_vm8 = vweird.f32 %v5206_v23  ;;  %v8801_v6 = vld [vmem:[#allocation2 + $0x108] sm:$0xff] }
 0x384   :  { %v4676_v31 = vadd.f32 1.0, %v5048_v51  ;;  %v2978_v53 = vadd.f32 %v2946_v3, %v2240_v9  ;;  %v4675_v43 = vadd.f32 1.0, %v5047_v59  ;;  %v4738_v38 = vadd.f32 %v5235_v58, %v4706_v63  ;;  %vm8760_vm9 = vmor %vm4244_vm12, %vm4245_vm8 }
 0x385   :  { %v3098_v1 = vsel %vm3051_vm15, %v3095_v0, %v3097_v25  ;;  %v3100_v15 = vsel %vm3051_vm15, %v3097_v25, %v3099_v42  ;;  %v4242_v30 = vmul.f32 %v5206_v23, %v4241_v7  ;;  %v4251_v22 = vor.u32 1.1754944e-38, %v4250_v40  ;;  %v5237_v25 = vld [vmem:[#allocation2 + $0xc8] sm:$0xff] }
 0x386   :  { %v4856_v62 = vadd.f32 %v8349_v28, %v4855_v14  ;;  %v3234_v50 = vsel %vm8733_vm5, 0.0, %v3098_v1  ;;  %v4707_v9 = vmul.f32 %v4675_v43, %v8495_v10  ;;  %v3235_v27 = vsel %vm8741_vm6, 0.0, %v3100_v15 }
 0x387   :  { %v3266_v0 = vadd.f32 %v3234_v50, %v2977_v16  ;;  %v1752_v19 = vmul.f32 %v6592_v32, %v8536_v48  ;;  %v4243_v63 = vadd.f32 %v5206_v23, %v4242_v30  ;;  %v4708_v12 = vmul.f32 %v4676_v31, %v8592_v5 }
 0x388   :  { %4929 = vst.msk [vmem:[#allocation6 + $0x20] sm:$0xff] %vm104_vm0, %v4856_v62  ;;  %v3267_v40 = vadd.f32 %v3235_v27, %v2978_v53  ;;  %v1753_v10 = vmul.f32 %v8569_v13, %v6592_v32  ;;  %v4739_v37 = vadd.f32 %v5236_v44, %v4707_v9  ;;  %v1785_v56 = vmul.f32 %v6606_v11, %v8536_v48 }
 0x389   :  { %v8773_v54 = vadd.f32 %v8188_v24, %v3266_v0  ;;  %v1786_v52 = vmul.f32 %v8569_v13, %v6606_v11  ;;  %v4247_v5 = vsel %vm8760_vm9, %v5206_v23, %v4243_v63  ;;  %v1819_v39 = vmul.f32 %v8569_v13, %v6637_v26 }
 0x38a   :  { %v8782_v45 = vadd.f32 %v8188_v24, %v3267_v40  ;;  %v1883_v55 = vmul.f32 %v6649_v60, %v8569_v13  ;;  %v4761_v21 = vpack.c.bf16 %v4739_v37, %v4738_v38  ;;  %v4252_v16 = vsel %vm8729_vm4, %v4251_v22, %v4247_v5  ;;  %v8820_v22 = vld [vmem:[#allocation2 + $0x110] sm:$0xff] }
 0x38b   :  { %v8791_v48 = vmul.f32 0.70710677, %v8773_v54  ;;  %v1884_v46 = vmul.f32 %v8660_v61, %v6649_v60  ;;  %v4253_v23 = vmul.f32 %v4252_v16, %v8658_v49  ;;  %v1820_v51 = vmul.f32 %v8660_v61, %v6637_v26  ;;  %v5238_v37 = vld [vmem:[#allocation2 + $0xd0] sm:$0xff] }
 0x38c   :  { %v8797_v24 = vmul.f32 0.70710677, %v8782_v45  ;;  %v1916_v18 = vmul.f32 %v6656_v34, %v8569_v13  ;;  %5077 = vmatmul.msk.bf16.gmra.mxu2 %vm1650_vm7, %v4761_v21  ;;  %v1917_v33 = vmul.f32 %v8660_v61, %v6656_v34  ;;  %v1950_v49 = vmul.f32 %v8660_v61, %v6676_v20 }
 0x38d   :  { %v4256_v57 = vmul.f32 %v8791_v48, %v8791_v48  ;;  %v1951_v59 = vmul.f32 %v6676_v20, %v8801_v6  ;;  %v5049_v3 = vclamps-f32 %v4253_v23, 1.0  ;;  %v4740_v7 = vadd.f32 %v5237_v25, %v4708_v12 }
 0x38e   :  { %v4296_v13 = vmul.f32 %v8797_v24, %v8797_v24  ;;  %v1981_v31 = vadd.f32 %v1883_v55, %v1752_v19  ;;  %v1982_v43 = vadd.f32 %v1884_v46, %v1753_v10  ;;  %v2013_v58 = vadd.f32 %v1916_v18, %v1785_v56 }
 0x38f   :  { %v8816_v53 = vmin.f32 %v4256_v57, 16.0  ;;  %v2014_v38 = vadd.f32 %v1917_v33, %v1786_v52  ;;  %v4677_v14 = vadd.f32 1.0, %v5049_v3  ;;  %v2046_v15 = vadd.f32 %v1950_v49, %v1819_v39 }
 0x390   :  { %v8818_v1 = vmin.f32 %v4296_v13, 16.0  ;;  %v2047_v30 = vadd.f32 %v1951_v59, %v1820_v51  ;;  %v2111_v9 = vmul.f32 %v6698_v17, %v8660_v61  ;;  %v2112_v36 = vmul.f32 %v6698_v17, %v8801_v6 }
 0x391   :  { %v4258_v62 = vmul.f32 2.1237322e-06, %v8816_v53  ;;  %v4269_v50 = vmul.f32 3.8918573e-05, %v8816_v53  ;;  %v4709_v27 = vmul.f32 %v4677_v14, %v8611_v2  ;;  %v2144_v63 = vmul.f32 %v6706_v35, %v8660_v61 }
 0x392   :  { %v4298_v0 = vmul.f32 2.1237322e-06, %v8818_v1  ;;  %v4309_v19 = vmul.f32 3.8918573e-05, %v8818_v1  ;;  %v2178_v10 = vmul.f32 %v8671_v41, %v8801_v6  ;;  %v2179_v44 = vmul.f32 %v8671_v41, %v8820_v22 }
 0x393   :  { %v4259_v12 = vadd.f32 0.00028619796, %v4258_v62  ;;  %v4270_v40 = vadd.f32 0.001143296, %v4269_v50  ;;  %v4741_v56 = vadd.f32 %v5238_v37, %v4709_v27  ;;  %v2145_v2 = vmul.f32 %v6706_v35, %v8801_v6 }
 0x394   :  { %v4299_v52 = vadd.f32 0.00028619796, %v4298_v0  ;;  %v4310_v5 = vadd.f32 0.001143296, %v4309_v19  ;;  %v2209_v21 = vadd.f32 %v2111_v9, %v1981_v31  ;;  %v8841_v16 = vadd.f32 %v2112_v36, %v1982_v43 }
 0x395   :  { %v4260_v39 = vmul.f32 %v4259_v12, %v8816_v53  ;;  %v4271_v55 = vmul.f32 %v4270_v40, %v8816_v53  ;;  %v4762_v46 = vpack.c.bf16 %v4741_v56, %v4740_v7  ;;  %v2241_v18 = vadd.f32 %v2144_v63, %v2013_v58 }
 0x396   :  { %v4300_v23 = vmul.f32 %v4299_v52, %v8818_v1  ;;  %v4311_v51 = vmul.f32 %v4310_v5, %v8818_v1  ;;  %v2274_v49 = vadd.f32 %v2178_v10, %v2046_v15  ;;  %v8845_v59 = vadd.f32 %v2179_v44, %v2047_v30 }
 0x397   :  { %v4261_v57 = vadd.f32 0.0036580483, %v4260_v39  ;;  %v4272_v33 = vadd.f32 0.014752088, %v4271_v55  ;;  %v2306_v13 = vadd.s32 192, %v6743_v4  ;;  %v2307_v14 = vadd.s32 200, %v6743_v4 }
 0x398   :  { %v4301_v3 = vadd.f32 0.0036580483, %v4300_v23  ;;  %v4312_v25 = vadd.f32 0.014752088, %v4311_v51  ;;  %v2810_v43 = vrot.slane %v2209_v21, 7  ;;  %v9530_v62 = vrot.slane %v8841_v16, 7 }
 0x399   :  { %v4262_v31 = vmul.f32 %v4261_v57, %v8816_v53  ;;  %v4273_v7 = vmul.f32 %v4272_v33, %v8816_v53  ;;  %v2486_v15 = vand.u32 7, %v2306_v13  ;;  %v2493_v30 = vand.u32 7, %v2307_v14  ;;  %v4857_v14 = vpop.f32.mrf.mxu1 }
 0x39a   :  { %v4302_v58 = vmul.f32 %v4301_v3, %v8818_v1  ;;  %v4313_v50 = vmul.f32 %v4312_v25, %v8818_v1  ;;  %v2811_v27 = vsel %vm2762_vm14, %v2808_v29, %v2810_v43  ;;  %v2813_v0 = vsel %vm2762_vm14, %v2810_v43, %v9530_v62 }
 0x39b   :  { %v4263_v9 = vadd.f32 0.05243302, %v4262_v31  ;;  %v4274_v36 = vadd.f32 0.112945676, %v4273_v7  ;;  %vm2722_vm11 = vcmp.eq.s32.totalorder %v2486_v15, 0  ;;  %vm8860_vm10 = vcmp.eq.s32.totalorder %v2493_v30, 0 }
 0x39c   :  { %v4303_v19 = vadd.f32 0.05243302, %v4302_v58  ;;  %v4314_v63 = vadd.f32 0.112945676, %v4313_v50  ;;  %5078 = vmatmul.msk.bf16.gmra.mxu2 %vm1650_vm7, %v4762_v46  ;;  %v2947_v8 = vsel %vm2722_vm11, 0.0, %v2811_v27  ;;  %v2242_v37 = vadd.f32 %v2145_v2, %v2014_v38 }
 0x39d   :  { %v4264_v40 = vmul.f32 %v4263_v9, %v8816_v53  ;;  %v4275_v10 = vmul.f32 %v4274_v36, %v8816_v53  ;;  %v2948_v56 = vsel %vm8860_vm10, 0.0, %v2813_v0  ;;  %v2979_v39 = vadd.f32 %v2947_v8, %v2241_v18 }
 0x39e   :  { %v4304_v29 = vmul.f32 %v4303_v19, %v8818_v1  ;;  %v4315_v44 = vmul.f32 %v4314_v63, %v8818_v1  ;;  %vm8871_vm13 = vcmp.eq.s32.totalorder %v2486_v15, 7  ;;  %v3101_v23 = vrot.slane %v2274_v49, 1 }
 0x39f   :  { %v4265_v52 = vadd.f32 0.18741608, %v4264_v40  ;;  %v4276_v5 = vadd.f32 0.4994258, %v4275_v10  ;;  %v9529_v51 = vrot.slane %v8845_v59, 1  ;;  %vm8878_vm12 = vcmp.eq.s32.totalorder %v2493_v30, 7 }
 0x3a0   :  { %v4305_v21 = vadd.f32 0.18741608, %v4304_v29  ;;  %v4316_v46 = vadd.f32 0.4994258, %v4315_v44  ;;  %v3102_v3 = vsel %vm3051_vm15, %v3099_v42, %v3101_v23  ;;  %v4858_v43 = vadd.f32 %v8349_v28, %v4857_v14 }
 0x3a1   :  { %v4266_v57 = vmul.f32 %v4265_v52, %v8816_v53  ;;  %v4277_v33 = vmul.f32 %v4276_v5, %v8816_v53  ;;  %v3104_v49 = vsel %vm3051_vm15, %v3101_v23, %v9529_v51  ;;  %v2980_v53 = vadd.f32 %v2948_v56, %v2242_v37  ;;  %v4860_v52 = vpop.f32.mrf.mxu1 }
 0x3a2   :  { %v4306_v2 = vmul.f32 %v4305_v21, %v8818_v1  ;;  %v4317_v18 = vmul.f32 %v4316_v46, %v8818_v1  ;;  %v3236_v31 = vsel %vm8871_vm13, 0.0, %v3102_v3  ;;  %v3237_v47 = vsel %vm8878_vm12, 0.0, %v3104_v49  ;;  %4930 = vst.msk [vmem:[#allocation6 + $0x28] sm:$0xff] %vm104_vm0, %v4858_v43 }
 0x3a3   :  { %v4267_v25 = vadd.f32 1.1283791, %v4266_v57  ;;  %v4278_v13 = vadd.f32 1.0, %v4277_v33  ;;  %v3268_v1 = vadd.f32 %v3236_v31, %v2979_v39  ;;  %v8898_v58 = vmul.f32 0.5, %v8773_v54  ;;  %v8913_v54 = vld [vmem:[%s9515_s4] ss:$0 sm:$0xff] }
 0x3a4   :  { %v8892_v7 = vadd.f32 1.0, %v4317_v18  ;;  %v4307_v42 = vadd.f32 1.1283791, %v4306_v2  ;;  %v8903_v30 = vmul.f32 0.5, %v8782_v45  ;;  %v3269_v27 = vadd.f32 %v3237_v47, %v2980_v53 }
 0x3a5   :  { %5207 = vrcp.f32 %v4278_v13  ;;  %v4288_v50 = vand.u32 2147483647, %v4278_v13  ;;  %v4290_v15 = vand.u32 2147483648, %v4278_v13  ;;  %v8908_v0 = vmul.f32 %v4267_v25, %v8791_v48 }
 0x3a6   :  { %5209 = vrcp.f32 %v8892_v7  ;;  %v4328_v9 = vand.u32 2147483647, %v8892_v7  ;;  %v4330_v36 = vand.u32 2147483648, %v8892_v7  ;;  %v3304_v19 = vadd.f32 %v8913_v54, %v3268_v1 }
 0x3a7   :  { %v1754_v63 = vmul.f32 %v8660_v61, %v6592_v32  ;;  %v1755_v45 = vmul.f32 %v8801_v6, %v6592_v32  ;;  %vm4284_vm1 = vweird.f32 %v4278_v13  ;;  %v8921_v12 = vmul.f32 %v4307_v42, %v8797_v24 }
 0x3a8   :  { %vm4324_vm2 = vweird.f32 %v8892_v7  ;;  %v8925_v48 = vadd.f32 %v8913_v54, %v3269_v27  ;;  %vm8927_vm3 = vcmp.eq.f32.partialorder %v4288_v50, 8.507059e+37  ;;  %v4291_v10 = vor.u32 1.1754944e-38, %v4290_v15 }
 0x3a9   :  { %v8931_v8 = vmul.f32 0.70710677, %v3304_v19  ;;  %v1787_v29 = vmul.f32 %v8660_v61, %v6606_v11  ;;  %v8937_v44 = vmul.f32 %v8801_v6, %v6606_v11  ;;  %vm8939_vm4 = vcmp.eq.f32.partialorder %v4328_v9, 8.507059e+37 }
 0x3aa   :  { %v4331_v56 = vor.u32 1.1754944e-38, %v4330_v36  ;;  %v8944_v5 = vmul.f32 0.70710677, %v8925_v48  ;;  %v1821_v39 = vmul.f32 %v8801_v6, %v6637_v26  ;;  %v4861_v46 = vadd.f32 %v8349_v28, %v4860_v52  ;;  %v8980_v36 = vld [vmem:[#allocation2 + $0x118] sm:$0xff] }
 0x3ab   :  { %v5208_v24 = vpop.eup %5207  ;;  %v8949_v23 = vmul.f32 0.5, %v3304_v19  ;;  %v4336_v57 = vmul.f32 %v8931_v8, %v8931_v8  ;;  %v1822_v2 = vmul.f32 %v8820_v22, %v6637_v26  ;;  %v1885_v18 = vmul.f32 %v6649_v60, %v8801_v6 }
 0x3ac   :  { %v5210_v55 = vpop.eup %5209  ;;  %v4280_v21 = vmul.f32 %v5208_v24, %v4278_v13  ;;  %v4376_v38 = vmul.f32 %v8944_v5, %v8944_v5  ;;  %vm4285_vm5 = vweird.f32 %v5208_v24  ;;  %4931 = vst.msk [vmem:[#allocation6 + $0x30] sm:$0xff] %vm104_vm0, %v4861_v46  ;;  %v1886_v49 = vmul.f32 %v8820_v22, %v6649_v60 }
 0x3ad   :  { %v4320_v33 = vmul.f32 %v5210_v55, %v8892_v7  ;;  %v8961_v28 = vmin.f32 %v4336_v57, 16.0  ;;  %vm4325_vm6 = vweird.f32 %v5210_v55  ;;  %v1918_v53 = vmul.f32 %v6656_v34, %v8801_v6  ;;  %vm8974_vm8 = vmor %vm4284_vm1, %vm4285_vm5 }
 0x3ae   :  { %v4281_v3 = vsub.f32 1.0, %v4280_v21  ;;  %v8965_v14 = vmin.f32 %v4376_v38, 16.0  ;;  %v1919_v1 = vmul.f32 %v8820_v22, %v6656_v34  ;;  %v1952_v27 = vmul.f32 %v8820_v22, %v6676_v20  ;;  %vm8986_vm9 = vmor %vm4324_vm2, %vm4325_vm6 }
 0x3af   :  { %v4321_v25 = vsub.f32 1.0, %v4320_v33  ;;  %v4338_v43 = vmul.f32 2.1237322e-06, %v8961_v28  ;;  %v4349_v47 = vmul.f32 3.8918573e-05, %v8961_v28  ;;  %v1953_v46 = vmul.f32 %v6676_v20, %v8980_v36 }
 0x3b0   :  { %v4282_v31 = vmul.f32 %v5208_v24, %v4281_v3  ;;  %v4378_v15 = vmul.f32 2.1237322e-06, %v8965_v14  ;;  %v4389_v9 = vmul.f32 3.8918573e-05, %v8965_v14  ;;  %v1983_v3 = vadd.f32 %v1885_v18, %v1754_v63 }
 0x3b1   :  { %v4322_v50 = vmul.f32 %v5210_v55, %v4321_v25  ;;  %v4339_v13 = vadd.f32 0.00028619796, %v4338_v43  ;;  %v4350_v21 = vadd.f32 0.001143296, %v4349_v47  ;;  %v1984_v51 = vadd.f32 %v1886_v49, %v1755_v45 }
 0x3b2   :  { %v4283_v19 = vadd.f32 %v5208_v24, %v4282_v31  ;;  %v4379_v33 = vadd.f32 0.00028619796, %v4378_v15  ;;  %v4390_v38 = vadd.f32 0.001143296, %v4389_v9  ;;  %v2015_v40 = vadd.f32 %v1918_v53, %v1787_v29 }
 0x3b3   :  { %v4323_v57 = vadd.f32 %v5210_v55, %v4322_v50  ;;  %v4340_v31 = vmul.f32 %v4339_v13, %v8961_v28  ;;  %v4351_v7 = vmul.f32 %v4350_v21, %v8961_v28  ;;  %v2048_v37 = vadd.f32 %v1952_v27, %v1821_v39 }
 0x3b4   :  { %v4287_v25 = vsel %vm8974_vm8, %v5208_v24, %v4283_v19  ;;  %v4380_v47 = vmul.f32 %v4379_v33, %v8965_v14  ;;  %v4391_v50 = vmul.f32 %v4390_v38, %v8965_v14  ;;  %v2016_v19 = vadd.f32 %v1919_v1, %v8937_v44 }
 0x3b5   :  { %v4292_v62 = vsel %vm8927_vm3, %v4291_v10, %v4287_v25  ;;  %v4327_v43 = vsel %vm8986_vm9, %v5210_v55, %v4323_v57  ;;  %v4341_v18 = vadd.f32 0.0036580483, %v4340_v31  ;;  %v4352_v42 = vadd.f32 0.014752088, %v4351_v7  ;;  %v9021_v7 = vld [vmem:[#allocation2 + $0x120] sm:$0xff] }
 0x3b6   :  { %v4293_v63 = vmul.f32 %v4292_v62, %v8908_v0  ;;  %v4332_v24 = vsel %vm8939_vm4, %v4331_v56, %v4327_v43  ;;  %v4381_v45 = vadd.f32 0.0036580483, %v4380_v47  ;;  %v4392_v49 = vadd.f32 0.014752088, %v4391_v50  ;;  %v5240_v50 = vld [vmem:[#allocation2 + $0xd8] sm:$0xff] }
 0x3b7   :  { %v4333_v15 = vmul.f32 %v4332_v24, %v8921_v12  ;;  %v4342_v9 = vmul.f32 %v4341_v18, %v8961_v28  ;;  %v4353_v55 = vmul.f32 %v4352_v42, %v8961_v28  ;;  %v2113_v12 = vmul.f32 %v6698_v17, %v8820_v22  ;;  %v5241_v24 = vld [vmem:[#allocation2 + $0xe0] sm:$0xff] }
 0x3b8   :  { %v5050_v10 = vclamps-f32 %v4293_v63, 1.0  ;;  %v4382_v62 = vmul.f32 %v4381_v45, %v8965_v14  ;;  %v4393_v0 = vmul.f32 %v4392_v49, %v8965_v14  ;;  %v2049_v33 = vadd.f32 %v1953_v46, %v1822_v2 }
 0x3b9   :  { %v5051_v52 = vclamps-f32 %v4333_v15, 1.0  ;;  %v4343_v13 = vadd.f32 0.05243302, %v4342_v9  ;;  %v4354_v21 = vadd.f32 0.112945676, %v4353_v55  ;;  %v2114_v25 = vmul.f32 %v6698_v17, %v8980_v36 }
 0x3ba   :  { %v4678_v56 = vadd.f32 1.0, %v5050_v10  ;;  %v4383_v53 = vadd.f32 0.05243302, %v4382_v62  ;;  %v4394_v57 = vadd.f32 0.112945676, %v4393_v0  ;;  %v2146_v2 = vmul.f32 %v6706_v35, %v8820_v22 }
 0x3bb   :  { %v4679_v29 = vadd.f32 1.0, %v5051_v52  ;;  %v4344_v44 = vmul.f32 %v4343_v13, %v8961_v28  ;;  %v4355_v1 = vmul.f32 %v4354_v21, %v8961_v28  ;;  %v2147_v43 = vmul.f32 %v6706_v35, %v8980_v36 }
 0x3bc   :  { %v4710_v38 = vmul.f32 %v4678_v56, %v8898_v58  ;;  %v4384_v27 = vmul.f32 %v4383_v53, %v8965_v14  ;;  %v4395_v31 = vmul.f32 %v4394_v57, %v8965_v14  ;;  %v2211_v47 = vadd.f32 %v2113_v12, %v1983_v3  ;;  %v4862_v56 = vpop.f32.mrf.mxu1  ;;  %v9047_v12 = vld [vmem:[%s9517_s6] ss:$0 sm:$0xff] }
 0x3bd   :  { %v4711_v39 = vmul.f32 %v4679_v29, %v8903_v30  ;;  %v4345_v46 = vadd.f32 0.18741608, %v4344_v44  ;;  %v4356_v58 = vadd.f32 0.4994258, %v4355_v1  ;;  %v2180_v49 = vmul.f32 %v8671_v41, %v8980_v36 }
 0x3be   :  { %v4742_v63 = vadd.f32 %v5240_v50, %v4710_v38  ;;  %v4385_v30 = vadd.f32 0.18741608, %v4384_v27  ;;  %v4396_v42 = vadd.f32 0.4994258, %v4395_v31  ;;  %v2181_v10 = vmul.f32 %v8671_v41, %v9021_v7 }
 0x3bf   :  { %v4743_v18 = vadd.f32 %v5241_v24, %v4711_v39  ;;  %v4346_v15 = vmul.f32 %v4345_v46, %v8961_v28  ;;  %v4357_v45 = vmul.f32 %v4356_v58, %v8961_v28  ;;  %v2308_v52 = vadd.s32 208, %v6743_v4 }
 0x3c0   :  { %v4386_v55 = vmul.f32 %v4385_v30, %v8965_v14  ;;  %v4397_v3 = vmul.f32 %v4396_v42, %v8965_v14  ;;  %v9038_v13 = vadd.f32 %v2114_v25, %v1984_v51  ;;  %v2309_v28 = vadd.s32 216, %v6743_v4 }
 0x3c1   :  { %v4763_v9 = vpack.c.bf16 %v4743_v18, %v4742_v63  ;;  %v4347_v62 = vadd.f32 1.1283791, %v4346_v15  ;;  %v9036_v0 = vadd.f32 1.0, %v4357_v45  ;;  %v4863_v14 = vadd.f32 %v9047_v12, %v4862_v56 }
 0x3c2   :  { %v9042_v21 = vadd.f32 1.0, %v4397_v3  ;;  %v2500_v29 = vand.u32 7, %v2308_v52  ;;  %v2814_v53 = vrot.slane %v2211_v47, 7  ;;  %v9051_v57 = vmul.f32 0.5, %v8925_v48 }
 0x3c3   :  { %5079 = vmatmul.msk.bf16.gmra.mxu2 %vm1650_vm7, %v4763_v9  ;;  %5211 = vrcp.f32 %v9036_v0  ;;  %v4387_v51 = vadd.f32 1.1283791, %v4386_v55  ;;  %v2243_v38 = vadd.f32 %v2146_v2, %v2015_v40  ;;  %4932 = vst.msk [vmem:[#allocation6 + $0x38] sm:$0xff] %vm104_vm0, %v4863_v14  ;;  %v2244_v44 = vadd.f32 %v2147_v43, %v2016_v19 }
 0x3c4   :  { %5213 = vrcp.f32 %v9042_v21  ;;  %v2276_v1 = vadd.f32 %v2180_v49, %v2048_v37  ;;  %v9056_v25 = vadd.f32 %v2181_v10, %v2049_v33  ;;  %v9059_v39 = vmul.f32 %v4347_v62, %v8931_v8  ;;  %v4865_v47 = vpop.f32.mrf.mxu1 }
 0x3c5   :  { %vm4364_vm11 = vweird.f32 %v9036_v0  ;;  %v4368_v48 = vand.u32 2147483647, %v9036_v0  ;;  %v2507_v27 = vand.u32 7, %v2309_v28  ;;  %v4370_v31 = vand.u32 2147483648, %v9036_v0 }
 0x3c6   :  { %vm2724_vm10 = vcmp.eq.s32.totalorder %v2500_v29, 0  ;;  %v9740_v40 = vrot.slane %v8841_v16, 7  ;;  %v2816_v19 = vrot.slane %v9038_v13, 7  ;;  %v9069_v37 = vmul.f32 %v4387_v51, %v8944_v5 }
 0x3c7   :  { %vm4404_vm13 = vweird.f32 %v9042_v21  ;;  %vm9072_vm12 = vcmp.eq.s32.totalorder %v2507_v27, 0  ;;  %v4408_v46 = vand.u32 2147483647, %v9042_v21  ;;  %vm9080_vm1 = vcmp.eq.s32.totalorder %v2500_v29, 7 }
 0x3c8   :  { %v2815_v2 = vsel %vm2762_vm14, %v9740_v40, %v2814_v53  ;;  %v2817_v16 = vsel %vm2762_vm14, %v2814_v53, %v2816_v19  ;;  %vm9086_vm2 = vcmp.eq.s32.totalorder %v2507_v27, 7  ;;  %v3105_v24 = vrot.slane %v2276_v1, 1 }
 0x3c9   :  { %v2949_v33 = vsel %vm2724_vm10, 0.0, %v2815_v2  ;;  %v5212_v5 = vpop.eup %5211  ;;  %v2950_v50 = vsel %vm9072_vm12, 0.0, %v2817_v16  ;;  %v3107_v18 = vrot.slane %v9056_v25, 1  ;;  %v4410_v15 = vand.u32 2147483648, %v9042_v21 }
 0x3ca   :  { %v2981_v58 = vadd.f32 %v2949_v33, %v2243_v38  ;;  %v5214_v30 = vpop.eup %5213  ;;  %v4360_v42 = vmul.f32 %v5212_v5, %v9036_v0  ;;  %v4866_v45 = vadd.f32 %v9047_v12, %v4865_v47  ;;  %v2982_v49 = vadd.f32 %v2950_v50, %v2244_v44 }
 0x3cb   :  { %vm9094_vm3 = vcmp.eq.f32.partialorder %v4368_v48, 8.507059e+37  ;;  %v4400_v9 = vmul.f32 %v5214_v30, %v9042_v21  ;;  %v9749_v55 = vrot.slane %v8845_v59, 1  ;;  %v3108_v52 = vsel %vm3051_vm15, %v3105_v24, %v3107_v18 }
 0x3cc   :  { %v4361_v62 = vsub.f32 1.0, %v4360_v42  ;;  %vm4365_vm4 = vweird.f32 %v5212_v5  ;;  %4933 = vst.msk [vmem:[#allocation6 + $0x40] sm:$0xff] %vm104_vm0, %v4866_v45  ;;  %v3239_v28 = vsel %vm9086_vm2, 0.0, %v3108_v52  ;;  %vm4405_vm5 = vweird.f32 %v5214_v30 }
 0x3cd   :  { %v3106_v3 = vsel %vm3051_vm15, %v9749_v55, %v3105_v24  ;;  %v4401_v14 = vsub.f32 1.0, %v4400_v9  ;;  %v3271_v59 = vadd.f32 %v3239_v28, %v2982_v49  ;;  %v4371_v51 = vor.u32 1.1754944e-38, %v4370_v31  ;;  %vm9116_vm8 = vmor %vm4364_vm11, %vm4365_vm4 }
 0x3ce   :  { %v3238_v56 = vsel %vm9080_vm1, 0.0, %v3106_v3  ;;  %v4362_v53 = vmul.f32 %v5212_v5, %v4361_v62  ;;  %vm9110_vm6 = vcmp.eq.f32.partialorder %v4408_v46, 8.507059e+37  ;;  %v4411_v44 = vor.u32 1.1754944e-38, %v4410_v15  ;;  %vm9130_vm9 = vmor %vm4404_vm13, %vm4405_vm5  ;;  %v9169_v3 = vld [vmem:[#allocation2 + $0x128] sm:$0xff] }
 0x3cf   :  { %v3270_v29 = vadd.f32 %v3238_v56, %v2981_v58  ;;  %v4402_v48 = vmul.f32 %v5214_v30, %v4401_v14  ;;  %v9124_v40 = vadd.f32 %v8913_v54, %v3271_v59  ;;  %v1756_v31 = vmul.f32 %v8820_v22, %v6592_v32 }
 0x3d0   :  { %v4363_v2 = vadd.f32 %v5212_v5, %v4362_v53  ;;  %v1757_v0 = vmul.f32 %v8980_v36, %v6592_v32  ;;  %v1789_v33 = vmul.f32 %v8820_v22, %v6606_v11  ;;  %v1790_v46 = vmul.f32 %v8980_v36, %v6606_v11 }
 0x3d1   :  { %v9121_v27 = vadd.f32 %v8913_v54, %v3270_v29  ;;  %v4403_v16 = vadd.f32 %v5214_v30, %v4402_v48  ;;  %v1823_v21 = vmul.f32 %v8980_v36, %v6637_v26  ;;  %v1824_v43 = vmul.f32 %v9021_v7, %v6637_v26 }
 0x3d2   :  { %v4367_v47 = vsel %vm9116_vm8, %v5212_v5, %v4363_v2  ;;  %v9150_v50 = vmul.f32 0.70710677, %v9124_v40  ;;  %v1887_v63 = vmul.f32 %v6649_v60, %v8980_v36  ;;  %v1888_v24 = vmul.f32 %v9021_v7, %v6649_v60 }
 0x3d3   :  { %v9141_v58 = vmul.f32 0.70710677, %v9121_v27  ;;  %v4372_v42 = vsel %vm9094_vm3, %v4371_v51, %v4367_v47  ;;  %v4407_v15 = vsel %vm9130_vm9, %v5214_v30, %v4403_v16  ;;  %v1920_v5 = vmul.f32 %v6656_v34, %v8980_v36 }
 0x3d4   :  { %v4373_v49 = vmul.f32 %v4372_v42, %v9059_v39  ;;  %v4412_v9 = vsel %vm9110_vm6, %v4411_v44, %v4407_v15  ;;  %v4456_v55 = vmul.f32 %v9150_v50, %v9150_v50  ;;  %v1921_v10 = vmul.f32 %v9021_v7, %v6656_v34 }
 0x3d5   :  { %v4416_v45 = vmul.f32 %v9141_v58, %v9141_v58  ;;  %v4413_v30 = vmul.f32 %v4412_v9, %v9069_v37  ;;  %v1954_v62 = vmul.f32 %v9021_v7, %v6676_v20  ;;  %v1955_v39 = vmul.f32 %v6676_v20, %v9169_v3  ;;  %v5243_v9 = vld [vmem:[#allocation2 + $0xf8] sm:$0xff] }
 0x3d6   :  { %v5052_v56 = vclamps-f32 %v4373_v49, 1.0  ;;  %v9180_v28 = vmin.f32 %v4456_v55, 16.0  ;;  %v1985_v14 = vadd.f32 %v1887_v63, %v1756_v31  ;;  %v1986_v29 = vadd.f32 %v1888_v24, %v1757_v0 }
 0x3d7   :  { %v9174_v52 = vmin.f32 %v4416_v45, 16.0  ;;  %v5053_v59 = vclamps-f32 %v4413_v30, 1.0  ;;  %v9184_v38 = vadd.f32 %v1920_v5, %v1789_v33  ;;  %v9188_v48 = vadd.f32 %v1921_v10, %v1790_v46 }
 0x3d8   :  { %v4680_v37 = vadd.f32 1.0, %v5052_v56  ;;  %v4458_v44 = vmul.f32 2.1237322e-06, %v9180_v28  ;;  %v4469_v1 = vmul.f32 3.8918573e-05, %v9180_v28  ;;  %v2115_v31 = vmul.f32 %v6698_v17, %v9021_v7 }
 0x3d9   :  { %v4418_v53 = vmul.f32 2.1237322e-06, %v9174_v52  ;;  %v4429_v51 = vmul.f32 3.8918573e-05, %v9174_v52  ;;  %v4681_v2 = vadd.f32 1.0, %v5053_v59  ;;  %v2116_v33 = vmul.f32 %v6698_v17, %v9169_v3 }
 0x3da   :  { %v4712_v0 = vmul.f32 %v4680_v37, %v8949_v23  ;;  %v4459_v47 = vadd.f32 0.00028619796, %v4458_v44  ;;  %v4470_v63 = vadd.f32 0.001143296, %v4469_v1  ;;  %v2050_v15 = vadd.f32 %v1954_v62, %v1823_v21 }
 0x3db   :  { %v4419_v8 = vadd.f32 0.00028619796, %v4418_v53  ;;  %v4430_v16 = vadd.f32 0.001143296, %v4429_v51  ;;  %v4713_v24 = vmul.f32 %v4681_v2, %v9051_v57  ;;  %v2051_v49 = vadd.f32 %v1955_v39, %v1824_v43  ;;  %v9203_v57 = vld [vmem:[#allocation2 + $0x130] sm:$0xff] }
 0x3dc   :  { %v4460_v45 = vmul.f32 %v4459_v47, %v9180_v28  ;;  %v4471_v5 = vmul.f32 %v4470_v63, %v9180_v28  ;;  %v2148_v23 = vmul.f32 %v6706_v35, %v9021_v7  ;;  %v4744_v55 = vadd.f32 %v5243_v9, %v4712_v0 }
 0x3dd   :  { %v4420_v42 = vmul.f32 %v4419_v8, %v9174_v52  ;;  %v4431_v46 = vmul.f32 %v4430_v16, %v9174_v52  ;;  %v4745_v10 = vadd.f32 %v4713_v24, %v8660_v61  ;;  %v2213_v51 = vadd.f32 %v2115_v31, %v1985_v14 }
 0x3de   :  { %v4461_v59 = vadd.f32 0.0036580483, %v4460_v45  ;;  %v4472_v53 = vadd.f32 0.014752088, %v4471_v5  ;;  %v9205_v21 = vadd.f32 %v2116_v33, %v1986_v29  ;;  %v2149_v39 = vmul.f32 %v6706_v35, %v9169_v3 }
 0x3df   :  { %v4421_v30 = vadd.f32 0.0036580483, %v4420_v42  ;;  %v4432_v56 = vadd.f32 0.014752088, %v4431_v46  ;;  %v4764_v62 = vpack.c.bf16 %v4745_v10, %v4744_v55  ;;  %v2182_v1 = vmul.f32 %v8671_v41, %v9169_v3 }
 0x3e0   :  { %v4462_v44 = vmul.f32 %v4461_v59, %v9180_v28  ;;  %v4473_v61 = vmul.f32 %v4472_v53, %v9180_v28  ;;  %v2183_v14 = vmul.f32 %v8671_v41, %v9203_v57  ;;  %v2310_v8 = vadd.s32 224, %v6743_v4 }
 0x3e1   :  { %v4422_v37 = vmul.f32 %v4421_v30, %v9174_v52  ;;  %v4433_v43 = vmul.f32 %v4432_v56, %v9174_v52  ;;  %5080 = vmatmul.msk.bf16.gmra.mxu2 %vm1650_vm7, %v4764_v62  ;;  %v2311_v16 = vadd.s32 232, %v6743_v4  ;;  %v2818_v47 = vrot.slane %v2213_v51, 7 }
 0x3e2   :  { %v4463_v31 = vadd.f32 0.05243302, %v4462_v44  ;;  %v4474_v0 = vadd.f32 0.112945676, %v4473_v61  ;;  %v2820_v63 = vrot.slane %v9205_v21, 7  ;;  %v2514_v42 = vand.u32 7, %v2310_v8 }
 0x3e3   :  { %v4423_v29 = vadd.f32 0.05243302, %v4422_v37  ;;  %v4434_v2 = vadd.f32 0.112945676, %v4433_v43  ;;  %v2521_v46 = vand.u32 7, %v2311_v16  ;;  %v2278_v5 = vadd.f32 %v2182_v1, %v2050_v15  ;;  %v4867_v1 = vpop.f32.mrf.mxu1 }
 0x3e4   :  { %v4464_v41 = vmul.f32 %v4463_v31, %v9180_v28  ;;  %v4475_v45 = vmul.f32 %v4474_v0, %v9180_v28  ;;  %v9225_v9 = vadd.f32 %v2183_v14, %v2051_v49  ;;  %vm9227_vm11 = vcmp.eq.s32.totalorder %v2514_v42, 0 }
 0x3e5   :  { %v4424_v33 = vmul.f32 %v4423_v29, %v9174_v52  ;;  %v4435_v24 = vmul.f32 %v4434_v2, %v9174_v52  ;;  %v2819_v56 = vsel %vm2762_vm14, %v2816_v19, %v2818_v47  ;;  %vm9234_vm10 = vcmp.eq.s32.totalorder %v2521_v46, 0 }
 0x3e6   :  { %v4465_v59 = vadd.f32 0.18741608, %v4464_v41  ;;  %v4476_v53 = vadd.f32 0.4994258, %v4475_v45  ;;  %v2821_v15 = vsel %vm2762_vm14, %v2818_v47, %v2820_v63  ;;  %v2245_v62 = vadd.f32 %v2148_v23, %v9184_v38 }
 0x3e7   :  { %v4425_v55 = vadd.f32 0.18741608, %v4424_v33  ;;  %v4436_v10 = vadd.f32 0.4994258, %v4435_v24  ;;  %v2246_v19 = vadd.f32 %v2149_v39, %v9188_v48  ;;  %v2951_v43 = vsel %vm9227_vm11, 0.0, %v2819_v56 }
 0x3e8   :  { %v4477_v13 = vmul.f32 %v4476_v53, %v9180_v28  ;;  %v4466_v61 = vmul.f32 %v4465_v59, %v9180_v28  ;;  %v2952_v14 = vsel %vm9234_vm10, 0.0, %v2821_v15  ;;  %v3109_v29 = vrot.slane %v2278_v5, 1 }
 0x3e9   :  { %v4437_v49 = vmul.f32 %v4436_v10, %v9174_v52  ;;  %v4426_v37 = vmul.f32 %v4425_v55, %v9174_v52  ;;  %v4868_v38 = vadd.f32 %v9047_v12, %v4867_v1  ;;  %v3111_v52 = vrot.slane %v9225_v9, 1 }
 0x3ea   :  { %v4478_v2 = vadd.f32 1.0, %v4477_v13  ;;  %v2983_v23 = vadd.f32 %v2951_v43, %v2245_v62  ;;  %vm3015_vm13 = vcmp.eq.s32.totalorder %v2514_v42, 7  ;;  %v2984_v39 = vadd.f32 %v2952_v14, %v2246_v19 }
 0x3eb   :  { %v4438_v44 = vadd.f32 1.0, %v4437_v49  ;;  %v4427_v48 = vadd.f32 1.1283791, %v4426_v37  ;;  %4934 = vst.msk [vmem:[#allocation6 + $0x48] sm:$0xff] %vm104_vm0, %v4868_v38  ;;  %vm3016_vm12 = vcmp.eq.s32.totalorder %v2521_v46, 7  ;;  %v3110_v8 = vsel %vm3051_vm15, %v3107_v18, %v3109_v29  ;;  %v4870_v5 = vpop.f32.mrf.mxu1 }
 0x3ec   :  { %v4467_v28 = vadd.f32 1.1283791, %v4466_v61  ;;  %v9258_v16 = vmul.f32 0.5, %v9121_v27  ;;  %v9261_v31 = vmul.f32 0.5, %v9124_v40  ;;  %v3112_v0 = vsel %vm3051_vm15, %v3109_v29, %v3111_v52 }
 0x3ed   :  { %5215 = vrcp.f32 %v4438_v44  ;;  %v3240_v47 = vsel %vm3015_vm13, 0.0, %v3110_v8  ;;  %v4448_v33 = vand.u32 2147483647, %v4438_v44  ;;  %v4450_v24 = vand.u32 2147483648, %v4438_v44 }
 0x3ee   :  { %5217 = vrcp.f32 %v4478_v2  ;;  %v3241_v42 = vsel %vm3016_vm12, 0.0, %v3112_v0  ;;  %v3272_v46 = vadd.f32 %v3240_v47, %v2983_v23  ;;  %v4428_v41 = vmul.f32 %v4427_v48, %v9141_v58 }
 0x3ef   :  { %vm4444_vm1 = vweird.f32 %v4438_v44  ;;  %v3273_v25 = vadd.f32 %v3241_v42, %v2984_v39  ;;  %v1758_v18 = vmul.f32 %v9021_v7, %v6592_v32  ;;  %v4468_v40 = vmul.f32 %v4467_v28, %v9150_v50 }
 0x3f0   :  { %vm4484_vm2 = vweird.f32 %v4478_v2  ;;  %v4488_v45 = vand.u32 2147483647, %v4478_v2  ;;  %v9271_v55 = vadd.f32 %v8913_v54, %v3272_v46  ;;  %v4490_v56 = vand.u32 2147483648, %v4478_v2 }
 0x3f1   :  { %v4871_v59 = vadd.f32 %v9047_v12, %v4870_v5  ;;  %v9275_v58 = vadd.f32 %v8913_v54, %v3273_v25  ;;  %vm9277_vm3 = vcmp.eq.f32.partialorder %v4448_v33, 8.507059e+37  ;;  %v4451_v51 = vor.u32 1.1754944e-38, %v4450_v24 }
 0x3f2   :  { %v9282_v15 = vmul.f32 0.70710677, %v9271_v55  ;;  %v1759_v37 = vmul.f32 %v9169_v3, %v6592_v32  ;;  %vm9290_vm6 = vcmp.eq.f32.partialorder %v4488_v45, 8.507059e+37  ;;  %v4491_v1 = vor.u32 1.1754944e-38, %v4490_v56 }
 0x3f3   :  { %v5216_v27 = vpop.eup %5215  ;;  %4935 = vst.msk [vmem:[#allocation6 + $0x50] sm:$0xff] %vm104_vm0, %v4871_v59  ;;  %v9286_v62 = vmul.f32 0.70710677, %v9275_v58  ;;  %v1791_v29 = vmul.f32 %v9021_v7, %v6606_v11  ;;  %v9309_v48 = vmul.f32 %v9169_v3, %v6606_v11  ;;  %v9313_v39 = vmul.f32 %v9169_v3, %v6637_v26 }
 0x3f4   :  { %v5218_v10 = vpop.eup %5217  ;;  %v4440_v30 = vmul.f32 %v5216_v27, %v4438_v44  ;;  %vm4445_vm4 = vweird.f32 %v5216_v27  ;;  %v4496_v43 = vmul.f32 %v9282_v15, %v9282_v15  ;;  %v1889_v0 = vmul.f32 %v6649_v60, %v9169_v3 }
 0x3f5   :  { %v4480_v50 = vmul.f32 %v5218_v10, %v4478_v2  ;;  %vm4485_vm5 = vweird.f32 %v5218_v10  ;;  %v4536_v14 = vmul.f32 %v9286_v62, %v9286_v62  ;;  %vm9301_vm8 = vmor %vm4444_vm1, %vm4445_vm4  ;;  %v1890_v47 = vmul.f32 %v9203_v57, %v6649_v60 }
 0x3f6   :  { %v4441_v49 = vsub.f32 1.0, %v4440_v30  ;;  %v9305_v23 = vmin.f32 %v4496_v43, 16.0  ;;  %vm9316_vm9 = vmor %vm4484_vm2, %vm4485_vm5  ;;  %v1922_v2 = vmul.f32 %v6656_v34, %v9169_v3  ;;  %v1923_v25 = vmul.f32 %v9203_v57, %v6656_v34 }
 0x3f7   :  { %v4481_v13 = vsub.f32 1.0, %v4480_v50  ;;  %v9320_v44 = vmin.f32 %v4536_v14, 16.0  ;;  %v1987_v34 = vadd.f32 %v1889_v0, %v1758_v18  ;;  %v1988_v8 = vadd.f32 %v1890_v47, %v1759_v37 }
 0x3f8   :  { %v4442_v61 = vmul.f32 %v5216_v27, %v4441_v49  ;;  %v4498_v33 = vmul.f32 2.1237322e-06, %v9305_v23  ;;  %v4509_v26 = vmul.f32 3.8918573e-05, %v9305_v23  ;;  %v2312_v37 = vadd.s32 240, %v6743_v4 }
 0x3f9   :  { %v4482_v38 = vmul.f32 %v5218_v10, %v4481_v13  ;;  %v4538_v42 = vmul.f32 2.1237322e-06, %v9320_v44  ;;  %v4549_v46 = vmul.f32 3.8918573e-05, %v9320_v44 }
 0x3fa   :  { %v4443_v28 = vadd.f32 %v5216_v27, %v4442_v61  ;;  %v4499_v5 = vadd.f32 0.00028619796, %v4498_v33  ;;  %v4510_v30 = vadd.f32 0.001143296, %v4509_v26 }
 0x3fb   :  { %v4483_v11 = vadd.f32 %v5218_v10, %v4482_v38  ;;  %v4550_v50 = vadd.f32 0.001143296, %v4549_v46 }
 0x3fc   :  { %v4447_v24 = vsel %vm9301_vm8, %v5216_v27, %v4443_v28  ;;  %v4539_v27 = vadd.f32 0.00028619796, %v4538_v42  ;;  %v4500_v13 = vmul.f32 %v4499_v5, %v9305_v23  ;;  %v4511_v43 = vmul.f32 %v4510_v30, %v9305_v23 }
 0x3fd   :  { %v4452_v60 = vsel %vm9277_vm3, %v4451_v51, %v4447_v24  ;;  %v4487_v45 = vsel %vm9316_vm9, %v5218_v10, %v4483_v11  ;;  %v4551_v51 = vmul.f32 %v4550_v50, %v9320_v44  ;;  %v2085_v10 = vld [vmem:[#allocation2 + $0x138] sm:$0xff]  ;;  %v2019_v30 = vadd.f32 %v1922_v2, %v1791_v29 }
 0x3fe   :  { %v4453_v56 = vmul.f32 %v4452_v60, %v4428_v41  ;;  %v4492_v59 = vsel %vm9290_vm6, %v4491_v1, %v4487_v45  ;;  %v4540_v53 = vmul.f32 %v4539_v27, %v9320_v44  ;;  %v2117_v41 = vmul.f32 %v6698_v17, %v9203_v57 }
 0x3ff   :  { %v4493_v49 = vmul.f32 %v4492_v59, %v4468_v40  ;;  %v4501_v19 = vadd.f32 0.0036580483, %v4500_v13  ;;  %v4512_v1 = vadd.f32 0.014752088, %v4511_v43  ;;  %v1956_v40 = vmul.f32 %v9203_v57, %v6676_v20 }
 0x400   :  { %v5054_v61 = vclamps-f32 %v4453_v56, 1.0  ;;  %v4541_v38 = vadd.f32 0.0036580483, %v4540_v53  ;;  %v4552_v28 = vadd.f32 0.014752088, %v4551_v51  ;;  %v2118_v33 = vmul.f32 %v6698_v17, %v2085_v10 }
 0x401   :  { %v5055_v14 = vclamps-f32 %v4493_v49, 1.0  ;;  %v4502_v0 = vmul.f32 %v4501_v19, %v9305_v23  ;;  %v4513_v11 = vmul.f32 %v4512_v1, %v9305_v23  ;;  %v2215_v46 = vadd.f32 %v2117_v41, %v1987_v34 }
 0x402   :  { %v4682_v32 = vadd.f32 1.0, %v5054_v61  ;;  %v4542_v24 = vmul.f32 %v4541_v38, %v9320_v44  ;;  %v4553_v42 = vmul.f32 %v4552_v28, %v9320_v44  ;;  %v2313_v56 = vadd.s32 248, %v6743_v4 }
 0x403   :  { %v4683_v18 = vadd.f32 1.0, %v5055_v14  ;;  %v4503_v60 = vadd.f32 0.05243302, %v4502_v0  ;;  %v4514_v45 = vadd.f32 0.112945676, %v4513_v11  ;;  %v2216_v27 = vadd.f32 %v2118_v33, %v1988_v8  ;;  %v4872_v8 = vpop.f32.mrf.mxu1 }
 0x404   :  { %v4714_v26 = vmul.f32 %v4682_v32, %v9258_v16  ;;  %v4543_v47 = vadd.f32 0.05243302, %v4542_v24  ;;  %v4554_v5 = vadd.f32 0.112945676, %v4553_v42  ;;  %v2528_v49 = vand.u32 7, %v2312_v37 }
 0x405   :  { %v4715_v20 = vmul.f32 %v4683_v18, %v9261_v31  ;;  %v4515_v59 = vmul.f32 %v4514_v45, %v9305_v23  ;;  %v4504_v50 = vmul.f32 %v4503_v60, %v9305_v23  ;;  %v2822_v13 = vrot.slane %v2215_v46, 7 }
 0x406   :  { %v4746_v17 = vadd.f32 %v4714_v26, %v8801_v6  ;;  %v4555_v31 = vmul.f32 %v4554_v5, %v9320_v44  ;;  %v4544_v61 = vmul.f32 %v4543_v47, %v9320_v44  ;;  %v2535_v29 = vand.u32 7, %v2313_v56 }
 0x407   :  { %v4747_v16 = vadd.f32 %v4715_v20, %v8820_v22  ;;  %v4516_v34 = vadd.f32 0.4994258, %v4515_v59  ;;  %v2052_v4 = vadd.f32 %v1956_v40, %v9313_v39  ;;  %v2150_v6 = vmul.f32 %v6706_v35, %v9203_v57  ;;  %v5244_v22 = vld [vmem:[%s9514_s3 + $0x8] ss:$0 sm:$0xff] }
 0x408   :  { %v4556_v2 = vadd.f32 0.4994258, %v4555_v31  ;;  %v2184_v53 = vmul.f32 %v5244_v22, %v2085_v10  ;;  %v2020_v41 = vadd.f32 %v1923_v25, %v9309_v48  ;;  %v2151_v14 = vmul.f32 %v6706_v35, %v2085_v10 }
 0x409   :  { %v4765_v43 = vpack.c.bf16 %v4747_v16, %v4746_v17  ;;  %v4517_v51 = vmul.f32 %v4516_v34, %v9305_v23  ;;  %v2824_v19 = vrot.slane %v2216_v27, 7  ;;  %v4505_v1 = vadd.f32 0.18741608, %v4504_v50 }
 0x40a   :  { %v4557_v39 = vmul.f32 %v4556_v2, %v9320_v44  ;;  %vm9376_vm11 = vcmp.eq.s32.totalorder %v2528_v49, 0  ;;  %v2823_v32 = vsel %vm2762_vm14, %v2820_v63, %v2822_v13  ;;  %v4545_v28 = vadd.f32 0.18741608, %v4544_v61 }
 0x40b   :  { %5081 = vmatmul.msk.bf16.gmra.mxu2 %vm1650_vm7, %v4765_v43  ;;  %v4518_v38 = vadd.f32 1.0, %v4517_v51  ;;  %vm9383_vm10 = vcmp.eq.s32.totalorder %v2535_v29, 0  ;;  %v2825_v35 = vsel %vm2762_vm14, %v2822_v13, %v2824_v19  ;;  %v4873_v25 = vadd.f32 %v9047_v12, %v4872_v8  ;;  %v4875_v5 = vpop.f32.mrf.mxu1 }
 0x40c   :  { %v4558_v48 = vadd.f32 1.0, %v4557_v39  ;;  %v2247_v10 = vadd.f32 %v2150_v6, %v2019_v30  ;;  %v2280_v0 = vadd.f32 %v2184_v53, %v2052_v4  ;;  %v2248_v11 = vadd.f32 %v2151_v14, %v2020_v41 }
 0x40d   :  { %5219 = vrcp.f32 %v4518_v38  ;;  %v2953_v21 = vsel %vm9376_vm11, 0.0, %v2823_v32  ;;  %v4506_v63 = vmul.f32 %v4505_v1, %v9305_v23  ;;  %4936 = vst.msk [vmem:[#allocation6 + $0x58] sm:$0xff] %vm104_vm0, %v4873_v25  ;;  %v2954_v33 = vsel %vm9383_vm10, 0.0, %v2825_v35 }
 0x40e   :  { %5221 = vrcp.f32 %v4558_v48  ;;  %v4546_v26 = vmul.f32 %v4545_v28, %v9320_v44  ;;  %v2985_v24 = vadd.f32 %v2953_v21, %v2247_v10  ;;  %vm9396_vm14 = vcmp.eq.s32.totalorder %v2528_v49, 7 }
 0x40f   :  { %vm9400_vm13 = vcmp.eq.s32.totalorder %v2535_v29, 7  ;;  %v3113_v20 = vrot.slane %v2280_v0, 1  ;;  %v2986_v60 = vadd.f32 %v2954_v33, %v2248_v11  ;;  %v4507_v23 = vadd.f32 1.1283791, %v4506_v63 }
 0x410   :  { %vm4524_vm12 = vweird.f32 %v4518_v38  ;;  %v4547_v44 = vadd.f32 1.1283791, %v4546_v26  ;;  %v4528_v59 = vand.u32 2147483647, %v4518_v38  ;;  %v4876_v27 = vadd.f32 %v9047_v12, %v4875_v5 }
 0x411   :  { %v3114_v45 = vsel %vm3051_vm15, %v3111_v52, %v3113_v20  ;;  %v3147_v37 = vsel %vm3051_vm15, %v3113_v20, 0.0  ;;  %v4530_v50 = vand.u32 2147483648, %v4518_v38  ;;  %vm4564_vm1 = vweird.f32 %v4558_v48 }
 0x412   :  { %v3242_v30 = vsel %vm9396_vm14, 0.0, %v3114_v45  ;;  %v3243_v56 = vsel %vm9400_vm13, 0.0, %v3147_v37  ;;  %v4570_v13 = vand.u32 2147483648, %v4558_v48  ;;  %4937 = vst.msk [vmem:[#allocation6 + $0x60] sm:$0xff] %vm104_vm0, %v4876_v27  ;;  %v4568_v61 = vand.u32 2147483647, %v4558_v48 }
 0x413   :  { %v5220_v47 = vpop.eup %5219  ;;  %v3274_v9 = vadd.f32 %v3242_v30, %v2985_v24  ;;  %v3275_v31 = vadd.f32 %v3243_v56, %v2986_v60  ;;  %v4508_v6 = vmul.f32 %v4507_v23, %v9282_v15  ;;  %v4531_v53 = vor.u32 1.1754944e-38, %v4530_v50 }
 0x414   :  { %v5222_v17 = vpop.eup %5221  ;;  %v4520_v16 = vmul.f32 %v5220_v47, %v4518_v38  ;;  %vm4525_vm15 = vweird.f32 %v5220_v47  ;;  %vm4529_vm4 = vcmp.eq.f32.partialorder %v4528_v59, 8.507059e+37  ;;  %v4548_v15 = vmul.f32 %v4547_v44, %v9286_v62 }
 0x415   :  { %v4560_v52 = vmul.f32 %v5222_v17, %v4558_v48  ;;  %v9415_v43 = vadd.f32 %v8913_v54, %v3274_v9  ;;  %vm4565_vm2 = vweird.f32 %v5222_v17  ;;  %v9418_v29 = vadd.f32 %v8913_v54, %v3275_v31  ;;  %vm9425_vm3 = vmor %vm4524_vm12, %vm4525_vm15 }
 0x416   :  { %v4521_v49 = vsub.f32 1.0, %v4520_v16  ;;  %vm4566_vm5 = vmor %vm4564_vm1, %vm4565_vm2  ;;  %v4571_v54 = vor.u32 1.1754944e-38, %v4570_v13  ;;  %vm4569_vm6 = vcmp.eq.f32.partialorder %v4568_v61, 8.507059e+37  ;;  %v3340_v11 = vmul.f32 0.5, %v9271_v55 }
 0x417   :  { %v4561_v34 = vsub.f32 1.0, %v4560_v52  ;;  %v9421_v4 = vmul.f32 0.70710677, %v9415_v43  ;;  %v9430_v41 = vmul.f32 0.70710677, %v9418_v29  ;;  %v3341_v23 = vmul.f32 0.5, %v9275_v58 }
 0x418   :  { %v4522_v2 = vmul.f32 %v5220_v47, %v4521_v49 }
 0x419   :  { %v4562_v51 = vmul.f32 %v5222_v17, %v4561_v34  ;;  %v4576_v19 = vmul.f32 %v9421_v4, %v9421_v4  ;;  %v4616_v39 = vmul.f32 %v9430_v41, %v9430_v41 }
 0x41a   :  { %v4523_v14 = vadd.f32 %v5220_v47, %v4522_v2 }
 0x41b   :  { %v4563_v1 = vadd.f32 %v5222_v17, %v4562_v51  ;;  %v9440_v32 = vmin.f32 %v4576_v19, 16.0  ;;  %v4617_v8 = vmin.f32 %v4616_v39, 16.0  ;;  %v4885_v19 = vpop.f32.mrf.mxu2 }
 0x41c   :  { %v4527_v40 = vsel %vm9425_vm3, %v5220_v47, %v4523_v14 }
 0x41d   :  { %v4532_v38 = vsel %vm4529_vm4, %v4531_v53, %v4527_v40  ;;  %v4567_v28 = vsel %vm4566_vm5, %v5222_v17, %v4563_v1  ;;  %v4578_v48 = vmul.f32 2.1237322e-06, %v9440_v32  ;;  %v4589_v25 = vmul.f32 3.8918573e-05, %v9440_v32 }
 0x41e   :  { %v4533_v18 = vmul.f32 %v4532_v38, %v4508_v6  ;;  %v4572_v35 = vsel %vm4569_vm6, %v4571_v54, %v4567_v28  ;;  %v4618_v10 = vmul.f32 2.1237322e-06, %v4617_v8  ;;  %v4629_v0 = vmul.f32 3.8918573e-05, %v4617_v8  ;;  %v4877_v54 = vpop.f32.mrf.mxu1 }
 0x41f   :  { %v4573_v62 = vmul.f32 %v4572_v35, %v4548_v15  ;;  %v4579_v63 = vadd.f32 0.00028619796, %v4578_v48  ;;  %v4590_v33 = vadd.f32 0.001143296, %v4589_v25  ;;  %v4878_v39 = vadd.f32 %v9047_v12, %v4877_v54 }
 0x420   :  { %v5056_v21 = vclamps-f32 %v4533_v18, 1.0  ;;  %v4619_v24 = vadd.f32 0.00028619796, %v4618_v10  ;;  %v4630_v42 = vadd.f32 0.001143296, %v4629_v0  ;;  %v4886_v40 = vadd.f32 %v9047_v12, %v4885_v19 }
 0x421   :  { %v5057_v26 = vclamps-f32 %v4573_v62, 1.0  ;;  %v4580_v20 = vmul.f32 %v4579_v63, %v9440_v32  ;;  %v4591_v60 = vmul.f32 %v4590_v33, %v9440_v32  ;;  %4938 = vst.msk [vmem:[#allocation6 + $0x68] sm:$0xff] %vm104_vm0, %v4878_v39 }
 0x422   :  { %v4684_v46 = vadd.f32 1.0, %v5056_v21  ;;  %v4620_v37 = vmul.f32 %v4619_v24, %v4617_v8  ;;  %v4631_v47 = vmul.f32 %v4630_v42, %v4617_v8  ;;  %4941 = vst.msk [vmem:[#allocation6 + $0x80] sm:$0xff] %vm104_vm0, %v4886_v40  ;;  %v5245_v40 = vld [vmem:[%s9517_s6] ss:$0 sm:$0xff]  ;;  %s5302_s6 = smov [#allocation6]  }
 0x423   :  { %v4685_v45 = vadd.f32 1.0, %v5057_v26  ;;  %v4581_v5 = vadd.f32 0.0036580483, %v4580_v20  ;;  %v4592_v30 = vadd.f32 0.014752088, %v4591_v60  ;;  %v4887_v25 = vpop.f32.mrf.mxu2  ;;  %s4961_s16 = sshll.u32 %s5302_s6, 4  ;;  %s4962_s16 = int_to_ptr.vmem [resolvable:$true] %s4961_s16 }
 0x424   :  { %v4716_v44 = vmul.f32 %v4684_v46, %v3340_v11  ;;  %v4621_v56 = vadd.f32 0.0036580483, %v4620_v37  ;;  %v4632_v17 = vadd.f32 0.014752088, %v4631_v47  ;;  %v4888_v21 = vadd.f32 %v9047_v12, %v4887_v25 }
 0x425   :  { %v4717_v55 = vmul.f32 %v4685_v45, %v3341_v23  ;;  %v4582_v16 = vmul.f32 %v4581_v5, %v9440_v32  ;;  %v4593_v59 = vmul.f32 %v4592_v30, %v9440_v32 }
 0x426   :  { %v4748_v27 = vadd.f32 %v4716_v44, %v8980_v36  ;;  %v4622_v50 = vmul.f32 %v4621_v56, %v4617_v8  ;;  %v4633_v52 = vmul.f32 %v4632_v17, %v4617_v8  ;;  %v4880_v48 = vpop.f32.mrf.mxu1  ;;  %4942 = vst.msk [vmem:[#allocation6 + $0x88] sm:$0xff] %vm104_vm0, %v4888_v21 }
 0x427   :  { %v4749_v9 = vadd.f32 %v4717_v55, %v9021_v7  ;;  %v4594_v58 = vadd.f32 0.112945676, %v4593_v59  ;;  %v4583_v49 = vadd.f32 0.05243302, %v4582_v16  ;;  %v4881_v11 = vadd.f32 %v9047_v12, %v4880_v48 }
 0x428   :  { %v4634_v13 = vadd.f32 0.112945676, %v4633_v52  ;;  %v4623_v61 = vadd.f32 0.05243302, %v4622_v50 }
 0x429   :  { %v4766_v31 = vpack.c.bf16 %v4749_v9, %v4748_v27  ;;  %v4595_v34 = vmul.f32 %v4594_v58, %v9440_v32  ;;  %v4584_v22 = vmul.f32 %v4583_v49, %v9440_v32  ;;  %4939 = vst.msk [vmem:[#allocation6 + $0x70] sm:$0xff] %vm104_vm0, %v4881_v11 }
 0x42a   :  { %v4635_v2 = vmul.f32 %v4634_v13, %v4617_v8  ;;  %v4624_v51 = vmul.f32 %v4623_v61, %v4617_v8 }
 0x42b   :  { %5082 = vmatmul.msk.bf16.gmra.mxu2 %vm1650_vm7, %v4766_v31  ;;  %v4596_v6 = vadd.f32 0.4994258, %v4595_v34  ;;  %v4585_v15 = vadd.f32 0.18741608, %v4584_v22  ;;  %v4890_v56 = vpop.f32.mrf.mxu2  ;;  %v3343_v31 = vmul.f32 0.5, %v9418_v29 }
 0x42c   :  { %v4636_v53 = vadd.f32 0.4994258, %v4635_v2  ;;  %v4625_v38 = vadd.f32 0.18741608, %v4624_v51  ;;  %v4891_v59 = vadd.f32 %v9047_v12, %v4890_v56 }
 0x42d   :  { %v4597_v36 = vmul.f32 %v4596_v6, %v9440_v32  ;;  %v4586_v28 = vmul.f32 %v4585_v15, %v9440_v32 }
 0x42e   :  { %v4637_v7 = vmul.f32 %v4636_v53, %v4617_v8  ;;  %v4626_v18 = vmul.f32 %v4625_v38, %v4617_v8  ;;  %v4882_v55 = vpop.f32.mrf.mxu1  ;;  %4943 = vst.msk [vmem:[#allocation6 + $0x90] sm:$0xff] %vm104_vm0, %v4891_v59 }
 0x42f   :  { %v4598_v14 = vadd.f32 1.0, %v4597_v36  ;;  %v4587_v10 = vadd.f32 1.1283791, %v4586_v28  ;;  %v4883_v16 = vadd.f32 %v9047_v12, %v4882_v55 }
 0x430   :  { %v4638_v1 = vadd.f32 1.0, %v4637_v7  ;;  %v4627_v33 = vadd.f32 1.1283791, %v4626_v18 }
 0x431   :  { %5223 = vrcp.f32 %v4598_v14  ;;  %vm4604_vm8 = vweird.f32 %v4598_v14  ;;  %v4610_v63 = vand.u32 2147483648, %v4598_v14  ;;  %v4608_v42 = vand.u32 2147483647, %v4598_v14  ;;  %4940 = vst.msk [vmem:[#allocation6 + $0x78] sm:$0xff] %vm104_vm0, %v4883_v16 }
 0x432   :  { %5225 = vrcp.f32 %v4638_v1  ;;  %v4650_v46 = vand.u32 2147483648, %v4638_v1  ;;  %vm4644_vm11 = vweird.f32 %v4638_v1  ;;  %v4648_v8 = vand.u32 2147483647, %v4638_v1 }
 0x433   :  { %v4611_v23 = vor.u32 1.1754944e-38, %v4610_v63  ;;  %v4588_v37 = vmul.f32 %v4587_v10, %v9421_v4  ;;  %vm4609_vm13 = vcmp.eq.f32.partialorder %v4608_v42, 8.507059e+37  ;;  %v4628_v5 = vmul.f32 %v4627_v33, %v9430_v41  ;;  %v4892_v61 = vpop.f32.mrf.mxu2 }
 0x434   :  { %v4651_v44 = vor.u32 1.1754944e-38, %v4650_v46  ;;  %vm4649_vm1 = vcmp.eq.f32.partialorder %v4648_v8, 8.507059e+37  ;;  %v3342_v41 = vmul.f32 0.5, %v9415_v43  ;;  %v4893_v6 = vadd.f32 %v9047_v12, %v4892_v61 }
 0x436   :  { %4944 = vst.msk [vmem:[#allocation6 + $0x98] sm:$0xff] %vm104_vm0, %v4893_v6 }
 0x437   :  { %v5224_v35 = vpop.eup %5223 }
 0x438   :  { %v5226_v62 = vpop.eup %5225  ;;  %v4600_v0 = vmul.f32 %v5224_v35, %v4598_v14  ;;  %vm4605_vm9 = vweird.f32 %v5224_v35 }
 0x439   :  { %v4640_v26 = vmul.f32 %v5226_v62, %v4638_v1  ;;  %vm4645_vm10 = vweird.f32 %v5226_v62  ;;  %vm9466_vm14 = vmor %vm4604_vm8, %vm4605_vm9 }
 0x43a   :  { %v4601_v24 = vsub.f32 1.0, %v4600_v0  ;;  %vm4646_vm12 = vmor %vm4644_vm11, %vm4645_vm10 }
 0x43b   :  { %v4641_v32 = vsub.f32 1.0, %v4640_v26  ;;  %v4895_v43 = vpop.f32.mrf.mxu2 }
 0x43c   :  { %v4602_v20 = vmul.f32 %v5224_v35, %v4601_v24  ;;  %v4896_v29 = vadd.f32 %v9047_v12, %v4895_v43 }
 0x43d   :  { %v4642_v45 = vmul.f32 %v5226_v62, %v4641_v32 }
 0x43e   :  { %v4603_v47 = vadd.f32 %v5224_v35, %v4602_v20  ;;  %4945 = vst.msk [vmem:[#allocation6 + $0xa0] sm:$0xff] %vm104_vm0, %v4896_v29 }
 0x43f   :  { %v4643_v30 = vadd.f32 %v5226_v62, %v4642_v45 }
 0x440   :  { %v4607_v17 = vsel %vm9466_vm14, %v5224_v35, %v4603_v47 }
 0x441   :  { %v4612_v27 = vsel %vm4609_vm13, %v4611_v23, %v4607_v17  ;;  %v4647_v9 = vsel %vm4646_vm12, %v5226_v62, %v4643_v30 }
 0x442   :  { %v4613_v4 = vmul.f32 %v4612_v27, %v4588_v37  ;;  %v4652_v50 = vsel %vm4649_vm1, %v4651_v44, %v4647_v9 }
 0x443   :  { %v4653_v52 = vmul.f32 %v4652_v50, %v4628_v5  ;;  %v4897_v7 = vpop.f32.mrf.mxu2 }
 0x444   :  { %v5058_v58 = vclamps-f32 %v4613_v4, 1.0  ;;  %v4898_v14 = vadd.f32 %v9047_v12, %v4897_v7 }
 0x445   :  { %v5059_v49 = vclamps-f32 %v4653_v52, 1.0 }
 0x446   :  { %v4686_v13 = vadd.f32 1.0, %v5058_v58  ;;  %4946 = vst.msk [vmem:[#allocation6 + $0xa8] sm:$0xff] %vm104_vm0, %v4898_v14 }
 0x447   :  { %v4687_v34 = vadd.f32 1.0, %v5059_v49 }
 0x448   :  { %v4718_v2 = vmul.f32 %v4686_v13, %v3342_v41 }
 0x449   :  { %v4719_v22 = vmul.f32 %v4687_v34, %v3343_v31 }
 0x44a   :  { %v4750_v53 = vadd.f32 %v4718_v2, %v9169_v3 }
 0x44b   :  { %v4751_v36 = vadd.f32 %v4719_v22, %v9203_v57  ;;  %v4900_v54 = vpop.f32.mrf.mxu2 }
 0x44c   :  { %v4901_v3 = vadd.f32 %v9047_v12, %v4900_v54 }
 0x44d   :  { %v4767_v51 = vpack.c.bf16 %v4751_v36, %v4750_v53 }
 0x44e   :  { %4947 = vst.msk [vmem:[#allocation6 + $0xb0] sm:$0xff] %vm104_vm0, %v4901_v3 }
 0x44f   :  { %5083 = vmatmul.msk.bf16.gmra.mxu2 %vm1650_vm7, %v4767_v51 }
 0x453   :  { %v4902_v19 = vpop.f32.mrf.mxu2 }
 0x454   :  { %v4903_v57 = vadd.f32 %v9047_v12, %v4902_v19 }
 0x456   :  { %4948 = vst.msk [vmem:[#allocation6 + $0xb8] sm:$0xff] %vm104_vm0, %v4903_v57 }
 0x464   :  { %v4905_v15 = vpop.f32.mrf.mxu2 }
 0x465   :  { %v4906_v1 = vadd.f32 %v9047_v12, %v4905_v15 }
 0x467   :  { %4949 = vst.msk [vmem:[#allocation6 + $0xc0] sm:$0xff] %vm104_vm0, %v4906_v1 }
 0x46c   :  { %v4907_v39 = vpop.f32.mrf.mxu2 }
 0x46d   :  { %v4908_v38 = vadd.f32 %v5245_v40, %v4907_v39 }
 0x46f   :  { %4950 = vst.msk [vmem:[#allocation6 + $0xc8] sm:$0xff] %vm104_vm0, %v4908_v38 }
 0x48e   :  { %v4910_v28 = vpop.f32.mrf.mxu2 }
 0x48f   :  { %v4911_v18 = vadd.f32 %v5245_v40, %v4910_v28 }
 0x491   :  { %4951 = vst.msk [vmem:[#allocation6 + $0xd0] sm:$0xff] %vm104_vm0, %v4911_v18 }
 0x496   :  { %v4912_v35 = vpop.f32.mrf.mxu2 }
 0x497   :  { %v4913_v48 = vadd.f32 %v5245_v40, %v4912_v35 }
 0x499   :  { %4952 = vst.msk [vmem:[#allocation6 + $0xd8] sm:$0xff] %vm104_vm0, %v4913_v48 }
 0x4ae   :  { %v4915_v25 = vpop.f32.mrf.mxu2 }
 0x4af   :  { %v4916_v12 = vadd.f32 %v5245_v40, %v4915_v25 }
 0x4b1   :  { %4953 = vst.msk [vmem:[#allocation6 + $0xe0] sm:$0xff] %vm104_vm0, %v4916_v12 }
 0x4b6   :  { %v4917_v62 = vpop.f32.mrf.mxu2 }
 0x4b7   :  { %v4918_v10 = vadd.f32 %v5245_v40, %v4917_v62 }
 0x4b9   :  { %4954 = vst.msk [vmem:[#allocation6 + $0xe8] sm:$0xff] %vm104_vm0, %v4918_v10 }
 0x4d2   :  { %v4920_v0 = vpop.f32.mrf.mxu2 }
 0x4d3   :  { %v4921_v11 = vadd.f32 %v5245_v40, %v4920_v0 }
 0x4d5   :  { %4955 = vst.msk [vmem:[#allocation6 + $0xf0] sm:$0xff] %vm104_vm0, %v4921_v11 }
 0x4da   :  { %v4922_v21 = vpop.f32.mrf.mxu2 }
 0x4db   :  { %v4923_v63 = vadd.f32 %v5245_v40, %v4922_v21 }
 0x4dd   :  { %4956 = vst.msk [vmem:[#allocation6 + $0xf8] sm:$0xff] %vm104_vm0, %v4923_v63 }
 0x4de   :  { %4969 = dma.vmem_to_hbm [thread:$0]  %s4962_s16, 4096, %s4964_s18, [#allocation5], %s5299_s29, %s5299_s29, %s5300_s30  }
 0x4df   :  { %5296 = dma.done.wait [#allocation5], 4096  }
 0x4e0   :  { %5297 = vsyncadd [#allocation5], 4294963200 }
 0x4e1   :  { %4974 = vsyncpa [#allocation4], 1 }
 0x4e2   :  { %4975 = vsyncpa [#allocation5], 1 }

</bundles_post_ra>
